<compile_context>
chip_gen: v7x
topology: tpu7x:2x2x1
jax: 0.10.0
libtpu: 0.0.40
codegen_flags: <defaults>
</compile_context>

<pallas_src>
import functools

import numpy as np
import jax
import jax.numpy as jnp
from jax.experimental import pallas as pl
from jax.experimental.pallas import tpu as pltpu


def _round_up(x, m):
    return (x + m - 1) // m * m


# -----------------------------------------------------------------------------
# Pallas kernel: matmul + fused 2x2 max-pool (lane-group max) + bias + ReLU
# -----------------------------------------------------------------------------
def _fused_mm_kernel(x_ref, w_ref, b_ref, o_ref, *, n_pool, apply_relu):
    # x_ref: (tm, K) bf16   w_ref: (K, n_pool*G) bf16   b_ref: (1, G) f32
    # o_ref: (tm, G).  Pool candidates live in n_pool aligned 128-multiple
    # lane groups of the matmul result.
    y = jnp.dot(x_ref[...], w_ref[...], preferred_element_type=jnp.float32)
    G = o_ref.shape[-1]
    p = y[:, :G]
    for g in range(1, n_pool):                       # fused 2x2 max-pool
        p = jnp.maximum(p, y[:, g * G:(g + 1) * G])
    p = p + b_ref[...]                               # bias is pool-invariant
    if apply_relu:
        p = jnp.maximum(p, 0.0)
    o_ref[...] = p.astype(o_ref.dtype)


def _pick_tile_m(m, target):
    """Largest sensible M tile; prefer >=2 grid steps (v7x dual TensorCore)."""
    if m > target:
        return target                                # target is a multiple of 8
    half = _round_up(pl.cdiv(m, 2), 8)
    return half if half < m else m


def fused_matmul(x, w, b, *, n_pool, apply_relu, out_dtype, tile_m):
    """x (M, K) @ w (K, n_pool*G) -> max over pool groups -> +b -> relu -> (M, G)."""
    M, K = x.shape
    N = w.shape[1]
    G = N // n_pool
    tm = _pick_tile_m(M, tile_m)
    kernel = functools.partial(_fused_mm_kernel, n_pool=n_pool,
                               apply_relu=apply_relu)
    return pl.pallas_call(
        kernel,
        out_shape=jax.ShapeDtypeStruct((M, G), out_dtype),
        grid=(pl.cdiv(M, tm),),
        in_specs=[
            pl.BlockSpec((tm, K), lambda i: (i, 0)),
            pl.BlockSpec((K, N), lambda i: (0, 0)),   # resident across all steps
            pl.BlockSpec((1, G), lambda i: (0, 0)),   # resident across all steps
        ],
        out_specs=pl.BlockSpec((tm, G), lambda i: (i, 0)),
        compiler_params=pltpu.CompilerParams(
            dimension_semantics=("parallel",),
            vmem_limit_bytes=32 * 1024 * 1024),
    )(x, w, b)


# -----------------------------------------------------------------------------
# JAX glue (pure data movement) and weight preprocessing (init-time only)
# -----------------------------------------------------------------------------
def extract_row_bands(x_nhwc, out_rows, k_pad):
    """(B, H, W, C) -> (B*out_rows, 6*W*C zero-padded to k_pad).
    Band i = input rows [2i, 2i+6): everything a 5x5 conv + 2x2 pool needs to
    produce pooled output row i."""
    B, H, W, C = x_nhwc.shape
    bands = jnp.stack([x_nhwc[:, 2 * i:2 * i + 6] for i in range(out_rows)],
                      axis=1)                        # (B, out_rows, 6, W, C)
    p = bands.reshape(B * out_rows, 6 * W * C)
    if k_pad > 6 * W * C:
        p = jnp.pad(p, ((0, 0), (0, k_pad - 6 * W * C)))
    return p


def build_pooled_conv_weight(w_ochw, in_w, out_j, k_pad=None):
    """PyTorch conv weight (Cout, Cin, 5, 5) -> (6*in_w*Cin [padded], 4*out_j*Cout).

    Column ((ph*2+pw)*out_j + j)*Cout + co computes the conv output at
    (row 2i+ph, col 2j+pw) from the 6-row band of pooled output row i; the
    kernel max-reduces the four (ph, pw) lane groups => fused 2x2 max-pool."""
    w = np.asarray(jax.device_get(w_ochw), dtype=np.float32)
    Cout, Cin, KH, KW = w.shape
    K = 6 * in_w * Cin
    N = 4 * out_j * Cout
    WE = np.zeros((K, N), np.float32)
    for ph in range(2):
        for pw in range(2):
            for j in range(out_j):
                for kh in range(KH):
                    for kw in range(KW):
                        ih = ph + kh                 # local band row, < 6
                        iw = 2 * j + pw + kw         # band column, < in_w
                        krow = (ih * in_w + iw) * Cin
                        ncol = ((ph * 2 + pw) * out_j + j) * Cout
                        WE[krow:krow + Cin, ncol:ncol + Cout] = w[:, :, kh, kw].T
    if k_pad is not None and k_pad > K:
        WE = np.pad(WE, ((0, k_pad - K), (0, 0)))
    return jnp.asarray(WE)


def build_fc_weight(wfc, n_pad):
    """PyTorch fc weight (num_classes, 64*4*4) with NCHW flatten order ->
    (4*4*64, n_pad) matrix in HWC flatten order (folds the pre-fc transpose
    into the weights)."""
    nc = wfc.shape[0]
    m = wfc.reshape(nc, 64, 4, 4)                    # (nc, C, H, W)
    m = jnp.transpose(m, (2, 3, 1, 0))               # (H, W, C, nc)
    m = m.reshape(4 * 4 * 64, nc)
    return jnp.pad(m, ((0, 0), (0, n_pad - nc)))


# -----------------------------------------------------------------------------
# Model
# -----------------------------------------------------------------------------
def init_params(key, in_channels, num_classes):
    k1, k2, k3, k4, k5, k6 = jax.random.split(key, 6)
    w1 = jax.random.normal(k1, (32, in_channels, 5, 5), jnp.float32) * 0.05
    b1 = jax.random.normal(k2, (32,), jnp.float32) * 0.05
    w2 = jax.random.normal(k3, (64, 32, 5, 5), jnp.float32) * 0.02
    b2 = jax.random.normal(k4, (64,), jnp.float32) * 0.02
    wfc = jax.random.normal(k5, (num_classes, 4 * 4 * 64), jnp.float32) * 0.02
    bfc = jax.random.normal(k6, (num_classes,), jnp.float32) * 0.02

    k1_pad = _round_up(6 * 28 * in_channels, 16)     # bf16 sublane multiple
    k2_pad = _round_up(6 * 12 * 32, 16)              # = 2304 (already aligned)
    nc_pad = _round_up(num_classes, 128)             # lane-dense fc output

    return {
        "w1": build_pooled_conv_weight(w1, 28, 12, k1_pad).astype(jnp.bfloat16),
        "b1": jnp.tile(b1, 12).reshape(1, 12 * 32),  # f32 epilogue
        "w2": build_pooled_conv_weight(w2, 12, 4, k2_pad).astype(jnp.bfloat16),
        "b2": jnp.tile(b2, 4).reshape(1, 4 * 64),
        "wfc": build_fc_weight(wfc, nc_pad).astype(jnp.bfloat16),
        "bfc": jnp.pad(bfc, (0, nc_pad - num_classes)).reshape(1, nc_pad),
    }


@functools.partial(jax.jit, static_argnames=("num_classes",))
def mnist_cnn_forward(x_nchw, params, *, num_classes):
    B = x_nchw.shape[0]
    x = jnp.transpose(x_nchw, (0, 2, 3, 1)).astype(jnp.bfloat16)   # NCHW -> NHWC

    # layer1: Conv2d(Cin, 32, k=5) + ReLU + MaxPool(2), fully fused.
    p1 = extract_row_bands(x, 12, params["w1"].shape[0])           # (B*12, 176)
    y1 = fused_matmul(p1, params["w1"], params["b1"], n_pool=4,
                      apply_relu=True, out_dtype=jnp.bfloat16, tile_m=512)
    y1 = y1.reshape(B, 12, 12, 32)                                 # free reshape

    # layer2: Conv2d(32, 64, k=5) + ReLU + MaxPool(2), fully fused.
    p2 = extract_row_bands(y1, 4, params["w2"].shape[0])           # (B*4, 2304)
    y2 = fused_matmul(p2, params["w2"], params["b2"], n_pool=4,
                      apply_relu=True, out_dtype=jnp.bfloat16, tile_m=256)

    # fc1: flatten is free -- HWC order is baked into wfc at init.
    flat = y2.reshape(B, 4 * 4 * 64)
    out = fused_matmul(flat, params["wfc"], params["bfc"], n_pool=1,
                       apply_relu=False, out_dtype=jnp.float32, tile_m=512)
    return out[:, :num_classes]


if __name__ == "__main__":
    # fc1 hard-codes 4*4*64, so the spatial size must be 28x28 (MNIST).
    B, CIN, H, W = 2, 1, 28, 28
    NUM_CLASSES = 10

    key = jax.random.PRNGKey(0)
    kx, kp = jax.random.split(key)
    x = jax.random.normal(kx, (B, CIN, H, W), jnp.float32)
    params = init_params(kp, CIN, NUM_CLASSES)

    out = mnist_cnn_forward(x, params, num_classes=NUM_CLASSES)
    jax.block_until_ready(out)
    assert out.shape == (B, NUM_CLASSES)
    print("KERNEL_OK")
</pallas_src>

<mosaic_0001>
module attributes {stable_mosaic.version = 11 : i64} {
  func.func @_fused_mm_kernel(%arg0: i32, %arg1: memref<16x176xbf16, #tpu.memory_space<vmem>>, %arg2: memref<176x1536xbf16, #tpu.memory_space<vmem>>, %arg3: memref<1x384xf32, #tpu.memory_space<vmem>>, %arg4: memref<16x384xbf16, #tpu.memory_space<vmem>>) attributes {dimension_semantics = [#tpu.dimension_semantics<parallel>], iteration_bounds = array<i64: 2>, scalar_prefetch = 0 : i64, scratch_operands = 0 : i64, tpu.core_type = #tpu.core_type<tc>, window_params = [{transform_indices = @transform_0, window_bounds = array<i64: 16, 176>}, {pipeline_mode = #tpu.pipeline_mode<synchronous>, transform_indices = @transform_1, window_bounds = array<i64: 176, 1536>}, {pipeline_mode = #tpu.pipeline_mode<synchronous>, transform_indices = @transform_2, window_bounds = array<i64: 1, 384>}, {transform_indices = @transform_3, window_bounds = array<i64: 16, 384>}]} {
    %c0 = arith.constant 0 : index
    %c0_0 = arith.constant 0 : index
    %0 = vector.load %arg1[%c0, %c0_0] : memref<16x176xbf16, #tpu.memory_space<vmem>>, vector<16x176xbf16>
    %c0_1 = arith.constant 0 : index
    %c0_2 = arith.constant 0 : index
    %1 = vector.load %arg2[%c0_1, %c0_2] : memref<176x1536xbf16, #tpu.memory_space<vmem>>, vector<176x1536xbf16>
    %cst = arith.constant dense<0.000000e+00> : vector<16x1536xf32>
    %2 = tpu.matmul %0, %1, %cst {dimension_numbers = #tpu.dot_dimension_numbers<[1], [0], [0], [1], [0, 0, 1, 1], [], []>} : vector<16x176xbf16>, vector<176x1536xbf16>, vector<16x1536xf32> -> vector<16x1536xf32>
    %3 = vector.extract_strided_slice %2 {offsets = [0, 0], sizes = [16, 384], strides = [1, 1]} : vector<16x1536xf32> to vector<16x384xf32>
    %4 = vector.extract_strided_slice %2 {offsets = [0, 384], sizes = [16, 384], strides = [1, 1]} : vector<16x1536xf32> to vector<16x384xf32>
    %5 = arith.maximumf %3, %4 : vector<16x384xf32>
    %6 = vector.extract_strided_slice %2 {offsets = [0, 768], sizes = [16, 384], strides = [1, 1]} : vector<16x1536xf32> to vector<16x384xf32>
    %7 = arith.maximumf %5, %6 : vector<16x384xf32>
    %8 = vector.extract_strided_slice %2 {offsets = [0, 1152], sizes = [16, 384], strides = [1, 1]} : vector<16x1536xf32> to vector<16x384xf32>
    %9 = arith.maximumf %7, %8 : vector<16x384xf32>
    %c0_3 = arith.constant 0 : index
    %c0_4 = arith.constant 0 : index
    %10 = vector.load %arg3[%c0_3, %c0_4] : memref<1x384xf32, #tpu.memory_space<vmem>>, vector<1x384xf32>
    %11 = vector.broadcast %10 : vector<1x384xf32> to vector<16x384xf32>
    %12 = arith.addf %9, %11 : vector<16x384xf32>
    %cst_5 = arith.constant 0.000000e+00 : f32
    %13 = vector.broadcast %cst_5 : f32 to vector<16x384xf32>
    %14 = arith.maximumf %12, %13 : vector<16x384xf32>
    %15 = arith.truncf %14 : vector<16x384xf32> to vector<16x384xbf16>
    %c0_6 = arith.constant 0 : index
    %c0_7 = arith.constant 0 : index
    %16 = vector.load %arg4[%c0_6, %c0_7] : memref<16x384xbf16, #tpu.memory_space<vmem>>, vector<16x384xbf16>
    tpu.vector_store %arg4[%c0_6, %c0_7], %15 {strides = array<i32>} : memref<16x384xbf16, #tpu.memory_space<vmem>>, vector<16x384xbf16>,
    return
  }
  func.func @transform_0(%arg0: i32) -> (i32, i32) {
    %c0_i32 = arith.constant 0 : i32
    %c0_i32_0 = arith.constant 0 : i32
    return %arg0, %c0_i32 : i32, i32
  }
  func.func @transform_1(%arg0: i32) -> (i32, i32) {
    %c0_i32 = arith.constant 0 : i32
    %c0_i32_0 = arith.constant 0 : i32
    %c0_i32_1 = arith.constant 0 : i32
    return %c0_i32, %c0_i32_0 : i32, i32
  }
  func.func @transform_2(%arg0: i32) -> (i32, i32) {
    %c0_i32 = arith.constant 0 : i32
    %c0_i32_0 = arith.constant 0 : i32
    %c0_i32_1 = arith.constant 0 : i32
    return %c0_i32, %c0_i32_0 : i32, i32
  }
  func.func @transform_3(%arg0: i32) -> (i32, i32) {
    %c0_i32 = arith.constant 0 : i32
    %c0_i32_0 = arith.constant 0 : i32
    return %arg0, %c0_i32 : i32, i32
  }
}

module attributes {stable_mosaic.version = 11 : i64} {
  func.func @_fused_mm_kernel(%arg0: i32, %arg1: memref<8x2304xbf16, #tpu.memory_space<vmem>>, %arg2: memref<2304x1024xbf16, #tpu.memory_space<vmem>>, %arg3: memref<1x256xf32, #tpu.memory_space<vmem>>, %arg4: memref<8x256xbf16, #tpu.memory_space<vmem>>) attributes {dimension_semantics = [#tpu.dimension_semantics<parallel>], iteration_bounds = array<i64: 1>, scalar_prefetch = 0 : i64, scratch_operands = 0 : i64, tpu.core_type = #tpu.core_type<tc>, window_params = [{transform_indices = @transform_0, window_bounds = array<i64: 8, 2304>}, {pipeline_mode = #tpu.pipeline_mode<synchronous>, transform_indices = @transform_1, window_bounds = array<i64: 2304, 1024>}, {pipeline_mode = #tpu.pipeline_mode<synchronous>, transform_indices = @transform_2, window_bounds = array<i64: 1, 256>}, {transform_indices = @transform_3, window_bounds = array<i64: 8, 256>}]} {
    %c0 = arith.constant 0 : index
    %c0_0 = arith.constant 0 : index
    %0 = vector.load %arg1[%c0, %c0_0] : memref<8x2304xbf16, #tpu.memory_space<vmem>>, vector<8x2304xbf16>
    %c0_1 = arith.constant 0 : index
    %c0_2 = arith.constant 0 : index
    %1 = vector.load %arg2[%c0_1, %c0_2] : memref<2304x1024xbf16, #tpu.memory_space<vmem>>, vector<2304x1024xbf16>
    %cst = arith.constant dense<0.000000e+00> : vector<8x1024xf32>
    %2 = tpu.matmul %0, %1, %cst {dimension_numbers = #tpu.dot_dimension_numbers<[1], [0], [0], [1], [0, 0, 1, 1], [], []>} : vector<8x2304xbf16>, vector<2304x1024xbf16>, vector<8x1024xf32> -> vector<8x1024xf32>
    %3 = vector.extract_strided_slice %2 {offsets = [0, 0], sizes = [8, 256], strides = [1, 1]} : vector<8x1024xf32> to vector<8x256xf32>
    %4 = vector.extract_strided_slice %2 {offsets = [0, 256], sizes = [8, 256], strides = [1, 1]} : vector<8x1024xf32> to vector<8x256xf32>
    %5 = arith.maximumf %3, %4 : vector<8x256xf32>
    %6 = vector.extract_strided_slice %2 {offsets = [0, 512], sizes = [8, 256], strides = [1, 1]} : vector<8x1024xf32> to vector<8x256xf32>
    %7 = arith.maximumf %5, %6 : vector<8x256xf32>
    %8 = vector.extract_strided_slice %2 {offsets = [0, 768], sizes = [8, 256], strides = [1, 1]} : vector<8x1024xf32> to vector<8x256xf32>
    %9 = arith.maximumf %7, %8 : vector<8x256xf32>
    %c0_3 = arith.constant 0 : index
    %c0_4 = arith.constant 0 : index
    %10 = vector.load %arg3[%c0_3, %c0_4] : memref<1x256xf32, #tpu.memory_space<vmem>>, vector<1x256xf32>
    %11 = vector.broadcast %10 : vector<1x256xf32> to vector<8x256xf32>
    %12 = arith.addf %9, %11 : vector<8x256xf32>
    %cst_5 = arith.constant 0.000000e+00 : f32
    %13 = vector.broadcast %cst_5 : f32 to vector<8x256xf32>
    %14 = arith.maximumf %12, %13 : vector<8x256xf32>
    %15 = arith.truncf %14 : vector<8x256xf32> to vector<8x256xbf16>
    %c0_6 = arith.constant 0 : index
    %c0_7 = arith.constant 0 : index
    %16 = vector.load %arg4[%c0_6, %c0_7] : memref<8x256xbf16, #tpu.memory_space<vmem>>, vector<8x256xbf16>
    tpu.vector_store %arg4[%c0_6, %c0_7], %15 {strides = array<i32>} : memref<8x256xbf16, #tpu.memory_space<vmem>>, vector<8x256xbf16>,
    return
  }
  func.func @transform_0(%arg0: i32) -> (i32, i32) {
    %c0_i32 = arith.constant 0 : i32
    %c0_i32_0 = arith.constant 0 : i32
    return %arg0, %c0_i32 : i32, i32
  }
  func.func @transform_1(%arg0: i32) -> (i32, i32) {
    %c0_i32 = arith.constant 0 : i32
    %c0_i32_0 = arith.constant 0 : i32
    %c0_i32_1 = arith.constant 0 : i32
    return %c0_i32, %c0_i32_0 : i32, i32
  }
  func.func @transform_2(%arg0: i32) -> (i32, i32) {
    %c0_i32 = arith.constant 0 : i32
    %c0_i32_0 = arith.constant 0 : i32
    %c0_i32_1 = arith.constant 0 : i32
    return %c0_i32, %c0_i32_0 : i32, i32
  }
  func.func @transform_3(%arg0: i32) -> (i32, i32) {
    %c0_i32 = arith.constant 0 : i32
    %c0_i32_0 = arith.constant 0 : i32
    return %arg0, %c0_i32 : i32, i32
  }
}

module attributes {stable_mosaic.version = 11 : i64} {
  func.func @_fused_mm_kernel(%arg0: i32, %arg1: memref<2x1024xbf16, #tpu.memory_space<vmem>>, %arg2: memref<1024x128xbf16, #tpu.memory_space<vmem>>, %arg3: memref<1x128xf32, #tpu.memory_space<vmem>>, %arg4: memref<2x128xf32, #tpu.memory_space<vmem>>) attributes {dimension_semantics = [#tpu.dimension_semantics<parallel>], iteration_bounds = array<i64: 1>, scalar_prefetch = 0 : i64, scratch_operands = 0 : i64, tpu.core_type = #tpu.core_type<tc>, window_params = [{transform_indices = @transform_0, window_bounds = array<i64: 2, 1024>}, {pipeline_mode = #tpu.pipeline_mode<synchronous>, transform_indices = @transform_1, window_bounds = array<i64: 1024, 128>}, {pipeline_mode = #tpu.pipeline_mode<synchronous>, transform_indices = @transform_2, window_bounds = array<i64: 1, 128>}, {transform_indices = @transform_3, window_bounds = array<i64: 2, 128>}]} {
    %c0 = arith.constant 0 : index
    %c0_0 = arith.constant 0 : index
    %0 = vector.load %arg1[%c0, %c0_0] : memref<2x1024xbf16, #tpu.memory_space<vmem>>, vector<2x1024xbf16>
    %c0_1 = arith.constant 0 : index
    %c0_2 = arith.constant 0 : index
    %1 = vector.load %arg2[%c0_1, %c0_2] : memref<1024x128xbf16, #tpu.memory_space<vmem>>, vector<1024x128xbf16>
    %cst = arith.constant dense<0.000000e+00> : vector<2x128xf32>
    %2 = tpu.matmul %0, %1, %cst {dimension_numbers = #tpu.dot_dimension_numbers<[1], [0], [0], [1], [0, 0, 1, 1], [], []>} : vector<2x1024xbf16>, vector<1024x128xbf16>, vector<2x128xf32> -> vector<2x128xf32>
    %c0_3 = arith.constant 0 : index
    %c0_4 = arith.constant 0 : index
    %3 = vector.load %arg3[%c0_3, %c0_4] : memref<1x128xf32, #tpu.memory_space<vmem>>, vector<1x128xf32>
    %4 = vector.broadcast %3 : vector<1x128xf32> to vector<2x128xf32>
    %5 = arith.addf %2, %4 : vector<2x128xf32>
    %c0_5 = arith.constant 0 : index
    %c0_6 = arith.constant 0 : index
    %6 = vector.load %arg4[%c0_5, %c0_6] : memref<2x128xf32, #tpu.memory_space<vmem>>, vector<2x128xf32>
    tpu.vector_store %arg4[%c0_5, %c0_6], %5 {strides = array<i32>} : memref<2x128xf32, #tpu.memory_space<vmem>>, vector<2x128xf32>,
    return
  }
  func.func @transform_0(%arg0: i32) -> (i32, i32) {
    %c0_i32 = arith.constant 0 : i32
    %c0_i32_0 = arith.constant 0 : i32
    return %arg0, %c0_i32 : i32, i32
  }
  func.func @transform_1(%arg0: i32) -> (i32, i32) {
    %c0_i32 = arith.constant 0 : i32
    %c0_i32_0 = arith.constant 0 : i32
    %c0_i32_1 = arith.constant 0 : i32
    return %c0_i32, %c0_i32_0 : i32, i32
  }
  func.func @transform_2(%arg0: i32) -> (i32, i32) {
    %c0_i32 = arith.constant 0 : i32
    %c0_i32_0 = arith.constant 0 : i32
    %c0_i32_1 = arith.constant 0 : i32
    return %c0_i32, %c0_i32_0 : i32, i32
  }
  func.func @transform_3(%arg0: i32) -> (i32, i32) {
    %c0_i32 = arith.constant 0 : i32
    %c0_i32_0 = arith.constant 0 : i32
    return %arg0, %c0_i32 : i32, i32
  }
}

</mosaic_0001>

<bundles_post_ra>
// kernel: mnist_cnn_forward.3
= control target key start
LH: loop header
LB: loop body
LE: loop exit
PB: predicated region body
PF: predicated region fallthrough
CT: control target
= control target key end

     0   :  { %8 = vsyncpa [#allocation3], 0  ;;  %s2649_s0 = inlined_call_operand.vmem [shape: bf16[24,176], index: 0, kind: input, shape index: {}]   ;;  %s2650_s1 = inlined_call_operand.hbm [shape: bf16[176,1536], index: 1, kind: input, shape index: {}]   ;;  %s2651_s2 = inlined_call_operand.hbm [shape: f32[1,384], index: 2, kind: input, shape index: {}]   ;;  %s2652_s3 = inlined_call_operand.vmem [shape: bf16[24,384], index: 3, kind: output, shape index: {}]  }
   0x1   :  { %9 = vsyncpa [#allocation5], 0  ;;  %s2433_s12 = smov 0   ;;  %s2435_s13 = smov 0  }
   0x2   :  { %s2437_s14 = smov 0  }
   0x3 LB: > { %s2446_s15 = sadd.s32 4294967295, %s2343_s14   ;;  %s2448_s16 = sadd.s32 1, %s2343_s14   ;;  %s2343_s14 = sphi %s2437_s14, %s2666_s14   ;;  %s2339_s13 = sphi %s2435_s13, %s2665_s13   ;;  %s2335_s12 = sphi %s2433_s12, %s2664_s12  }
   0x4   : > { %s87_s17 = ssub.s32 %s2343_s14, %s2448_s16  ;;  %s90_s18 = sadd.s32 1, %s2339_s13 }
   0x5   : > { %p88_p0 = scmp.eq.s32.totalorder %s87_s17, 0  ;;  %p100_p1 = scmp.ne.s32.totalorder %s2339_s13, %s2335_s12 }
   0x6   : > { %p101_p2 = scmp.eq.s32.totalorder %s2446_s15, 1  ;;  %p1640_p3 = scmp.ge.s32.totalorder %s2343_s14, 1 }
   0x7   : > { %s2456_s19 = scalar_select %p88_p0, %s2339_s13, %s90_s18  }
   0x8   : > { %p2458_p4 = por %p101_p2, %p100_p1  ;;  %p114_p5 = scmp.lt.s32.totalorder %s2343_s14, 3 }
   0x9   : > { %p2653_p6 = scmp.eq.s32.totalorder %s2446_s15, 0  ;;  %s2409_s22 = smov [#allocation2]  }
   0xa   : > { %s2655_s20 = scalar_select %p2458_p4, 1, 0 }
   0xb   : > { %p2463_p7 = pnand %p1640_p3, %p114_p5  ;;  %s126_s23 = sshll.u32 %s2409_s22, 4  ;;  %s127_s23 = int_to_ptr.vmem [resolvable:$true] %s126_s23 }
   0xc   : > { %s2410_s25 = smov [#allocation4]   ;;  %s2193_s29 = scalar_lea.hbm %s2650_s1, 16896 }
   0xd   : > { %s2656_s21 = scalar_select %p2463_p7, 1, 0 }
   0xe   : > { %p1825_p8 = pneg %p2463_p7  ;;  %s140_s26 = sshll.u32 %s2410_s25, 4  ;;  %s2475_s26 = int_to_ptr.vmem [resolvable:$true] %s140_s26 }
   0xf   : > { %p2194_p10 = scmp.ne.s32.totalorder %s2650_s1, %s2193_s29  ;;  %p2200_p0 = scmp.lt.u32.totalorder %s2193_s29, %s2650_s1 }
  0x10   : > { %p2471_p9 = pnand %p2653_p6, %p1825_p8 }
  0x12   : > { %p2195_p11 = pneg %p2471_p9 }
  0x14   : > { %p2196_p12 = pnand %p2195_p11, %p2194_p10 }
  0x16   : > { %p2197_p13 = pneg %p2196_p12 }
  0x18   : > { %p2202_p1 = pnand %p2200_p0, %p2197_p13 }
  0x1a   : > { %2205 = shalt.err (!%p2202_p1)
}
  0x1b   : > { %s2206_s7 = scalar_lea.vmem %s127_s23, 16896  ;;  %p2214_p8 = scmp.lt.s32.totalorder %s127_s23, %s127_s23 }
  0x1c   : > { %p2207_p2 = scmp.ne.s32.totalorder %s127_s23, %s2206_s7  ;;  %p2215_p6 = scmp.lt.s32.totalorder %s2206_s7, %s2206_s7 }
  0x1e   : > { %p2209_p3 = pnand %p2207_p2, %p2195_p11  ;;  %p2216_p4 = por %p2215_p6, %p2214_p8 }
  0x20   : > { %p2210_p5 = pneg %p2209_p3 }
  0x22   : > { %p2217_p7 = pnand %p2216_p4, %p2210_p5 }
  0x24   : > { %2220 = shalt.err (!%p2217_p7)
}
  0x25   : > { %s2411_s8 = smov 768   ;;  %s2412_s9 = smov 48  }
  0x26   : > { %1828 = dma.hbm_to_vmem [thread:$0]  (!%p2471_p9), %s2650_s1, 16896, %s127_s23, [#allocation3], %s2411_s8, %s2411_s8, %s2412_s9  }
  0x27   : > { %s2221_s18 = scalar_lea.hbm %s2651_s2, 48 }
  0x28   : > { %p2222_p10 = scmp.ne.s32.totalorder %s2651_s2, %s2221_s18  ;;  %p2228_p7 = scmp.lt.u32.totalorder %s2221_s18, %s2651_s2 }
  0x2a   : > { %p2224_p4 = pnand %p2222_p10, %p2195_p11 }
  0x2c   : > { %p2225_p6 = pneg %p2224_p4 }
  0x2e   : > { %p2230_p12 = pnand %p2228_p7, %p2225_p6 }
  0x30   : > { %2233 = shalt.err (!%p2230_p12)
}
  0x31   : > { %s2234_s23 = scalar_lea.vmem %s2475_s26, 48  ;;  %s2241_s29 = scalar_lea.vmem %s2475_s26, 64 }
  0x32   : > { %p2235_p13 = scmp.ne.s32.totalorder %s2475_s26, %s2234_s23  ;;  %p2242_p2 = scmp.lt.s32.totalorder %s2475_s26, %s2475_s26 }
  0x33   : > { %p2243_p3 = scmp.lt.s32.totalorder %s2241_s29, %s2234_s23 }
  0x34   : > { %p2237_p0 = pnand %p2235_p13, %p2195_p11 }
  0x35   : > { %p2244_p5 = por %p2243_p3, %p2242_p2 }
  0x36   : > { %p2238_p1 = pneg %p2237_p0 }
  0x38   : > { %p2245_p8 = pnand %p2244_p5, %p2238_p1 }
  0x3a   : > { %2248 = shalt.err (!%p2245_p8)
}
  0x3b   : > { %1831 = dma.hbm_to_vmem [thread:$0]  (!%p2471_p9), %s2651_s2, 48, %s2475_s26, [#allocation5]  }
  0x3c   : > { %p2658_p10 = scmp.ne.s32.totalorder %s2656_s21, 0 }
  0x3d   : > { %p2659_p11 = scmp.eq.s32.totalorder (!%p2658_p10), %s2446_s15, 0 }
  0x3e   : > { %173 = sbr.rel (%p2658_p10) target bundleno = 516 (0x204), region = 32 }
  0x45   : > { %2326 = dma.done.wait (%p2659_p11), [#allocation3], 16896   ;;  %p2660_p4 = pmov %p2659_p11 }
  0x47   : > { %2328 = vsyncadd (%p2660_p4), [#allocation3], 4294950400  ;;  %p2661_p6 = pmov %p2660_p4 }
  0x48   : > { %p2662_p7 = pmov %p2660_p4 }
  0x49   : > { %2330 = dma.done.wait (%p2661_p6), [#allocation5], 48  }
  0x4a   : > { %2332 = vsyncadd (%p2662_p7), [#allocation5], 4294967248  ;;  %v1992_v0 = vld [vmem:[#allocation2 + $0x4] ss:$48 sps:$4 sm:$0xff]   ;;  %v1994_v1 = vld [vmem:[#allocation2 + $0xc] ss:$48 sps:$4 sm:$0xff]  }
  0x4b   : > { %1037 = vmatprep.subr.bf16.mxu0 %v1992_v0  ;;  %v1996_v2 = vld [vmem:[#allocation2] ss:$48 sps:$4 sm:$0xff]   ;;  %v1997_v3 = vld [vmem:[#allocation2 + $0x8] ss:$48 sps:$4 sm:$0xff]   ;;  %1080 = vmatprep.subr.bf16.mxu1 %v1994_v1  ;;  %v1998_v4 = vld [vmem:[#allocation2 + $0x64] ss:$48 sps:$4 sm:$0xff]  }
  0x4c   : > { %1038 = vmatpush1.bf16.msra.mxu0 %v1996_v2  ;;  %1081 = vmatpush1.bf16.msra.mxu1 %v1997_v3  ;;  %v2000_v5 = vld [vmem:[#allocation2 + $0x6c] ss:$48 sps:$4 sm:$0xff]   ;;  %v2002_v6 = vld [vmem:[#allocation2 + $0x60] ss:$48 sps:$4 sm:$0xff]   ;;  %v2003_v7 = vld [vmem:[#allocation2 + $0x68] ss:$48 sps:$4 sm:$0xff]  }
  0x4d   : > { %1039 = vmatprep.subr.bf16.mxu0 %v1998_v4  ;;  %1082 = vmatprep.subr.bf16.mxu1 %v2000_v5  ;;  %v2004_v8 = vld [vmem:[#allocation2 + $0xc4] ss:$48 sps:$4 sm:$0xff]   ;;  %v2006_v9 = vld [vmem:[#allocation2 + $0xcc] ss:$48 sps:$4 sm:$0xff]   ;;  %v2008_v10 = vld [vmem:[#allocation2 + $0xc0] ss:$48 sps:$4 sm:$0xff]  }
  0x4e   : > { %v2009_v11 = vld [vmem:[#allocation2 + $0xc8] ss:$48 sps:$4 sm:$0xff]   ;;  %v2010_v12 = vld [vmem:[#allocation2 + $0x124] ss:$48 sps:$4 sm:$0xff]   ;;  %v2012_v13 = vld [vmem:[#allocation2 + $0x12c] ss:$48 sps:$4 sm:$0xff]  }
  0x4f   : > { %v2014_v14 = vld [vmem:[#allocation2 + $0x120] ss:$48 sps:$4 sm:$0xff]   ;;  %v2015_v15 = vld [vmem:[#allocation2 + $0x128] ss:$48 sps:$4 sm:$0xff]   ;;  %v2016_v16 = vld [vmem:[#allocation2 + $0x184] ss:$48 sps:$4 sm:$0xff]  }
  0x50   : > { %1040 = vmatpush1.bf16.msra.mxu0 %v2002_v6  ;;  %1083 = vmatpush1.bf16.msra.mxu1 %v2003_v7  ;;  %v2018_v17 = vld [vmem:[#allocation2 + $0x18c] ss:$48 sps:$4 sm:$0xff]   ;;  %s2536_s21 = sshll.u32 %s2446_s15, 1  ;;  %v2020_v18 = vld [vmem:[#allocation2 + $0x180] ss:$48 sps:$4 sm:$0xff]   ;;  %vm1033_vm0 = vcmask 392192  }
  0x51   : > { %1041 = vmatprep.subr.bf16.mxu0 %v2004_v8  ;;  %1084 = vmatprep.subr.bf16.mxu1 %v2006_v9  ;;  %v2021_v19 = vld [vmem:[#allocation2 + $0x188] ss:$48 sps:$4 sm:$0xff]   ;;  %v2022_v20 = vld [vmem:[#allocation2 + $0x1e4] ss:$48 sps:$4 sm:$0xff]   ;;  %p212_p9 = scmp.lt.s32.totalorder %s2536_s21, 2  ;;  %s203_s8 = sand.u32 1, %s2335_s12  }
  0x52   : > { %v2024_v21 = vld [vmem:[#allocation2 + $0x1ec] ss:$48 sps:$4 sm:$0xff]   ;;  %v2026_v22 = vld [vmem:[#allocation2 + $0x1e0] ss:$48 sps:$4 sm:$0xff]   ;;  %v2027_v23 = vld [vmem:[#allocation2 + $0x1e8] ss:$48 sps:$4 sm:$0xff]  }
  0x53   : > { %v2028_v24 = vld [vmem:[#allocation2 + $0x244] ss:$48 sps:$4 sm:$0xff]   ;;  %s213_s24 = scalar_select %p212_p9, %s2536_s21, 2  ;;  %v2030_v25 = vld [vmem:[#allocation2 + $0x24c] ss:$48 sps:$4 sm:$0xff]  }
  0x54   : > { %1042 = vmatpush1.bf16.msra.mxu0 %v2008_v10  ;;  %1085 = vmatpush1.bf16.msra.mxu1 %v2009_v11  ;;  %v2032_v26 = vld [vmem:[#allocation2 + $0x240] ss:$48 sps:$4 sm:$0xff]   ;;  %v2033_v27 = vld [vmem:[#allocation2 + $0x248] ss:$48 sps:$4 sm:$0xff]   ;;  %v2034_v28 = vld [vmem:[#allocation2 + $0x2a4] ss:$48 sps:$4 sm:$0xff]  }
  0x55   : > { %1043 = vmatprep.subr.bf16.mxu0 %v2010_v12  ;;  %1086 = vmatprep.subr.bf16.mxu1 %v2012_v13  ;;  %s1810_s26 = sshll.u32 %s213_s24, 3  ;;  %v2036_v29 = vld [vmem:[#allocation2 + $0x2ac] ss:$48 sps:$4 sm:$0xff]   ;;  %v2038_v30 = vld [vmem:[#allocation2 + $0x2a0] ss:$48 sps:$4 sm:$0xff]   ;;  %s1815_s9 = smul.u32 24, %s203_s8 }
  0x56   : > { %s2543_s7 = scalar_lea.vmem %s2649_s0, %s1810_s26  ;;  %v2039_v31 = vld [vmem:[#allocation2 + $0x2a8] ss:$48 sps:$4 sm:$0xff]   ;;  %v2040_v32 = vld [vmem:[#allocation2 + $0x304] ss:$48 sps:$4 sm:$0xff]   ;;  %v2042_v33 = vld [vmem:[#allocation2 + $0x30c] ss:$48 sps:$4 sm:$0xff]  }
  0x57   : > { %v2546_v34 = vld [vmem:[%s2543_s7 + $0x4] ss:$8 sps:$4 sm:$0xff]   ;;  %v2044_v35 = vld [vmem:[#allocation2 + $0x300] ss:$48 sps:$4 sm:$0xff]   ;;  %v2045_v36 = vld [vmem:[#allocation2 + $0x308] ss:$48 sps:$4 sm:$0xff]  }
  0x58   : > { %1044 = vmatpush1.bf16.msra.mxu0 %v2014_v14  ;;  %1087 = vmatpush1.bf16.msra.mxu1 %v2015_v15  ;;  %v2046_v37 = vld [vmem:[#allocation2 + $0x364] ss:$48 sps:$4 sm:$0xff]   ;;  %v2048_v38 = vld [vmem:[#allocation2 + $0x36c] ss:$48 sps:$4 sm:$0xff]   ;;  %v2050_v39 = vld [vmem:[#allocation2 + $0x360] ss:$48 sps:$4 sm:$0xff]  }
  0x59   : > { %1045 = vmatprep.subr.bf16.mxu0 %v2016_v16  ;;  %1088 = vmatprep.subr.bf16.mxu1 %v2018_v17  ;;  %v2051_v40 = vld [vmem:[#allocation2 + $0x368] ss:$48 sps:$4 sm:$0xff]   ;;  %v2052_v41 = vld [vmem:[#allocation2 + $0x3c4] ss:$48 sps:$4 sm:$0xff]   ;;  %v2054_v42 = vld [vmem:[#allocation2 + $0x3cc] ss:$48 sps:$4 sm:$0xff]  }
  0x5a   : > { %1784 = vmatprep.mubr.msk.bf16.mxu0 %vm1033_vm0, %v2546_v34  ;;  %1785 = vmatprep.mubr.msk.bf16.mxu1 %vm1033_vm0, %v2546_v34  ;;  %v2056_v43 = vld [vmem:[#allocation2 + $0x3c0] ss:$48 sps:$4 sm:$0xff]   ;;  %v2057_v44 = vld [vmem:[#allocation2 + $0x3c8] ss:$48 sps:$4 sm:$0xff]   ;;  %v2063_v45 = vld [vmem:[#allocation2 + $0x14] ss:$48 sps:$4 sm:$0xff]  }
  0x5b   : > { %v2066_v46 = vld [vmem:[#allocation2 + $0x1c] ss:$48 sps:$4 sm:$0xff]   ;;  %v2553_v47 = vld [vmem:[%s2543_s7] ss:$8 sps:$4 sm:$0xff]   ;;  %v2069_v50 = vld [vmem:[#allocation2 + $0x74] ss:$48 sps:$4 sm:$0xff]  }
  0x5c   : > { %1046 = vmatpush1.bf16.msra.mxu0 %v2020_v18  ;;  %1089 = vmatpush1.bf16.msra.mxu1 %v2021_v19  ;;  %v2061_v48 = vld [vmem:[#allocation2 + $0x10] ss:$48 sps:$4 sm:$0xff]   ;;  %v2064_v49 = vld [vmem:[#allocation2 + $0x18] ss:$48 sps:$4 sm:$0xff]   ;;  %v2072_v51 = vld [vmem:[#allocation2 + $0x7c] ss:$48 sps:$4 sm:$0xff]  }
  0x5d   : > { %1047 = vmatprep.subr.bf16.mxu0 %v2022_v20  ;;  %1090 = vmatprep.subr.bf16.mxu1 %v2024_v21  ;;  %v2067_v52 = vld [vmem:[#allocation2 + $0x70] ss:$48 sps:$4 sm:$0xff]   ;;  %v2070_v53 = vld [vmem:[#allocation2 + $0x78] ss:$48 sps:$4 sm:$0xff]   ;;  %v2075_v54 = vld [vmem:[#allocation2 + $0xd4] ss:$48 sps:$4 sm:$0xff]  }
  0x5e   : > { %v2078_v55 = vld [vmem:[#allocation2 + $0xdc] ss:$48 sps:$4 sm:$0xff]   ;;  %v2073_v56 = vld [vmem:[#allocation2 + $0xd0] ss:$48 sps:$4 sm:$0xff]   ;;  %v2076_v57 = vld [vmem:[#allocation2 + $0xd8] ss:$48 sps:$4 sm:$0xff]  }
  0x5f   : > { %v2081_v58 = vld [vmem:[#allocation2 + $0x134] ss:$48 sps:$4 sm:$0xff]   ;;  %v2084_v59 = vld [vmem:[#allocation2 + $0x13c] ss:$48 sps:$4 sm:$0xff]   ;;  %v2079_v60 = vld [vmem:[#allocation2 + $0x130] ss:$48 sps:$4 sm:$0xff]  }
  0x60   : > { %1048 = vmatpush1.bf16.msra.mxu0 %v2026_v22  ;;  %1091 = vmatpush1.bf16.msra.mxu1 %v2027_v23  ;;  %v2082_v61 = vld [vmem:[#allocation2 + $0x138] ss:$48 sps:$4 sm:$0xff]   ;;  %v2087_v62 = vld [vmem:[#allocation2 + $0x194] ss:$48 sps:$4 sm:$0xff]   ;;  %v2090_v63 = vld [vmem:[#allocation2 + $0x19c] ss:$48 sps:$4 sm:$0xff]  }
  0x61   : > { %1049 = vmatprep.subr.bf16.mxu0 %v2028_v24  ;;  %1092 = vmatprep.subr.bf16.mxu1 %v2030_v25  ;;  %v2085_v0 = vld [vmem:[#allocation2 + $0x190] ss:$48 sps:$4 sm:$0xff]   ;;  %v2088_v1 = vld [vmem:[#allocation2 + $0x198] ss:$48 sps:$4 sm:$0xff]   ;;  %v2093_v2 = vld [vmem:[#allocation2 + $0x1f4] ss:$48 sps:$4 sm:$0xff]  }
  0x62   : > { %v2096_v3 = vld [vmem:[#allocation2 + $0x1fc] ss:$48 sps:$4 sm:$0xff]   ;;  %v2091_v4 = vld [vmem:[#allocation2 + $0x1f0] ss:$48 sps:$4 sm:$0xff]   ;;  %v2094_v5 = vld [vmem:[#allocation2 + $0x1f8] ss:$48 sps:$4 sm:$0xff]  }
  0x63   : > { %v2099_v6 = vld [vmem:[#allocation2 + $0x254] ss:$48 sps:$4 sm:$0xff]   ;;  %v2102_v7 = vld [vmem:[#allocation2 + $0x25c] ss:$48 sps:$4 sm:$0xff]   ;;  %v2097_v8 = vld [vmem:[#allocation2 + $0x250] ss:$48 sps:$4 sm:$0xff]  }
  0x64   : > { %1050 = vmatpush1.bf16.msra.mxu0 %v2032_v26  ;;  %1093 = vmatpush1.bf16.msra.mxu1 %v2033_v27  ;;  %v2100_v9 = vld [vmem:[#allocation2 + $0x258] ss:$48 sps:$4 sm:$0xff]   ;;  %v2105_v10 = vld [vmem:[#allocation2 + $0x2b4] ss:$48 sps:$4 sm:$0xff]   ;;  %v2108_v11 = vld [vmem:[#allocation2 + $0x2bc] ss:$48 sps:$4 sm:$0xff]  }
  0x65   : > { %1051 = vmatprep.subr.bf16.mxu0 %v2034_v28  ;;  %1094 = vmatprep.subr.bf16.mxu1 %v2036_v29  ;;  %v2103_v12 = vld [vmem:[#allocation2 + $0x2b0] ss:$48 sps:$4 sm:$0xff]   ;;  %v2106_v13 = vld [vmem:[#allocation2 + $0x2b8] ss:$48 sps:$4 sm:$0xff]   ;;  %v2111_v14 = vld [vmem:[#allocation2 + $0x314] ss:$48 sps:$4 sm:$0xff]  }
  0x66   : > { %v2114_v15 = vld [vmem:[#allocation2 + $0x31c] ss:$48 sps:$4 sm:$0xff]   ;;  %v2109_v16 = vld [vmem:[#allocation2 + $0x310] ss:$48 sps:$4 sm:$0xff]   ;;  %v2112_v17 = vld [vmem:[#allocation2 + $0x318] ss:$48 sps:$4 sm:$0xff]  }
  0x67   : > { %v2117_v18 = vld [vmem:[#allocation2 + $0x374] ss:$48 sps:$4 sm:$0xff]   ;;  %v2120_v19 = vld [vmem:[#allocation2 + $0x37c] ss:$48 sps:$4 sm:$0xff]   ;;  %v2115_v20 = vld [vmem:[#allocation2 + $0x370] ss:$48 sps:$4 sm:$0xff]  }
  0x68   : > { %1052 = vmatpush1.bf16.msra.mxu0 %v2038_v30  ;;  %1095 = vmatpush1.bf16.msra.mxu1 %v2039_v31  ;;  %v2118_v21 = vld [vmem:[#allocation2 + $0x378] ss:$48 sps:$4 sm:$0xff]   ;;  %v2123_v22 = vld [vmem:[#allocation2 + $0x3d4] ss:$48 sps:$4 sm:$0xff]   ;;  %v2126_v23 = vld [vmem:[#allocation2 + $0x3dc] ss:$48 sps:$4 sm:$0xff]  }
  0x69   : > { %1053 = vmatprep.subr.bf16.mxu0 %v2040_v32  ;;  %1096 = vmatprep.subr.bf16.mxu1 %v2042_v33  ;;  %v2121_v24 = vld [vmem:[#allocation2 + $0x3d0] ss:$48 sps:$4 sm:$0xff]   ;;  %v2124_v25 = vld [vmem:[#allocation2 + $0x3d8] ss:$48 sps:$4 sm:$0xff]   ;;  %v2129_v26 = vld [vmem:[#allocation2 + $0x24] ss:$48 sps:$4 sm:$0xff]  }
  0x6a   : > { %v2132_v27 = vld [vmem:[#allocation2 + $0x2c] ss:$48 sps:$4 sm:$0xff]   ;;  %v2127_v28 = vld [vmem:[#allocation2 + $0x20] ss:$48 sps:$4 sm:$0xff]   ;;  %v2130_v29 = vld [vmem:[#allocation2 + $0x28] ss:$48 sps:$4 sm:$0xff]  }
  0x6b   : > { %v2135_v30 = vld [vmem:[#allocation2 + $0x84] ss:$48 sps:$4 sm:$0xff]   ;;  %v2138_v31 = vld [vmem:[#allocation2 + $0x8c] ss:$48 sps:$4 sm:$0xff]   ;;  %v2133_v32 = vld [vmem:[#allocation2 + $0x80] ss:$48 sps:$4 sm:$0xff]  }
  0x6c   : > { %1054 = vmatpush1.bf16.msra.mxu0 %v2044_v35  ;;  %1097 = vmatpush1.bf16.msra.mxu1 %v2045_v36  ;;  %v2136_v33 = vld [vmem:[#allocation2 + $0x88] ss:$48 sps:$4 sm:$0xff]   ;;  %v2141_v35 = vld [vmem:[#allocation2 + $0xe4] ss:$48 sps:$4 sm:$0xff]   ;;  %v2144_v36 = vld [vmem:[#allocation2 + $0xec] ss:$48 sps:$4 sm:$0xff]  }
  0x6d   : > { %1055 = vmatprep.subr.bf16.mxu0 %v2046_v37  ;;  %1098 = vmatprep.subr.bf16.mxu1 %v2048_v38  ;;  %v2139_v37 = vld [vmem:[#allocation2 + $0xe0] ss:$48 sps:$4 sm:$0xff]   ;;  %v2142_v38 = vld [vmem:[#allocation2 + $0xe8] ss:$48 sps:$4 sm:$0xff]   ;;  %s2570_s12 = scalar_lea.vmem [#allocation6], %s1815_s9   ;;  %p2663_p12 = scmp.ne.s32.totalorder %s2655_s20, 0 }
  0x6e   : > { %s1374_s10 = ssub.s32 (%p2663_p12), 3, %s2536_s21  ;;  %s1816_s11 = smul.u32 (%p2663_p12), 24, %s2446_s15 }
  0x6f   : > { %p1375_p13 = scmp.lt.s32.totalorder (%p2663_p12), %s1374_s10, 2 }
  0x70   : > { %1056 = vmatpush1.bf16.msra.mxu0 %v2050_v39  ;;  %1099 = vmatpush1.bf16.msra.mxu1 %v2051_v40  ;;  %v2147_v39 = vld [vmem:[#allocation2 + $0x144] ss:$48 sps:$4 sm:$0xff]   ;;  %v2150_v40 = vld [vmem:[#allocation2 + $0x14c] ss:$48 sps:$4 sm:$0xff]   ;;  %s2583_s18 = scalar_lea.vmem (%p2663_p12), %s2652_s3, %s1816_s11  }
  0x71   : > { %1057 = vmatprep.subr.bf16.mxu0 %v2052_v41  ;;  %1100 = vmatprep.subr.bf16.mxu1 %v2054_v42  ;;  %v2145_v41 = vld [vmem:[#allocation2 + $0x140] ss:$48 sps:$4 sm:$0xff]   ;;  %v2148_v42 = vld [vmem:[#allocation2 + $0x148] ss:$48 sps:$4 sm:$0xff]  }
  0x74   : > { %1058 = vmatpush1.bf16.msra.mxu0 %v2056_v43  ;;  %1101 = vmatpush1.bf16.msra.mxu1 %v2057_v44  ;;  %v2153_v43 = vld [vmem:[#allocation2 + $0x1a4] ss:$48 sps:$4 sm:$0xff]   ;;  %v2156_v44 = vld [vmem:[#allocation2 + $0x1ac] ss:$48 sps:$4 sm:$0xff]  }
  0x75   : > { %1123 = vmatprep.subr.bf16.mxu0 %v2063_v45  ;;  %1166 = vmatprep.subr.bf16.mxu1 %v2066_v46  ;;  %v2151_v45 = vld [vmem:[#allocation2 + $0x1a0] ss:$48 sps:$4 sm:$0xff]   ;;  %v2159_v46 = vld [vmem:[#allocation2 + $0x204] ss:$48 sps:$4 sm:$0xff]  }
  0x77   : > { %1070 = vmatmul.mubr.bf16.vlgmr.msra.gmra.mrb[0].mxu0 %v2553_v47  ;;  %1113 = vmatmul.mubr.bf16.vlgmr.msra.gmra.mrb[0].mxu1 %v2553_v47 }
  0x78   : > { %1124 = vmatpush1.bf16.msra.mxu0 %v2061_v48  ;;  %1167 = vmatpush1.bf16.msra.mxu1 %v2064_v49  ;;  %v2162_v48 = vld [vmem:[#allocation2 + $0x20c] ss:$48 sps:$4 sm:$0xff]   ;;  %v2157_v49 = vld [vmem:[#allocation2 + $0x200] ss:$48 sps:$4 sm:$0xff]  }
  0x79   : > { %1125 = vmatprep.subr.bf16.mxu0 %v2069_v50  ;;  %1168 = vmatprep.subr.bf16.mxu1 %v2072_v51  ;;  %v2160_v50 = vld [vmem:[#allocation2 + $0x208] ss:$48 sps:$4 sm:$0xff]   ;;  %v2165_v51 = vld [vmem:[#allocation2 + $0x264] ss:$48 sps:$4 sm:$0xff]  }
  0x7a   : > { %1786 = vmatprep.mubr.msk.bf16.mxu0 %vm1033_vm0, %v2546_v34  ;;  %1787 = vmatprep.mubr.msk.bf16.mxu1 %vm1033_vm0, %v2546_v34 }
  0x7c   : > { %1126 = vmatpush1.bf16.msra.mxu0 %v2067_v52  ;;  %1169 = vmatpush1.bf16.msra.mxu1 %v2070_v53  ;;  %v2168_v52 = vld [vmem:[#allocation2 + $0x26c] ss:$48 sps:$4 sm:$0xff]   ;;  %v2163_v53 = vld [vmem:[#allocation2 + $0x260] ss:$48 sps:$4 sm:$0xff]  }
  0x7d   : > { %1127 = vmatprep.subr.bf16.mxu0 %v2075_v54  ;;  %1170 = vmatprep.subr.bf16.mxu1 %v2078_v55  ;;  %v2166_v54 = vld [vmem:[#allocation2 + $0x268] ss:$48 sps:$4 sm:$0xff]   ;;  %v2171_v55 = vld [vmem:[#allocation2 + $0x2c4] ss:$48 sps:$4 sm:$0xff]  }
  0x80   : > { %1128 = vmatpush1.bf16.msra.mxu0 %v2073_v56  ;;  %1171 = vmatpush1.bf16.msra.mxu1 %v2076_v57  ;;  %v2174_v56 = vld [vmem:[#allocation2 + $0x2cc] ss:$48 sps:$4 sm:$0xff]   ;;  %v2169_v57 = vld [vmem:[#allocation2 + $0x2c0] ss:$48 sps:$4 sm:$0xff]  }
  0x81   : > { %1129 = vmatprep.subr.bf16.mxu0 %v2081_v58  ;;  %1172 = vmatprep.subr.bf16.mxu1 %v2084_v59  ;;  %v2172_v58 = vld [vmem:[#allocation2 + $0x2c8] ss:$48 sps:$4 sm:$0xff]   ;;  %v2177_v59 = vld [vmem:[#allocation2 + $0x324] ss:$48 sps:$4 sm:$0xff]  }
  0x84   : > { %1130 = vmatpush1.bf16.msra.mxu0 %v2079_v60  ;;  %1173 = vmatpush1.bf16.msra.mxu1 %v2082_v61  ;;  %v2180_v60 = vld [vmem:[#allocation2 + $0x32c] ss:$48 sps:$4 sm:$0xff]   ;;  %v2175_v61 = vld [vmem:[#allocation2 + $0x320] ss:$48 sps:$4 sm:$0xff]  }
  0x85   : > { %1131 = vmatprep.subr.bf16.mxu0 %v2087_v62  ;;  %1174 = vmatprep.subr.bf16.mxu1 %v2090_v63  ;;  %v2178_v62 = vld [vmem:[#allocation2 + $0x328] ss:$48 sps:$4 sm:$0xff]   ;;  %v2183_v63 = vld [vmem:[#allocation2 + $0x384] ss:$48 sps:$4 sm:$0xff]  }
  0x88   : > { %1132 = vmatpush1.bf16.msra.mxu0 %v2085_v0  ;;  %1175 = vmatpush1.bf16.msra.mxu1 %v2088_v1  ;;  %v2186_v0 = vld [vmem:[#allocation2 + $0x38c] ss:$48 sps:$4 sm:$0xff]   ;;  %v2181_v1 = vld [vmem:[#allocation2 + $0x380] ss:$48 sps:$4 sm:$0xff]  }
  0x89   : > { %1133 = vmatprep.subr.bf16.mxu0 %v2093_v2  ;;  %1176 = vmatprep.subr.bf16.mxu1 %v2096_v3  ;;  %v2184_v2 = vld [vmem:[#allocation2 + $0x388] ss:$48 sps:$4 sm:$0xff]   ;;  %v2189_v3 = vld [vmem:[#allocation2 + $0x3e4] ss:$48 sps:$4 sm:$0xff]  }
  0x8c   : > { %1134 = vmatpush1.bf16.msra.mxu0 %v2091_v4  ;;  %1177 = vmatpush1.bf16.msra.mxu1 %v2094_v5  ;;  %v2192_v4 = vld [vmem:[#allocation2 + $0x3ec] ss:$48 sps:$4 sm:$0xff]   ;;  %v2187_v5 = vld [vmem:[#allocation2 + $0x3e0] ss:$48 sps:$4 sm:$0xff]  }
  0x8d   : > { %1135 = vmatprep.subr.bf16.mxu0 %v2099_v6  ;;  %1178 = vmatprep.subr.bf16.mxu1 %v2102_v7  ;;  %v2190_v6 = vld [vmem:[#allocation2 + $0x3e8] ss:$48 sps:$4 sm:$0xff]  }
  0x90   : > { %1136 = vmatpush1.bf16.msra.mxu0 %v2097_v8  ;;  %1179 = vmatpush1.bf16.msra.mxu1 %v2100_v9 }
  0x91   : > { %1137 = vmatprep.subr.bf16.mxu0 %v2105_v10  ;;  %1180 = vmatprep.subr.bf16.mxu1 %v2108_v11 }
  0x94   : > { %1138 = vmatpush1.bf16.msra.mxu0 %v2103_v12  ;;  %1181 = vmatpush1.bf16.msra.mxu1 %v2106_v13 }
  0x95   : > { %1139 = vmatprep.subr.bf16.mxu0 %v2111_v14  ;;  %1182 = vmatprep.subr.bf16.mxu1 %v2114_v15 }
  0x98   : > { %1140 = vmatpush1.bf16.msra.mxu0 %v2109_v16  ;;  %1183 = vmatpush1.bf16.msra.mxu1 %v2112_v17 }
  0x99   : > { %1141 = vmatprep.subr.bf16.mxu0 %v2117_v18  ;;  %1184 = vmatprep.subr.bf16.mxu1 %v2120_v19 }
  0x9c   : > { %1142 = vmatpush1.bf16.msra.mxu0 %v2115_v20  ;;  %1185 = vmatpush1.bf16.msra.mxu1 %v2118_v21 }
  0x9d   : > { %1143 = vmatprep.subr.bf16.mxu0 %v2123_v22  ;;  %1186 = vmatprep.subr.bf16.mxu1 %v2126_v23 }
  0xa0   : > { %1144 = vmatpush1.bf16.msra.mxu0 %v2121_v24  ;;  %1187 = vmatpush1.bf16.msra.mxu1 %v2124_v25 }
  0xa1   : > { %1209 = vmatprep.subr.bf16.mxu0 %v2129_v26  ;;  %1252 = vmatprep.subr.bf16.mxu1 %v2132_v27 }
  0xa3   : > { %1156 = vmatmul.mubr.bf16.vlgmr.msra.gmra.mrb[4].mxu0 %v2553_v47  ;;  %1199 = vmatmul.mubr.bf16.vlgmr.msra.gmra.mrb[4].mxu1 %v2553_v47 }
  0xa4   : > { %1210 = vmatpush1.bf16.msra.mxu0 %v2127_v28  ;;  %1253 = vmatpush1.bf16.msra.mxu1 %v2130_v29 }
  0xa5   : > { %1211 = vmatprep.subr.bf16.mxu0 %v2135_v30  ;;  %1254 = vmatprep.subr.bf16.mxu1 %v2138_v31 }
  0xa6   : > { %1788 = vmatprep.mubr.msk.bf16.mxu0 %vm1033_vm0, %v2546_v34  ;;  %1789 = vmatprep.mubr.msk.bf16.mxu1 %vm1033_vm0, %v2546_v34  ;;  %v2154_v34 = vld [vmem:[#allocation2 + $0x1a8] ss:$48 sps:$4 sm:$0xff]  }
  0xa8   : > { %1212 = vmatpush1.bf16.msra.mxu0 %v2133_v32  ;;  %1255 = vmatpush1.bf16.msra.mxu1 %v2136_v33  ;;  %v1315_v32 = vlaneseq }
  0xa9   : > { %1213 = vmatprep.subr.bf16.mxu0 %v2141_v35  ;;  %1256 = vmatprep.subr.bf16.mxu1 %v2144_v36  ;;  %v1313_v36 = vld [vmem:[#allocation4] sm:$0x7] }
  0xaa   : > { %v1316_v33 = vshrl.u32 %v1315_v32, 7 }
  0xac   : > { %1214 = vmatpush1.bf16.msra.mxu0 %v2139_v37  ;;  %1257 = vmatpush1.bf16.msra.mxu1 %v2142_v38  ;;  %v1321_v35 = vsub.s32 1, %v1316_v33  ;;  %v1317_v37 = vsub.s32 0, %v1316_v33  ;;  %v1325_v38 = vsub.s32 2, %v1316_v33 }
  0xad   : > { %1215 = vmatprep.subr.bf16.mxu0 %v2147_v39  ;;  %1258 = vmatprep.subr.bf16.mxu1 %v2150_v40 }
  0xae   : > { %v1322_v39 = vrot.slane %v1313_v36, %v1321_v35 }
  0xb0   : > { %1216 = vmatpush1.bf16.msra.mxu0 %v2145_v41  ;;  %1259 = vmatpush1.bf16.msra.mxu1 %v2148_v42  ;;  %v1318_v42 = vrot.slane %v1313_v36, %v1317_v37 }
  0xb1   : > { %1217 = vmatprep.subr.bf16.mxu0 %v2153_v43  ;;  %1260 = vmatprep.subr.bf16.mxu1 %v2156_v44 }
  0xb4   : > { %1218 = vmatpush1.bf16.msra.mxu0 %v2151_v45  ;;  %1261 = vmatpush1.bf16.msra.mxu1 %v2154_v34 }
  0xb5   : > { %1219 = vmatprep.subr.bf16.mxu0 %v2159_v46  ;;  %1262 = vmatprep.subr.bf16.mxu1 %v2162_v48  ;;  %v1326_v46 = vrot.slane %v1313_v36, %v1325_v38 }
  0xb8   : > { %1220 = vmatpush1.bf16.msra.mxu0 %v2157_v49  ;;  %1263 = vmatpush1.bf16.msra.mxu1 %v2160_v50 }
  0xb9   : > { %1221 = vmatprep.subr.bf16.mxu0 %v2165_v51  ;;  %1264 = vmatprep.subr.bf16.mxu1 %v2168_v52 }
  0xbc   : > { %1222 = vmatpush1.bf16.msra.mxu0 %v2163_v53  ;;  %1265 = vmatpush1.bf16.msra.mxu1 %v2166_v54 }
  0xbd   : > { %1223 = vmatprep.subr.bf16.mxu0 %v2171_v55  ;;  %1266 = vmatprep.subr.bf16.mxu1 %v2174_v56 }
  0xc0   : > { %1224 = vmatpush1.bf16.msra.mxu0 %v2169_v57  ;;  %1267 = vmatpush1.bf16.msra.mxu1 %v2172_v58 }
  0xc1   : > { %1225 = vmatprep.subr.bf16.mxu0 %v2177_v59  ;;  %1268 = vmatprep.subr.bf16.mxu1 %v2180_v60 }
  0xc4   : > { %1226 = vmatpush1.bf16.msra.mxu0 %v2175_v61  ;;  %1269 = vmatpush1.bf16.msra.mxu1 %v2178_v62 }
  0xc5   : > { %1227 = vmatprep.subr.bf16.mxu0 %v2183_v63  ;;  %1270 = vmatprep.subr.bf16.mxu1 %v2186_v0 }
  0xc8   : > { %1228 = vmatpush1.bf16.msra.mxu0 %v2181_v1  ;;  %1271 = vmatpush1.bf16.msra.mxu1 %v2184_v2 }
  0xc9   : > { %1229 = vmatprep.subr.bf16.mxu0 %v2189_v3  ;;  %1272 = vmatprep.subr.bf16.mxu1 %v2192_v4 }
  0xcc   : > { %1230 = vmatpush1.bf16.msra.mxu0 %v2187_v5  ;;  %1273 = vmatpush1.bf16.msra.mxu1 %v2190_v6 }
  0xcf   : > { %1242 = vmatmul.mubr.bf16.vlgmr.msra.gmra.mrb[8].mxu0 %v2553_v47  ;;  %1285 = vmatmul.mubr.bf16.vlgmr.msra.gmra.mrb[8].mxu1 %v2553_v47 }
 0x14a   : > { %v1071_v7 = vpop.f32.mrb[0].mxu0  ;;  %v1114_v8 = vpop.f32.mrb[0].mxu1 }
 0x14b   : > { %v1073_v9 = vpop.f32.mrb[1].mxu0  ;;  %v1116_v10 = vpop.f32.mrb[1].mxu1 }
 0x14c   : > { %v1295_v11 = vmax.f32 %v1071_v7, %v1116_v10  ;;  %v1075_v12 = vpop.f32.mrb[2].mxu0  ;;  %v1118_v13 = vpop.f32.mrb[2].mxu1 }
 0x14d   : > { %v1077_v14 = vpop.f32.mrb[3].mxu0  ;;  %v1120_v15 = vpop.f32.mrb[3].mxu1 }
 0x14e   : > { %v1298_v16 = vmax.f32 %v1075_v12, %v1120_v15 }
 0x176   : > { %v1157_v17 = vpop.f32.mrb[4].mxu0  ;;  %v1200_v18 = vpop.f32.mrb[4].mxu1 }
 0x177   : > { %v1296_v19 = vmax.f32 %v1073_v9, %v1157_v17  ;;  %v1301_v20 = vmax.f32 %v1295_v11, %v1200_v18  ;;  %v1159_v21 = vpop.f32.mrb[5].mxu0  ;;  %v1202_v22 = vpop.f32.mrb[5].mxu1 }
 0x178   : > { %v1297_v23 = vmax.f32 %v1114_v8, %v1159_v21  ;;  %v1161_v24 = vpop.f32.mrb[6].mxu0  ;;  %v1204_v25 = vpop.f32.mrb[6].mxu1 }
 0x179   : > { %v1302_v47 = vmax.f32 %v1296_v19, %v1202_v22  ;;  %v1299_v26 = vmax.f32 %v1077_v14, %v1161_v24  ;;  %v1304_v27 = vmax.f32 %v1298_v16, %v1204_v25  ;;  %v1163_v28 = vpop.f32.mrb[7].mxu0  ;;  %v1206_v29 = vpop.f32.mrb[7].mxu1 }
 0x17a   : > { %v1300_v30 = vmax.f32 %v1118_v13, %v1163_v28 }
 0x17b   : > { %v1305_v31 = vmax.f32 %v1299_v26, %v1206_v29 }
 0x1a2   : > { %v1243_v40 = vpop.f32.mrb[8].mxu0  ;;  %v1286_v41 = vpop.f32.mrb[8].mxu1 }
 0x1a3   : > { %v1303_v43 = vmax.f32 %v1297_v23, %v1243_v40  ;;  %v1308_v44 = vmax.f32 %v1302_v47, %v1286_v41  ;;  %v1245_v45 = vpop.f32.mrb[9].mxu0  ;;  %v1288_v34 = vpop.f32.mrb[9].mxu1 }
 0x1a4   : > { %v1307_v48 = vmax.f32 %v1301_v20, %v1245_v45  ;;  %v1247_v49 = vpop.f32.mrb[10].mxu0  ;;  %v1290_v50 = vpop.f32.mrb[10].mxu1 }
 0x1a5   : > { %v1331_v51 = vadd.f32 %v1322_v39, %v1308_v44  ;;  %v1309_v52 = vmax.f32 %v1303_v43, %v1288_v34  ;;  %v1306_v53 = vmax.f32 %v1300_v30, %v1247_v49  ;;  %v1311_v54 = vmax.f32 %v1305_v31, %v1290_v50  ;;  %v1249_v55 = vpop.f32.mrb[11].mxu0  ;;  %v1292_v56 = vpop.f32.mrb[11].mxu1 }
 0x1a6   : > { %v1330_v57 = vadd.f32 %v1318_v42, %v1307_v48  ;;  %v1310_v58 = vmax.f32 %v1304_v27, %v1249_v55 }
 0x1a7   : > { %v1337_v59 = vmax.f32 %v1331_v51, 0.0  ;;  %v1332_v60 = vadd.f32 %v1326_v46, %v1309_v52  ;;  %v1334_v61 = vadd.f32 %v1322_v39, %v1311_v54  ;;  %v1312_v62 = vmax.f32 %v1306_v53, %v1292_v56 }
 0x1a8   : > { %v1336_v63 = vmax.f32 %v1330_v57, 0.0  ;;  %v1333_v0 = vadd.f32 %v1318_v42, %v1310_v58 }
 0x1a9   : > { %v1338_v1 = vmax.f32 %v1332_v60, 0.0  ;;  %v1340_v2 = vmax.f32 %v1334_v61, 0.0  ;;  %v1335_v3 = vadd.f32 %v1326_v46, %v1312_v62  ;;  %1372 = sbr.rel (!%p2663_p12) target bundleno = 516 (0x204), region = 44 }
 0x1aa   : > { %v1811_v4 = vpack.c.bf16 %v1337_v59, %v1336_v63  ;;  %v1339_v5 = vmax.f32 %v1333_v0, 0.0 }
 0x1ab   : > { %v1812_v6 = vpack.c.bf16 %v1338_v1, %v1338_v1  ;;  %v1341_v7 = vmax.f32 %v1335_v3, 0.0 }
 0x1ac   : > { %1362 = vst [vmem:[%s2570_s12] sm:$0xff] %v1811_v4  ;;  %v1813_v8 = vpack.c.bf16 %v1340_v2, %v1339_v5 }
 0x1ad   : > { %1363 = vst [vmem:[%s2570_s12 + $0x8] sm:$0xf] %v1812_v6  ;;  %v1814_v9 = vpack.c.bf16 %v1341_v7, %v1341_v7 }
 0x1ae   : > { %1364 = vst [vmem:[%s2570_s12 + $0xc] sm:$0xff] %v1813_v8 }
 0x1af   : > { %1365 = vst [vmem:[%s2570_s12 + $0x14] sm:$0xf] %v1814_v9 }
 0x1b0   : > { %s2668_s10 = smov (!%p1375_p13, %s1374_s10), 2 }
 0x1b1   : > { %s1796_s22 = smul.u32 192, %s2668_s10 }
 0x1b3   : > { %p1800_p0 = scmp.eq.s32.totalorder %s1796_s22, 0 }
 0x1b4   : > { %s1388_s20 = scalar_lea.vmem (!%p1800_p0), %s2570_s12, 8 [#allocation6]   ;;  %s1389_s25 = scalar_lea.vmem (!%p1800_p0), %s2583_s18, 8  }
 0x1b5   : > { %1385 = sbr.rel (%p1800_p0) target bundleno = 516 (0x204), region = 48  ;;  %s2591_s27 = sshrl.u32 (!%p1800_p0), %s2668_s10, 1 }
 0x1b6   : > { %p1801_p1 = scmp.le.s32.totalorder (!%p1800_p0), %s2591_s27, 0 }
 0x1bc   : > { %1549 = sbr.rel (%p1801_p1) target bundleno = 461 (0x1cd), region = 115  ;;  %s2345_s15 = smov (!%p1801_p1), %s2583_s18  }
 0x1bd   : > { %s2349_s28 = smov (!%p1801_p1), %s2570_s12   ;;  %s2353_s23 = smov (!%p1801_p1), 0  }
 0x1be   : > { %s2357_s29 = smov (!%p1801_p1), 0  }
 0x1c3 LB: >> { %v1400_v10 = vld [vmem:[%s2351_s28] sm:$0xff]  ;;  %v1402_v11 = vld [vmem:[%s2351_s28 + $0xc] sm:$0xff]  ;;  %s1404_s30 = sadd.s32 1, %s2355_s23  ;;  %s1394_s29 = sadd.s32 1, %s2359_s29   ;;  %s2359_s29 = sphi %s2357_s29, %s1394_s29   ;;  %s2355_s23 = sphi %s2353_s23, %s2354_s23   ;;  %s2351_s28 = sphi %s2349_s28, %s1409_s28   ;;  %s2347_s15 = sphi %s2345_s15, %s1410_s15  }
 0x1c4   : >> { %1401 = vst [vmem:[%s2347_s15] sm:$0xff] %v1400_v10  ;;  %1403 = vst [vmem:[%s2347_s15 + $0xc] sm:$0xff] %v1402_v11  ;;  %p1405_p2 = scmp.ge.s32.totalorder %s1404_s30, %s2591_s27  ;;  %p1393_p3 = scmp.ge.s32.totalorder %s1394_s29, %s2591_s27 }
 0x1c6   : >> { %s2670_s30 = smov (%p1405_p2, %s1404_s30), 0  ;;  %1396 = sbr.rel (!%p1393_p3) target bundleno = 451 (0x1c3), region = 121 }
 0x1c7   : >> { %s1407_s4 = smul.u32 24, %s2670_s30  ;;  %s2354_s23 = smov %s2670_s30  }
 0x1c9   : >> { %s1409_s28 = scalar_lea.vmem %s2570_s12, %s1407_s4 [#allocation6]   ;;  %s1410_s15 = scalar_lea.vmem %s2583_s18, %s1407_s4  }
 0x1cd PF: > { %s2603_s21 = sand.u32 1, %s2668_s10   ;;  %s1803_s24 = smul.u32 24, %s2591_s27 }
 0x1ce   : > { %p1805_p5 = scmp.le.s32.totalorder %s2603_s21, 0 }
 0x1cf   : > { %s2607_s26 = scalar_lea.vmem %s2570_s12, %s1803_s24 [#allocation6]   ;;  %s2610_s5 = scalar_lea.vmem %s2583_s18, %s1803_s24  }
 0x1d0   : > { %1563 = sbr.rel (%p1805_p5) target bundleno = 481 (0x1e1), region = 126  ;;  %s2361_s6 = smov (!%p1805_p5), %s2610_s5  }
 0x1d1   : > { %s2365_s7 = smov (!%p1805_p5), %s2607_s26   ;;  %s2369_s8 = smov (!%p1805_p5), 0  }
 0x1d2   : > { %s2373_s9 = smov (!%p1805_p5), 0  }
 0x1d7 LB: >> { %v1427_v12 = vld [vmem:[%s2367_s7] sm:$0xff]  ;;  %s1429_s10 = sadd.s32 1, %s2371_s8  ;;  %s1421_s9 = sadd.s32 1, %s2375_s9   ;;  %s2375_s9 = sphi %s2373_s9, %s1421_s9   ;;  %s2371_s8 = sphi %s2369_s8, %s2370_s8   ;;  %s2367_s7 = sphi %s2365_s7, %s1434_s7   ;;  %s2363_s6 = sphi %s2361_s6, %s1435_s6  }
 0x1d8   : >> { %1428 = vst [vmem:[%s2363_s6] sm:$0xff] %v1427_v12  ;;  %p1430_p8 = scmp.ge.s32.totalorder %s1429_s10, %s2603_s21  ;;  %p1420_p10 = scmp.ge.s32.totalorder %s1421_s9, %s2603_s21 }
 0x1da   : >> { %s2672_s10 = smov (%p1430_p8, %s1429_s10), 0  ;;  %1423 = sbr.rel (!%p1420_p10) target bundleno = 471 (0x1d7), region = 132 }
 0x1db   : >> { %s1432_s11 = smul.u32 12, %s2672_s10  ;;  %s2370_s8 = smov %s2672_s10  }
 0x1dd   : >> { %s1434_s7 = scalar_lea.vmem %s2607_s26, %s1432_s11 [#allocation6]   ;;  %s1435_s6 = scalar_lea.vmem %s2610_s5, %s1432_s11  }
 0x1e1 PF: > { %1577 = sbr.rel (%p1801_p1) target bundleno = 498 (0x1f2), region = 137  ;;  %s2377_s14 = smov (!%p1801_p1), %s1389_s25  }
 0x1e2   : > { %s2381_s17 = smov (!%p1801_p1), %s1388_s20   ;;  %s2385_s22 = smov (!%p1801_p1), 0  }
 0x1e3   : > { %s2389_s15 = smov (!%p1801_p1), 0  }
 0x1e8 LB: >> { %v1447_v13 = vld [vmem:[%s2383_s17] sm:$0xf]  ;;  %v1449_v14 = vld [vmem:[%s2383_s17 + $0xc] sm:$0xf]  ;;  %s1451_s28 = sadd.s32 1, %s2387_s22  ;;  %s1441_s15 = sadd.s32 1, %s2391_s15   ;;  %s2391_s15 = sphi %s2389_s15, %s1441_s15   ;;  %s2387_s22 = sphi %s2385_s22, %s2386_s22   ;;  %s2383_s17 = sphi %s2381_s17, %s1526_s17   ;;  %s2379_s14 = sphi %s2377_s14, %s1529_s14  }
 0x1e9   : >> { %1448 = vst [vmem:[%s2379_s14] sm:$0xf] %v1447_v13  ;;  %1450 = vst [vmem:[%s2379_s14 + $0xc] sm:$0xf] %v1449_v14  ;;  %p1452_p11 = scmp.ge.s32.totalorder %s1451_s28, %s2591_s27  ;;  %p1440_p4 = scmp.ge.s32.totalorder %s1441_s15, %s2591_s27 }
 0x1eb   : >> { %s2674_s28 = smov (%p1452_p11, %s1451_s28), 0  ;;  %1443 = sbr.rel (!%p1440_p4) target bundleno = 488 (0x1e8), region = 143 }
 0x1ec   : >> { %s1524_s25 = smul.u32 24, %s2674_s28  ;;  %s2386_s22 = smov %s2674_s28  }
 0x1ee   : >> { %s1525_s20 = scalar_lea.vmem %s2570_s12, %s1524_s25 [#allocation6]  ;;  %s1528_s23 = scalar_lea.vmem %s2583_s18, %s1524_s25 }
 0x1ef   : >> { %s1526_s17 = scalar_lea.vmem %s1525_s20, 8 [#allocation6]   ;;  %s1529_s14 = scalar_lea.vmem %s1528_s23, 8  }
 0x1f2 PF: > { %s1532_s29 = scalar_lea.vmem %s2607_s26, 8 [#allocation6]   ;;  %s1535_s30 = scalar_lea.vmem %s2610_s5, 8  }
 0x1f3   : > { %1591 = sbr.rel (%p1805_p5) target bundleno = 516 (0x204), region = 148  ;;  %s2393_s4 = smov (!%p1805_p5), %s1535_s30  }
 0x1f4   : > { %s2397_s24 = smov (!%p1805_p5), %s1532_s29   ;;  %s2401_s6 = smov (!%p1805_p5), 0  }
 0x1f5   : > { %s2405_s7 = smov (!%p1805_p5), 0  }
 0x1fa LB: >> { %v1474_v15 = vld [vmem:[%s2399_s24] sm:$0xf]  ;;  %s1476_s12 = sadd.s32 1, %s2403_s6  ;;  %s1468_s7 = sadd.s32 1, %s2407_s7   ;;  %s2407_s7 = sphi %s2405_s7, %s1468_s7   ;;  %s2403_s6 = sphi %s2401_s6, %s2402_s6   ;;  %s2399_s24 = sphi %s2397_s24, %s1538_s24   ;;  %s2395_s4 = sphi %s2393_s4, %s1541_s4  }
 0x1fb   : >> { %1475 = vst [vmem:[%s2395_s4] sm:$0xf] %v1474_v15  ;;  %p1477_p6 = scmp.ge.s32.totalorder %s1476_s12, %s2603_s21  ;;  %p1467_p7 = scmp.ge.s32.totalorder %s1468_s7, %s2603_s21 }
 0x1fd   : >> { %s2676_s12 = smov (%p1477_p6, %s1476_s12), 0  ;;  %1470 = sbr.rel (!%p1467_p7) target bundleno = 506 (0x1fa), region = 154 }
 0x1fe   : >> { %s1536_s18 = smul.u32 12, %s2676_s12  ;;  %s2402_s6 = smov %s2676_s12  }
 0x200   : >> { %s1537_s27 = scalar_lea.vmem %s2607_s26, %s1536_s18 [#allocation6]  ;;  %s1540_s8 = scalar_lea.vmem %s2610_s5, %s1536_s18 }
 0x201   : >> { %s1538_s24 = scalar_lea.vmem %s1537_s27, 8 [#allocation6]   ;;  %s1541_s4 = scalar_lea.vmem %s1540_s8, 8  }
 0x204 PF: > { %p12_p9 = scmp.ge.s32.totalorder %s2448_s16, 4   ;;  %s2664_s12 = smov %s2339_s13 }
 0x205   : > { %s2665_s13 = smov %s2456_s19  ;;  %s2666_s14 = smov %s2448_s16 }
 0x206   :  { %14 = sbr.rel (!%p12_p9) target bundleno = 3 (0x3), region = 165 }
 0x20d   :  { %1496 = vsyncpa [#allocation3], 1 }
 0x20e   :  { %1498 = vsyncpa [#allocation3 + $0x1], 1 }
 0x20f   :  { %1499 = vsyncpa [#allocation5], 1 }

// kernel: mnist_cnn_forward.5
= control target key start
LH: loop header
LB: loop body
LE: loop exit
PB: predicated region body
PF: predicated region fallthrough
CT: control target
= control target key end

     0   :  { %v157_v28 = vlaneseq  ;;  %v1013_v36 = vmov 1966171168   ;;  %s1258_s0 = inlined_call_operand.vmem [shape: bf16[2,1024], index: 0, kind: input, shape index: {}]   ;;  %s1259_s1 = inlined_call_operand.vmem [shape: bf16[1024,128], index: 1, kind: input, shape index: {}]   ;;  %s1260_s2 = inlined_call_operand.vmem [shape: f32[1,128], index: 2, kind: input, shape index: {}]   ;;  %s1261_s3 = inlined_call_operand.hbm [shape: f32[2,128], index: 3, kind: output, shape index: {}]  }
   0x1   :  { %v924_v0 = vld [vmem:[%s1259_s1 + $0x40] sm:$0xff]   ;;  %v928_v4 = vld [vmem:[%s1259_s1 + $0x48] sm:$0xff]   ;;  %v932_v8 = vld [vmem:[%s1259_s1 + $0x50] sm:$0xff]   ;;  %v155_v37 = vunpack.c.l.s4 %v1013_v36 }
   0x2   :  { %v925_v1 = vld [vmem:[%s1259_s1 + $0xc0] sm:$0xff]   ;;  %834 = vmatprep.subr.bf16.mxu0 %v924_v0  ;;  %v929_v5 = vld [vmem:[%s1259_s1 + $0xc8] sm:$0xff]   ;;  %v933_v9 = vld [vmem:[%s1259_s1 + $0xd0] sm:$0xff]   ;;  %v158_v33 = vshrl.u32 %v157_v28, 7 }
   0x3   :  { %v926_v2 = vld [vmem:[%s1259_s1] sm:$0xff]   ;;  %856 = vmatprep.subr.bf16.mxu1 %v925_v1  ;;  %v930_v6 = vld [vmem:[%s1259_s1 + $0x8] sm:$0xff]   ;;  %v934_v10 = vld [vmem:[%s1259_s1 + $0x10] sm:$0xff]   ;;  %v156_v40 = vunpack.c.0.s8 %v155_v37 }
   0x4   :  { %v927_v3 = vld [vmem:[%s1259_s1 + $0x80] sm:$0xff]   ;;  %835 = vmatpush3.bf16.msra.mxu0 %v926_v2  ;;  %v931_v7 = vld [vmem:[%s1259_s1 + $0x88] sm:$0xff]   ;;  %v935_v11 = vld [vmem:[%s1259_s1 + $0x90] sm:$0xff]  }
   0x5   :  { %857 = vmatpush3.bf16.msra.mxu1 %v927_v3  ;;  %836 = vmatprep.subr.bf16.mxu0 %v928_v4  ;;  %v936_v12 = vld [vmem:[%s1259_s1 + $0x58] sm:$0xff]   ;;  %v940_v16 = vld [vmem:[%s1259_s1 + $0x60] sm:$0xff]   ;;  %v944_v20 = vld [vmem:[%s1259_s1 + $0x68] sm:$0xff]   ;;  %v1140_v41 = vsub.s32 %v156_v40, %v158_v33 }
   0x6   :  { %858 = vmatprep.subr.bf16.mxu1 %v929_v5  ;;  %v937_v13 = vld [vmem:[%s1259_s1 + $0xd8] sm:$0xff]   ;;  %v941_v17 = vld [vmem:[%s1259_s1 + $0xe0] sm:$0xff]   ;;  %v945_v21 = vld [vmem:[%s1259_s1 + $0xe8] sm:$0xff]  }
   0x7   :  { %v938_v14 = vld [vmem:[%s1259_s1 + $0x18] sm:$0xff]   ;;  %v942_v18 = vld [vmem:[%s1259_s1 + $0x20] sm:$0xff]   ;;  %v946_v22 = vld [vmem:[%s1259_s1 + $0x28] sm:$0xff]  }
   0x8   :  { %837 = vmatpush3.bf16.msra.mxu0 %v930_v6  ;;  %v939_v15 = vld [vmem:[%s1259_s1 + $0x98] sm:$0xff]   ;;  %v943_v19 = vld [vmem:[%s1259_s1 + $0xa0] sm:$0xff]   ;;  %v947_v23 = vld [vmem:[%s1259_s1 + $0xa8] sm:$0xff]  }
   0x9   :  { %859 = vmatpush3.bf16.msra.mxu1 %v931_v7  ;;  %838 = vmatprep.subr.bf16.mxu0 %v932_v8  ;;  %v948_v24 = vld [vmem:[%s1259_s1 + $0x70] sm:$0xff]   ;;  %v952_v29 = vld [vmem:[%s1259_s1 + $0x78] sm:$0xff]   ;;  %v16_v34 = vld [vmem:[%s1258_s0] sm:$0xff] }
   0xa   :  { %860 = vmatprep.subr.bf16.mxu1 %v933_v9  ;;  %v949_v25 = vld [vmem:[%s1259_s1 + $0xf0] sm:$0xff]   ;;  %v953_v30 = vld [vmem:[%s1259_s1 + $0xf8] sm:$0xff]   ;;  %v957_v35 = vld [vmem:[%s1259_s1 + $0x140] sm:$0xff]   ;;  %v153_v39 = vcombine.high %v16_v34, %v16_v34  ;;  %v160_v42 = vrot.slane %v16_v34, %v1140_v41 }
   0xb   :  { %v950_v26 = vld [vmem:[%s1259_s1 + $0x30] sm:$0xff]   ;;  %v954_v31 = vld [vmem:[%s1259_s1 + $0x38] sm:$0xff]   ;;  %v958_v38 = vld [vmem:[%s1259_s1 + $0x1c0] sm:$0xff]  }
   0xc   :  { %839 = vmatpush3.bf16.msra.mxu0 %v934_v10  ;;  %v951_v27 = vld [vmem:[%s1259_s1 + $0xb0] sm:$0xff]   ;;  %v955_v32 = vld [vmem:[%s1259_s1 + $0xb8] sm:$0xff]   ;;  %v1144_v43 = vrot.slane %v153_v39, %v1140_v41  ;;  %v168_v44 = vcombine.high %v160_v42, %v160_v42  ;;  %v176_v45 = vrot.slane %v160_v42, %v1140_v41  ;;  %v959_v48 = vld [vmem:[%s1259_s1 + $0x100] sm:$0xff]  }
   0xd   :  { %861 = vmatpush3.bf16.msra.mxu1 %v935_v11  ;;  %840 = vmatprep.subr.bf16.mxu0 %v936_v12  ;;  %v961_v51 = vld [vmem:[%s1259_s1 + $0x148] sm:$0xff]   ;;  %v960_v53 = vld [vmem:[%s1259_s1 + $0x180] sm:$0xff]   ;;  %v965_v57 = vld [vmem:[%s1259_s1 + $0x150] sm:$0xff]  }
   0xe   :  { %862 = vmatprep.subr.bf16.mxu1 %v937_v13  ;;  %v169_v46 = vcombine.high %v1144_v43, %v1144_v43  ;;  %v190_v47 = vrot.slane %v168_v44, %v1140_v41  ;;  %v198_v50 = vcombine.high %v176_v45, %v176_v45  ;;  %v962_v54 = vld [vmem:[%s1259_s1 + $0x1c8] sm:$0xff]   ;;  %v966_v59 = vld [vmem:[%s1259_s1 + $0x1d0] sm:$0xff]   ;;  %v969_v61 = vld [vmem:[%s1259_s1 + $0x158] sm:$0xff]  }
   0xf   :  { %v963_v56 = vld [vmem:[%s1259_s1 + $0x108] sm:$0xff]   ;;  %v967_v60 = vld [vmem:[%s1259_s1 + $0x110] sm:$0xff]   ;;  %v970_v63 = vld [vmem:[%s1259_s1 + $0x1d8] sm:$0xff]  }
  0x10   :  { %841 = vmatpush3.bf16.msra.mxu0 %v938_v14  ;;  %v197_v49 = vrot.slane %v169_v46, %v1140_v41  ;;  %626 = vmatprep.mubr.bf16.mxu0 %v190_v47  ;;  %v200_v52 = vcombine.high %v190_v47, %v190_v47  ;;  %v964_v58 = vld [vmem:[%s1259_s1 + $0x188] sm:$0xff]   ;;  %v968_v62 = vld [vmem:[%s1259_s1 + $0x190] sm:$0xff]   ;;  %v971_v0 = vld [vmem:[%s1259_s1 + $0x118] sm:$0xff]  }
  0x11   :  { %863 = vmatpush3.bf16.msra.mxu1 %v939_v15  ;;  %842 = vmatprep.subr.bf16.mxu0 %v940_v16  ;;  %v973_v1 = vld [vmem:[%s1259_s1 + $0x160] sm:$0xff]   ;;  %v972_v2 = vld [vmem:[%s1259_s1 + $0x198] sm:$0xff]   ;;  %v977_v5 = vld [vmem:[%s1259_s1 + $0x168] sm:$0xff]  }
  0x12   :  { %864 = vmatprep.subr.bf16.mxu1 %v941_v17  ;;  %v201_v55 = vcombine.high %v197_v49, %v197_v49  ;;  %666 = vmatprep.mubr.bf16.mxu1 %v200_v52  ;;  %v974_v3 = vld [vmem:[%s1259_s1 + $0x1e0] sm:$0xff]   ;;  %v978_v7 = vld [vmem:[%s1259_s1 + $0x1e8] sm:$0xff]   ;;  %v981_v9 = vld [vmem:[%s1259_s1 + $0x170] sm:$0xff]  }
  0x13   :  { %v975_v4 = vld [vmem:[%s1259_s1 + $0x120] sm:$0xff]   ;;  %v979_v8 = vld [vmem:[%s1259_s1 + $0x128] sm:$0xff]  }
  0x14   :  { %843 = vmatpush3.bf16.msra.mxu0 %v942_v18  ;;  %v976_v6 = vld [vmem:[%s1259_s1 + $0x1a0] sm:$0xff]  }
  0x15   :  { %865 = vmatpush3.bf16.msra.mxu1 %v943_v19  ;;  %844 = vmatprep.subr.bf16.mxu0 %v944_v20 }
  0x16   :  { %866 = vmatprep.subr.bf16.mxu1 %v945_v21 }
  0x18   :  { %845 = vmatpush3.bf16.msra.mxu0 %v946_v22 }
  0x19   :  { %867 = vmatpush3.bf16.msra.mxu1 %v947_v23  ;;  %846 = vmatprep.subr.bf16.mxu0 %v948_v24 }
  0x1a   :  { %868 = vmatprep.subr.bf16.mxu1 %v949_v25 }
  0x1c   :  { %847 = vmatpush3.bf16.msra.mxu0 %v950_v26 }
  0x1d   :  { %869 = vmatpush3.bf16.msra.mxu1 %v951_v27  ;;  %848 = vmatprep.subr.bf16.mxu0 %v952_v29 }
  0x1e   :  { %870 = vmatprep.subr.bf16.mxu1 %v953_v30 }
  0x20   :  { %849 = vmatpush3.bf16.msra.mxu0 %v954_v31 }
  0x21   :  { %871 = vmatpush3.bf16.msra.mxu1 %v955_v32  ;;  %878 = vmatprep.subr.bf16.mxu0 %v957_v35 }
  0x22   :  { %900 = vmatprep.subr.bf16.mxu1 %v958_v38 }
  0x23   :  { %627 = vmatmul.mubr.bf16.vlgmr.msra.gmra.mrb[0].mxu0 %v176_v45 }
  0x24   :  { %879 = vmatpush3.bf16.msra.mxu0 %v959_v48  ;;  %667 = vmatmul.mubr.bf16.vlgmr.msra.gmra.mrb[0].mxu1 %v198_v50 }
  0x25   :  { %880 = vmatprep.subr.bf16.mxu0 %v961_v51  ;;  %901 = vmatpush3.bf16.msra.mxu1 %v960_v53 }
  0x26   :  { %706 = vmatprep.mubr.bf16.mxu0 %v197_v49  ;;  %902 = vmatprep.subr.bf16.mxu1 %v962_v54 }
  0x27   :  { %746 = vmatprep.mubr.bf16.mxu1 %v201_v55 }
  0x28   :  { %881 = vmatpush3.bf16.msra.mxu0 %v963_v56 }
  0x29   :  { %882 = vmatprep.subr.bf16.mxu0 %v965_v57  ;;  %903 = vmatpush3.bf16.msra.mxu1 %v964_v58 }
  0x2a   :  { %904 = vmatprep.subr.bf16.mxu1 %v966_v59 }
  0x2c   :  { %883 = vmatpush3.bf16.msra.mxu0 %v967_v60 }
  0x2d   :  { %884 = vmatprep.subr.bf16.mxu0 %v969_v61  ;;  %905 = vmatpush3.bf16.msra.mxu1 %v968_v62 }
  0x2e   :  { %906 = vmatprep.subr.bf16.mxu1 %v970_v63 }
  0x30   :  { %885 = vmatpush3.bf16.msra.mxu0 %v971_v0 }
  0x31   :  { %886 = vmatprep.subr.bf16.mxu0 %v973_v1  ;;  %907 = vmatpush3.bf16.msra.mxu1 %v972_v2 }
  0x32   :  { %908 = vmatprep.subr.bf16.mxu1 %v974_v3 }
  0x34   :  { %887 = vmatpush3.bf16.msra.mxu0 %v975_v4 }
  0x35   :  { %888 = vmatprep.subr.bf16.mxu0 %v977_v5 }
  0x36   :  { %8 = vsyncpa [#allocation3], 0  ;;  %909 = vmatpush3.bf16.msra.mxu1 %v976_v6  ;;  %v980_v10 = vld [vmem:[%s1259_s1 + $0x1a8] sm:$0xff]   ;;  %v982_v11 = vld [vmem:[%s1259_s1 + $0x1f0] sm:$0xff]   ;;  %v183_v17 = vrot.slane %v1144_v43, %v1140_v41 }
  0x37   :  { %910 = vmatprep.subr.bf16.mxu1 %v978_v7  ;;  %v983_v12 = vld [vmem:[%s1259_s1 + $0x130] sm:$0xff]   ;;  %v985_v13 = vld [vmem:[%s1259_s1 + $0x178] sm:$0xff]   ;;  %v769_v21 = vld [vmem:[%s1260_s2] ss:$0 sm:$0xff] }
  0x38   :  { %889 = vmatpush3.bf16.msra.mxu0 %v979_v8  ;;  %v984_v14 = vld [vmem:[%s1259_s1 + $0x1b0] sm:$0xff]   ;;  %v986_v15 = vld [vmem:[%s1259_s1 + $0x1f8] sm:$0xff]   ;;  %v199_v19 = vcombine.high %v183_v17, %v183_v17 }
  0x39   :  { %890 = vmatprep.subr.bf16.mxu0 %v981_v9  ;;  %v987_v16 = vld [vmem:[%s1259_s1 + $0x138] sm:$0xff]  }
  0x3a   :  { %911 = vmatpush3.bf16.msra.mxu1 %v980_v10  ;;  %v988_v18 = vld [vmem:[%s1259_s1 + $0x1b8] sm:$0xff]   ;;  %s1014_s1 = smov [#allocation2]  }
  0x3b   :  { %912 = vmatprep.subr.bf16.mxu1 %v982_v11  ;;  %s761_s2 = sshll.u32 %s1014_s1, 4  ;;  %s762_s2 = int_to_ptr.vmem [resolvable:$true] %s761_s2 }
  0x3c   :  { %891 = vmatpush3.bf16.msra.mxu0 %v983_v12  ;;  %s989_s6 = scalar_lea.vmem %s762_s2, 32  ;;  %p994_p1 = scmp.lt.s32.totalorder %s762_s2, %s762_s2 }
  0x3d   :  { %892 = vmatprep.subr.bf16.mxu0 %v985_v13  ;;  %p990_p0 = scmp.ne.s32.totalorder %s762_s2, %s989_s6  ;;  %p995_p2 = scmp.lt.s32.totalorder %s989_s6, %s989_s6 }
  0x3e   :  { %913 = vmatpush3.bf16.msra.mxu1 %v984_v14 }
  0x3f   :  { %914 = vmatprep.subr.bf16.mxu1 %v986_v15  ;;  %p996_p3 = por %p995_p2, %p994_p1 }
  0x40   :  { %893 = vmatpush3.bf16.msra.mxu0 %v987_v16 }
  0x41   :  { %p997_p4 = pnand %p996_p3, %p990_p0 }
  0x42   :  { %915 = vmatpush3.bf16.msra.mxu1 %v988_v18 }
  0x43   :  { %707 = vmatmul.mubr.bf16.vlgmr.msra.gmra.mrb[4].mxu0 %v183_v17 }
  0x45   :  { %747 = vmatmul.mubr.bf16.vlgmr.msra.gmra.mrb[4].mxu1 %v199_v19 }
  0xf6   :  { %v850_v20 = vpop.f32.mrb[0].mxu0 }
  0xf7   :  { %v851_v22 = vpop.f32.mrb[1].mxu0  ;;  %v872_v23 = vpop.f32.mrb[0].mxu1 }
  0xf8   :  { %v852_v24 = vadd.f32 %v851_v22, %v850_v20  ;;  %v853_v25 = vpop.f32.mrb[2].mxu0  ;;  %v873_v26 = vpop.f32.mrb[1].mxu1 }
  0xf9   :  { %v854_v27 = vpop.f32.mrb[3].mxu0  ;;  %v874_v29 = vadd.f32 %v873_v26, %v872_v23  ;;  %v875_v30 = vpop.f32.mrb[2].mxu1 }
  0xfa   :  { %v629_v28 = vadd.f32 %v852_v24, %v769_v21  ;;  %v876_v31 = vpop.f32.mrb[3].mxu1 }
  0xfc   :  { %v669_v32 = vadd.f32 %v874_v29, %v629_v28 }
 0x116   :  { %v894_v33 = vpop.f32.mrb[4].mxu0 }
 0x117   :  { %v895_v34 = vpop.f32.mrb[5].mxu0 }
 0x118   :  { %v916_v35 = vpop.f32.mrb[4].mxu1  ;;  %v896_v36 = vadd.f32 %v895_v34, %v894_v33  ;;  %v897_v37 = vpop.f32.mrb[6].mxu0 }
 0x119   :  { %v917_v38 = vpop.f32.mrb[5].mxu1  ;;  %v898_v39 = vpop.f32.mrb[7].mxu0 }
 0x11a   :  { %v709_v40 = vadd.f32 %v896_v36, %v669_v32  ;;  %v918_v41 = vadd.f32 %v917_v38, %v916_v35  ;;  %v919_v42 = vpop.f32.mrb[6].mxu1 }
 0x11b   :  { %v920_v43 = vpop.f32.mrb[7].mxu1 }
 0x11c   :  { %v749_v44 = vadd.f32 %v918_v41, %v709_v40 }
 0x11e   :  { %754 = vst [vmem:[#allocation2] sm:$0x3] %v749_v44 }
 0x11f   :  { %1000 = shalt.err (!%p997_p4)
}
 0x120   :  { %s1001_s9 = scalar_lea.hbm %s1261_s3, 32 }
 0x121   :  { %p1002_p5 = scmp.ne.s32.totalorder %s1261_s3, %s1001_s9  ;;  %p1005_p6 = scmp.lt.u32.totalorder %s1001_s9, %s1261_s3 }
 0x123   :  { %p1007_p7 = pnand %p1005_p6, %p1002_p5 }
 0x125   :  { %1010 = shalt.err (!%p1007_p7)
}
 0x126   :  { %764 = dma.vmem_to_hbm [thread:$0]  %s762_s2, 32, %s1261_s3, [#allocation3]  }
 0x127   :  { %1011 = dma.done.wait [#allocation3], 32  }
 0x128   :  { %1012 = vsyncadd [#allocation3], 4294967264 }
 0x129   :  { %768 = vsyncpa [#allocation3], 1 }

// kernel: mnist_cnn_forward.4
= control target key start
LH: loop header
LB: loop body
LE: loop exit
PB: predicated region body
PF: predicated region fallthrough
CT: control target
= control target key end

     0   :  { %8 = vsyncpa [#allocation3], 0  ;;  %s10165_s0 = inlined_call_operand.vmem [shape: bf16[8,2304], index: 0, kind: input, shape index: {}]   ;;  %s10166_s1 = inlined_call_operand.hbm [shape: bf16[2304,1024], index: 1, kind: input, shape index: {}]   ;;  %s10167_s2 = inlined_call_operand.hbm [shape: f32[1,256], index: 2, kind: input, shape index: {}]   ;;  %s10168_s3 = inlined_call_operand.vmem [shape: bf16[8,256], index: 3, kind: output, shape index: {}]  }
   0x1   :  { %9 = vsyncpa [#allocation5], 0  ;;  %s9907_s12 = smov [#allocation2]   ;;  %s9859_s16 = scalar_lea.hbm %s10166_s1, 147456 }
   0x2   :  { %s17_s13 = sshll.u32 %s9907_s12, 4  ;;  %p9860_p0 = scmp.ne.s32.totalorder %s10166_s1, %s9859_s16  ;;  %s18_s13 = int_to_ptr.vmem [resolvable:$true] %s17_s13 }
   0x3   :  { %p9863_p1 = scmp.lt.u32.totalorder %s9859_s16, %s10166_s1 }
   0x5   :  { %p9865_p2 = pnand %p9863_p1, %p9860_p0 }
   0x7   :  { %9868 = shalt.err (!%p9865_p2)
}
   0x8   :  { %s9869_s21 = scalar_lea.vmem %s18_s13, 147456  ;;  %p9874_p4 = scmp.lt.s32.totalorder %s18_s13, %s18_s13 }
   0x9   :  { %p9870_p3 = scmp.ne.s32.totalorder %s18_s13, %s9869_s21  ;;  %p9875_p5 = scmp.lt.s32.totalorder %s9869_s21, %s9869_s21 }
   0xb   :  { %p9876_p6 = por %p9875_p5, %p9874_p4 }
   0xd   :  { %p9877_p7 = pnand %p9876_p6, %p9870_p3 }
   0xf   :  { %9880 = shalt.err (!%p9877_p7)
}
  0x10   :  { %s9908_s22 = smov 512   ;;  %s9909_s23 = smov 32  }
  0x11   :  { %23 = dma.hbm_to_vmem [thread:$0]  %s10166_s1, 147456, %s18_s13, [#allocation3], %s9908_s22, %s9908_s22, %s9909_s23  }
  0x12   :  { %s9910_s26 = smov [#allocation4]   ;;  %s9881_s30 = scalar_lea.hbm %s10167_s2, 32 }
  0x13   :  { %s30_s27 = sshll.u32 %s9910_s26, 4  ;;  %p9882_p8 = scmp.ne.s32.totalorder %s10167_s2, %s9881_s30  ;;  %s31_s27 = int_to_ptr.vmem [resolvable:$true] %s30_s27 }
  0x14   :  { %p9885_p9 = scmp.lt.u32.totalorder %s9881_s30, %s10167_s2 }
  0x16   :  { %p9887_p10 = pnand %p9885_p9, %p9882_p8 }
  0x18   :  { %9890 = shalt.err (!%p9887_p10)
}
  0x19   :  { %s9891_s8 = scalar_lea.vmem %s31_s27, 32  ;;  %p9896_p12 = scmp.lt.s32.totalorder %s31_s27, %s31_s27 }
  0x1a   :  { %p9892_p11 = scmp.ne.s32.totalorder %s31_s27, %s9891_s8  ;;  %p9897_p13 = scmp.lt.s32.totalorder %s9891_s8, %s9891_s8 }
  0x1c   :  { %p9898_p0 = por %p9897_p13, %p9896_p12 }
  0x1e   :  { %p9899_p1 = pnand %p9898_p0, %p9892_p11 }
  0x20   :  { %9902 = shalt.err (!%p9899_p1)
}
  0x21   :  { %33 = dma.hbm_to_vmem [thread:$0]  %s10167_s2, 32, %s31_s27, [#allocation5]  }
  0x22   :  { %9903 = dma.done.wait [#allocation3], 147456  }
  0x23   :  { %9904 = vsyncadd [#allocation3], 4294819840 }
  0x24   :  { %9905 = dma.done.wait [#allocation5], 32  }
  0x25   :  { %9906 = vsyncadd [#allocation5], 4294967264  ;;  %v49_v0 = vld [vmem:[#allocation2] sm:$0xff]  ;;  %v50_v2 = vld [vmem:[#allocation2 + $0x8] sm:$0xff] }
  0x26   :  { %v53_v1 = vld [vmem:[#allocation2 + $0x20] sm:$0xff]  ;;  %v54_v4 = vld [vmem:[#allocation2 + $0x28] sm:$0xff] }
  0x27   :  { %v8556_v3 = vcombine.high %v49_v0, %v53_v1  ;;  %v8555_v5 = vcombine.low %v49_v0, %v53_v1  ;;  %v57_v6 = vld [vmem:[#allocation2 + $0x40] sm:$0xff]  ;;  %v8558_v8 = vcombine.high %v50_v2, %v54_v4  ;;  %v8557_v9 = vcombine.low %v50_v2, %v54_v4  ;;  %v58_v11 = vld [vmem:[#allocation2 + $0x48] sm:$0xff] }
  0x28   :  { %v61_v7 = vld [vmem:[#allocation2 + $0x60] sm:$0xff]  ;;  %v62_v12 = vld [vmem:[#allocation2 + $0x68] sm:$0xff] }
  0x29   :  { %v8564_v10 = vcombine.high %v57_v6, %v61_v7  ;;  %v65_v13 = vld [vmem:[#allocation2 + $0x80] sm:$0xff]  ;;  %7024 = vmatprep.subr.bf16.mxu0 %v8556_v3  ;;  %v8566_v14 = vcombine.high %v58_v11, %v62_v12  ;;  %v66_v16 = vld [vmem:[#allocation2 + $0x88] sm:$0xff]  ;;  %7393 = vmatprep.subr.bf16.mxu1 %v8558_v8  ;;  %v8563_v18 = vcombine.low %v57_v6, %v61_v7 }
  0x2a   :  { %v69_v15 = vld [vmem:[#allocation2 + $0xa0] sm:$0xff]  ;;  %v70_v17 = vld [vmem:[#allocation2 + $0xa8] sm:$0xff]  ;;  %7025 = vmatpush1.bf16.msra.mxu0 %v8555_v5  ;;  %7394 = vmatpush1.bf16.msra.mxu1 %v8557_v9  ;;  %v8565_v19 = vcombine.low %v58_v11, %v62_v12 }
  0x2b   :  { %7026 = vmatprep.subr.bf16.mxu0 %v8564_v10  ;;  %v8572_v20 = vcombine.high %v65_v13, %v69_v15  ;;  %7395 = vmatprep.subr.bf16.mxu1 %v8566_v14  ;;  %v8574_v21 = vcombine.high %v66_v16, %v70_v17  ;;  %v73_v22 = vld [vmem:[#allocation2 + $0xc0] sm:$0xff]  ;;  %v74_v24 = vld [vmem:[#allocation2 + $0xc8] sm:$0xff]  ;;  %v8571_v26 = vcombine.low %v65_v13, %v69_v15 }
  0x2c   :  { %v77_v23 = vld [vmem:[#allocation2 + $0xe0] sm:$0xff]  ;;  %v78_v25 = vld [vmem:[#allocation2 + $0xe8] sm:$0xff]  ;;  %v8573_v27 = vcombine.low %v66_v16, %v70_v17 }
  0x2d   :  { %v8580_v28 = vcombine.high %v73_v22, %v77_v23  ;;  %v8582_v29 = vcombine.high %v74_v24, %v78_v25  ;;  %v81_v30 = vld [vmem:[#allocation2 + $0x100] sm:$0xff]  ;;  %v82_v32 = vld [vmem:[#allocation2 + $0x108] sm:$0xff]  ;;  %v8579_v34 = vcombine.low %v73_v22, %v77_v23  ;;  %v8581_v35 = vcombine.low %v74_v24, %v78_v25 }
  0x2e   :  { %7027 = vmatpush1.bf16.msra.mxu0 %v8563_v18  ;;  %7396 = vmatpush1.bf16.msra.mxu1 %v8565_v19  ;;  %v85_v31 = vld [vmem:[#allocation2 + $0x120] sm:$0xff]  ;;  %v86_v33 = vld [vmem:[#allocation2 + $0x128] sm:$0xff] }
  0x2f   :  { %7028 = vmatprep.subr.bf16.mxu0 %v8572_v20  ;;  %7397 = vmatprep.subr.bf16.mxu1 %v8574_v21  ;;  %v8588_v36 = vcombine.high %v81_v30, %v85_v31  ;;  %v8590_v37 = vcombine.high %v82_v32, %v86_v33  ;;  %v89_v38 = vld [vmem:[#allocation2 + $0x140] sm:$0xff]  ;;  %v90_v40 = vld [vmem:[#allocation2 + $0x148] sm:$0xff]  ;;  %v8587_v42 = vcombine.low %v81_v30, %v85_v31 }
  0x30   :  { %v93_v39 = vld [vmem:[#allocation2 + $0x160] sm:$0xff]  ;;  %v94_v41 = vld [vmem:[#allocation2 + $0x168] sm:$0xff]  ;;  %v8589_v43 = vcombine.low %v82_v32, %v86_v33 }
  0x31   :  { %v8596_v44 = vcombine.high %v89_v38, %v93_v39  ;;  %v8598_v45 = vcombine.high %v90_v40, %v94_v41  ;;  %v97_v46 = vld [vmem:[#allocation2 + $0x180] sm:$0xff]  ;;  %v98_v48 = vld [vmem:[#allocation2 + $0x188] sm:$0xff]  ;;  %v8595_v50 = vcombine.low %v89_v38, %v93_v39  ;;  %v8597_v51 = vcombine.low %v90_v40, %v94_v41 }
  0x32   :  { %7029 = vmatpush1.bf16.msra.mxu0 %v8571_v26  ;;  %7398 = vmatpush1.bf16.msra.mxu1 %v8573_v27  ;;  %v101_v47 = vld [vmem:[#allocation2 + $0x1a0] sm:$0xff]  ;;  %v102_v49 = vld [vmem:[#allocation2 + $0x1a8] sm:$0xff] }
  0x33   :  { %7030 = vmatprep.subr.bf16.mxu0 %v8580_v28  ;;  %7399 = vmatprep.subr.bf16.mxu1 %v8582_v29  ;;  %v8604_v52 = vcombine.high %v97_v46, %v101_v47  ;;  %v9958_v53 = vld [vmem:[%s10165_s0] sm:$0xff]  ;;  %v8606_v54 = vcombine.high %v98_v48, %v102_v49  ;;  %v106_v58 = vld [vmem:[#allocation2 + $0x1c8] sm:$0xff]  ;;  %v8603_v60 = vcombine.low %v97_v46, %v101_v47 }
  0x34   :  { %v105_v55 = vld [vmem:[#allocation2 + $0x1c0] sm:$0xff]  ;;  %v9962_v57 = vcombine.high %v9958_v53, %v9958_v53  ;;  %v110_v59 = vld [vmem:[#allocation2 + $0x1e8] sm:$0xff]  ;;  %v8605_v61 = vcombine.low %v98_v48, %v102_v49 }
  0x35   :  { %v109_v56 = vld [vmem:[#allocation2 + $0x1e0] sm:$0xff]  ;;  %v8614_v63 = vcombine.high %v106_v58, %v110_v59  ;;  %v114_v2 = vld [vmem:[#allocation2 + $0x208] sm:$0xff]  ;;  %v8613_v5 = vcombine.low %v106_v58, %v110_v59 }
  0x36   :  { %7031 = vmatpush1.bf16.msra.mxu0 %v8579_v34  ;;  %7400 = vmatpush1.bf16.msra.mxu1 %v8581_v35  ;;  %v8612_v62 = vcombine.high %v105_v55, %v109_v56  ;;  %v113_v0 = vld [vmem:[#allocation2 + $0x200] sm:$0xff]  ;;  %v118_v3 = vld [vmem:[#allocation2 + $0x228] sm:$0xff]  ;;  %v8611_v4 = vcombine.low %v105_v55, %v109_v56 }
  0x37   :  { %7032 = vmatprep.subr.bf16.mxu0 %v8588_v36  ;;  %7401 = vmatprep.subr.bf16.mxu1 %v8590_v37  ;;  %v117_v1 = vld [vmem:[#allocation2 + $0x220] sm:$0xff]  ;;  %v8622_v7 = vcombine.high %v114_v2, %v118_v3  ;;  %v122_v10 = vld [vmem:[#allocation2 + $0x248] sm:$0xff]  ;;  %v8621_v13 = vcombine.low %v114_v2, %v118_v3 }
  0x38   :  { %7056 = vmatprep.mubr.bf16.mxu0 %v9962_v57  ;;  %7425 = vmatprep.mubr.bf16.mxu1 %v9962_v57  ;;  %v8620_v6 = vcombine.high %v113_v0, %v117_v1  ;;  %v121_v8 = vld [vmem:[#allocation2 + $0x240] sm:$0xff]  ;;  %v126_v11 = vld [vmem:[#allocation2 + $0x268] sm:$0xff]  ;;  %v8619_v12 = vcombine.low %v113_v0, %v117_v1 }
  0x39   :  { %v125_v9 = vld [vmem:[#allocation2 + $0x260] sm:$0xff]  ;;  %v8630_v15 = vcombine.high %v122_v10, %v126_v11  ;;  %v130_v18 = vld [vmem:[#allocation2 + $0x288] sm:$0xff]  ;;  %v8629_v21 = vcombine.low %v122_v10, %v126_v11 }
  0x3a   :  { %7033 = vmatpush1.bf16.msra.mxu0 %v8587_v42  ;;  %7402 = vmatpush1.bf16.msra.mxu1 %v8589_v43  ;;  %v8628_v14 = vcombine.high %v121_v8, %v125_v9  ;;  %v129_v16 = vld [vmem:[#allocation2 + $0x280] sm:$0xff]  ;;  %v134_v19 = vld [vmem:[#allocation2 + $0x2a8] sm:$0xff]  ;;  %v8627_v20 = vcombine.low %v121_v8, %v125_v9 }
  0x3b   :  { %7034 = vmatprep.subr.bf16.mxu0 %v8596_v44  ;;  %7403 = vmatprep.subr.bf16.mxu1 %v8598_v45  ;;  %v133_v17 = vld [vmem:[#allocation2 + $0x2a0] sm:$0xff]  ;;  %v8638_v23 = vcombine.high %v130_v18, %v134_v19  ;;  %v138_v26 = vld [vmem:[#allocation2 + $0x2c8] sm:$0xff]  ;;  %v8637_v29 = vcombine.low %v130_v18, %v134_v19 }
  0x3c   :  { %v8636_v22 = vcombine.high %v129_v16, %v133_v17  ;;  %v137_v24 = vld [vmem:[#allocation2 + $0x2c0] sm:$0xff]  ;;  %v142_v27 = vld [vmem:[#allocation2 + $0x2e8] sm:$0xff]  ;;  %v8635_v28 = vcombine.low %v129_v16, %v133_v17 }
  0x3d   :  { %v141_v25 = vld [vmem:[#allocation2 + $0x2e0] sm:$0xff]  ;;  %v8646_v31 = vcombine.high %v138_v26, %v142_v27  ;;  %v146_v34 = vld [vmem:[#allocation2 + $0x308] sm:$0xff]  ;;  %v8645_v37 = vcombine.low %v138_v26, %v142_v27 }
  0x3e   :  { %7035 = vmatpush1.bf16.msra.mxu0 %v8595_v50  ;;  %7404 = vmatpush1.bf16.msra.mxu1 %v8597_v51  ;;  %v8644_v30 = vcombine.high %v137_v24, %v141_v25  ;;  %v145_v32 = vld [vmem:[#allocation2 + $0x300] sm:$0xff]  ;;  %v150_v35 = vld [vmem:[#allocation2 + $0x328] sm:$0xff]  ;;  %v8643_v36 = vcombine.low %v137_v24, %v141_v25 }
  0x3f   :  { %7036 = vmatprep.subr.bf16.mxu0 %v8604_v52  ;;  %7405 = vmatprep.subr.bf16.mxu1 %v8606_v54  ;;  %v149_v33 = vld [vmem:[#allocation2 + $0x320] sm:$0xff]  ;;  %v8654_v39 = vcombine.high %v146_v34, %v150_v35  ;;  %v154_v42 = vld [vmem:[#allocation2 + $0x348] sm:$0xff]  ;;  %v8653_v45 = vcombine.low %v146_v34, %v150_v35 }
  0x40   :  { %v8652_v38 = vcombine.high %v145_v32, %v149_v33  ;;  %v153_v40 = vld [vmem:[#allocation2 + $0x340] sm:$0xff]  ;;  %v158_v43 = vld [vmem:[#allocation2 + $0x368] sm:$0xff]  ;;  %v8651_v44 = vcombine.low %v145_v32, %v149_v33 }
  0x41   :  { %v157_v41 = vld [vmem:[#allocation2 + $0x360] sm:$0xff]  ;;  %v8662_v47 = vcombine.high %v154_v42, %v158_v43  ;;  %v162_v50 = vld [vmem:[#allocation2 + $0x388] sm:$0xff]  ;;  %v8661_v54 = vcombine.low %v154_v42, %v158_v43 }
  0x42   :  { %7037 = vmatpush1.bf16.msra.mxu0 %v8603_v60  ;;  %7406 = vmatpush1.bf16.msra.mxu1 %v8605_v61  ;;  %v8660_v46 = vcombine.high %v153_v40, %v157_v41  ;;  %v161_v48 = vld [vmem:[#allocation2 + $0x380] sm:$0xff]  ;;  %v166_v51 = vld [vmem:[#allocation2 + $0x3a8] sm:$0xff]  ;;  %v8659_v52 = vcombine.low %v153_v40, %v157_v41 }
  0x43   :  { %7038 = vmatprep.subr.bf16.mxu0 %v8612_v62  ;;  %7407 = vmatprep.subr.bf16.mxu1 %v8614_v63  ;;  %v165_v49 = vld [vmem:[#allocation2 + $0x3a0] sm:$0xff]  ;;  %v8670_v56 = vcombine.high %v162_v50, %v166_v51  ;;  %v170_v60 = vld [vmem:[#allocation2 + $0x3c8] sm:$0xff]  ;;  %v8669_v63 = vcombine.low %v162_v50, %v166_v51 }
  0x44   :  { %v8668_v55 = vcombine.high %v161_v48, %v165_v49  ;;  %v169_v58 = vld [vmem:[#allocation2 + $0x3c0] sm:$0xff]  ;;  %v174_v61 = vld [vmem:[#allocation2 + $0x3e8] sm:$0xff]  ;;  %v8667_v62 = vcombine.low %v161_v48, %v165_v49 }
  0x45   :  { %v173_v59 = vld [vmem:[#allocation2 + $0x3e0] sm:$0xff]  ;;  %v8678_v1 = vcombine.high %v170_v60, %v174_v61 }
  0x46   :  { %7039 = vmatpush1.bf16.msra.mxu0 %v8611_v4  ;;  %7408 = vmatpush1.bf16.msra.mxu1 %v8613_v5  ;;  %v8676_v0 = vcombine.high %v169_v58, %v173_v59  ;;  %v177_v2 = vld [vmem:[#allocation2 + $0x400] sm:$0xff]  ;;  %v178_v4 = vld [vmem:[#allocation2 + $0x408] sm:$0xff] }
  0x47   :  { %7040 = vmatprep.subr.bf16.mxu0 %v8620_v6  ;;  %7409 = vmatprep.subr.bf16.mxu1 %v8622_v7  ;;  %v181_v3 = vld [vmem:[#allocation2 + $0x420] sm:$0xff]  ;;  %v182_v5 = vld [vmem:[#allocation2 + $0x428] sm:$0xff]  ;;  %v8675_v6 = vcombine.low %v169_v58, %v173_v59  ;;  %v8677_v7 = vcombine.low %v170_v60, %v174_v61 }
  0x48   :  { %v8684_v8 = vcombine.high %v177_v2, %v181_v3  ;;  %v8686_v9 = vcombine.high %v178_v4, %v182_v5  ;;  %v185_v10 = vld [vmem:[#allocation2 + $0x440] sm:$0xff]  ;;  %v8683_v16 = vcombine.low %v177_v2, %v181_v3  ;;  %v8685_v17 = vcombine.low %v178_v4, %v182_v5 }
  0x49   :  { %v189_v11 = vld [vmem:[#allocation2 + $0x460] sm:$0xff] }
  0x4a   :  { %7041 = vmatpush1.bf16.msra.mxu0 %v8619_v12  ;;  %7410 = vmatpush1.bf16.msra.mxu1 %v8621_v13  ;;  %v9968_v12 = vcombine.low %v9958_v53, %v9958_v53  ;;  %v186_v13 = vld [vmem:[#allocation2 + $0x448] sm:$0xff]  ;;  %v8692_v18 = vcombine.high %v185_v10, %v189_v11  ;;  %v8691_v24 = vcombine.low %v185_v10, %v189_v11 }
  0x4b   :  { %7042 = vmatprep.subr.bf16.mxu0 %v8628_v14  ;;  %7411 = vmatprep.subr.bf16.mxu1 %v8630_v15  ;;  %v190_v14 = vld [vmem:[#allocation2 + $0x468] sm:$0xff] }
  0x4c   :  { %v9973_v15 = vld [vmem:[%s10165_s0 + $0x8] sm:$0xff]  ;;  %v8694_v19 = vcombine.high %v186_v13, %v190_v14  ;;  %v8693_v25 = vcombine.low %v186_v13, %v190_v14 }
  0x4d   :  { %v9977_v53 = vcombine.high %v9973_v15, %v9973_v15 }
  0x4e   :  { %7043 = vmatpush1.bf16.msra.mxu0 %v8627_v20  ;;  %7412 = vmatpush1.bf16.msra.mxu1 %v8629_v21  ;;  %v193_v20 = vld [vmem:[#allocation2 + $0x480] sm:$0xff] }
  0x4f   :  { %7044 = vmatprep.subr.bf16.mxu0 %v8636_v22  ;;  %7413 = vmatprep.subr.bf16.mxu1 %v8638_v23  ;;  %v197_v21 = vld [vmem:[#allocation2 + $0x4a0] sm:$0xff]  ;;  %v194_v22 = vld [vmem:[#allocation2 + $0x488] sm:$0xff] }
  0x50   :  { %v198_v23 = vld [vmem:[#allocation2 + $0x4a8] sm:$0xff]  ;;  %v8700_v26 = vcombine.high %v193_v20, %v197_v21  ;;  %v8699_v32 = vcombine.low %v193_v20, %v197_v21 }
  0x51   :  { %v8702_v27 = vcombine.high %v194_v22, %v198_v23  ;;  %v8701_v33 = vcombine.low %v194_v22, %v198_v23 }
  0x52   :  { %7045 = vmatpush1.bf16.msra.mxu0 %v8635_v28  ;;  %7414 = vmatpush1.bf16.msra.mxu1 %v8637_v29  ;;  %v201_v28 = vld [vmem:[#allocation2 + $0x4c0] sm:$0xff] }
  0x53   :  { %7046 = vmatprep.subr.bf16.mxu0 %v8644_v30  ;;  %7415 = vmatprep.subr.bf16.mxu1 %v8646_v31  ;;  %v205_v29 = vld [vmem:[#allocation2 + $0x4e0] sm:$0xff]  ;;  %v202_v30 = vld [vmem:[#allocation2 + $0x4c8] sm:$0xff] }
  0x54   :  { %v206_v31 = vld [vmem:[#allocation2 + $0x4e8] sm:$0xff]  ;;  %v8708_v34 = vcombine.high %v201_v28, %v205_v29  ;;  %v8707_v40 = vcombine.low %v201_v28, %v205_v29 }
  0x55   :  { %v8710_v35 = vcombine.high %v202_v30, %v206_v31  ;;  %v8709_v41 = vcombine.low %v202_v30, %v206_v31 }
  0x56   :  { %7047 = vmatpush1.bf16.msra.mxu0 %v8643_v36  ;;  %7416 = vmatpush1.bf16.msra.mxu1 %v8645_v37  ;;  %v209_v36 = vld [vmem:[#allocation2 + $0x500] sm:$0xff] }
  0x57   :  { %7048 = vmatprep.subr.bf16.mxu0 %v8652_v38  ;;  %7417 = vmatprep.subr.bf16.mxu1 %v8654_v39  ;;  %v213_v37 = vld [vmem:[#allocation2 + $0x520] sm:$0xff]  ;;  %v210_v38 = vld [vmem:[#allocation2 + $0x508] sm:$0xff] }
  0x58   :  { %v214_v39 = vld [vmem:[#allocation2 + $0x528] sm:$0xff]  ;;  %v8716_v42 = vcombine.high %v209_v36, %v213_v37  ;;  %v8715_v48 = vcombine.low %v209_v36, %v213_v37 }
  0x59   :  { %v8718_v43 = vcombine.high %v210_v38, %v214_v39  ;;  %v8717_v49 = vcombine.low %v210_v38, %v214_v39 }
  0x5a   :  { %7049 = vmatpush1.bf16.msra.mxu0 %v8651_v44  ;;  %7418 = vmatpush1.bf16.msra.mxu1 %v8653_v45  ;;  %v217_v44 = vld [vmem:[#allocation2 + $0x540] sm:$0xff] }
  0x5b   :  { %7050 = vmatprep.subr.bf16.mxu0 %v8660_v46  ;;  %7419 = vmatprep.subr.bf16.mxu1 %v8662_v47  ;;  %v221_v45 = vld [vmem:[#allocation2 + $0x560] sm:$0xff]  ;;  %v218_v46 = vld [vmem:[#allocation2 + $0x548] sm:$0xff] }
  0x5c   :  { %v222_v47 = vld [vmem:[#allocation2 + $0x568] sm:$0xff]  ;;  %v8724_v50 = vcombine.high %v217_v44, %v221_v45  ;;  %v8723_v58 = vcombine.low %v217_v44, %v221_v45 }
  0x5d   :  { %v8726_v51 = vcombine.high %v218_v46, %v222_v47  ;;  %v8725_v59 = vcombine.low %v218_v46, %v222_v47 }
  0x5e   :  { %7051 = vmatpush1.bf16.msra.mxu0 %v8659_v52  ;;  %7420 = vmatpush1.bf16.msra.mxu1 %v8661_v54  ;;  %v225_v52 = vld [vmem:[#allocation2 + $0x580] sm:$0xff] }
  0x5f   :  { %7052 = vmatprep.subr.bf16.mxu0 %v8668_v55  ;;  %7421 = vmatprep.subr.bf16.mxu1 %v8670_v56  ;;  %v229_v54 = vld [vmem:[#allocation2 + $0x5a0] sm:$0xff]  ;;  %v226_v55 = vld [vmem:[#allocation2 + $0x588] sm:$0xff] }
  0x60   :  { %v230_v56 = vld [vmem:[#allocation2 + $0x5a8] sm:$0xff]  ;;  %v8732_v60 = vcombine.high %v225_v52, %v229_v54  ;;  %v8731_v2 = vcombine.low %v225_v52, %v229_v54 }
  0x61   :  { %v8734_v61 = vcombine.high %v226_v55, %v230_v56  ;;  %v8733_v3 = vcombine.low %v226_v55, %v230_v56 }
  0x62   :  { %7053 = vmatpush1.bf16.msra.mxu0 %v8667_v62  ;;  %7422 = vmatpush1.bf16.msra.mxu1 %v8669_v63  ;;  %v233_v62 = vld [vmem:[#allocation2 + $0x5c0] sm:$0xff] }
  0x63   :  { %7054 = vmatprep.subr.bf16.mxu0 %v8676_v0  ;;  %7423 = vmatprep.subr.bf16.mxu1 %v8678_v1  ;;  %v237_v63 = vld [vmem:[#allocation2 + $0x5e0] sm:$0xff]  ;;  %v234_v0 = vld [vmem:[#allocation2 + $0x5c8] sm:$0xff] }
  0x64   :  { %v238_v1 = vld [vmem:[#allocation2 + $0x5e8] sm:$0xff]  ;;  %v8740_v4 = vcombine.high %v233_v62, %v237_v63  ;;  %v8739_v10 = vcombine.low %v233_v62, %v237_v63 }
  0x65   :  { %v8742_v5 = vcombine.high %v234_v0, %v238_v1  ;;  %v8741_v11 = vcombine.low %v234_v0, %v238_v1 }
  0x66   :  { %7055 = vmatpush1.bf16.msra.mxu0 %v8675_v6  ;;  %7424 = vmatpush1.bf16.msra.mxu1 %v8677_v7  ;;  %v241_v6 = vld [vmem:[#allocation2 + $0x600] sm:$0xff] }
  0x67   :  { %7065 = vmatprep.subr.bf16.mxu0 %v8684_v8  ;;  %7434 = vmatprep.subr.bf16.mxu1 %v8686_v9  ;;  %v245_v7 = vld [vmem:[#allocation2 + $0x620] sm:$0xff]  ;;  %v242_v8 = vld [vmem:[#allocation2 + $0x608] sm:$0xff] }
  0x68   :  { %v246_v9 = vld [vmem:[#allocation2 + $0x628] sm:$0xff]  ;;  %v8748_v13 = vcombine.high %v241_v6, %v245_v7  ;;  %v8747_v20 = vcombine.low %v241_v6, %v245_v7 }
  0x69   :  { %7057 = vmatmul.mubr.bf16.vlgmr.msra.gmra.mrb[0].mxu0 %v9968_v12  ;;  %7426 = vmatmul.mubr.bf16.vlgmr.msra.gmra.mrb[0].mxu1 %v9968_v12  ;;  %v8750_v14 = vcombine.high %v242_v8, %v246_v9  ;;  %v8749_v21 = vcombine.low %v242_v8, %v246_v9 }
  0x6a   :  { %7066 = vmatpush1.bf16.msra.mxu0 %v8683_v16  ;;  %7435 = vmatpush1.bf16.msra.mxu1 %v8685_v17  ;;  %v249_v16 = vld [vmem:[#allocation2 + $0x640] sm:$0xff] }
  0x6b   :  { %7067 = vmatprep.subr.bf16.mxu0 %v8692_v18  ;;  %7436 = vmatprep.subr.bf16.mxu1 %v8694_v19  ;;  %v253_v17 = vld [vmem:[#allocation2 + $0x660] sm:$0xff]  ;;  %v250_v18 = vld [vmem:[#allocation2 + $0x648] sm:$0xff] }
  0x6c   :  { %7097 = vmatprep.mubr.bf16.mxu0 %v9977_v53  ;;  %7466 = vmatprep.mubr.bf16.mxu1 %v9977_v53  ;;  %v254_v19 = vld [vmem:[#allocation2 + $0x668] sm:$0xff]  ;;  %v8756_v22 = vcombine.high %v249_v16, %v253_v17  ;;  %v8755_v28 = vcombine.low %v249_v16, %v253_v17 }
  0x6d   :  { %v8758_v23 = vcombine.high %v250_v18, %v254_v19  ;;  %v8757_v29 = vcombine.low %v250_v18, %v254_v19 }
  0x6e   :  { %7068 = vmatpush1.bf16.msra.mxu0 %v8691_v24  ;;  %7437 = vmatpush1.bf16.msra.mxu1 %v8693_v25  ;;  %v257_v24 = vld [vmem:[#allocation2 + $0x680] sm:$0xff] }
  0x6f   :  { %7069 = vmatprep.subr.bf16.mxu0 %v8700_v26  ;;  %7438 = vmatprep.subr.bf16.mxu1 %v8702_v27  ;;  %v261_v25 = vld [vmem:[#allocation2 + $0x6a0] sm:$0xff]  ;;  %v258_v26 = vld [vmem:[#allocation2 + $0x688] sm:$0xff] }
  0x70   :  { %v262_v27 = vld [vmem:[#allocation2 + $0x6a8] sm:$0xff]  ;;  %v8764_v30 = vcombine.high %v257_v24, %v261_v25  ;;  %v8763_v36 = vcombine.low %v257_v24, %v261_v25  ;;  %v9990_v25 = vld [vmem:[%s10165_s0 + $0x10] sm:$0xff] }
  0x71   :  { %v8766_v31 = vcombine.high %v258_v26, %v262_v27  ;;  %v8765_v37 = vcombine.low %v258_v26, %v262_v27  ;;  %v318_v24 = vld [vmem:[#allocation2 + $0x868] sm:$0xff] }
  0x72   :  { %7070 = vmatpush1.bf16.msra.mxu0 %v8699_v32  ;;  %7439 = vmatpush1.bf16.msra.mxu1 %v8701_v33  ;;  %v265_v32 = vld [vmem:[#allocation2 + $0x6c0] sm:$0xff] }
  0x73   :  { %7071 = vmatprep.subr.bf16.mxu0 %v8708_v34  ;;  %7440 = vmatprep.subr.bf16.mxu1 %v8710_v35  ;;  %v269_v33 = vld [vmem:[#allocation2 + $0x6e0] sm:$0xff]  ;;  %v266_v34 = vld [vmem:[#allocation2 + $0x6c8] sm:$0xff] }
  0x74   :  { %v270_v35 = vld [vmem:[#allocation2 + $0x6e8] sm:$0xff]  ;;  %v8772_v38 = vcombine.high %v265_v32, %v269_v33  ;;  %v8771_v44 = vcombine.low %v265_v32, %v269_v33 }
  0x75   :  { %v8774_v39 = vcombine.high %v266_v34, %v270_v35  ;;  %v8773_v45 = vcombine.low %v266_v34, %v270_v35  ;;  %v322_v32 = vld [vmem:[#allocation2 + $0x888] sm:$0xff] }
  0x76   :  { %7072 = vmatpush1.bf16.msra.mxu0 %v8707_v40  ;;  %7441 = vmatpush1.bf16.msra.mxu1 %v8709_v41  ;;  %v273_v40 = vld [vmem:[#allocation2 + $0x700] sm:$0xff]  ;;  %v326_v33 = vld [vmem:[#allocation2 + $0x8a8] sm:$0xff] }
  0x77   :  { %7073 = vmatprep.subr.bf16.mxu0 %v8716_v42  ;;  %7442 = vmatprep.subr.bf16.mxu1 %v8718_v43  ;;  %v277_v41 = vld [vmem:[#allocation2 + $0x720] sm:$0xff]  ;;  %v274_v42 = vld [vmem:[#allocation2 + $0x708] sm:$0xff] }
  0x78   :  { %v278_v43 = vld [vmem:[#allocation2 + $0x728] sm:$0xff]  ;;  %v8780_v46 = vcombine.high %v273_v40, %v277_v41  ;;  %v8779_v52 = vcombine.low %v273_v40, %v277_v41 }
  0x79   :  { %v8782_v47 = vcombine.high %v274_v42, %v278_v43  ;;  %v8781_v54 = vcombine.low %v274_v42, %v278_v43  ;;  %v330_v40 = vld [vmem:[#allocation2 + $0x8c8] sm:$0xff]  ;;  %v8829_v43 = vcombine.low %v322_v32, %v326_v33 }
  0x7a   :  { %7074 = vmatpush1.bf16.msra.mxu0 %v8715_v48  ;;  %7443 = vmatpush1.bf16.msra.mxu1 %v8717_v49  ;;  %v281_v48 = vld [vmem:[#allocation2 + $0x740] sm:$0xff]  ;;  %v334_v41 = vld [vmem:[#allocation2 + $0x8e8] sm:$0xff] }
  0x7b   :  { %7075 = vmatprep.subr.bf16.mxu0 %v8724_v50  ;;  %7444 = vmatprep.subr.bf16.mxu1 %v8726_v51  ;;  %v285_v49 = vld [vmem:[#allocation2 + $0x760] sm:$0xff]  ;;  %v282_v50 = vld [vmem:[#allocation2 + $0x748] sm:$0xff] }
  0x7c   :  { %v286_v51 = vld [vmem:[#allocation2 + $0x768] sm:$0xff]  ;;  %v8788_v55 = vcombine.high %v281_v48, %v285_v49  ;;  %v8787_v62 = vcombine.low %v281_v48, %v285_v49 }
  0x7d   :  { %v8790_v56 = vcombine.high %v282_v50, %v286_v51  ;;  %v8789_v63 = vcombine.low %v282_v50, %v286_v51  ;;  %v338_v48 = vld [vmem:[#allocation2 + $0x908] sm:$0xff]  ;;  %v8837_v51 = vcombine.low %v330_v40, %v334_v41 }
  0x7e   :  { %7076 = vmatpush1.bf16.msra.mxu0 %v8723_v58  ;;  %7445 = vmatpush1.bf16.msra.mxu1 %v8725_v59  ;;  %v289_v58 = vld [vmem:[#allocation2 + $0x780] sm:$0xff]  ;;  %v342_v49 = vld [vmem:[#allocation2 + $0x928] sm:$0xff] }
  0x7f   :  { %7077 = vmatprep.subr.bf16.mxu0 %v8732_v60  ;;  %7446 = vmatprep.subr.bf16.mxu1 %v8734_v61  ;;  %v293_v59 = vld [vmem:[#allocation2 + $0x7a0] sm:$0xff]  ;;  %v290_v60 = vld [vmem:[#allocation2 + $0x788] sm:$0xff] }
  0x80   :  { %v294_v61 = vld [vmem:[#allocation2 + $0x7a8] sm:$0xff]  ;;  %v8796_v0 = vcombine.high %v289_v58, %v293_v59  ;;  %v8795_v6 = vcombine.low %v289_v58, %v293_v59 }
  0x81   :  { %v8798_v1 = vcombine.high %v290_v60, %v294_v61  ;;  %v8797_v7 = vcombine.low %v290_v60, %v294_v61  ;;  %v346_v58 = vld [vmem:[#allocation2 + $0x948] sm:$0xff]  ;;  %v8845_v61 = vcombine.low %v338_v48, %v342_v49 }
  0x82   :  { %7078 = vmatpush1.bf16.msra.mxu0 %v8731_v2  ;;  %7447 = vmatpush1.bf16.msra.mxu1 %v8733_v3  ;;  %v297_v2 = vld [vmem:[#allocation2 + $0x7c0] sm:$0xff]  ;;  %v350_v59 = vld [vmem:[#allocation2 + $0x968] sm:$0xff] }
  0x83   :  { %7079 = vmatprep.subr.bf16.mxu0 %v8740_v4  ;;  %7448 = vmatprep.subr.bf16.mxu1 %v8742_v5  ;;  %v301_v3 = vld [vmem:[#allocation2 + $0x7e0] sm:$0xff]  ;;  %v298_v4 = vld [vmem:[#allocation2 + $0x7c8] sm:$0xff] }
  0x84   :  { %v302_v5 = vld [vmem:[#allocation2 + $0x7e8] sm:$0xff]  ;;  %v8804_v8 = vcombine.high %v297_v2, %v301_v3  ;;  %v8803_v16 = vcombine.low %v297_v2, %v301_v3 }
  0x85   :  { %v8806_v9 = vcombine.high %v298_v4, %v302_v5  ;;  %v8805_v17 = vcombine.low %v298_v4, %v302_v5  ;;  %v354_v2 = vld [vmem:[#allocation2 + $0x988] sm:$0xff]  ;;  %v8853_v5 = vcombine.low %v346_v58, %v350_v59 }
  0x86   :  { %7080 = vmatpush1.bf16.msra.mxu0 %v8739_v10  ;;  %7449 = vmatpush1.bf16.msra.mxu1 %v8741_v11  ;;  %v305_v10 = vld [vmem:[#allocation2 + $0x800] sm:$0xff]  ;;  %v358_v3 = vld [vmem:[#allocation2 + $0x9a8] sm:$0xff] }
  0x87   :  { %7081 = vmatprep.subr.bf16.mxu0 %v8748_v13  ;;  %7450 = vmatprep.subr.bf16.mxu1 %v8750_v14  ;;  %v309_v11 = vld [vmem:[#allocation2 + $0x820] sm:$0xff]  ;;  %v306_v13 = vld [vmem:[#allocation2 + $0x808] sm:$0xff] }
  0x88   :  { %v310_v14 = vld [vmem:[#allocation2 + $0x828] sm:$0xff]  ;;  %v8812_v18 = vcombine.high %v305_v10, %v309_v11  ;;  %v8811_v26 = vcombine.low %v305_v10, %v309_v11 }
  0x89   :  { %v8814_v19 = vcombine.high %v306_v13, %v310_v14  ;;  %v8813_v27 = vcombine.low %v306_v13, %v310_v14  ;;  %v362_v10 = vld [vmem:[#allocation2 + $0x9c8] sm:$0xff]  ;;  %v8861_v14 = vcombine.low %v354_v2, %v358_v3 }
  0x8a   :  { %7082 = vmatpush1.bf16.msra.mxu0 %v8747_v20  ;;  %7451 = vmatpush1.bf16.msra.mxu1 %v8749_v21  ;;  %v313_v20 = vld [vmem:[#allocation2 + $0x840] sm:$0xff]  ;;  %v366_v11 = vld [vmem:[#allocation2 + $0x9e8] sm:$0xff] }
  0x8b   :  { %7083 = vmatprep.subr.bf16.mxu0 %v8756_v22  ;;  %7452 = vmatprep.subr.bf16.mxu1 %v8758_v23  ;;  %v317_v21 = vld [vmem:[#allocation2 + $0x860] sm:$0xff]  ;;  %v9985_v22 = vcombine.low %v9973_v15, %v9973_v15  ;;  %v314_v23 = vld [vmem:[#allocation2 + $0x848] sm:$0xff]  ;;  %v9994_v15 = vcombine.high %v9990_v25, %v9990_v25 }
  0x8c   :  { %v8819_v34 = vcombine.low %v313_v20, %v317_v21  ;;  %v8821_v35 = vcombine.low %v314_v23, %v318_v24 }
  0x8e   :  { %7084 = vmatpush1.bf16.msra.mxu0 %v8755_v28  ;;  %7453 = vmatpush1.bf16.msra.mxu1 %v8757_v29  ;;  %v8820_v28 = vcombine.high %v313_v20, %v317_v21  ;;  %v8822_v29 = vcombine.high %v314_v23, %v318_v24  ;;  %v370_v20 = vld [vmem:[#allocation2 + $0xa08] sm:$0xff]  ;;  %v8869_v24 = vcombine.low %v362_v10, %v366_v11 }
  0x8f   :  { %7085 = vmatprep.subr.bf16.mxu0 %v8764_v30  ;;  %7454 = vmatprep.subr.bf16.mxu1 %v8766_v31  ;;  %v321_v30 = vld [vmem:[#allocation2 + $0x880] sm:$0xff]  ;;  %v374_v21 = vld [vmem:[#allocation2 + $0xa28] sm:$0xff] }
  0x90   :  { %v325_v31 = vld [vmem:[#allocation2 + $0x8a0] sm:$0xff] }
  0x91   :  { %v8827_v42 = vcombine.low %v321_v30, %v325_v31 }
  0x92   :  { %7086 = vmatpush1.bf16.msra.mxu0 %v8763_v36  ;;  %7455 = vmatpush1.bf16.msra.mxu1 %v8765_v37  ;;  %v8828_v36 = vcombine.high %v321_v30, %v325_v31  ;;  %v8830_v37 = vcombine.high %v322_v32, %v326_v33  ;;  %v378_v30 = vld [vmem:[#allocation2 + $0xa48] sm:$0xff]  ;;  %v8877_v33 = vcombine.low %v370_v20, %v374_v21 }
  0x93   :  { %7087 = vmatprep.subr.bf16.mxu0 %v8772_v38  ;;  %7456 = vmatprep.subr.bf16.mxu1 %v8774_v39  ;;  %v329_v38 = vld [vmem:[#allocation2 + $0x8c0] sm:$0xff]  ;;  %v382_v31 = vld [vmem:[#allocation2 + $0xa68] sm:$0xff] }
  0x94   :  { %v333_v39 = vld [vmem:[#allocation2 + $0x8e0] sm:$0xff] }
  0x95   :  { %v8835_v50 = vcombine.low %v329_v38, %v333_v39 }
  0x96   :  { %7088 = vmatpush1.bf16.msra.mxu0 %v8771_v44  ;;  %7457 = vmatpush1.bf16.msra.mxu1 %v8773_v45  ;;  %v8836_v44 = vcombine.high %v329_v38, %v333_v39  ;;  %v8838_v45 = vcombine.high %v330_v40, %v334_v41  ;;  %v386_v38 = vld [vmem:[#allocation2 + $0xa88] sm:$0xff]  ;;  %v8885_v41 = vcombine.low %v378_v30, %v382_v31 }
  0x97   :  { %7089 = vmatprep.subr.bf16.mxu0 %v8780_v46  ;;  %7458 = vmatprep.subr.bf16.mxu1 %v8782_v47  ;;  %v337_v46 = vld [vmem:[#allocation2 + $0x900] sm:$0xff]  ;;  %v390_v39 = vld [vmem:[#allocation2 + $0xaa8] sm:$0xff] }
  0x98   :  { %v341_v47 = vld [vmem:[#allocation2 + $0x920] sm:$0xff] }
  0x99   :  { %v8843_v60 = vcombine.low %v337_v46, %v341_v47 }
  0x9a   :  { %7090 = vmatpush1.bf16.msra.mxu0 %v8779_v52  ;;  %7459 = vmatpush1.bf16.msra.mxu1 %v8781_v54  ;;  %v8844_v52 = vcombine.high %v337_v46, %v341_v47  ;;  %v8846_v54 = vcombine.high %v338_v48, %v342_v49  ;;  %v394_v46 = vld [vmem:[#allocation2 + $0xac8] sm:$0xff]  ;;  %v8893_v49 = vcombine.low %v386_v38, %v390_v39 }
  0x9b   :  { %7091 = vmatprep.subr.bf16.mxu0 %v8788_v55  ;;  %7460 = vmatprep.subr.bf16.mxu1 %v8790_v56  ;;  %v345_v55 = vld [vmem:[#allocation2 + $0x940] sm:$0xff]  ;;  %v398_v47 = vld [vmem:[#allocation2 + $0xae8] sm:$0xff] }
  0x9c   :  { %v349_v56 = vld [vmem:[#allocation2 + $0x960] sm:$0xff] }
  0x9d   :  { %v8851_v4 = vcombine.low %v345_v55, %v349_v56 }
  0x9e   :  { %7092 = vmatpush1.bf16.msra.mxu0 %v8787_v62  ;;  %7461 = vmatpush1.bf16.msra.mxu1 %v8789_v63  ;;  %v8852_v62 = vcombine.high %v345_v55, %v349_v56  ;;  %v8854_v63 = vcombine.high %v346_v58, %v350_v59  ;;  %v402_v55 = vld [vmem:[#allocation2 + $0xb08] sm:$0xff]  ;;  %v8901_v59 = vcombine.low %v394_v46, %v398_v47 }
  0x9f   :  { %7093 = vmatprep.subr.bf16.mxu0 %v8796_v0  ;;  %7462 = vmatprep.subr.bf16.mxu1 %v8798_v1  ;;  %v353_v0 = vld [vmem:[#allocation2 + $0x980] sm:$0xff]  ;;  %v406_v56 = vld [vmem:[#allocation2 + $0xb28] sm:$0xff] }
  0xa0   :  { %v357_v1 = vld [vmem:[#allocation2 + $0x9a0] sm:$0xff] }
  0xa1   :  { %v8859_v13 = vcombine.low %v353_v0, %v357_v1 }
  0xa2   :  { %7094 = vmatpush1.bf16.msra.mxu0 %v8795_v6  ;;  %7463 = vmatpush1.bf16.msra.mxu1 %v8797_v7  ;;  %v8860_v6 = vcombine.high %v353_v0, %v357_v1  ;;  %v8862_v7 = vcombine.high %v354_v2, %v358_v3  ;;  %v410_v0 = vld [vmem:[#allocation2 + $0xb48] sm:$0xff]  ;;  %v8909_v3 = vcombine.low %v402_v55, %v406_v56 }
  0xa3   :  { %7095 = vmatprep.subr.bf16.mxu0 %v8804_v8  ;;  %7464 = vmatprep.subr.bf16.mxu1 %v8806_v9  ;;  %v361_v8 = vld [vmem:[#allocation2 + $0x9c0] sm:$0xff]  ;;  %v414_v1 = vld [vmem:[#allocation2 + $0xb68] sm:$0xff] }
  0xa4   :  { %v365_v9 = vld [vmem:[#allocation2 + $0x9e0] sm:$0xff] }
  0xa5   :  { %v8867_v23 = vcombine.low %v361_v8, %v365_v9 }
  0xa6   :  { %7096 = vmatpush1.bf16.msra.mxu0 %v8803_v16  ;;  %7465 = vmatpush1.bf16.msra.mxu1 %v8805_v17  ;;  %v8868_v16 = vcombine.high %v361_v8, %v365_v9  ;;  %v8870_v17 = vcombine.high %v362_v10, %v366_v11  ;;  %v418_v8 = vld [vmem:[#allocation2 + $0xb88] sm:$0xff]  ;;  %v8917_v11 = vcombine.low %v410_v0, %v414_v1 }
  0xa7   :  { %7106 = vmatprep.subr.bf16.mxu0 %v8812_v18  ;;  %7475 = vmatprep.subr.bf16.mxu1 %v8814_v19  ;;  %v369_v18 = vld [vmem:[#allocation2 + $0xa00] sm:$0xff]  ;;  %v422_v9 = vld [vmem:[#allocation2 + $0xba8] sm:$0xff] }
  0xa8   :  { %v373_v19 = vld [vmem:[#allocation2 + $0xa20] sm:$0xff] }
  0xa9   :  { %7098 = vmatmul.mubr.bf16.vlgmr.msra.gmra.mrb[0].mxu0 %v9985_v22  ;;  %7467 = vmatmul.mubr.bf16.vlgmr.msra.gmra.mrb[0].mxu1 %v9985_v22  ;;  %v8875_v32 = vcombine.low %v369_v18, %v373_v19 }
  0xaa   :  { %7107 = vmatpush1.bf16.msra.mxu0 %v8811_v26  ;;  %7476 = vmatpush1.bf16.msra.mxu1 %v8813_v27  ;;  %v8876_v26 = vcombine.high %v369_v18, %v373_v19  ;;  %v8878_v27 = vcombine.high %v370_v20, %v374_v21  ;;  %v426_v18 = vld [vmem:[#allocation2 + $0xbc8] sm:$0xff]  ;;  %v8925_v21 = vcombine.low %v418_v8, %v422_v9 }
  0xab   :  { %7108 = vmatprep.subr.bf16.mxu0 %v8820_v28  ;;  %7477 = vmatprep.subr.bf16.mxu1 %v8822_v29  ;;  %v377_v28 = vld [vmem:[#allocation2 + $0xa40] sm:$0xff]  ;;  %v430_v19 = vld [vmem:[#allocation2 + $0xbe8] sm:$0xff] }
  0xac   :  { %7138 = vmatprep.mubr.bf16.mxu0 %v9994_v15  ;;  %7507 = vmatprep.mubr.bf16.mxu1 %v9994_v15  ;;  %v381_v29 = vld [vmem:[#allocation2 + $0xa60] sm:$0xff] }
  0xad   :  { %v8883_v40 = vcombine.low %v377_v28, %v381_v29 }
  0xae   :  { %7109 = vmatpush1.bf16.msra.mxu0 %v8819_v34  ;;  %7478 = vmatpush1.bf16.msra.mxu1 %v8821_v35  ;;  %v8884_v34 = vcombine.high %v377_v28, %v381_v29  ;;  %v8886_v35 = vcombine.high %v378_v30, %v382_v31  ;;  %v434_v28 = vld [vmem:[#allocation2 + $0xc08] sm:$0xff]  ;;  %v8933_v31 = vcombine.low %v426_v18, %v430_v19 }
  0xaf   :  { %7110 = vmatprep.subr.bf16.mxu0 %v8828_v36  ;;  %7479 = vmatprep.subr.bf16.mxu1 %v8830_v37  ;;  %v385_v36 = vld [vmem:[#allocation2 + $0xa80] sm:$0xff]  ;;  %v438_v29 = vld [vmem:[#allocation2 + $0xc28] sm:$0xff] }
  0xb0   :  { %v389_v37 = vld [vmem:[#allocation2 + $0xaa0] sm:$0xff] }
  0xb1   :  { %v8891_v48 = vcombine.low %v385_v36, %v389_v37 }
  0xb2   :  { %7111 = vmatpush1.bf16.msra.mxu0 %v8827_v42  ;;  %7480 = vmatpush1.bf16.msra.mxu1 %v8829_v43  ;;  %v8892_v42 = vcombine.high %v385_v36, %v389_v37  ;;  %v8894_v43 = vcombine.high %v386_v38, %v390_v39  ;;  %v10002_v36 = vcombine.low %v9990_v25, %v9990_v25  ;;  %v442_v37 = vld [vmem:[#allocation2 + $0xc48] sm:$0xff]  ;;  %v10007_v39 = vld [vmem:[%s10165_s0 + $0x18] sm:$0xff] }
  0xb3   :  { %7112 = vmatprep.subr.bf16.mxu0 %v8836_v44  ;;  %7481 = vmatprep.subr.bf16.mxu1 %v8838_v45  ;;  %v393_v44 = vld [vmem:[#allocation2 + $0xac0] sm:$0xff]  ;;  %v446_v38 = vld [vmem:[#allocation2 + $0xc68] sm:$0xff]  ;;  %v10011_v25 = vcombine.high %v10007_v39, %v10007_v39 }
  0xb4   :  { %v397_v45 = vld [vmem:[#allocation2 + $0xae0] sm:$0xff] }
  0xb5   :  { %v8899_v58 = vcombine.low %v393_v44, %v397_v45 }
  0xb6   :  { %7113 = vmatpush1.bf16.msra.mxu0 %v8835_v50  ;;  %7482 = vmatpush1.bf16.msra.mxu1 %v8837_v51  ;;  %v8900_v50 = vcombine.high %v393_v44, %v397_v45  ;;  %v8902_v51 = vcombine.high %v394_v46, %v398_v47  ;;  %v449_v44 = vld [vmem:[#allocation2 + $0xc80] sm:$0xff]  ;;  %v450_v46 = vld [vmem:[#allocation2 + $0xc88] sm:$0xff] }
  0xb7   :  { %7114 = vmatprep.subr.bf16.mxu0 %v8844_v52  ;;  %7483 = vmatprep.subr.bf16.mxu1 %v8846_v54  ;;  %v401_v52 = vld [vmem:[#allocation2 + $0xb00] sm:$0xff]  ;;  %v454_v47 = vld [vmem:[#allocation2 + $0xca8] sm:$0xff] }
  0xb8   :  { %v405_v54 = vld [vmem:[#allocation2 + $0xb20] sm:$0xff] }
  0xb9   :  { %v8907_v2 = vcombine.low %v401_v52, %v405_v54  ;;  %v453_v45 = vld [vmem:[#allocation2 + $0xca0] sm:$0xff] }
  0xba   :  { %7115 = vmatpush1.bf16.msra.mxu0 %v8843_v60  ;;  %7484 = vmatpush1.bf16.msra.mxu1 %v8845_v61  ;;  %v8908_v60 = vcombine.high %v401_v52, %v405_v54  ;;  %v8910_v61 = vcombine.high %v402_v55, %v406_v56  ;;  %v457_v52 = vld [vmem:[#allocation2 + $0xcc0] sm:$0xff]  ;;  %v458_v55 = vld [vmem:[#allocation2 + $0xcc8] sm:$0xff] }
  0xbb   :  { %7116 = vmatprep.subr.bf16.mxu0 %v8852_v62  ;;  %7485 = vmatprep.subr.bf16.mxu1 %v8854_v63  ;;  %v409_v62 = vld [vmem:[#allocation2 + $0xb40] sm:$0xff]  ;;  %v462_v56 = vld [vmem:[#allocation2 + $0xce8] sm:$0xff] }
  0xbc   :  { %v413_v63 = vld [vmem:[#allocation2 + $0xb60] sm:$0xff] }
  0xbd   :  { %v8915_v10 = vcombine.low %v409_v62, %v413_v63  ;;  %v461_v54 = vld [vmem:[#allocation2 + $0xce0] sm:$0xff] }
  0xbe   :  { %7117 = vmatpush1.bf16.msra.mxu0 %v8851_v4  ;;  %7486 = vmatpush1.bf16.msra.mxu1 %v8853_v5  ;;  %v8916_v4 = vcombine.high %v409_v62, %v413_v63  ;;  %v8918_v5 = vcombine.high %v410_v0, %v414_v1  ;;  %v465_v62 = vld [vmem:[#allocation2 + $0xd00] sm:$0xff]  ;;  %v466_v0 = vld [vmem:[#allocation2 + $0xd08] sm:$0xff] }
  0xbf   :  { %7118 = vmatprep.subr.bf16.mxu0 %v8860_v6  ;;  %7487 = vmatprep.subr.bf16.mxu1 %v8862_v7  ;;  %v417_v6 = vld [vmem:[#allocation2 + $0xb80] sm:$0xff]  ;;  %v470_v1 = vld [vmem:[#allocation2 + $0xd28] sm:$0xff] }
  0xc0   :  { %v421_v7 = vld [vmem:[#allocation2 + $0xba0] sm:$0xff] }
  0xc1   :  { %v8923_v20 = vcombine.low %v417_v6, %v421_v7  ;;  %v469_v63 = vld [vmem:[#allocation2 + $0xd20] sm:$0xff] }
  0xc2   :  { %7119 = vmatpush1.bf16.msra.mxu0 %v8859_v13  ;;  %7488 = vmatpush1.bf16.msra.mxu1 %v8861_v14  ;;  %v8924_v13 = vcombine.high %v417_v6, %v421_v7  ;;  %v8926_v14 = vcombine.high %v418_v8, %v422_v9  ;;  %v473_v6 = vld [vmem:[#allocation2 + $0xd40] sm:$0xff]  ;;  %v474_v8 = vld [vmem:[#allocation2 + $0xd48] sm:$0xff] }
  0xc3   :  { %7120 = vmatprep.subr.bf16.mxu0 %v8868_v16  ;;  %7489 = vmatprep.subr.bf16.mxu1 %v8870_v17  ;;  %v425_v16 = vld [vmem:[#allocation2 + $0xbc0] sm:$0xff]  ;;  %v478_v9 = vld [vmem:[#allocation2 + $0xd68] sm:$0xff] }
  0xc4   :  { %v429_v17 = vld [vmem:[#allocation2 + $0xbe0] sm:$0xff] }
  0xc5   :  { %v8931_v30 = vcombine.low %v425_v16, %v429_v17  ;;  %v477_v7 = vld [vmem:[#allocation2 + $0xd60] sm:$0xff] }
  0xc6   :  { %7121 = vmatpush1.bf16.msra.mxu0 %v8867_v23  ;;  %7490 = vmatpush1.bf16.msra.mxu1 %v8869_v24  ;;  %v8932_v23 = vcombine.high %v425_v16, %v429_v17  ;;  %v8934_v24 = vcombine.high %v426_v18, %v430_v19  ;;  %v481_v16 = vld [vmem:[#allocation2 + $0xd80] sm:$0xff]  ;;  %v482_v18 = vld [vmem:[#allocation2 + $0xd88] sm:$0xff] }
  0xc7   :  { %7122 = vmatprep.subr.bf16.mxu0 %v8876_v26  ;;  %7491 = vmatprep.subr.bf16.mxu1 %v8878_v27  ;;  %v433_v26 = vld [vmem:[#allocation2 + $0xc00] sm:$0xff]  ;;  %v486_v19 = vld [vmem:[#allocation2 + $0xda8] sm:$0xff] }
  0xc8   :  { %v437_v27 = vld [vmem:[#allocation2 + $0xc20] sm:$0xff] }
  0xc9   :  { %v485_v17 = vld [vmem:[#allocation2 + $0xda0] sm:$0xff] }
  0xca   :  { %7123 = vmatpush1.bf16.msra.mxu0 %v8875_v32  ;;  %7492 = vmatpush1.bf16.msra.mxu1 %v8877_v33  ;;  %v8940_v32 = vcombine.high %v433_v26, %v437_v27  ;;  %v8942_v33 = vcombine.high %v434_v28, %v438_v29 }
  0xcb   :  { %7124 = vmatprep.subr.bf16.mxu0 %v8884_v34  ;;  %7493 = vmatprep.subr.bf16.mxu1 %v8886_v35  ;;  %v441_v34 = vld [vmem:[#allocation2 + $0xc40] sm:$0xff] }
  0xcc   :  { %v445_v35 = vld [vmem:[#allocation2 + $0xc60] sm:$0xff] }
  0xce   :  { %7125 = vmatpush1.bf16.msra.mxu0 %v8883_v40  ;;  %7494 = vmatpush1.bf16.msra.mxu1 %v8885_v41  ;;  %v8939_v40 = vcombine.low %v433_v26, %v437_v27  ;;  %v8941_v41 = vcombine.low %v434_v28, %v438_v29  ;;  %v489_v26 = vld [vmem:[#allocation2 + $0xdc0] sm:$0xff]  ;;  %v490_v28 = vld [vmem:[#allocation2 + $0xdc8] sm:$0xff] }
  0xcf   :  { %7126 = vmatprep.subr.bf16.mxu0 %v8892_v42  ;;  %7495 = vmatprep.subr.bf16.mxu1 %v8894_v43  ;;  %v8948_v42 = vcombine.high %v441_v34, %v445_v35  ;;  %v8950_v43 = vcombine.high %v442_v37, %v446_v38  ;;  %v493_v27 = vld [vmem:[#allocation2 + $0xde0] sm:$0xff]  ;;  %v494_v29 = vld [vmem:[#allocation2 + $0xde8] sm:$0xff] }
  0xd2   :  { %7127 = vmatpush1.bf16.msra.mxu0 %v8891_v48  ;;  %7496 = vmatpush1.bf16.msra.mxu1 %v8893_v49  ;;  %v8947_v48 = vcombine.low %v441_v34, %v445_v35  ;;  %v8949_v49 = vcombine.low %v442_v37, %v446_v38  ;;  %v497_v34 = vld [vmem:[#allocation2 + $0xe00] sm:$0xff]  ;;  %v498_v37 = vld [vmem:[#allocation2 + $0xe08] sm:$0xff] }
  0xd3   :  { %7128 = vmatprep.subr.bf16.mxu0 %v8900_v50  ;;  %7497 = vmatprep.subr.bf16.mxu1 %v8902_v51  ;;  %v8956_v50 = vcombine.high %v449_v44, %v453_v45  ;;  %v8958_v51 = vcombine.high %v450_v46, %v454_v47  ;;  %v501_v35 = vld [vmem:[#allocation2 + $0xe20] sm:$0xff]  ;;  %v502_v38 = vld [vmem:[#allocation2 + $0xe28] sm:$0xff] }
  0xd6   :  { %7129 = vmatpush1.bf16.msra.mxu0 %v8899_v58  ;;  %7498 = vmatpush1.bf16.msra.mxu1 %v8901_v59  ;;  %v8955_v58 = vcombine.low %v449_v44, %v453_v45  ;;  %v8957_v59 = vcombine.low %v450_v46, %v454_v47  ;;  %v505_v44 = vld [vmem:[#allocation2 + $0xe40] sm:$0xff]  ;;  %v506_v46 = vld [vmem:[#allocation2 + $0xe48] sm:$0xff] }
  0xd7   :  { %7130 = vmatprep.subr.bf16.mxu0 %v8908_v60  ;;  %7499 = vmatprep.subr.bf16.mxu1 %v8910_v61  ;;  %v8964_v60 = vcombine.high %v457_v52, %v461_v54  ;;  %v8966_v61 = vcombine.high %v458_v55, %v462_v56  ;;  %v509_v45 = vld [vmem:[#allocation2 + $0xe60] sm:$0xff]  ;;  %v510_v47 = vld [vmem:[#allocation2 + $0xe68] sm:$0xff] }
  0xda   :  { %7131 = vmatpush1.bf16.msra.mxu0 %v8907_v2  ;;  %7500 = vmatpush1.bf16.msra.mxu1 %v8909_v3  ;;  %v8963_v2 = vcombine.low %v457_v52, %v461_v54  ;;  %v8965_v3 = vcombine.low %v458_v55, %v462_v56  ;;  %v513_v52 = vld [vmem:[#allocation2 + $0xe80] sm:$0xff]  ;;  %v514_v55 = vld [vmem:[#allocation2 + $0xe88] sm:$0xff] }
  0xdb   :  { %7132 = vmatprep.subr.bf16.mxu0 %v8916_v4  ;;  %7501 = vmatprep.subr.bf16.mxu1 %v8918_v5  ;;  %v8972_v4 = vcombine.high %v465_v62, %v469_v63  ;;  %v8974_v5 = vcombine.high %v466_v0, %v470_v1  ;;  %v517_v54 = vld [vmem:[#allocation2 + $0xea0] sm:$0xff]  ;;  %v518_v56 = vld [vmem:[#allocation2 + $0xea8] sm:$0xff] }
  0xde   :  { %7133 = vmatpush1.bf16.msra.mxu0 %v8915_v10  ;;  %7502 = vmatpush1.bf16.msra.mxu1 %v8917_v11  ;;  %v8971_v10 = vcombine.low %v465_v62, %v469_v63  ;;  %v8973_v11 = vcombine.low %v466_v0, %v470_v1  ;;  %v521_v62 = vld [vmem:[#allocation2 + $0xec0] sm:$0xff]  ;;  %v522_v0 = vld [vmem:[#allocation2 + $0xec8] sm:$0xff] }
  0xdf   :  { %7134 = vmatprep.subr.bf16.mxu0 %v8924_v13  ;;  %7503 = vmatprep.subr.bf16.mxu1 %v8926_v14  ;;  %v8980_v13 = vcombine.high %v473_v6, %v477_v7  ;;  %v8982_v14 = vcombine.high %v474_v8, %v478_v9  ;;  %v525_v63 = vld [vmem:[#allocation2 + $0xee0] sm:$0xff]  ;;  %v526_v1 = vld [vmem:[#allocation2 + $0xee8] sm:$0xff] }
  0xe2   :  { %7135 = vmatpush1.bf16.msra.mxu0 %v8923_v20  ;;  %7504 = vmatpush1.bf16.msra.mxu1 %v8925_v21  ;;  %v8979_v20 = vcombine.low %v473_v6, %v477_v7  ;;  %v8981_v21 = vcombine.low %v474_v8, %v478_v9  ;;  %v529_v6 = vld [vmem:[#allocation2 + $0xf00] sm:$0xff]  ;;  %v530_v8 = vld [vmem:[#allocation2 + $0xf08] sm:$0xff] }
  0xe3   :  { %7136 = vmatprep.subr.bf16.mxu0 %v8932_v23  ;;  %7505 = vmatprep.subr.bf16.mxu1 %v8934_v24  ;;  %v8988_v23 = vcombine.high %v481_v16, %v485_v17  ;;  %v8990_v24 = vcombine.high %v482_v18, %v486_v19  ;;  %v533_v7 = vld [vmem:[#allocation2 + $0xf20] sm:$0xff]  ;;  %v534_v9 = vld [vmem:[#allocation2 + $0xf28] sm:$0xff] }
  0xe6   :  { %7137 = vmatpush1.bf16.msra.mxu0 %v8931_v30  ;;  %7506 = vmatpush1.bf16.msra.mxu1 %v8933_v31  ;;  %v8987_v30 = vcombine.low %v481_v16, %v485_v17  ;;  %v8989_v31 = vcombine.low %v482_v18, %v486_v19  ;;  %v537_v16 = vld [vmem:[#allocation2 + $0xf40] sm:$0xff]  ;;  %v538_v18 = vld [vmem:[#allocation2 + $0xf48] sm:$0xff] }
  0xe7   :  { %7147 = vmatprep.subr.bf16.mxu0 %v8940_v32  ;;  %7516 = vmatprep.subr.bf16.mxu1 %v8942_v33  ;;  %v8996_v32 = vcombine.high %v489_v26, %v493_v27  ;;  %v8998_v33 = vcombine.high %v490_v28, %v494_v29  ;;  %v541_v17 = vld [vmem:[#allocation2 + $0xf60] sm:$0xff]  ;;  %v542_v19 = vld [vmem:[#allocation2 + $0xf68] sm:$0xff] }
  0xe9   :  { %7139 = vmatmul.mubr.bf16.vlgmr.msra.gmra.mrb[0].mxu0 %v10002_v36  ;;  %7508 = vmatmul.mubr.bf16.vlgmr.msra.gmra.mrb[0].mxu1 %v10002_v36 }
  0xea   :  { %7148 = vmatpush1.bf16.msra.mxu0 %v8939_v40  ;;  %7517 = vmatpush1.bf16.msra.mxu1 %v8941_v41  ;;  %v8995_v40 = vcombine.low %v489_v26, %v493_v27  ;;  %v8997_v41 = vcombine.low %v490_v28, %v494_v29  ;;  %v545_v26 = vld [vmem:[#allocation2 + $0xf80] sm:$0xff]  ;;  %v546_v28 = vld [vmem:[#allocation2 + $0xf88] sm:$0xff] }
  0xeb   :  { %7149 = vmatprep.subr.bf16.mxu0 %v8948_v42  ;;  %7518 = vmatprep.subr.bf16.mxu1 %v8950_v43  ;;  %v9004_v42 = vcombine.high %v497_v34, %v501_v35  ;;  %v9006_v43 = vcombine.high %v498_v37, %v502_v38  ;;  %v549_v27 = vld [vmem:[#allocation2 + $0xfa0] sm:$0xff]  ;;  %v550_v29 = vld [vmem:[#allocation2 + $0xfa8] sm:$0xff] }
  0xec   :  { %7179 = vmatprep.mubr.bf16.mxu0 %v10011_v25  ;;  %7548 = vmatprep.mubr.bf16.mxu1 %v10011_v25 }
  0xee   :  { %7150 = vmatpush1.bf16.msra.mxu0 %v8947_v48  ;;  %7519 = vmatpush1.bf16.msra.mxu1 %v8949_v49  ;;  %v9003_v48 = vcombine.low %v497_v34, %v501_v35  ;;  %v9005_v49 = vcombine.low %v498_v37, %v502_v38  ;;  %v553_v34 = vld [vmem:[#allocation2 + $0xfc0] sm:$0xff]  ;;  %v554_v37 = vld [vmem:[#allocation2 + $0xfc8] sm:$0xff] }
  0xef   :  { %7151 = vmatprep.subr.bf16.mxu0 %v8956_v50  ;;  %7520 = vmatprep.subr.bf16.mxu1 %v8958_v51  ;;  %v9012_v50 = vcombine.high %v505_v44, %v509_v45  ;;  %v9014_v51 = vcombine.high %v506_v46, %v510_v47  ;;  %v557_v35 = vld [vmem:[#allocation2 + $0xfe0] sm:$0xff]  ;;  %v558_v38 = vld [vmem:[#allocation2 + $0xfe8] sm:$0xff] }
  0xf2   :  { %7152 = vmatpush1.bf16.msra.mxu0 %v8955_v58  ;;  %7521 = vmatpush1.bf16.msra.mxu1 %v8957_v59  ;;  %v9011_v58 = vcombine.low %v505_v44, %v509_v45  ;;  %v9013_v59 = vcombine.low %v506_v46, %v510_v47  ;;  %v561_v44 = vld [vmem:[#allocation2 + $0x1000] sm:$0xff]  ;;  %v562_v46 = vld [vmem:[#allocation2 + $0x1008] sm:$0xff] }
  0xf3   :  { %7153 = vmatprep.subr.bf16.mxu0 %v8964_v60  ;;  %7522 = vmatprep.subr.bf16.mxu1 %v8966_v61  ;;  %v9020_v60 = vcombine.high %v513_v52, %v517_v54  ;;  %v9022_v61 = vcombine.high %v514_v55, %v518_v56  ;;  %v565_v45 = vld [vmem:[#allocation2 + $0x1020] sm:$0xff]  ;;  %v566_v47 = vld [vmem:[#allocation2 + $0x1028] sm:$0xff] }
  0xf6   :  { %7154 = vmatpush1.bf16.msra.mxu0 %v8963_v2  ;;  %7523 = vmatpush1.bf16.msra.mxu1 %v8965_v3  ;;  %v9019_v2 = vcombine.low %v513_v52, %v517_v54  ;;  %v9021_v3 = vcombine.low %v514_v55, %v518_v56  ;;  %v569_v52 = vld [vmem:[#allocation2 + $0x1040] sm:$0xff]  ;;  %v10019_v55 = vcombine.low %v10007_v39, %v10007_v39  ;;  %v570_v56 = vld [vmem:[#allocation2 + $0x1048] sm:$0xff] }
  0xf7   :  { %7155 = vmatprep.subr.bf16.mxu0 %v8972_v4  ;;  %7524 = vmatprep.subr.bf16.mxu1 %v8974_v5  ;;  %v9028_v4 = vcombine.high %v521_v62, %v525_v63  ;;  %v9030_v5 = vcombine.high %v522_v0, %v526_v1  ;;  %v573_v54 = vld [vmem:[#allocation2 + $0x1060] sm:$0xff] }
  0xfa   :  { %7156 = vmatpush1.bf16.msra.mxu0 %v8971_v10  ;;  %7525 = vmatpush1.bf16.msra.mxu1 %v8973_v11  ;;  %v9027_v10 = vcombine.low %v521_v62, %v525_v63  ;;  %v9029_v11 = vcombine.low %v522_v0, %v526_v1  ;;  %v9076_v62 = vcombine.high %v569_v52, %v573_v54  ;;  %v577_v0 = vld [vmem:[#allocation2 + $0x1080] sm:$0xff] }
  0xfb   :  { %7157 = vmatprep.subr.bf16.mxu0 %v8980_v13  ;;  %7526 = vmatprep.subr.bf16.mxu1 %v8982_v14  ;;  %v9036_v13 = vcombine.high %v529_v6, %v533_v7  ;;  %v9038_v14 = vcombine.high %v530_v8, %v534_v9  ;;  %v581_v1 = vld [vmem:[#allocation2 + $0x10a0] sm:$0xff] }
  0xfe   :  { %7158 = vmatpush1.bf16.msra.mxu0 %v8979_v20  ;;  %7527 = vmatpush1.bf16.msra.mxu1 %v8981_v21  ;;  %v9035_v20 = vcombine.low %v529_v6, %v533_v7  ;;  %v9037_v21 = vcombine.low %v530_v8, %v534_v9  ;;  %v9084_v6 = vcombine.high %v577_v0, %v581_v1  ;;  %v585_v8 = vld [vmem:[#allocation2 + $0x10c0] sm:$0xff] }
  0xff   :  { %7159 = vmatprep.subr.bf16.mxu0 %v8988_v23  ;;  %7528 = vmatprep.subr.bf16.mxu1 %v8990_v24  ;;  %v9044_v23 = vcombine.high %v537_v16, %v541_v17  ;;  %v9046_v24 = vcombine.high %v538_v18, %v542_v19  ;;  %v589_v9 = vld [vmem:[#allocation2 + $0x10e0] sm:$0xff] }
 0x102   :  { %7160 = vmatpush1.bf16.msra.mxu0 %v8987_v30  ;;  %7529 = vmatpush1.bf16.msra.mxu1 %v8989_v31  ;;  %v9043_v30 = vcombine.low %v537_v16, %v541_v17  ;;  %v9045_v31 = vcombine.low %v538_v18, %v542_v19  ;;  %v9092_v16 = vcombine.high %v585_v8, %v589_v9  ;;  %v593_v18 = vld [vmem:[#allocation2 + $0x1100] sm:$0xff] }
 0x103   :  { %7161 = vmatprep.subr.bf16.mxu0 %v8996_v32  ;;  %7530 = vmatprep.subr.bf16.mxu1 %v8998_v33  ;;  %v9052_v32 = vcombine.high %v545_v26, %v549_v27  ;;  %v9054_v33 = vcombine.high %v546_v28, %v550_v29  ;;  %v597_v19 = vld [vmem:[#allocation2 + $0x1120] sm:$0xff] }
 0x106   :  { %7162 = vmatpush1.bf16.msra.mxu0 %v8995_v40  ;;  %7531 = vmatpush1.bf16.msra.mxu1 %v8997_v41  ;;  %v9051_v40 = vcombine.low %v545_v26, %v549_v27  ;;  %v9053_v41 = vcombine.low %v546_v28, %v550_v29  ;;  %v9100_v26 = vcombine.high %v593_v18, %v597_v19  ;;  %v601_v28 = vld [vmem:[#allocation2 + $0x1140] sm:$0xff] }
 0x107   :  { %7163 = vmatprep.subr.bf16.mxu0 %v9004_v42  ;;  %7532 = vmatprep.subr.bf16.mxu1 %v9006_v43  ;;  %v9060_v42 = vcombine.high %v553_v34, %v557_v35  ;;  %v9062_v43 = vcombine.high %v554_v37, %v558_v38  ;;  %v605_v29 = vld [vmem:[#allocation2 + $0x1160] sm:$0xff] }
 0x10a   :  { %7164 = vmatpush1.bf16.msra.mxu0 %v9003_v48  ;;  %7533 = vmatpush1.bf16.msra.mxu1 %v9005_v49  ;;  %v9059_v48 = vcombine.low %v553_v34, %v557_v35  ;;  %v9061_v49 = vcombine.low %v554_v37, %v558_v38  ;;  %v9108_v34 = vcombine.high %v601_v28, %v605_v29  ;;  %v609_v37 = vld [vmem:[#allocation2 + $0x1180] sm:$0xff] }
 0x10b   :  { %7165 = vmatprep.subr.bf16.mxu0 %v9012_v50  ;;  %7534 = vmatprep.subr.bf16.mxu1 %v9014_v51  ;;  %v9068_v50 = vcombine.high %v561_v44, %v565_v45  ;;  %v9070_v51 = vcombine.high %v562_v46, %v566_v47  ;;  %v613_v38 = vld [vmem:[#allocation2 + $0x11a0] sm:$0xff] }
 0x10e   :  { %7166 = vmatpush1.bf16.msra.mxu0 %v9011_v58  ;;  %7535 = vmatpush1.bf16.msra.mxu1 %v9013_v59  ;;  %v574_v58 = vld [vmem:[#allocation2 + $0x1068] sm:$0xff]  ;;  %v10024_v59 = vld [vmem:[%s10165_s0 + $0x20] sm:$0xff] }
 0x10f   :  { %7167 = vmatprep.subr.bf16.mxu0 %v9020_v60  ;;  %7536 = vmatprep.subr.bf16.mxu1 %v9022_v61  ;;  %v9067_v60 = vcombine.low %v561_v44, %v565_v45  ;;  %v9069_v61 = vcombine.low %v562_v46, %v566_v47  ;;  %v9078_v63 = vcombine.high %v570_v56, %v574_v58  ;;  %v617_v46 = vld [vmem:[#allocation2 + $0x11c0] sm:$0xff] }
 0x110   :  { %v10028_v39 = vcombine.high %v10024_v59, %v10024_v59  ;;  %v9116_v44 = vcombine.high %v609_v37, %v613_v38  ;;  %v621_v47 = vld [vmem:[#allocation2 + $0x11e0] sm:$0xff] }
 0x112   :  { %7168 = vmatpush1.bf16.msra.mxu0 %v9019_v2  ;;  %7537 = vmatpush1.bf16.msra.mxu1 %v9021_v3  ;;  %v578_v2 = vld [vmem:[#allocation2 + $0x1088] sm:$0xff] }
 0x113   :  { %7169 = vmatprep.subr.bf16.mxu0 %v9028_v4  ;;  %7538 = vmatprep.subr.bf16.mxu1 %v9030_v5  ;;  %v582_v3 = vld [vmem:[#allocation2 + $0x10a8] sm:$0xff]  ;;  %v9075_v4 = vcombine.low %v569_v52, %v573_v54  ;;  %v9077_v5 = vcombine.low %v570_v56, %v574_v58  ;;  %v9124_v52 = vcombine.high %v617_v46, %v621_v47  ;;  %v625_v56 = vld [vmem:[#allocation2 + $0x1200] sm:$0xff] }
 0x114   :  { %v9086_v7 = vcombine.high %v578_v2, %v582_v3  ;;  %v629_v58 = vld [vmem:[#allocation2 + $0x1220] sm:$0xff] }
 0x116   :  { %7170 = vmatpush1.bf16.msra.mxu0 %v9027_v10  ;;  %7539 = vmatpush1.bf16.msra.mxu1 %v9029_v11  ;;  %v586_v10 = vld [vmem:[#allocation2 + $0x10c8] sm:$0xff] }
 0x117   :  { %7171 = vmatprep.subr.bf16.mxu0 %v9036_v13  ;;  %7540 = vmatprep.subr.bf16.mxu1 %v9038_v14  ;;  %v590_v11 = vld [vmem:[#allocation2 + $0x10e8] sm:$0xff]  ;;  %v9083_v13 = vcombine.low %v577_v0, %v581_v1  ;;  %v9085_v14 = vcombine.low %v578_v2, %v582_v3  ;;  %v9132_v0 = vcombine.high %v625_v56, %v629_v58  ;;  %v633_v2 = vld [vmem:[#allocation2 + $0x1240] sm:$0xff] }
 0x118   :  { %v9094_v17 = vcombine.high %v586_v10, %v590_v11  ;;  %v637_v3 = vld [vmem:[#allocation2 + $0x1260] sm:$0xff] }
 0x11a   :  { %7172 = vmatpush1.bf16.msra.mxu0 %v9035_v20  ;;  %7541 = vmatpush1.bf16.msra.mxu1 %v9037_v21  ;;  %v594_v20 = vld [vmem:[#allocation2 + $0x1108] sm:$0xff] }
 0x11b   :  { %7173 = vmatprep.subr.bf16.mxu0 %v9044_v23  ;;  %7542 = vmatprep.subr.bf16.mxu1 %v9046_v24  ;;  %v598_v21 = vld [vmem:[#allocation2 + $0x1128] sm:$0xff]  ;;  %v9091_v23 = vcombine.low %v585_v8, %v589_v9  ;;  %v9093_v24 = vcombine.low %v586_v10, %v590_v11  ;;  %v9140_v8 = vcombine.high %v633_v2, %v637_v3  ;;  %v641_v10 = vld [vmem:[#allocation2 + $0x1280] sm:$0xff] }
 0x11c   :  { %v9102_v27 = vcombine.high %v594_v20, %v598_v21  ;;  %v645_v11 = vld [vmem:[#allocation2 + $0x12a0] sm:$0xff] }
 0x11e   :  { %7174 = vmatpush1.bf16.msra.mxu0 %v9043_v30  ;;  %7543 = vmatpush1.bf16.msra.mxu1 %v9045_v31  ;;  %v602_v30 = vld [vmem:[#allocation2 + $0x1148] sm:$0xff] }
 0x11f   :  { %7175 = vmatprep.subr.bf16.mxu0 %v9052_v32  ;;  %7544 = vmatprep.subr.bf16.mxu1 %v9054_v33  ;;  %v606_v31 = vld [vmem:[#allocation2 + $0x1168] sm:$0xff]  ;;  %v9099_v32 = vcombine.low %v593_v18, %v597_v19  ;;  %v9101_v33 = vcombine.low %v594_v20, %v598_v21  ;;  %v9148_v18 = vcombine.high %v641_v10, %v645_v11  ;;  %v649_v20 = vld [vmem:[#allocation2 + $0x12c0] sm:$0xff] }
 0x120   :  { %v9110_v35 = vcombine.high %v602_v30, %v606_v31  ;;  %v653_v21 = vld [vmem:[#allocation2 + $0x12e0] sm:$0xff] }
 0x122   :  { %7176 = vmatpush1.bf16.msra.mxu0 %v9051_v40  ;;  %7545 = vmatpush1.bf16.msra.mxu1 %v9053_v41  ;;  %v610_v40 = vld [vmem:[#allocation2 + $0x1188] sm:$0xff] }
 0x123   :  { %7177 = vmatprep.subr.bf16.mxu0 %v9060_v42  ;;  %7546 = vmatprep.subr.bf16.mxu1 %v9062_v43  ;;  %v614_v41 = vld [vmem:[#allocation2 + $0x11a8] sm:$0xff]  ;;  %v9107_v42 = vcombine.low %v601_v28, %v605_v29  ;;  %v9109_v43 = vcombine.low %v602_v30, %v606_v31  ;;  %v9156_v28 = vcombine.high %v649_v20, %v653_v21  ;;  %v657_v30 = vld [vmem:[#allocation2 + $0x1300] sm:$0xff] }
 0x124   :  { %v9118_v45 = vcombine.high %v610_v40, %v614_v41  ;;  %v661_v31 = vld [vmem:[#allocation2 + $0x1320] sm:$0xff] }
 0x126   :  { %7178 = vmatpush1.bf16.msra.mxu0 %v9059_v48  ;;  %7547 = vmatpush1.bf16.msra.mxu1 %v9061_v49  ;;  %v618_v48 = vld [vmem:[#allocation2 + $0x11c8] sm:$0xff] }
 0x127   :  { %7188 = vmatprep.subr.bf16.mxu0 %v9068_v50  ;;  %7557 = vmatprep.subr.bf16.mxu1 %v9070_v51  ;;  %v622_v49 = vld [vmem:[#allocation2 + $0x11e8] sm:$0xff]  ;;  %v9115_v50 = vcombine.low %v609_v37, %v613_v38  ;;  %v9117_v51 = vcombine.low %v610_v40, %v614_v41  ;;  %v9164_v37 = vcombine.high %v657_v30, %v661_v31  ;;  %v665_v40 = vld [vmem:[#allocation2 + $0x1340] sm:$0xff] }
 0x128   :  { %v9126_v54 = vcombine.high %v618_v48, %v622_v49  ;;  %v669_v41 = vld [vmem:[#allocation2 + $0x1360] sm:$0xff] }
 0x129   :  { %7180 = vmatmul.mubr.bf16.vlgmr.msra.gmra.mrb[0].mxu0 %v10019_v55  ;;  %7549 = vmatmul.mubr.bf16.vlgmr.msra.gmra.mrb[0].mxu1 %v10019_v55 }
 0x12a   :  { %7189 = vmatpush1.bf16.msra.mxu0 %v9067_v60  ;;  %7558 = vmatpush1.bf16.msra.mxu1 %v9069_v61  ;;  %v626_v60 = vld [vmem:[#allocation2 + $0x1208] sm:$0xff] }
 0x12b   :  { %7190 = vmatprep.subr.bf16.mxu0 %v9076_v62  ;;  %7559 = vmatprep.subr.bf16.mxu1 %v9078_v63  ;;  %v630_v61 = vld [vmem:[#allocation2 + $0x1228] sm:$0xff]  ;;  %v9123_v62 = vcombine.low %v617_v46, %v621_v47  ;;  %v9125_v63 = vcombine.low %v618_v48, %v622_v49  ;;  %v9172_v46 = vcombine.high %v665_v40, %v669_v41  ;;  %v673_v48 = vld [vmem:[#allocation2 + $0x1380] sm:$0xff] }
 0x12c   :  { %7220 = vmatprep.mubr.bf16.mxu0 %v10028_v39  ;;  %7589 = vmatprep.mubr.bf16.mxu1 %v10028_v39  ;;  %v9134_v1 = vcombine.high %v626_v60, %v630_v61  ;;  %v677_v49 = vld [vmem:[#allocation2 + $0x13a0] sm:$0xff] }
 0x12e   :  { %7191 = vmatpush1.bf16.msra.mxu0 %v9075_v4  ;;  %7560 = vmatpush1.bf16.msra.mxu1 %v9077_v5  ;;  %v634_v4 = vld [vmem:[#allocation2 + $0x1248] sm:$0xff] }
 0x12f   :  { %7192 = vmatprep.subr.bf16.mxu0 %v9084_v6  ;;  %7561 = vmatprep.subr.bf16.mxu1 %v9086_v7  ;;  %v638_v5 = vld [vmem:[#allocation2 + $0x1268] sm:$0xff]  ;;  %v9131_v6 = vcombine.low %v625_v56, %v629_v58  ;;  %v9133_v7 = vcombine.low %v626_v60, %v630_v61  ;;  %v9180_v56 = vcombine.high %v673_v48, %v677_v49  ;;  %v681_v60 = vld [vmem:[#allocation2 + $0x13c0] sm:$0xff] }
 0x130   :  { %v9142_v9 = vcombine.high %v634_v4, %v638_v5  ;;  %v685_v61 = vld [vmem:[#allocation2 + $0x13e0] sm:$0xff] }
 0x132   :  { %7193 = vmatpush1.bf16.msra.mxu0 %v9083_v13  ;;  %7562 = vmatpush1.bf16.msra.mxu1 %v9085_v14  ;;  %v642_v13 = vld [vmem:[#allocation2 + $0x1288] sm:$0xff] }
 0x133   :  { %7194 = vmatprep.subr.bf16.mxu0 %v9092_v16  ;;  %7563 = vmatprep.subr.bf16.mxu1 %v9094_v17  ;;  %v646_v14 = vld [vmem:[#allocation2 + $0x12a8] sm:$0xff]  ;;  %v9139_v16 = vcombine.low %v633_v2, %v637_v3  ;;  %v9141_v17 = vcombine.low %v634_v4, %v638_v5  ;;  %v9188_v2 = vcombine.high %v681_v60, %v685_v61  ;;  %v689_v4 = vld [vmem:[#allocation2 + $0x1400] sm:$0xff] }
 0x134   :  { %v9150_v19 = vcombine.high %v642_v13, %v646_v14  ;;  %v693_v5 = vld [vmem:[#allocation2 + $0x1420] sm:$0xff] }
 0x136   :  { %7195 = vmatpush1.bf16.msra.mxu0 %v9091_v23  ;;  %7564 = vmatpush1.bf16.msra.mxu1 %v9093_v24  ;;  %v650_v23 = vld [vmem:[#allocation2 + $0x12c8] sm:$0xff] }
 0x137   :  { %7196 = vmatprep.subr.bf16.mxu0 %v9100_v26  ;;  %7565 = vmatprep.subr.bf16.mxu1 %v9102_v27  ;;  %v654_v24 = vld [vmem:[#allocation2 + $0x12e8] sm:$0xff]  ;;  %v9147_v26 = vcombine.low %v641_v10, %v645_v11  ;;  %v9149_v27 = vcombine.low %v642_v13, %v646_v14  ;;  %v9196_v10 = vcombine.high %v689_v4, %v693_v5  ;;  %v697_v13 = vld [vmem:[#allocation2 + $0x1440] sm:$0xff] }
 0x138   :  { %v9158_v29 = vcombine.high %v650_v23, %v654_v24  ;;  %v701_v14 = vld [vmem:[#allocation2 + $0x1460] sm:$0xff] }
 0x13a   :  { %7197 = vmatpush1.bf16.msra.mxu0 %v9099_v32  ;;  %7566 = vmatpush1.bf16.msra.mxu1 %v9101_v33  ;;  %v658_v32 = vld [vmem:[#allocation2 + $0x1308] sm:$0xff] }
 0x13b   :  { %7198 = vmatprep.subr.bf16.mxu0 %v9108_v34  ;;  %7567 = vmatprep.subr.bf16.mxu1 %v9110_v35  ;;  %v662_v33 = vld [vmem:[#allocation2 + $0x1328] sm:$0xff]  ;;  %v9155_v34 = vcombine.low %v649_v20, %v653_v21  ;;  %v9157_v35 = vcombine.low %v650_v23, %v654_v24  ;;  %v9195_v20 = vcombine.low %v689_v4, %v693_v5 }
 0x13c   :  { %v9166_v38 = vcombine.high %v658_v32, %v662_v33  ;;  %v9204_v23 = vcombine.high %v697_v13, %v701_v14 }
 0x13e   :  { %7199 = vmatpush1.bf16.msra.mxu0 %v9107_v42  ;;  %7568 = vmatpush1.bf16.msra.mxu1 %v9109_v43  ;;  %v666_v42 = vld [vmem:[#allocation2 + $0x1348] sm:$0xff] }
 0x13f   :  { %7200 = vmatprep.subr.bf16.mxu0 %v9116_v44  ;;  %7569 = vmatprep.subr.bf16.mxu1 %v9118_v45  ;;  %v670_v43 = vld [vmem:[#allocation2 + $0x1368] sm:$0xff]  ;;  %v9163_v44 = vcombine.low %v657_v30, %v661_v31  ;;  %v9165_v45 = vcombine.low %v658_v32, %v662_v33  ;;  %v9203_v30 = vcombine.low %v697_v13, %v701_v14 }
 0x140   :  { %v9174_v47 = vcombine.high %v666_v42, %v670_v43 }
 0x142   :  { %7201 = vmatpush1.bf16.msra.mxu0 %v9115_v50  ;;  %7570 = vmatpush1.bf16.msra.mxu1 %v9117_v51  ;;  %v674_v50 = vld [vmem:[#allocation2 + $0x1388] sm:$0xff] }
 0x143   :  { %7202 = vmatprep.subr.bf16.mxu0 %v9124_v52  ;;  %7571 = vmatprep.subr.bf16.mxu1 %v9126_v54  ;;  %v678_v51 = vld [vmem:[#allocation2 + $0x13a8] sm:$0xff]  ;;  %v9171_v52 = vcombine.low %v665_v40, %v669_v41  ;;  %v9173_v54 = vcombine.low %v666_v42, %v670_v43 }
 0x144   :  { %v9182_v58 = vcombine.high %v674_v50, %v678_v51 }
 0x146   :  { %7203 = vmatpush1.bf16.msra.mxu0 %v9123_v62  ;;  %7572 = vmatpush1.bf16.msra.mxu1 %v9125_v63  ;;  %v682_v62 = vld [vmem:[#allocation2 + $0x13c8] sm:$0xff] }
 0x147   :  { %7204 = vmatprep.subr.bf16.mxu0 %v9132_v0  ;;  %7573 = vmatprep.subr.bf16.mxu1 %v9134_v1  ;;  %v686_v63 = vld [vmem:[#allocation2 + $0x13e8] sm:$0xff]  ;;  %v9179_v0 = vcombine.low %v673_v48, %v677_v49  ;;  %v9181_v1 = vcombine.low %v674_v50, %v678_v51 }
 0x148   :  { %v9190_v3 = vcombine.high %v682_v62, %v686_v63 }
 0x14a   :  { %7205 = vmatpush1.bf16.msra.mxu0 %v9131_v6  ;;  %7574 = vmatpush1.bf16.msra.mxu1 %v9133_v7  ;;  %v690_v6 = vld [vmem:[#allocation2 + $0x1408] sm:$0xff] }
 0x14b   :  { %7206 = vmatprep.subr.bf16.mxu0 %v9140_v8  ;;  %7575 = vmatprep.subr.bf16.mxu1 %v9142_v9  ;;  %v694_v7 = vld [vmem:[#allocation2 + $0x1428] sm:$0xff]  ;;  %v9187_v8 = vcombine.low %v681_v60, %v685_v61  ;;  %v9189_v9 = vcombine.low %v682_v62, %v686_v63 }
 0x14c   :  { %v9198_v11 = vcombine.high %v690_v6, %v694_v7  ;;  %v9197_v21 = vcombine.low %v690_v6, %v694_v7 }
 0x14e   :  { %7207 = vmatpush1.bf16.msra.mxu0 %v9139_v16  ;;  %7576 = vmatpush1.bf16.msra.mxu1 %v9141_v17  ;;  %v10036_v16 = vcombine.low %v10024_v59, %v10024_v59  ;;  %v698_v17 = vld [vmem:[#allocation2 + $0x1448] sm:$0xff] }
 0x14f   :  { %7208 = vmatprep.subr.bf16.mxu0 %v9148_v18  ;;  %7577 = vmatprep.subr.bf16.mxu1 %v9150_v19  ;;  %v702_v18 = vld [vmem:[#allocation2 + $0x1468] sm:$0xff] }
 0x150   :  { %v10041_v19 = vld [vmem:[%s10165_s0 + $0x28] sm:$0xff]  ;;  %v9206_v24 = vcombine.high %v698_v17, %v702_v18  ;;  %v9205_v31 = vcombine.low %v698_v17, %v702_v18 }
 0x151   :  { %v10045_v59 = vcombine.high %v10041_v19, %v10041_v19 }
 0x152   :  { %7209 = vmatpush1.bf16.msra.mxu0 %v9147_v26  ;;  %7578 = vmatpush1.bf16.msra.mxu1 %v9149_v27  ;;  %v705_v26 = vld [vmem:[#allocation2 + $0x1480] sm:$0xff] }
 0x153   :  { %7210 = vmatprep.subr.bf16.mxu0 %v9156_v28  ;;  %7579 = vmatprep.subr.bf16.mxu1 %v9158_v29  ;;  %v709_v27 = vld [vmem:[#allocation2 + $0x14a0] sm:$0xff]  ;;  %v706_v28 = vld [vmem:[#allocation2 + $0x1488] sm:$0xff] }
 0x154   :  { %v710_v29 = vld [vmem:[#allocation2 + $0x14a8] sm:$0xff]  ;;  %v9212_v32 = vcombine.high %v705_v26, %v709_v27  ;;  %v9211_v40 = vcombine.low %v705_v26, %v709_v27 }
 0x155   :  { %v9214_v33 = vcombine.high %v706_v28, %v710_v29  ;;  %v9213_v41 = vcombine.low %v706_v28, %v710_v29 }
 0x156   :  { %7211 = vmatpush1.bf16.msra.mxu0 %v9155_v34  ;;  %7580 = vmatpush1.bf16.msra.mxu1 %v9157_v35  ;;  %v713_v34 = vld [vmem:[#allocation2 + $0x14c0] sm:$0xff] }
 0x157   :  { %7212 = vmatprep.subr.bf16.mxu0 %v9164_v37  ;;  %7581 = vmatprep.subr.bf16.mxu1 %v9166_v38  ;;  %v717_v35 = vld [vmem:[#allocation2 + $0x14e0] sm:$0xff]  ;;  %v714_v37 = vld [vmem:[#allocation2 + $0x14c8] sm:$0xff] }
 0x158   :  { %v718_v38 = vld [vmem:[#allocation2 + $0x14e8] sm:$0xff]  ;;  %v9220_v42 = vcombine.high %v713_v34, %v717_v35  ;;  %v9219_v48 = vcombine.low %v713_v34, %v717_v35 }
 0x159   :  { %v9222_v43 = vcombine.high %v714_v37, %v718_v38  ;;  %v9221_v49 = vcombine.low %v714_v37, %v718_v38 }
 0x15a   :  { %7213 = vmatpush1.bf16.msra.mxu0 %v9163_v44  ;;  %7582 = vmatpush1.bf16.msra.mxu1 %v9165_v45  ;;  %v721_v44 = vld [vmem:[#allocation2 + $0x1500] sm:$0xff] }
 0x15b   :  { %7214 = vmatprep.subr.bf16.mxu0 %v9172_v46  ;;  %7583 = vmatprep.subr.bf16.mxu1 %v9174_v47  ;;  %v725_v45 = vld [vmem:[#allocation2 + $0x1520] sm:$0xff]  ;;  %v722_v46 = vld [vmem:[#allocation2 + $0x1508] sm:$0xff] }
 0x15c   :  { %v726_v47 = vld [vmem:[#allocation2 + $0x1528] sm:$0xff]  ;;  %v9228_v50 = vcombine.high %v721_v44, %v725_v45  ;;  %v9227_v60 = vcombine.low %v721_v44, %v725_v45 }
 0x15d   :  { %v9230_v51 = vcombine.high %v722_v46, %v726_v47  ;;  %v9229_v61 = vcombine.low %v722_v46, %v726_v47 }
 0x15e   :  { %7215 = vmatpush1.bf16.msra.mxu0 %v9171_v52  ;;  %7584 = vmatpush1.bf16.msra.mxu1 %v9173_v54  ;;  %v729_v52 = vld [vmem:[#allocation2 + $0x1540] sm:$0xff] }
 0x15f   :  { %7216 = vmatprep.subr.bf16.mxu0 %v9180_v56  ;;  %7585 = vmatprep.subr.bf16.mxu1 %v9182_v58  ;;  %v733_v54 = vld [vmem:[#allocation2 + $0x1560] sm:$0xff]  ;;  %v730_v56 = vld [vmem:[#allocation2 + $0x1548] sm:$0xff] }
 0x160   :  { %v734_v58 = vld [vmem:[#allocation2 + $0x1568] sm:$0xff]  ;;  %v9236_v62 = vcombine.high %v729_v52, %v733_v54  ;;  %v9235_v4 = vcombine.low %v729_v52, %v733_v54 }
 0x161   :  { %v9238_v63 = vcombine.high %v730_v56, %v734_v58  ;;  %v9237_v5 = vcombine.low %v730_v56, %v734_v58 }
 0x162   :  { %7217 = vmatpush1.bf16.msra.mxu0 %v9179_v0  ;;  %7586 = vmatpush1.bf16.msra.mxu1 %v9181_v1  ;;  %v737_v0 = vld [vmem:[#allocation2 + $0x1580] sm:$0xff] }
 0x163   :  { %7218 = vmatprep.subr.bf16.mxu0 %v9188_v2  ;;  %7587 = vmatprep.subr.bf16.mxu1 %v9190_v3  ;;  %v741_v1 = vld [vmem:[#allocation2 + $0x15a0] sm:$0xff]  ;;  %v738_v2 = vld [vmem:[#allocation2 + $0x1588] sm:$0xff] }
 0x164   :  { %v742_v3 = vld [vmem:[#allocation2 + $0x15a8] sm:$0xff]  ;;  %v9244_v6 = vcombine.high %v737_v0, %v741_v1  ;;  %v9243_v13 = vcombine.low %v737_v0, %v741_v1 }
 0x165   :  { %v9246_v7 = vcombine.high %v738_v2, %v742_v3  ;;  %v9245_v14 = vcombine.low %v738_v2, %v742_v3 }
 0x166   :  { %7219 = vmatpush1.bf16.msra.mxu0 %v9187_v8  ;;  %7588 = vmatpush1.bf16.msra.mxu1 %v9189_v9  ;;  %v745_v8 = vld [vmem:[#allocation2 + $0x15c0] sm:$0xff] }
 0x167   :  { %7229 = vmatprep.subr.bf16.mxu0 %v9196_v10  ;;  %7598 = vmatprep.subr.bf16.mxu1 %v9198_v11  ;;  %v749_v9 = vld [vmem:[#allocation2 + $0x15e0] sm:$0xff]  ;;  %v746_v10 = vld [vmem:[#allocation2 + $0x15c8] sm:$0xff] }
 0x168   :  { %v750_v11 = vld [vmem:[#allocation2 + $0x15e8] sm:$0xff]  ;;  %v9252_v17 = vcombine.high %v745_v8, %v749_v9  ;;  %v9251_v26 = vcombine.low %v745_v8, %v749_v9 }
 0x169   :  { %7221 = vmatmul.mubr.bf16.vlgmr.msra.gmra.mrb[0].mxu0 %v10036_v16  ;;  %7590 = vmatmul.mubr.bf16.vlgmr.msra.gmra.mrb[0].mxu1 %v10036_v16  ;;  %v9254_v18 = vcombine.high %v746_v10, %v750_v11  ;;  %v9253_v27 = vcombine.low %v746_v10, %v750_v11 }
 0x16a   :  { %7230 = vmatpush1.bf16.msra.mxu0 %v9195_v20  ;;  %7599 = vmatpush1.bf16.msra.mxu1 %v9197_v21  ;;  %v753_v20 = vld [vmem:[#allocation2 + $0x1600] sm:$0xff] }
 0x16b   :  { %7231 = vmatprep.subr.bf16.mxu0 %v9204_v23  ;;  %7600 = vmatprep.subr.bf16.mxu1 %v9206_v24  ;;  %v757_v21 = vld [vmem:[#allocation2 + $0x1620] sm:$0xff]  ;;  %v754_v23 = vld [vmem:[#allocation2 + $0x1608] sm:$0xff] }
 0x16c   :  { %7261 = vmatprep.mubr.bf16.mxu0 %v10045_v59  ;;  %7630 = vmatprep.mubr.bf16.mxu1 %v10045_v59  ;;  %v758_v24 = vld [vmem:[#allocation2 + $0x1628] sm:$0xff]  ;;  %v9260_v28 = vcombine.high %v753_v20, %v757_v21  ;;  %v9259_v34 = vcombine.low %v753_v20, %v757_v21 }
 0x16d   :  { %v9262_v29 = vcombine.high %v754_v23, %v758_v24  ;;  %v9261_v35 = vcombine.low %v754_v23, %v758_v24 }
 0x16e   :  { %7232 = vmatpush1.bf16.msra.mxu0 %v9203_v30  ;;  %7601 = vmatpush1.bf16.msra.mxu1 %v9205_v31  ;;  %v761_v30 = vld [vmem:[#allocation2 + $0x1640] sm:$0xff] }
 0x16f   :  { %7233 = vmatprep.subr.bf16.mxu0 %v9212_v32  ;;  %7602 = vmatprep.subr.bf16.mxu1 %v9214_v33  ;;  %v765_v31 = vld [vmem:[#allocation2 + $0x1660] sm:$0xff]  ;;  %v762_v32 = vld [vmem:[#allocation2 + $0x1648] sm:$0xff] }
 0x170   :  { %v766_v33 = vld [vmem:[#allocation2 + $0x1668] sm:$0xff]  ;;  %v9268_v37 = vcombine.high %v761_v30, %v765_v31  ;;  %v9267_v44 = vcombine.low %v761_v30, %v765_v31 }
 0x171   :  { %v9270_v38 = vcombine.high %v762_v32, %v766_v33  ;;  %v9269_v45 = vcombine.low %v762_v32, %v766_v33 }
 0x172   :  { %7234 = vmatpush1.bf16.msra.mxu0 %v9211_v40  ;;  %7603 = vmatpush1.bf16.msra.mxu1 %v9213_v41  ;;  %v769_v40 = vld [vmem:[#allocation2 + $0x1680] sm:$0xff] }
 0x173   :  { %7235 = vmatprep.subr.bf16.mxu0 %v9220_v42  ;;  %7604 = vmatprep.subr.bf16.mxu1 %v9222_v43  ;;  %v773_v41 = vld [vmem:[#allocation2 + $0x16a0] sm:$0xff]  ;;  %v770_v42 = vld [vmem:[#allocation2 + $0x1688] sm:$0xff] }
 0x174   :  { %v774_v43 = vld [vmem:[#allocation2 + $0x16a8] sm:$0xff]  ;;  %v9276_v46 = vcombine.high %v769_v40, %v773_v41  ;;  %v9275_v52 = vcombine.low %v769_v40, %v773_v41 }
 0x175   :  { %v9278_v47 = vcombine.high %v770_v42, %v774_v43  ;;  %v9277_v54 = vcombine.low %v770_v42, %v774_v43 }
 0x176   :  { %7236 = vmatpush1.bf16.msra.mxu0 %v9219_v48  ;;  %7605 = vmatpush1.bf16.msra.mxu1 %v9221_v49  ;;  %v777_v48 = vld [vmem:[#allocation2 + $0x16c0] sm:$0xff] }
 0x177   :  { %7237 = vmatprep.subr.bf16.mxu0 %v9228_v50  ;;  %7606 = vmatprep.subr.bf16.mxu1 %v9230_v51  ;;  %v781_v49 = vld [vmem:[#allocation2 + $0x16e0] sm:$0xff]  ;;  %v778_v50 = vld [vmem:[#allocation2 + $0x16c8] sm:$0xff] }
 0x178   :  { %v782_v51 = vld [vmem:[#allocation2 + $0x16e8] sm:$0xff]  ;;  %v9284_v56 = vcombine.high %v777_v48, %v781_v49  ;;  %v9283_v0 = vcombine.low %v777_v48, %v781_v49  ;;  %v10058_v49 = vld [vmem:[%s10165_s0 + $0x30] sm:$0xff] }
 0x179   :  { %v9286_v58 = vcombine.high %v778_v50, %v782_v51  ;;  %v9285_v1 = vcombine.low %v778_v50, %v782_v51  ;;  %v830_v48 = vld [vmem:[#allocation2 + $0x1868] sm:$0xff] }
 0x17a   :  { %7238 = vmatpush1.bf16.msra.mxu0 %v9227_v60  ;;  %7607 = vmatpush1.bf16.msra.mxu1 %v9229_v61  ;;  %v785_v60 = vld [vmem:[#allocation2 + $0x1700] sm:$0xff] }
 0x17b   :  { %7239 = vmatprep.subr.bf16.mxu0 %v9236_v62  ;;  %7608 = vmatprep.subr.bf16.mxu1 %v9238_v63  ;;  %v789_v61 = vld [vmem:[#allocation2 + $0x1720] sm:$0xff]  ;;  %v786_v62 = vld [vmem:[#allocation2 + $0x1708] sm:$0xff] }
 0x17c   :  { %v790_v63 = vld [vmem:[#allocation2 + $0x1728] sm:$0xff]  ;;  %v9292_v2 = vcombine.high %v785_v60, %v789_v61  ;;  %v9291_v8 = vcombine.low %v785_v60, %v789_v61 }
 0x17d   :  { %v9294_v3 = vcombine.high %v786_v62, %v790_v63  ;;  %v9293_v9 = vcombine.low %v786_v62, %v790_v63  ;;  %v834_v60 = vld [vmem:[#allocation2 + $0x1888] sm:$0xff] }
 0x17e   :  { %7240 = vmatpush1.bf16.msra.mxu0 %v9235_v4  ;;  %7609 = vmatpush1.bf16.msra.mxu1 %v9237_v5  ;;  %v793_v4 = vld [vmem:[#allocation2 + $0x1740] sm:$0xff]  ;;  %v838_v61 = vld [vmem:[#allocation2 + $0x18a8] sm:$0xff] }
 0x17f   :  { %7241 = vmatprep.subr.bf16.mxu0 %v9244_v6  ;;  %7610 = vmatprep.subr.bf16.mxu1 %v9246_v7  ;;  %v797_v5 = vld [vmem:[#allocation2 + $0x1760] sm:$0xff]  ;;  %v794_v6 = vld [vmem:[#allocation2 + $0x1748] sm:$0xff] }
 0x180   :  { %v798_v7 = vld [vmem:[#allocation2 + $0x1768] sm:$0xff]  ;;  %v9300_v10 = vcombine.high %v793_v4, %v797_v5  ;;  %v9299_v20 = vcombine.low %v793_v4, %v797_v5 }
 0x181   :  { %v9302_v11 = vcombine.high %v794_v6, %v798_v7  ;;  %v9301_v21 = vcombine.low %v794_v6, %v798_v7  ;;  %v842_v4 = vld [vmem:[#allocation2 + $0x18c8] sm:$0xff]  ;;  %v9341_v7 = vcombine.low %v834_v60, %v838_v61 }
 0x182   :  { %7242 = vmatpush1.bf16.msra.mxu0 %v9243_v13  ;;  %7611 = vmatpush1.bf16.msra.mxu1 %v9245_v14  ;;  %v801_v13 = vld [vmem:[#allocation2 + $0x1780] sm:$0xff]  ;;  %v846_v5 = vld [vmem:[#allocation2 + $0x18e8] sm:$0xff] }
 0x183   :  { %7243 = vmatprep.subr.bf16.mxu0 %v9252_v17  ;;  %7612 = vmatprep.subr.bf16.mxu1 %v9254_v18  ;;  %v805_v14 = vld [vmem:[#allocation2 + $0x17a0] sm:$0xff]  ;;  %v802_v17 = vld [vmem:[#allocation2 + $0x1788] sm:$0xff] }
 0x184   :  { %v806_v18 = vld [vmem:[#allocation2 + $0x17a8] sm:$0xff]  ;;  %v9308_v23 = vcombine.high %v801_v13, %v805_v14  ;;  %v9307_v30 = vcombine.low %v801_v13, %v805_v14 }
 0x185   :  { %v9310_v24 = vcombine.high %v802_v17, %v806_v18  ;;  %v9309_v31 = vcombine.low %v802_v17, %v806_v18  ;;  %v850_v13 = vld [vmem:[#allocation2 + $0x1908] sm:$0xff]  ;;  %v9349_v18 = vcombine.low %v842_v4, %v846_v5 }
 0x186   :  { %7244 = vmatpush1.bf16.msra.mxu0 %v9251_v26  ;;  %7613 = vmatpush1.bf16.msra.mxu1 %v9253_v27  ;;  %v809_v26 = vld [vmem:[#allocation2 + $0x17c0] sm:$0xff]  ;;  %v854_v14 = vld [vmem:[#allocation2 + $0x1928] sm:$0xff] }
 0x187   :  { %7245 = vmatprep.subr.bf16.mxu0 %v9260_v28  ;;  %7614 = vmatprep.subr.bf16.mxu1 %v9262_v29  ;;  %v813_v27 = vld [vmem:[#allocation2 + $0x17e0] sm:$0xff]  ;;  %v810_v28 = vld [vmem:[#allocation2 + $0x17c8] sm:$0xff] }
 0x188   :  { %v814_v29 = vld [vmem:[#allocation2 + $0x17e8] sm:$0xff]  ;;  %v9316_v32 = vcombine.high %v809_v26, %v813_v27  ;;  %v9315_v40 = vcombine.low %v809_v26, %v813_v27 }
 0x189   :  { %v9318_v33 = vcombine.high %v810_v28, %v814_v29  ;;  %v9317_v41 = vcombine.low %v810_v28, %v814_v29  ;;  %v858_v26 = vld [vmem:[#allocation2 + $0x1948] sm:$0xff]  ;;  %v9357_v29 = vcombine.low %v850_v13, %v854_v14 }
 0x18a   :  { %7246 = vmatpush1.bf16.msra.mxu0 %v9259_v34  ;;  %7615 = vmatpush1.bf16.msra.mxu1 %v9261_v35  ;;  %v817_v34 = vld [vmem:[#allocation2 + $0x1800] sm:$0xff]  ;;  %v862_v27 = vld [vmem:[#allocation2 + $0x1968] sm:$0xff] }
 0x18b   :  { %7247 = vmatprep.subr.bf16.mxu0 %v9268_v37  ;;  %7616 = vmatprep.subr.bf16.mxu1 %v9270_v38  ;;  %v821_v35 = vld [vmem:[#allocation2 + $0x1820] sm:$0xff]  ;;  %v818_v37 = vld [vmem:[#allocation2 + $0x1808] sm:$0xff] }
 0x18c   :  { %v822_v38 = vld [vmem:[#allocation2 + $0x1828] sm:$0xff]  ;;  %v9324_v42 = vcombine.high %v817_v34, %v821_v35  ;;  %v9323_v50 = vcombine.low %v817_v34, %v821_v35 }
 0x18d   :  { %v9326_v43 = vcombine.high %v818_v37, %v822_v38  ;;  %v9325_v51 = vcombine.low %v818_v37, %v822_v38  ;;  %v866_v34 = vld [vmem:[#allocation2 + $0x1988] sm:$0xff]  ;;  %v9365_v38 = vcombine.low %v858_v26, %v862_v27 }
 0x18e   :  { %7248 = vmatpush1.bf16.msra.mxu0 %v9267_v44  ;;  %7617 = vmatpush1.bf16.msra.mxu1 %v9269_v45  ;;  %v825_v44 = vld [vmem:[#allocation2 + $0x1840] sm:$0xff]  ;;  %v870_v35 = vld [vmem:[#allocation2 + $0x19a8] sm:$0xff] }
 0x18f   :  { %7249 = vmatprep.subr.bf16.mxu0 %v9276_v46  ;;  %7618 = vmatprep.subr.bf16.mxu1 %v9278_v47  ;;  %v829_v45 = vld [vmem:[#allocation2 + $0x1860] sm:$0xff]  ;;  %v10053_v46 = vcombine.low %v10041_v19, %v10041_v19  ;;  %v826_v47 = vld [vmem:[#allocation2 + $0x1848] sm:$0xff]  ;;  %v10062_v19 = vcombine.high %v10058_v49, %v10058_v49 }
 0x190   :  { %v9331_v62 = vcombine.low %v825_v44, %v829_v45  ;;  %v9333_v63 = vcombine.low %v826_v47, %v830_v48 }
 0x192   :  { %7250 = vmatpush1.bf16.msra.mxu0 %v9275_v52  ;;  %7619 = vmatpush1.bf16.msra.mxu1 %v9277_v54  ;;  %v9332_v52 = vcombine.high %v825_v44, %v829_v45  ;;  %v9334_v54 = vcombine.high %v826_v47, %v830_v48  ;;  %v874_v44 = vld [vmem:[#allocation2 + $0x19c8] sm:$0xff]  ;;  %v9373_v48 = vcombine.low %v866_v34, %v870_v35 }
 0x193   :  { %7251 = vmatprep.subr.bf16.mxu0 %v9284_v56  ;;  %7620 = vmatprep.subr.bf16.mxu1 %v9286_v58  ;;  %v833_v56 = vld [vmem:[#allocation2 + $0x1880] sm:$0xff]  ;;  %v878_v45 = vld [vmem:[#allocation2 + $0x19e8] sm:$0xff] }
 0x194   :  { %v837_v58 = vld [vmem:[#allocation2 + $0x18a0] sm:$0xff] }
 0x195   :  { %v9339_v6 = vcombine.low %v833_v56, %v837_v58 }
 0x196   :  { %7252 = vmatpush1.bf16.msra.mxu0 %v9283_v0  ;;  %7621 = vmatpush1.bf16.msra.mxu1 %v9285_v1  ;;  %v9340_v0 = vcombine.high %v833_v56, %v837_v58  ;;  %v9342_v1 = vcombine.high %v834_v60, %v838_v61  ;;  %v882_v56 = vld [vmem:[#allocation2 + $0x1a08] sm:$0xff]  ;;  %v9381_v61 = vcombine.low %v874_v44, %v878_v45 }
 0x197   :  { %7253 = vmatprep.subr.bf16.mxu0 %v9292_v2  ;;  %7622 = vmatprep.subr.bf16.mxu1 %v9294_v3  ;;  %v841_v2 = vld [vmem:[#allocation2 + $0x18c0] sm:$0xff]  ;;  %v886_v58 = vld [vmem:[#allocation2 + $0x1a28] sm:$0xff] }
 0x198   :  { %v845_v3 = vld [vmem:[#allocation2 + $0x18e0] sm:$0xff] }
 0x199   :  { %v9347_v17 = vcombine.low %v841_v2, %v845_v3 }
 0x19a   :  { %7254 = vmatpush1.bf16.msra.mxu0 %v9291_v8  ;;  %7623 = vmatpush1.bf16.msra.mxu1 %v9293_v9  ;;  %v9348_v8 = vcombine.high %v841_v2, %v845_v3  ;;  %v9350_v9 = vcombine.high %v842_v4, %v846_v5  ;;  %v890_v2 = vld [vmem:[#allocation2 + $0x1a48] sm:$0xff]  ;;  %v9389_v5 = vcombine.low %v882_v56, %v886_v58 }
 0x19b   :  { %7255 = vmatprep.subr.bf16.mxu0 %v9300_v10  ;;  %7624 = vmatprep.subr.bf16.mxu1 %v9302_v11  ;;  %v849_v10 = vld [vmem:[#allocation2 + $0x1900] sm:$0xff]  ;;  %v894_v3 = vld [vmem:[#allocation2 + $0x1a68] sm:$0xff] }
 0x19c   :  { %v853_v11 = vld [vmem:[#allocation2 + $0x1920] sm:$0xff] }
 0x19d   :  { %v9355_v28 = vcombine.low %v849_v10, %v853_v11 }
 0x19e   :  { %7256 = vmatpush1.bf16.msra.mxu0 %v9299_v20  ;;  %7625 = vmatpush1.bf16.msra.mxu1 %v9301_v21  ;;  %v9356_v20 = vcombine.high %v849_v10, %v853_v11  ;;  %v9358_v21 = vcombine.high %v850_v13, %v854_v14  ;;  %v898_v10 = vld [vmem:[#allocation2 + $0x1a88] sm:$0xff]  ;;  %v9397_v14 = vcombine.low %v890_v2, %v894_v3 }
 0x19f   :  { %7257 = vmatprep.subr.bf16.mxu0 %v9308_v23  ;;  %7626 = vmatprep.subr.bf16.mxu1 %v9310_v24  ;;  %v857_v23 = vld [vmem:[#allocation2 + $0x1940] sm:$0xff]  ;;  %v902_v11 = vld [vmem:[#allocation2 + $0x1aa8] sm:$0xff] }
 0x1a0   :  { %v861_v24 = vld [vmem:[#allocation2 + $0x1960] sm:$0xff] }
 0x1a1   :  { %v9363_v37 = vcombine.low %v857_v23, %v861_v24 }
 0x1a2   :  { %7258 = vmatpush1.bf16.msra.mxu0 %v9307_v30  ;;  %7627 = vmatpush1.bf16.msra.mxu1 %v9309_v31  ;;  %v9364_v30 = vcombine.high %v857_v23, %v861_v24  ;;  %v9366_v31 = vcombine.high %v858_v26, %v862_v27  ;;  %v906_v23 = vld [vmem:[#allocation2 + $0x1ac8] sm:$0xff]  ;;  %v9405_v27 = vcombine.low %v898_v10, %v902_v11 }
 0x1a3   :  { %7259 = vmatprep.subr.bf16.mxu0 %v9316_v32  ;;  %7628 = vmatprep.subr.bf16.mxu1 %v9318_v33  ;;  %v865_v32 = vld [vmem:[#allocation2 + $0x1980] sm:$0xff]  ;;  %v910_v24 = vld [vmem:[#allocation2 + $0x1ae8] sm:$0xff] }
 0x1a4   :  { %v869_v33 = vld [vmem:[#allocation2 + $0x19a0] sm:$0xff] }
 0x1a5   :  { %v9371_v47 = vcombine.low %v865_v32, %v869_v33 }
 0x1a6   :  { %7260 = vmatpush1.bf16.msra.mxu0 %v9315_v40  ;;  %7629 = vmatpush1.bf16.msra.mxu1 %v9317_v41  ;;  %v9372_v40 = vcombine.high %v865_v32, %v869_v33  ;;  %v9374_v41 = vcombine.high %v866_v34, %v870_v35  ;;  %v914_v32 = vld [vmem:[#allocation2 + $0x1b08] sm:$0xff]  ;;  %v9413_v35 = vcombine.low %v906_v23, %v910_v24 }
 0x1a7   :  { %7270 = vmatprep.subr.bf16.mxu0 %v9324_v42  ;;  %7639 = vmatprep.subr.bf16.mxu1 %v9326_v43  ;;  %v873_v42 = vld [vmem:[#allocation2 + $0x19c0] sm:$0xff]  ;;  %v918_v33 = vld [vmem:[#allocation2 + $0x1b28] sm:$0xff] }
 0x1a8   :  { %v877_v43 = vld [vmem:[#allocation2 + $0x19e0] sm:$0xff] }
 0x1a9   :  { %7262 = vmatmul.mubr.bf16.vlgmr.msra.gmra.mrb[0].mxu0 %v10053_v46  ;;  %7631 = vmatmul.mubr.bf16.vlgmr.msra.gmra.mrb[0].mxu1 %v10053_v46  ;;  %v9379_v60 = vcombine.low %v873_v42, %v877_v43 }
 0x1aa   :  { %7271 = vmatpush1.bf16.msra.mxu0 %v9323_v50  ;;  %7640 = vmatpush1.bf16.msra.mxu1 %v9325_v51  ;;  %v9380_v50 = vcombine.high %v873_v42, %v877_v43  ;;  %v9382_v51 = vcombine.high %v874_v44, %v878_v45  ;;  %v922_v42 = vld [vmem:[#allocation2 + $0x1b48] sm:$0xff]  ;;  %v9421_v45 = vcombine.low %v914_v32, %v918_v33 }
 0x1ab   :  { %7272 = vmatprep.subr.bf16.mxu0 %v9332_v52  ;;  %7641 = vmatprep.subr.bf16.mxu1 %v9334_v54  ;;  %v881_v52 = vld [vmem:[#allocation2 + $0x1a00] sm:$0xff]  ;;  %v926_v43 = vld [vmem:[#allocation2 + $0x1b68] sm:$0xff] }
 0x1ac   :  { %7302 = vmatprep.mubr.bf16.mxu0 %v10062_v19  ;;  %7671 = vmatprep.mubr.bf16.mxu1 %v10062_v19  ;;  %v885_v54 = vld [vmem:[#allocation2 + $0x1a20] sm:$0xff] }
 0x1ad   :  { %v9387_v4 = vcombine.low %v881_v52, %v885_v54 }
 0x1ae   :  { %7273 = vmatpush1.bf16.msra.mxu0 %v9331_v62  ;;  %7642 = vmatpush1.bf16.msra.mxu1 %v9333_v63  ;;  %v9388_v62 = vcombine.high %v881_v52, %v885_v54  ;;  %v9390_v63 = vcombine.high %v882_v56, %v886_v58  ;;  %v930_v52 = vld [vmem:[#allocation2 + $0x1b88] sm:$0xff]  ;;  %v9429_v58 = vcombine.low %v922_v42, %v926_v43 }
 0x1af   :  { %7274 = vmatprep.subr.bf16.mxu0 %v9340_v0  ;;  %7643 = vmatprep.subr.bf16.mxu1 %v9342_v1  ;;  %v889_v0 = vld [vmem:[#allocation2 + $0x1a40] sm:$0xff]  ;;  %v934_v54 = vld [vmem:[#allocation2 + $0x1ba8] sm:$0xff] }
 0x1b0   :  { %v893_v1 = vld [vmem:[#allocation2 + $0x1a60] sm:$0xff] }
 0x1b1   :  { %v9395_v13 = vcombine.low %v889_v0, %v893_v1 }
 0x1b2   :  { %7275 = vmatpush1.bf16.msra.mxu0 %v9339_v6  ;;  %7644 = vmatpush1.bf16.msra.mxu1 %v9341_v7  ;;  %v9396_v6 = vcombine.high %v889_v0, %v893_v1  ;;  %v9398_v7 = vcombine.high %v890_v2, %v894_v3  ;;  %v938_v0 = vld [vmem:[#allocation2 + $0x1bc8] sm:$0xff]  ;;  %v9437_v3 = vcombine.low %v930_v52, %v934_v54 }
 0x1b3   :  { %7276 = vmatprep.subr.bf16.mxu0 %v9348_v8  ;;  %7645 = vmatprep.subr.bf16.mxu1 %v9350_v9  ;;  %v897_v8 = vld [vmem:[#allocation2 + $0x1a80] sm:$0xff]  ;;  %v942_v1 = vld [vmem:[#allocation2 + $0x1be8] sm:$0xff] }
 0x1b4   :  { %v901_v9 = vld [vmem:[#allocation2 + $0x1aa0] sm:$0xff] }
 0x1b5   :  { %v9403_v26 = vcombine.low %v897_v8, %v901_v9 }
 0x1b6   :  { %7277 = vmatpush1.bf16.msra.mxu0 %v9347_v17  ;;  %7646 = vmatpush1.bf16.msra.mxu1 %v9349_v18  ;;  %v9404_v17 = vcombine.high %v897_v8, %v901_v9  ;;  %v9406_v18 = vcombine.high %v898_v10, %v902_v11  ;;  %v946_v8 = vld [vmem:[#allocation2 + $0x1c08] sm:$0xff]  ;;  %v9445_v11 = vcombine.low %v938_v0, %v942_v1 }
 0x1b7   :  { %7278 = vmatprep.subr.bf16.mxu0 %v9356_v20  ;;  %7647 = vmatprep.subr.bf16.mxu1 %v9358_v21  ;;  %v905_v20 = vld [vmem:[#allocation2 + $0x1ac0] sm:$0xff]  ;;  %v950_v9 = vld [vmem:[#allocation2 + $0x1c28] sm:$0xff] }
 0x1b8   :  { %v909_v21 = vld [vmem:[#allocation2 + $0x1ae0] sm:$0xff] }
 0x1b9   :  { %v9411_v34 = vcombine.low %v905_v20, %v909_v21 }
 0x1ba   :  { %7279 = vmatpush1.bf16.msra.mxu0 %v9355_v28  ;;  %7648 = vmatpush1.bf16.msra.mxu1 %v9357_v29  ;;  %v9412_v28 = vcombine.high %v905_v20, %v909_v21  ;;  %v9414_v29 = vcombine.high %v906_v23, %v910_v24  ;;  %v10070_v20 = vcombine.low %v10058_v49, %v10058_v49  ;;  %v954_v21 = vld [vmem:[#allocation2 + $0x1c48] sm:$0xff]  ;;  %v10075_v24 = vld [vmem:[%s10165_s0 + $0x38] sm:$0xff] }
 0x1bb   :  { %7280 = vmatprep.subr.bf16.mxu0 %v9364_v30  ;;  %7649 = vmatprep.subr.bf16.mxu1 %v9366_v31  ;;  %v913_v30 = vld [vmem:[#allocation2 + $0x1b00] sm:$0xff]  ;;  %v958_v23 = vld [vmem:[#allocation2 + $0x1c68] sm:$0xff]  ;;  %v10079_v49 = vcombine.high %v10075_v24, %v10075_v24 }
 0x1bc   :  { %v917_v31 = vld [vmem:[#allocation2 + $0x1b20] sm:$0xff] }
 0x1bd   :  { %v9419_v44 = vcombine.low %v913_v30, %v917_v31 }
 0x1be   :  { %7281 = vmatpush1.bf16.msra.mxu0 %v9363_v37  ;;  %7650 = vmatpush1.bf16.msra.mxu1 %v9365_v38  ;;  %v9420_v37 = vcombine.high %v913_v30, %v917_v31  ;;  %v9422_v38 = vcombine.high %v914_v32, %v918_v33  ;;  %v961_v30 = vld [vmem:[#allocation2 + $0x1c80] sm:$0xff]  ;;  %v962_v32 = vld [vmem:[#allocation2 + $0x1c88] sm:$0xff] }
 0x1bf   :  { %7282 = vmatprep.subr.bf16.mxu0 %v9372_v40  ;;  %7651 = vmatprep.subr.bf16.mxu1 %v9374_v41  ;;  %v921_v40 = vld [vmem:[#allocation2 + $0x1b40] sm:$0xff]  ;;  %v966_v33 = vld [vmem:[#allocation2 + $0x1ca8] sm:$0xff] }
 0x1c0   :  { %v925_v41 = vld [vmem:[#allocation2 + $0x1b60] sm:$0xff] }
 0x1c1   :  { %v9427_v56 = vcombine.low %v921_v40, %v925_v41  ;;  %v965_v31 = vld [vmem:[#allocation2 + $0x1ca0] sm:$0xff] }
 0x1c2   :  { %7283 = vmatpush1.bf16.msra.mxu0 %v9371_v47  ;;  %7652 = vmatpush1.bf16.msra.mxu1 %v9373_v48  ;;  %v9428_v47 = vcombine.high %v921_v40, %v925_v41  ;;  %v9430_v48 = vcombine.high %v922_v42, %v926_v43  ;;  %v969_v40 = vld [vmem:[#allocation2 + $0x1cc0] sm:$0xff]  ;;  %v970_v42 = vld [vmem:[#allocation2 + $0x1cc8] sm:$0xff] }
 0x1c3   :  { %7284 = vmatprep.subr.bf16.mxu0 %v9380_v50  ;;  %7653 = vmatprep.subr.bf16.mxu1 %v9382_v51  ;;  %v929_v50 = vld [vmem:[#allocation2 + $0x1b80] sm:$0xff]  ;;  %v974_v43 = vld [vmem:[#allocation2 + $0x1ce8] sm:$0xff] }
 0x1c4   :  { %v933_v51 = vld [vmem:[#allocation2 + $0x1ba0] sm:$0xff] }
 0x1c5   :  { %v9435_v2 = vcombine.low %v929_v50, %v933_v51  ;;  %v973_v41 = vld [vmem:[#allocation2 + $0x1ce0] sm:$0xff] }
 0x1c6   :  { %7285 = vmatpush1.bf16.msra.mxu0 %v9379_v60  ;;  %7654 = vmatpush1.bf16.msra.mxu1 %v9381_v61  ;;  %v9436_v60 = vcombine.high %v929_v50, %v933_v51  ;;  %v9438_v61 = vcombine.high %v930_v52, %v934_v54  ;;  %v977_v50 = vld [vmem:[#allocation2 + $0x1d00] sm:$0xff]  ;;  %v978_v52 = vld [vmem:[#allocation2 + $0x1d08] sm:$0xff] }
 0x1c7   :  { %7286 = vmatprep.subr.bf16.mxu0 %v9388_v62  ;;  %7655 = vmatprep.subr.bf16.mxu1 %v9390_v63  ;;  %v937_v62 = vld [vmem:[#allocation2 + $0x1bc0] sm:$0xff]  ;;  %v982_v54 = vld [vmem:[#allocation2 + $0x1d28] sm:$0xff] }
 0x1c8   :  { %v941_v63 = vld [vmem:[#allocation2 + $0x1be0] sm:$0xff] }
 0x1c9   :  { %v9443_v10 = vcombine.low %v937_v62, %v941_v63  ;;  %v981_v51 = vld [vmem:[#allocation2 + $0x1d20] sm:$0xff] }
 0x1ca   :  { %7287 = vmatpush1.bf16.msra.mxu0 %v9387_v4  ;;  %7656 = vmatpush1.bf16.msra.mxu1 %v9389_v5  ;;  %v9444_v4 = vcombine.high %v937_v62, %v941_v63  ;;  %v9446_v5 = vcombine.high %v938_v0, %v942_v1  ;;  %v985_v62 = vld [vmem:[#allocation2 + $0x1d40] sm:$0xff]  ;;  %v986_v0 = vld [vmem:[#allocation2 + $0x1d48] sm:$0xff] }
 0x1cb   :  { %7288 = vmatprep.subr.bf16.mxu0 %v9396_v6  ;;  %7657 = vmatprep.subr.bf16.mxu1 %v9398_v7  ;;  %v945_v6 = vld [vmem:[#allocation2 + $0x1c00] sm:$0xff]  ;;  %v990_v1 = vld [vmem:[#allocation2 + $0x1d68] sm:$0xff] }
 0x1cc   :  { %v949_v7 = vld [vmem:[#allocation2 + $0x1c20] sm:$0xff] }
 0x1cd   :  { %v989_v63 = vld [vmem:[#allocation2 + $0x1d60] sm:$0xff] }
 0x1ce   :  { %7289 = vmatpush1.bf16.msra.mxu0 %v9395_v13  ;;  %7658 = vmatpush1.bf16.msra.mxu1 %v9397_v14  ;;  %v9452_v13 = vcombine.high %v945_v6, %v949_v7  ;;  %v9454_v14 = vcombine.high %v946_v8, %v950_v9 }
 0x1cf   :  { %7290 = vmatprep.subr.bf16.mxu0 %v9404_v17  ;;  %7659 = vmatprep.subr.bf16.mxu1 %v9406_v18  ;;  %v953_v17 = vld [vmem:[#allocation2 + $0x1c40] sm:$0xff] }
 0x1d0   :  { %v957_v18 = vld [vmem:[#allocation2 + $0x1c60] sm:$0xff] }
 0x1d2   :  { %7291 = vmatpush1.bf16.msra.mxu0 %v9403_v26  ;;  %7660 = vmatpush1.bf16.msra.mxu1 %v9405_v27  ;;  %v9451_v26 = vcombine.low %v945_v6, %v949_v7  ;;  %v9453_v27 = vcombine.low %v946_v8, %v950_v9  ;;  %v993_v6 = vld [vmem:[#allocation2 + $0x1d80] sm:$0xff]  ;;  %v994_v8 = vld [vmem:[#allocation2 + $0x1d88] sm:$0xff] }
 0x1d3   :  { %7292 = vmatprep.subr.bf16.mxu0 %v9412_v28  ;;  %7661 = vmatprep.subr.bf16.mxu1 %v9414_v29  ;;  %v9460_v28 = vcombine.high %v953_v17, %v957_v18  ;;  %v9462_v29 = vcombine.high %v954_v21, %v958_v23  ;;  %v997_v7 = vld [vmem:[#allocation2 + $0x1da0] sm:$0xff]  ;;  %v998_v9 = vld [vmem:[#allocation2 + $0x1da8] sm:$0xff] }
 0x1d6   :  { %7293 = vmatpush1.bf16.msra.mxu0 %v9411_v34  ;;  %7662 = vmatpush1.bf16.msra.mxu1 %v9413_v35  ;;  %v9459_v34 = vcombine.low %v953_v17, %v957_v18  ;;  %v9461_v35 = vcombine.low %v954_v21, %v958_v23  ;;  %v1001_v17 = vld [vmem:[#allocation2 + $0x1dc0] sm:$0xff]  ;;  %v1002_v21 = vld [vmem:[#allocation2 + $0x1dc8] sm:$0xff] }
 0x1d7   :  { %7294 = vmatprep.subr.bf16.mxu0 %v9420_v37  ;;  %7663 = vmatprep.subr.bf16.mxu1 %v9422_v38  ;;  %v9468_v37 = vcombine.high %v961_v30, %v965_v31  ;;  %v9470_v38 = vcombine.high %v962_v32, %v966_v33  ;;  %v1005_v18 = vld [vmem:[#allocation2 + $0x1de0] sm:$0xff]  ;;  %v1006_v23 = vld [vmem:[#allocation2 + $0x1de8] sm:$0xff] }
 0x1da   :  { %7295 = vmatpush1.bf16.msra.mxu0 %v9419_v44  ;;  %7664 = vmatpush1.bf16.msra.mxu1 %v9421_v45  ;;  %v9467_v44 = vcombine.low %v961_v30, %v965_v31  ;;  %v9469_v45 = vcombine.low %v962_v32, %v966_v33  ;;  %v1009_v30 = vld [vmem:[#allocation2 + $0x1e00] sm:$0xff]  ;;  %v1010_v32 = vld [vmem:[#allocation2 + $0x1e08] sm:$0xff] }
 0x1db   :  { %7296 = vmatprep.subr.bf16.mxu0 %v9428_v47  ;;  %7665 = vmatprep.subr.bf16.mxu1 %v9430_v48  ;;  %v9476_v47 = vcombine.high %v969_v40, %v973_v41  ;;  %v9478_v48 = vcombine.high %v970_v42, %v974_v43  ;;  %v1013_v31 = vld [vmem:[#allocation2 + $0x1e20] sm:$0xff]  ;;  %v1014_v33 = vld [vmem:[#allocation2 + $0x1e28] sm:$0xff] }
 0x1de   :  { %7297 = vmatpush1.bf16.msra.mxu0 %v9427_v56  ;;  %7666 = vmatpush1.bf16.msra.mxu1 %v9429_v58  ;;  %v9475_v56 = vcombine.low %v969_v40, %v973_v41  ;;  %v9477_v58 = vcombine.low %v970_v42, %v974_v43  ;;  %v1017_v40 = vld [vmem:[#allocation2 + $0x1e40] sm:$0xff]  ;;  %v1018_v42 = vld [vmem:[#allocation2 + $0x1e48] sm:$0xff] }
 0x1df   :  { %7298 = vmatprep.subr.bf16.mxu0 %v9436_v60  ;;  %7667 = vmatprep.subr.bf16.mxu1 %v9438_v61  ;;  %v9484_v60 = vcombine.high %v977_v50, %v981_v51  ;;  %v9486_v61 = vcombine.high %v978_v52, %v982_v54  ;;  %v1021_v41 = vld [vmem:[#allocation2 + $0x1e60] sm:$0xff]  ;;  %v1022_v43 = vld [vmem:[#allocation2 + $0x1e68] sm:$0xff] }
 0x1e2   :  { %7299 = vmatpush1.bf16.msra.mxu0 %v9435_v2  ;;  %7668 = vmatpush1.bf16.msra.mxu1 %v9437_v3  ;;  %v9483_v2 = vcombine.low %v977_v50, %v981_v51  ;;  %v9485_v3 = vcombine.low %v978_v52, %v982_v54  ;;  %v1025_v50 = vld [vmem:[#allocation2 + $0x1e80] sm:$0xff]  ;;  %v1026_v52 = vld [vmem:[#allocation2 + $0x1e88] sm:$0xff] }
 0x1e3   :  { %7300 = vmatprep.subr.bf16.mxu0 %v9444_v4  ;;  %7669 = vmatprep.subr.bf16.mxu1 %v9446_v5  ;;  %v9492_v4 = vcombine.high %v985_v62, %v989_v63  ;;  %v9494_v5 = vcombine.high %v986_v0, %v990_v1  ;;  %v1029_v51 = vld [vmem:[#allocation2 + $0x1ea0] sm:$0xff]  ;;  %v1030_v54 = vld [vmem:[#allocation2 + $0x1ea8] sm:$0xff] }
 0x1e6   :  { %7301 = vmatpush1.bf16.msra.mxu0 %v9443_v10  ;;  %7670 = vmatpush1.bf16.msra.mxu1 %v9445_v11  ;;  %v9491_v10 = vcombine.low %v985_v62, %v989_v63  ;;  %v9493_v11 = vcombine.low %v986_v0, %v990_v1  ;;  %v1033_v62 = vld [vmem:[#allocation2 + $0x1ec0] sm:$0xff]  ;;  %v1034_v0 = vld [vmem:[#allocation2 + $0x1ec8] sm:$0xff] }
 0x1e7   :  { %7311 = vmatprep.subr.bf16.mxu0 %v9452_v13  ;;  %7680 = vmatprep.subr.bf16.mxu1 %v9454_v14  ;;  %v9500_v13 = vcombine.high %v993_v6, %v997_v7  ;;  %v9502_v14 = vcombine.high %v994_v8, %v998_v9  ;;  %v1037_v63 = vld [vmem:[#allocation2 + $0x1ee0] sm:$0xff]  ;;  %v1038_v1 = vld [vmem:[#allocation2 + $0x1ee8] sm:$0xff] }
 0x1e9   :  { %7303 = vmatmul.mubr.bf16.vlgmr.msra.gmra.mrb[0].mxu0 %v10070_v20  ;;  %7672 = vmatmul.mubr.bf16.vlgmr.msra.gmra.mrb[0].mxu1 %v10070_v20 }
 0x1ea   :  { %7312 = vmatpush1.bf16.msra.mxu0 %v9451_v26  ;;  %7681 = vmatpush1.bf16.msra.mxu1 %v9453_v27  ;;  %v9499_v26 = vcombine.low %v993_v6, %v997_v7  ;;  %v9501_v27 = vcombine.low %v994_v8, %v998_v9  ;;  %v1041_v6 = vld [vmem:[#allocation2 + $0x1f00] sm:$0xff]  ;;  %v1042_v8 = vld [vmem:[#allocation2 + $0x1f08] sm:$0xff] }
 0x1eb   :  { %7313 = vmatprep.subr.bf16.mxu0 %v9460_v28  ;;  %7682 = vmatprep.subr.bf16.mxu1 %v9462_v29  ;;  %v9508_v28 = vcombine.high %v1001_v17, %v1005_v18  ;;  %v9510_v29 = vcombine.high %v1002_v21, %v1006_v23  ;;  %v1045_v7 = vld [vmem:[#allocation2 + $0x1f20] sm:$0xff]  ;;  %v1046_v9 = vld [vmem:[#allocation2 + $0x1f28] sm:$0xff] }
 0x1ec   :  { %7343 = vmatprep.mubr.bf16.mxu0 %v10079_v49  ;;  %7712 = vmatprep.mubr.bf16.mxu1 %v10079_v49 }
 0x1ee   :  { %7314 = vmatpush1.bf16.msra.mxu0 %v9459_v34  ;;  %7683 = vmatpush1.bf16.msra.mxu1 %v9461_v35  ;;  %v9507_v34 = vcombine.low %v1001_v17, %v1005_v18  ;;  %v9509_v35 = vcombine.low %v1002_v21, %v1006_v23  ;;  %v1049_v17 = vld [vmem:[#allocation2 + $0x1f40] sm:$0xff]  ;;  %v1050_v21 = vld [vmem:[#allocation2 + $0x1f48] sm:$0xff] }
 0x1ef   :  { %7315 = vmatprep.subr.bf16.mxu0 %v9468_v37  ;;  %7684 = vmatprep.subr.bf16.mxu1 %v9470_v38  ;;  %v9516_v37 = vcombine.high %v1009_v30, %v1013_v31  ;;  %v9518_v38 = vcombine.high %v1010_v32, %v1014_v33  ;;  %v1053_v18 = vld [vmem:[#allocation2 + $0x1f60] sm:$0xff]  ;;  %v1054_v23 = vld [vmem:[#allocation2 + $0x1f68] sm:$0xff] }
 0x1f2   :  { %7316 = vmatpush1.bf16.msra.mxu0 %v9467_v44  ;;  %7685 = vmatpush1.bf16.msra.mxu1 %v9469_v45  ;;  %v9515_v44 = vcombine.low %v1009_v30, %v1013_v31  ;;  %v9517_v45 = vcombine.low %v1010_v32, %v1014_v33  ;;  %v1057_v30 = vld [vmem:[#allocation2 + $0x1f80] sm:$0xff]  ;;  %v1058_v32 = vld [vmem:[#allocation2 + $0x1f88] sm:$0xff] }
 0x1f3   :  { %7317 = vmatprep.subr.bf16.mxu0 %v9476_v47  ;;  %7686 = vmatprep.subr.bf16.mxu1 %v9478_v48  ;;  %v9524_v47 = vcombine.high %v1017_v40, %v1021_v41  ;;  %v9526_v48 = vcombine.high %v1018_v42, %v1022_v43  ;;  %v1061_v31 = vld [vmem:[#allocation2 + $0x1fa0] sm:$0xff]  ;;  %v1062_v33 = vld [vmem:[#allocation2 + $0x1fa8] sm:$0xff] }
 0x1f6   :  { %7318 = vmatpush1.bf16.msra.mxu0 %v9475_v56  ;;  %7687 = vmatpush1.bf16.msra.mxu1 %v9477_v58  ;;  %v9523_v56 = vcombine.low %v1017_v40, %v1021_v41  ;;  %v9525_v58 = vcombine.low %v1018_v42, %v1022_v43  ;;  %v1065_v40 = vld [vmem:[#allocation2 + $0x1fc0] sm:$0xff]  ;;  %v1066_v42 = vld [vmem:[#allocation2 + $0x1fc8] sm:$0xff] }
 0x1f7   :  { %7319 = vmatprep.subr.bf16.mxu0 %v9484_v60  ;;  %7688 = vmatprep.subr.bf16.mxu1 %v9486_v61  ;;  %v9532_v60 = vcombine.high %v1025_v50, %v1029_v51  ;;  %v9534_v61 = vcombine.high %v1026_v52, %v1030_v54  ;;  %v1069_v41 = vld [vmem:[#allocation2 + $0x1fe0] sm:$0xff]  ;;  %v1070_v43 = vld [vmem:[#allocation2 + $0x1fe8] sm:$0xff] }
 0x1fa   :  { %7320 = vmatpush1.bf16.msra.mxu0 %v9483_v2  ;;  %7689 = vmatpush1.bf16.msra.mxu1 %v9485_v3  ;;  %v9531_v2 = vcombine.low %v1025_v50, %v1029_v51  ;;  %v9533_v3 = vcombine.low %v1026_v52, %v1030_v54  ;;  %v1073_v50 = vld [vmem:[#allocation2 + $0x2000] sm:$0xff]  ;;  %v1074_v52 = vld [vmem:[#allocation2 + $0x2008] sm:$0xff] }
 0x1fb   :  { %7321 = vmatprep.subr.bf16.mxu0 %v9492_v4  ;;  %7690 = vmatprep.subr.bf16.mxu1 %v9494_v5  ;;  %v9540_v4 = vcombine.high %v1033_v62, %v1037_v63  ;;  %v9542_v5 = vcombine.high %v1034_v0, %v1038_v1  ;;  %v1077_v51 = vld [vmem:[#allocation2 + $0x2020] sm:$0xff]  ;;  %v1078_v54 = vld [vmem:[#allocation2 + $0x2028] sm:$0xff] }
 0x1fe   :  { %7322 = vmatpush1.bf16.msra.mxu0 %v9491_v10  ;;  %7691 = vmatpush1.bf16.msra.mxu1 %v9493_v11  ;;  %v9539_v10 = vcombine.low %v1033_v62, %v1037_v63  ;;  %v9541_v11 = vcombine.low %v1034_v0, %v1038_v1  ;;  %v1081_v62 = vld [vmem:[#allocation2 + $0x2040] sm:$0xff]  ;;  %v10087_v0 = vcombine.low %v10075_v24, %v10075_v24  ;;  %v1082_v1 = vld [vmem:[#allocation2 + $0x2048] sm:$0xff] }
 0x1ff   :  { %7323 = vmatprep.subr.bf16.mxu0 %v9500_v13  ;;  %7692 = vmatprep.subr.bf16.mxu1 %v9502_v14  ;;  %v9548_v13 = vcombine.high %v1041_v6, %v1045_v7  ;;  %v9550_v14 = vcombine.high %v1042_v8, %v1046_v9  ;;  %v1085_v63 = vld [vmem:[#allocation2 + $0x2060] sm:$0xff] }
 0x202   :  { %7324 = vmatpush1.bf16.msra.mxu0 %v9499_v26  ;;  %7693 = vmatpush1.bf16.msra.mxu1 %v9501_v27  ;;  %v9547_v26 = vcombine.low %v1041_v6, %v1045_v7  ;;  %v9549_v27 = vcombine.low %v1042_v8, %v1046_v9  ;;  %v9588_v6 = vcombine.high %v1081_v62, %v1085_v63  ;;  %v1089_v8 = vld [vmem:[#allocation2 + $0x2080] sm:$0xff] }
 0x203   :  { %7325 = vmatprep.subr.bf16.mxu0 %v9508_v28  ;;  %7694 = vmatprep.subr.bf16.mxu1 %v9510_v29  ;;  %v9556_v28 = vcombine.high %v1049_v17, %v1053_v18  ;;  %v9558_v29 = vcombine.high %v1050_v21, %v1054_v23  ;;  %v1093_v9 = vld [vmem:[#allocation2 + $0x20a0] sm:$0xff] }
 0x206   :  { %7326 = vmatpush1.bf16.msra.mxu0 %v9507_v34  ;;  %7695 = vmatpush1.bf16.msra.mxu1 %v9509_v35  ;;  %v9555_v34 = vcombine.low %v1049_v17, %v1053_v18  ;;  %v9557_v35 = vcombine.low %v1050_v21, %v1054_v23  ;;  %v9596_v17 = vcombine.high %v1089_v8, %v1093_v9  ;;  %v1097_v21 = vld [vmem:[#allocation2 + $0x20c0] sm:$0xff] }
 0x207   :  { %7327 = vmatprep.subr.bf16.mxu0 %v9516_v37  ;;  %7696 = vmatprep.subr.bf16.mxu1 %v9518_v38  ;;  %v9564_v37 = vcombine.high %v1057_v30, %v1061_v31  ;;  %v9566_v38 = vcombine.high %v1058_v32, %v1062_v33  ;;  %v1101_v23 = vld [vmem:[#allocation2 + $0x20e0] sm:$0xff] }
 0x20a   :  { %7328 = vmatpush1.bf16.msra.mxu0 %v9515_v44  ;;  %7697 = vmatpush1.bf16.msra.mxu1 %v9517_v45  ;;  %v9563_v44 = vcombine.low %v1057_v30, %v1061_v31  ;;  %v9565_v45 = vcombine.low %v1058_v32, %v1062_v33  ;;  %v9604_v30 = vcombine.high %v1097_v21, %v1101_v23  ;;  %v1105_v32 = vld [vmem:[#allocation2 + $0x2100] sm:$0xff] }
 0x20b   :  { %7329 = vmatprep.subr.bf16.mxu0 %v9524_v47  ;;  %7698 = vmatprep.subr.bf16.mxu1 %v9526_v48  ;;  %v9572_v47 = vcombine.high %v1065_v40, %v1069_v41  ;;  %v9574_v48 = vcombine.high %v1066_v42, %v1070_v43  ;;  %v1109_v33 = vld [vmem:[#allocation2 + $0x2120] sm:$0xff] }
 0x20e   :  { %7330 = vmatpush1.bf16.msra.mxu0 %v9523_v56  ;;  %7699 = vmatpush1.bf16.msra.mxu1 %v9525_v58  ;;  %v9571_v56 = vcombine.low %v1065_v40, %v1069_v41  ;;  %v9573_v58 = vcombine.low %v1066_v42, %v1070_v43  ;;  %v9612_v40 = vcombine.high %v1105_v32, %v1109_v33  ;;  %v1113_v42 = vld [vmem:[#allocation2 + $0x2140] sm:$0xff] }
 0x20f   :  { %7331 = vmatprep.subr.bf16.mxu0 %v9532_v60  ;;  %7700 = vmatprep.subr.bf16.mxu1 %v9534_v61  ;;  %v9580_v60 = vcombine.high %v1073_v50, %v1077_v51  ;;  %v9582_v61 = vcombine.high %v1074_v52, %v1078_v54  ;;  %v1117_v43 = vld [vmem:[#allocation2 + $0x2160] sm:$0xff] }
 0x212   :  { %7332 = vmatpush1.bf16.msra.mxu0 %v9531_v2  ;;  %7701 = vmatpush1.bf16.msra.mxu1 %v9533_v3  ;;  %v1086_v2 = vld [vmem:[#allocation2 + $0x2068] sm:$0xff]  ;;  %v10092_v3 = vld [vmem:[%s10165_s0 + $0x40] sm:$0xff] }
 0x213   :  { %7333 = vmatprep.subr.bf16.mxu0 %v9540_v4  ;;  %7702 = vmatprep.subr.bf16.mxu1 %v9542_v5  ;;  %v9579_v4 = vcombine.low %v1073_v50, %v1077_v51  ;;  %v9581_v5 = vcombine.low %v1074_v52, %v1078_v54  ;;  %v9590_v7 = vcombine.high %v1082_v1, %v1086_v2  ;;  %v1121_v52 = vld [vmem:[#allocation2 + $0x2180] sm:$0xff] }
 0x214   :  { %v10096_v24 = vcombine.high %v10092_v3, %v10092_v3  ;;  %v9620_v50 = vcombine.high %v1113_v42, %v1117_v43  ;;  %v1125_v54 = vld [vmem:[#allocation2 + $0x21a0] sm:$0xff] }
 0x216   :  { %7334 = vmatpush1.bf16.msra.mxu0 %v9539_v10  ;;  %7703 = vmatpush1.bf16.msra.mxu1 %v9541_v11  ;;  %v1090_v10 = vld [vmem:[#allocation2 + $0x2088] sm:$0xff] }
 0x217   :  { %7335 = vmatprep.subr.bf16.mxu0 %v9548_v13  ;;  %7704 = vmatprep.subr.bf16.mxu1 %v9550_v14  ;;  %v1094_v11 = vld [vmem:[#allocation2 + $0x20a8] sm:$0xff]  ;;  %v9587_v13 = vcombine.low %v1081_v62, %v1085_v63  ;;  %v9589_v14 = vcombine.low %v1082_v1, %v1086_v2  ;;  %v9628_v62 = vcombine.high %v1121_v52, %v1125_v54  ;;  %v1129_v1 = vld [vmem:[#allocation2 + $0x21c0] sm:$0xff] }
 0x218   :  { %v9598_v18 = vcombine.high %v1090_v10, %v1094_v11  ;;  %v1133_v2 = vld [vmem:[#allocation2 + $0x21e0] sm:$0xff] }
 0x21a   :  { %7336 = vmatpush1.bf16.msra.mxu0 %v9547_v26  ;;  %7705 = vmatpush1.bf16.msra.mxu1 %v9549_v27  ;;  %v1098_v26 = vld [vmem:[#allocation2 + $0x20c8] sm:$0xff] }
 0x21b   :  { %7337 = vmatprep.subr.bf16.mxu0 %v9556_v28  ;;  %7706 = vmatprep.subr.bf16.mxu1 %v9558_v29  ;;  %v1102_v27 = vld [vmem:[#allocation2 + $0x20e8] sm:$0xff]  ;;  %v9595_v28 = vcombine.low %v1089_v8, %v1093_v9  ;;  %v9597_v29 = vcombine.low %v1090_v10, %v1094_v11  ;;  %v9636_v8 = vcombine.high %v1129_v1, %v1133_v2  ;;  %v1137_v10 = vld [vmem:[#allocation2 + $0x2200] sm:$0xff] }
 0x21c   :  { %v9606_v31 = vcombine.high %v1098_v26, %v1102_v27  ;;  %v1141_v11 = vld [vmem:[#allocation2 + $0x2220] sm:$0xff] }
 0x21e   :  { %7338 = vmatpush1.bf16.msra.mxu0 %v9555_v34  ;;  %7707 = vmatpush1.bf16.msra.mxu1 %v9557_v35  ;;  %v1106_v34 = vld [vmem:[#allocation2 + $0x2108] sm:$0xff] }
 0x21f   :  { %7339 = vmatprep.subr.bf16.mxu0 %v9564_v37  ;;  %7708 = vmatprep.subr.bf16.mxu1 %v9566_v38  ;;  %v1110_v35 = vld [vmem:[#allocation2 + $0x2128] sm:$0xff]  ;;  %v9603_v37 = vcombine.low %v1097_v21, %v1101_v23  ;;  %v9605_v38 = vcombine.low %v1098_v26, %v1102_v27  ;;  %v9644_v21 = vcombine.high %v1137_v10, %v1141_v11  ;;  %v1145_v26 = vld [vmem:[#allocation2 + $0x2240] sm:$0xff] }
 0x220   :  { %v9614_v41 = vcombine.high %v1106_v34, %v1110_v35  ;;  %v1149_v27 = vld [vmem:[#allocation2 + $0x2260] sm:$0xff] }
 0x222   :  { %7340 = vmatpush1.bf16.msra.mxu0 %v9563_v44  ;;  %7709 = vmatpush1.bf16.msra.mxu1 %v9565_v45  ;;  %v1114_v44 = vld [vmem:[#allocation2 + $0x2148] sm:$0xff] }
 0x223   :  { %7341 = vmatprep.subr.bf16.mxu0 %v9572_v47  ;;  %7710 = vmatprep.subr.bf16.mxu1 %v9574_v48  ;;  %v1118_v45 = vld [vmem:[#allocation2 + $0x2168] sm:$0xff]  ;;  %v9611_v47 = vcombine.low %v1105_v32, %v1109_v33  ;;  %v9613_v48 = vcombine.low %v1106_v34, %v1110_v35  ;;  %v9652_v32 = vcombine.high %v1145_v26, %v1149_v27  ;;  %v1153_v34 = vld [vmem:[#allocation2 + $0x2280] sm:$0xff] }
 0x224   :  { %v9622_v51 = vcombine.high %v1114_v44, %v1118_v45  ;;  %v1157_v35 = vld [vmem:[#allocation2 + $0x22a0] sm:$0xff] }
 0x226   :  { %7342 = vmatpush1.bf16.msra.mxu0 %v9571_v56  ;;  %7711 = vmatpush1.bf16.msra.mxu1 %v9573_v58  ;;  %v1122_v56 = vld [vmem:[#allocation2 + $0x2188] sm:$0xff] }
 0x227   :  { %7352 = vmatprep.subr.bf16.mxu0 %v9580_v60  ;;  %7721 = vmatprep.subr.bf16.mxu1 %v9582_v61  ;;  %v1126_v58 = vld [vmem:[#allocation2 + $0x21a8] sm:$0xff]  ;;  %v9619_v60 = vcombine.low %v1113_v42, %v1117_v43  ;;  %v9621_v61 = vcombine.low %v1114_v44, %v1118_v45  ;;  %v9660_v42 = vcombine.high %v1153_v34, %v1157_v35  ;;  %v1161_v44 = vld [vmem:[#allocation2 + $0x22c0] sm:$0xff] }
 0x228   :  { %v9630_v63 = vcombine.high %v1122_v56, %v1126_v58  ;;  %v1165_v45 = vld [vmem:[#allocation2 + $0x22e0] sm:$0xff] }
 0x229   :  { %7344 = vmatmul.mubr.bf16.vlgmr.msra.gmra.mrb[0].mxu0 %v10087_v0  ;;  %7713 = vmatmul.mubr.bf16.vlgmr.msra.gmra.mrb[0].mxu1 %v10087_v0 }
 0x22a   :  { %7353 = vmatpush1.bf16.msra.mxu0 %v9579_v4  ;;  %7722 = vmatpush1.bf16.msra.mxu1 %v9581_v5  ;;  %v1130_v4 = vld [vmem:[#allocation2 + $0x21c8] sm:$0xff] }
 0x22b   :  { %7354 = vmatprep.subr.bf16.mxu0 %v9588_v6  ;;  %7723 = vmatprep.subr.bf16.mxu1 %v9590_v7  ;;  %v1134_v5 = vld [vmem:[#allocation2 + $0x21e8] sm:$0xff]  ;;  %v9627_v6 = vcombine.low %v1121_v52, %v1125_v54  ;;  %v9629_v7 = vcombine.low %v1122_v56, %v1126_v58  ;;  %v9668_v52 = vcombine.high %v1161_v44, %v1165_v45  ;;  %v1169_v56 = vld [vmem:[#allocation2 + $0x2300] sm:$0xff] }
 0x22c   :  { %7384 = vmatprep.mubr.bf16.mxu0 %v10096_v24  ;;  %7753 = vmatprep.mubr.bf16.mxu1 %v10096_v24  ;;  %v9638_v9 = vcombine.high %v1130_v4, %v1134_v5  ;;  %v1173_v58 = vld [vmem:[#allocation2 + $0x2320] sm:$0xff] }
 0x22e   :  { %7355 = vmatpush1.bf16.msra.mxu0 %v9587_v13  ;;  %7724 = vmatpush1.bf16.msra.mxu1 %v9589_v14  ;;  %v1138_v13 = vld [vmem:[#allocation2 + $0x2208] sm:$0xff] }
 0x22f   :  { %7356 = vmatprep.subr.bf16.mxu0 %v9596_v17  ;;  %7725 = vmatprep.subr.bf16.mxu1 %v9598_v18  ;;  %v1142_v14 = vld [vmem:[#allocation2 + $0x2228] sm:$0xff]  ;;  %v9635_v17 = vcombine.low %v1129_v1, %v1133_v2  ;;  %v9637_v18 = vcombine.low %v1130_v4, %v1134_v5  ;;  %v9676_v1 = vcombine.high %v1169_v56, %v1173_v58  ;;  %v1177_v4 = vld [vmem:[#allocation2 + $0x2340] sm:$0xff] }
 0x230   :  { %v9646_v23 = vcombine.high %v1138_v13, %v1142_v14  ;;  %v1181_v5 = vld [vmem:[#allocation2 + $0x2360] sm:$0xff] }
 0x232   :  { %7357 = vmatpush1.bf16.msra.mxu0 %v9595_v28  ;;  %7726 = vmatpush1.bf16.msra.mxu1 %v9597_v29  ;;  %v1146_v28 = vld [vmem:[#allocation2 + $0x2248] sm:$0xff] }
 0x233   :  { %7358 = vmatprep.subr.bf16.mxu0 %v9604_v30  ;;  %7727 = vmatprep.subr.bf16.mxu1 %v9606_v31  ;;  %v1150_v29 = vld [vmem:[#allocation2 + $0x2268] sm:$0xff]  ;;  %v9643_v30 = vcombine.low %v1137_v10, %v1141_v11  ;;  %v9645_v31 = vcombine.low %v1138_v13, %v1142_v14  ;;  %v9684_v10 = vcombine.high %v1177_v4, %v1181_v5  ;;  %v1185_v13 = vld [vmem:[#allocation2 + $0x2380] sm:$0xff] }
 0x234   :  { %v9654_v33 = vcombine.high %v1146_v28, %v1150_v29  ;;  %v1189_v14 = vld [vmem:[#allocation2 + $0x23a0] sm:$0xff] }
 0x236   :  { %7359 = vmatpush1.bf16.msra.mxu0 %v9603_v37  ;;  %7728 = vmatpush1.bf16.msra.mxu1 %v9605_v38  ;;  %v1154_v37 = vld [vmem:[#allocation2 + $0x2288] sm:$0xff] }
 0x237   :  { %7360 = vmatprep.subr.bf16.mxu0 %v9612_v40  ;;  %7729 = vmatprep.subr.bf16.mxu1 %v9614_v41  ;;  %v1158_v38 = vld [vmem:[#allocation2 + $0x22a8] sm:$0xff]  ;;  %v9651_v40 = vcombine.low %v1145_v26, %v1149_v27  ;;  %v9653_v41 = vcombine.low %v1146_v28, %v1150_v29  ;;  %v9692_v26 = vcombine.high %v1185_v13, %v1189_v14  ;;  %v1193_v28 = vld [vmem:[#allocation2 + $0x23c0] sm:$0xff] }
 0x238   :  { %v9662_v43 = vcombine.high %v1154_v37, %v1158_v38  ;;  %v1197_v29 = vld [vmem:[#allocation2 + $0x23e0] sm:$0xff] }
 0x23a   :  { %7361 = vmatpush1.bf16.msra.mxu0 %v9611_v47  ;;  %7730 = vmatpush1.bf16.msra.mxu1 %v9613_v48  ;;  %v1162_v47 = vld [vmem:[#allocation2 + $0x22c8] sm:$0xff] }
 0x23b   :  { %7362 = vmatprep.subr.bf16.mxu0 %v9620_v50  ;;  %7731 = vmatprep.subr.bf16.mxu1 %v9622_v51  ;;  %v1166_v48 = vld [vmem:[#allocation2 + $0x22e8] sm:$0xff]  ;;  %v9659_v50 = vcombine.low %v1153_v34, %v1157_v35  ;;  %v9661_v51 = vcombine.low %v1154_v37, %v1158_v38  ;;  %v9700_v34 = vcombine.high %v1193_v28, %v1197_v29  ;;  %v51_v37 = vld [vmem:[#allocation2 + $0x10] sm:$0xff] }
 0x23c   :  { %v9670_v54 = vcombine.high %v1162_v47, %v1166_v48  ;;  %v55_v38 = vld [vmem:[#allocation2 + $0x30] sm:$0xff] }
 0x23e   :  { %7363 = vmatpush1.bf16.msra.mxu0 %v9619_v60  ;;  %7732 = vmatpush1.bf16.msra.mxu1 %v9621_v61  ;;  %v1170_v60 = vld [vmem:[#allocation2 + $0x2308] sm:$0xff] }
 0x23f   :  { %7364 = vmatprep.subr.bf16.mxu0 %v9628_v62  ;;  %7733 = vmatprep.subr.bf16.mxu1 %v9630_v63  ;;  %v1174_v61 = vld [vmem:[#allocation2 + $0x2328] sm:$0xff]  ;;  %v9667_v62 = vcombine.low %v1161_v44, %v1165_v45  ;;  %v9669_v63 = vcombine.low %v1162_v47, %v1166_v48  ;;  %v8560_v44 = vcombine.high %v51_v37, %v55_v38  ;;  %v59_v47 = vld [vmem:[#allocation2 + $0x50] sm:$0xff] }
 0x240   :  { %v9678_v2 = vcombine.high %v1170_v60, %v1174_v61  ;;  %v63_v48 = vld [vmem:[#allocation2 + $0x70] sm:$0xff] }
 0x242   :  { %7365 = vmatpush1.bf16.msra.mxu0 %v9627_v6  ;;  %7734 = vmatpush1.bf16.msra.mxu1 %v9629_v7  ;;  %v1178_v6 = vld [vmem:[#allocation2 + $0x2348] sm:$0xff] }
 0x243   :  { %7366 = vmatprep.subr.bf16.mxu0 %v9636_v8  ;;  %7735 = vmatprep.subr.bf16.mxu1 %v9638_v9  ;;  %v1182_v7 = vld [vmem:[#allocation2 + $0x2368] sm:$0xff]  ;;  %v9675_v8 = vcombine.low %v1169_v56, %v1173_v58  ;;  %v9677_v9 = vcombine.low %v1170_v60, %v1174_v61  ;;  %v8568_v58 = vcombine.high %v59_v47, %v63_v48  ;;  %v67_v61 = vld [vmem:[#allocation2 + $0x90] sm:$0xff] }
 0x244   :  { %v9686_v11 = vcombine.high %v1178_v6, %v1182_v7 }
 0x246   :  { %7367 = vmatpush1.bf16.msra.mxu0 %v9635_v17  ;;  %7736 = vmatpush1.bf16.msra.mxu1 %v9637_v18  ;;  %v1186_v17 = vld [vmem:[#allocation2 + $0x2388] sm:$0xff] }
 0x247   :  { %7368 = vmatprep.subr.bf16.mxu0 %v9644_v21  ;;  %7737 = vmatprep.subr.bf16.mxu1 %v9646_v23  ;;  %v1190_v18 = vld [vmem:[#allocation2 + $0x23a8] sm:$0xff]  ;;  %v9683_v21 = vcombine.low %v1177_v4, %v1181_v5  ;;  %v9685_v23 = vcombine.low %v1178_v6, %v1182_v7  ;;  %v75_v6 = vld [vmem:[#allocation2 + $0xd0] sm:$0xff] }
 0x248   :  { %v9694_v27 = vcombine.high %v1186_v17, %v1190_v18  ;;  %v79_v7 = vld [vmem:[#allocation2 + $0xf0] sm:$0xff] }
 0x24a   :  { %7369 = vmatpush1.bf16.msra.mxu0 %v9643_v30  ;;  %7738 = vmatpush1.bf16.msra.mxu1 %v9645_v31  ;;  %v1194_v30 = vld [vmem:[#allocation2 + $0x23c8] sm:$0xff] }
 0x24b   :  { %7370 = vmatprep.subr.bf16.mxu0 %v9652_v32  ;;  %7739 = vmatprep.subr.bf16.mxu1 %v9654_v33  ;;  %v1198_v31 = vld [vmem:[#allocation2 + $0x23e8] sm:$0xff]  ;;  %v9691_v32 = vcombine.low %v1185_v13, %v1189_v14  ;;  %v9693_v33 = vcombine.low %v1186_v17, %v1190_v18  ;;  %v8584_v13 = vcombine.high %v75_v6, %v79_v7  ;;  %v83_v17 = vld [vmem:[#allocation2 + $0x110] sm:$0xff] }
 0x24c   :  { %v9702_v35 = vcombine.high %v1194_v30, %v1198_v31  ;;  %v87_v18 = vld [vmem:[#allocation2 + $0x130] sm:$0xff] }
 0x24e   :  { %7371 = vmatpush1.bf16.msra.mxu0 %v9651_v40  ;;  %7740 = vmatpush1.bf16.msra.mxu1 %v9653_v41  ;;  %v52_v40 = vld [vmem:[#allocation2 + $0x18] sm:$0xff] }
 0x24f   :  { %7372 = vmatprep.subr.bf16.mxu0 %v9660_v42  ;;  %7741 = vmatprep.subr.bf16.mxu1 %v9662_v43  ;;  %v56_v41 = vld [vmem:[#allocation2 + $0x38] sm:$0xff]  ;;  %v9699_v42 = vcombine.low %v1193_v28, %v1197_v29  ;;  %v9701_v43 = vcombine.low %v1194_v30, %v1198_v31  ;;  %v8592_v28 = vcombine.high %v83_v17, %v87_v18  ;;  %v91_v29 = vld [vmem:[#allocation2 + $0x150] sm:$0xff] }
 0x250   :  { %v8562_v45 = vcombine.high %v52_v40, %v56_v41  ;;  %v8561_v56 = vcombine.low %v52_v40, %v56_v41  ;;  %v95_v30 = vld [vmem:[#allocation2 + $0x170] sm:$0xff]  ;;  %v92_v31 = vld [vmem:[#allocation2 + $0x158] sm:$0xff] }
 0x251   :  { %v103_v40 = vld [vmem:[#allocation2 + $0x1b0] sm:$0xff]  ;;  %v100_v41 = vld [vmem:[#allocation2 + $0x198] sm:$0xff] }
 0x252   :  { %7373 = vmatpush1.bf16.msra.mxu0 %v9659_v50  ;;  %7742 = vmatpush1.bf16.msra.mxu1 %v9661_v51  ;;  %v10104_v50 = vcombine.low %v10092_v3, %v10092_v3  ;;  %v60_v51 = vld [vmem:[#allocation2 + $0x58] sm:$0xff]  ;;  %v8567_v3 = vcombine.low %v59_v47, %v63_v48  ;;  %v107_v48 = vld [vmem:[#allocation2 + $0x1d0] sm:$0xff] }
 0x253   :  { %7374 = vmatprep.subr.bf16.mxu0 %v9668_v52  ;;  %7743 = vmatprep.subr.bf16.mxu1 %v9670_v54  ;;  %v64_v52 = vld [vmem:[#allocation2 + $0x78] sm:$0xff]  ;;  %v8559_v54 = vcombine.low %v51_v37, %v55_v38  ;;  %v99_v38 = vld [vmem:[#allocation2 + $0x190] sm:$0xff] }
 0x254   :  { %v8570_v60 = vcombine.high %v60_v51, %v64_v52 }
 0x256   :  { %7375 = vmatpush1.bf16.msra.mxu0 %v9667_v62  ;;  %7744 = vmatpush1.bf16.msra.mxu1 %v9669_v63  ;;  %v71_v62 = vld [vmem:[#allocation2 + $0xb0] sm:$0xff]  ;;  %v68_v63 = vld [vmem:[#allocation2 + $0x98] sm:$0xff] }
 0x257   :  { %7376 = vmatprep.subr.bf16.mxu0 %v9676_v1  ;;  %7745 = vmatprep.subr.bf16.mxu1 %v9678_v2  ;;  %v72_v1 = vld [vmem:[#allocation2 + $0xb8] sm:$0xff]  ;;  %v8569_v2 = vcombine.low %v60_v51, %v64_v52  ;;  %v8576_v4 = vcombine.high %v67_v61, %v71_v62  ;;  %v111_v51 = vld [vmem:[#allocation2 + $0x1f0] sm:$0xff] }
 0x258   :  { %v8578_v5 = vcombine.high %v68_v63, %v72_v1  ;;  %v108_v52 = vld [vmem:[#allocation2 + $0x1d8] sm:$0xff] }
 0x25a   :  { %7377 = vmatpush1.bf16.msra.mxu0 %v9675_v8  ;;  %7746 = vmatpush1.bf16.msra.mxu1 %v9677_v9  ;;  %v76_v8 = vld [vmem:[#allocation2 + $0xd8] sm:$0xff] }
 0x25b   :  { %7378 = vmatprep.subr.bf16.mxu0 %v9684_v10  ;;  %7747 = vmatprep.subr.bf16.mxu1 %v9686_v11  ;;  %v80_v9 = vld [vmem:[#allocation2 + $0xf8] sm:$0xff]  ;;  %v8575_v10 = vcombine.low %v67_v61, %v71_v62  ;;  %v8577_v11 = vcombine.low %v68_v63, %v72_v1  ;;  %v115_v62 = vld [vmem:[#allocation2 + $0x210] sm:$0xff] }
 0x25c   :  { %v8586_v14 = vcombine.high %v76_v8, %v80_v9  ;;  %v119_v63 = vld [vmem:[#allocation2 + $0x230] sm:$0xff]  ;;  %v116_v1 = vld [vmem:[#allocation2 + $0x218] sm:$0xff] }
 0x25e   :  { %7379 = vmatpush1.bf16.msra.mxu0 %v9683_v21  ;;  %7748 = vmatpush1.bf16.msra.mxu1 %v9685_v23  ;;  %v84_v21 = vld [vmem:[#allocation2 + $0x118] sm:$0xff] }
 0x25f   :  { %7380 = vmatprep.subr.bf16.mxu0 %v9692_v26  ;;  %7749 = vmatprep.subr.bf16.mxu1 %v9694_v27  ;;  %v88_v23 = vld [vmem:[#allocation2 + $0x138] sm:$0xff]  ;;  %v8583_v26 = vcombine.low %v75_v6, %v79_v7  ;;  %v8585_v27 = vcombine.low %v76_v8, %v80_v9  ;;  %v123_v7 = vld [vmem:[#allocation2 + $0x250] sm:$0xff] }
 0x260   :  { %v127_v8 = vld [vmem:[#allocation2 + $0x270] sm:$0xff]  ;;  %v124_v9 = vld [vmem:[#allocation2 + $0x258] sm:$0xff] }
 0x262   :  { %7381 = vmatpush1.bf16.msra.mxu0 %v9691_v32  ;;  %7750 = vmatpush1.bf16.msra.mxu1 %v9693_v33  ;;  %v96_v32 = vld [vmem:[#allocation2 + $0x178] sm:$0xff]  ;;  %v8591_v33 = vcombine.low %v83_v17, %v87_v18  ;;  %v131_v18 = vld [vmem:[#allocation2 + $0x290] sm:$0xff] }
 0x263   :  { %7382 = vmatprep.subr.bf16.mxu0 %v9700_v34  ;;  %7751 = vmatprep.subr.bf16.mxu1 %v9702_v35  ;;  %v8593_v34 = vcombine.low %v84_v21, %v88_v23  ;;  %v8600_v35 = vcombine.high %v91_v29, %v95_v30  ;;  %v8602_v37 = vcombine.high %v92_v31, %v96_v32 }
 0x266   :  { %7383 = vmatpush1.bf16.msra.mxu0 %v9699_v42  ;;  %7752 = vmatpush1.bf16.msra.mxu1 %v9701_v43  ;;  %v104_v42 = vld [vmem:[#allocation2 + $0x1b8] sm:$0xff]  ;;  %v8599_v43 = vcombine.low %v91_v29, %v95_v30  ;;  %v139_v30 = vld [vmem:[#allocation2 + $0x2d0] sm:$0xff] }
 0x267   :  { %7762 = vmatprep.subr.bf16.mxu0 %v8560_v44  ;;  %8131 = vmatprep.subr.bf16.mxu1 %v8562_v45  ;;  %v8601_v44 = vcombine.low %v92_v31, %v96_v32  ;;  %v8608_v45 = vcombine.high %v99_v38, %v103_v40  ;;  %v8610_v47 = vcombine.high %v100_v41, %v104_v42  ;;  %v143_v31 = vld [vmem:[#allocation2 + $0x2f0] sm:$0xff]  ;;  %v140_v32 = vld [vmem:[#allocation2 + $0x2d8] sm:$0xff] }
 0x269   :  { %7385 = vmatmul.mubr.bf16.vlgmr.msra.gmra.mrb[0].mxu0 %v10104_v50  ;;  %7754 = vmatmul.mubr.bf16.vlgmr.msra.gmra.mrb[0].mxu1 %v10104_v50 }
 0x26a   :  { %7763 = vmatpush1.bf16.msra.mxu0 %v8559_v54  ;;  %8132 = vmatpush1.bf16.msra.mxu1 %v8561_v56  ;;  %v112_v54 = vld [vmem:[#allocation2 + $0x1f8] sm:$0xff]  ;;  %v8607_v56 = vcombine.low %v99_v38, %v103_v40  ;;  %v147_v40 = vld [vmem:[#allocation2 + $0x310] sm:$0xff] }
 0x26b   :  { %7764 = vmatprep.subr.bf16.mxu0 %v8568_v58  ;;  %8133 = vmatprep.subr.bf16.mxu1 %v8570_v60  ;;  %v8609_v58 = vcombine.low %v100_v41, %v104_v42  ;;  %v8616_v60 = vcombine.high %v107_v48, %v111_v51  ;;  %v8618_v61 = vcombine.high %v108_v52, %v112_v54  ;;  %v151_v41 = vld [vmem:[#allocation2 + $0x330] sm:$0xff]  ;;  %v148_v42 = vld [vmem:[#allocation2 + $0x318] sm:$0xff] }
 0x26c   :  { %7794 = vmatprep.mubr.bf16.mxu0 %v9962_v57  ;;  %8163 = vmatprep.mubr.bf16.mxu1 %v9962_v57  ;;  %v8594_v57 = vcombine.high %v84_v21, %v88_v23  ;;  %v135_v21 = vld [vmem:[#allocation2 + $0x2b0] sm:$0xff]  ;;  %v132_v23 = vld [vmem:[#allocation2 + $0x298] sm:$0xff] }
 0x26e   :  { %7765 = vmatpush1.bf16.msra.mxu0 %v8567_v3  ;;  %8134 = vmatpush1.bf16.msra.mxu1 %v8569_v2  ;;  %v120_v3 = vld [vmem:[#allocation2 + $0x238] sm:$0xff]  ;;  %v8615_v2 = vcombine.low %v107_v48, %v111_v51  ;;  %v155_v51 = vld [vmem:[#allocation2 + $0x350] sm:$0xff] }
 0x26f   :  { %7766 = vmatprep.subr.bf16.mxu0 %v8576_v4  ;;  %8135 = vmatprep.subr.bf16.mxu1 %v8578_v5  ;;  %v8617_v4 = vcombine.low %v108_v52, %v112_v54  ;;  %v8624_v5 = vcombine.high %v115_v62, %v119_v63  ;;  %v8626_v6 = vcombine.high %v116_v1, %v120_v3  ;;  %v159_v52 = vld [vmem:[#allocation2 + $0x370] sm:$0xff]  ;;  %v156_v54 = vld [vmem:[#allocation2 + $0x358] sm:$0xff] }
 0x272   :  { %7767 = vmatpush1.bf16.msra.mxu0 %v8575_v10  ;;  %8136 = vmatpush1.bf16.msra.mxu1 %v8577_v11  ;;  %v128_v10 = vld [vmem:[#allocation2 + $0x278] sm:$0xff]  ;;  %v8623_v11 = vcombine.low %v115_v62, %v119_v63  ;;  %v163_v63 = vld [vmem:[#allocation2 + $0x390] sm:$0xff] }
 0x273   :  { %7768 = vmatprep.subr.bf16.mxu0 %v8584_v13  ;;  %8137 = vmatprep.subr.bf16.mxu1 %v8586_v14  ;;  %v8625_v13 = vcombine.low %v116_v1, %v120_v3  ;;  %v8632_v14 = vcombine.high %v123_v7, %v127_v8  ;;  %v8634_v17 = vcombine.high %v124_v9, %v128_v10  ;;  %v167_v1 = vld [vmem:[#allocation2 + $0x3b0] sm:$0xff]  ;;  %v164_v3 = vld [vmem:[#allocation2 + $0x398] sm:$0xff] }
 0x276   :  { %7769 = vmatpush1.bf16.msra.mxu0 %v8583_v26  ;;  %8138 = vmatpush1.bf16.msra.mxu1 %v8585_v27  ;;  %v136_v26 = vld [vmem:[#allocation2 + $0x2b8] sm:$0xff]  ;;  %v8631_v27 = vcombine.low %v123_v7, %v127_v8  ;;  %v171_v8 = vld [vmem:[#allocation2 + $0x3d0] sm:$0xff] }
 0x277   :  { %7770 = vmatprep.subr.bf16.mxu0 %v8592_v28  ;;  %8139 = vmatprep.subr.bf16.mxu1 %v8594_v57  ;;  %v8633_v28 = vcombine.low %v124_v9, %v128_v10  ;;  %v8640_v57 = vcombine.high %v131_v18, %v135_v21  ;;  %v8642_v29 = vcombine.high %v132_v23, %v136_v26  ;;  %v175_v9 = vld [vmem:[#allocation2 + $0x3f0] sm:$0xff]  ;;  %v172_v10 = vld [vmem:[#allocation2 + $0x3d8] sm:$0xff] }
 0x27a   :  { %7771 = vmatpush1.bf16.msra.mxu0 %v8591_v33  ;;  %8140 = vmatpush1.bf16.msra.mxu1 %v8593_v34  ;;  %v144_v33 = vld [vmem:[#allocation2 + $0x2f8] sm:$0xff]  ;;  %v8639_v34 = vcombine.low %v131_v18, %v135_v21  ;;  %v179_v21 = vld [vmem:[#allocation2 + $0x410] sm:$0xff] }
 0x27b   :  { %7772 = vmatprep.subr.bf16.mxu0 %v8600_v35  ;;  %8141 = vmatprep.subr.bf16.mxu1 %v8602_v37  ;;  %v8641_v35 = vcombine.low %v132_v23, %v136_v26  ;;  %v8648_v37 = vcombine.high %v139_v30, %v143_v31  ;;  %v8650_v38 = vcombine.high %v140_v32, %v144_v33  ;;  %v183_v23 = vld [vmem:[#allocation2 + $0x430] sm:$0xff]  ;;  %v180_v26 = vld [vmem:[#allocation2 + $0x418] sm:$0xff] }
 0x27e   :  { %7773 = vmatpush1.bf16.msra.mxu0 %v8599_v43  ;;  %8142 = vmatpush1.bf16.msra.mxu1 %v8601_v44  ;;  %v152_v43 = vld [vmem:[#allocation2 + $0x338] sm:$0xff]  ;;  %v8647_v44 = vcombine.low %v139_v30, %v143_v31  ;;  %v187_v31 = vld [vmem:[#allocation2 + $0x450] sm:$0xff] }
 0x27f   :  { %7774 = vmatprep.subr.bf16.mxu0 %v8608_v45  ;;  %8143 = vmatprep.subr.bf16.mxu1 %v8610_v47  ;;  %v8649_v45 = vcombine.low %v140_v32, %v144_v33  ;;  %v8656_v47 = vcombine.high %v147_v40, %v151_v41  ;;  %v8658_v48 = vcombine.high %v148_v42, %v152_v43  ;;  %v191_v32 = vld [vmem:[#allocation2 + $0x470] sm:$0xff]  ;;  %v188_v33 = vld [vmem:[#allocation2 + $0x458] sm:$0xff] }
 0x282   :  { %7775 = vmatpush1.bf16.msra.mxu0 %v8607_v56  ;;  %8144 = vmatpush1.bf16.msra.mxu1 %v8609_v58  ;;  %v160_v56 = vld [vmem:[#allocation2 + $0x378] sm:$0xff]  ;;  %v8655_v58 = vcombine.low %v147_v40, %v151_v41  ;;  %v195_v41 = vld [vmem:[#allocation2 + $0x490] sm:$0xff] }
 0x283   :  { %7776 = vmatprep.subr.bf16.mxu0 %v8616_v60  ;;  %8145 = vmatprep.subr.bf16.mxu1 %v8618_v61  ;;  %v8657_v60 = vcombine.low %v148_v42, %v152_v43  ;;  %v8664_v61 = vcombine.high %v155_v51, %v159_v52  ;;  %v8666_v62 = vcombine.high %v156_v54, %v160_v56  ;;  %v199_v42 = vld [vmem:[#allocation2 + $0x4b0] sm:$0xff]  ;;  %v196_v43 = vld [vmem:[#allocation2 + $0x498] sm:$0xff] }
 0x286   :  { %7777 = vmatpush1.bf16.msra.mxu0 %v8615_v2  ;;  %8146 = vmatpush1.bf16.msra.mxu1 %v8617_v4  ;;  %v168_v2 = vld [vmem:[#allocation2 + $0x3b8] sm:$0xff]  ;;  %v8663_v4 = vcombine.low %v155_v51, %v159_v52  ;;  %v203_v52 = vld [vmem:[#allocation2 + $0x4d0] sm:$0xff] }
 0x287   :  { %7778 = vmatprep.subr.bf16.mxu0 %v8624_v5  ;;  %8147 = vmatprep.subr.bf16.mxu1 %v8626_v6  ;;  %v8665_v5 = vcombine.low %v156_v54, %v160_v56  ;;  %v8672_v6 = vcombine.high %v163_v63, %v167_v1  ;;  %v8674_v7 = vcombine.high %v164_v3, %v168_v2  ;;  %v207_v54 = vld [vmem:[#allocation2 + $0x4f0] sm:$0xff]  ;;  %v204_v56 = vld [vmem:[#allocation2 + $0x4d8] sm:$0xff] }
 0x28a   :  { %7779 = vmatpush1.bf16.msra.mxu0 %v8623_v11  ;;  %8148 = vmatpush1.bf16.msra.mxu1 %v8625_v13  ;;  %v176_v11 = vld [vmem:[#allocation2 + $0x3f8] sm:$0xff]  ;;  %v8671_v13 = vcombine.low %v163_v63, %v167_v1  ;;  %v211_v63 = vld [vmem:[#allocation2 + $0x510] sm:$0xff] }
 0x28b   :  { %7780 = vmatprep.subr.bf16.mxu0 %v8632_v14  ;;  %8149 = vmatprep.subr.bf16.mxu1 %v8634_v17  ;;  %v8673_v14 = vcombine.low %v164_v3, %v168_v2  ;;  %v8680_v17 = vcombine.high %v171_v8, %v175_v9  ;;  %v8682_v18 = vcombine.high %v172_v10, %v176_v11  ;;  %v215_v1 = vld [vmem:[#allocation2 + $0x530] sm:$0xff]  ;;  %v212_v3 = vld [vmem:[#allocation2 + $0x518] sm:$0xff] }
 0x28c   :  { %v216_v2 = vld [vmem:[#allocation2 + $0x538] sm:$0xff] }
 0x28e   :  { %7781 = vmatpush1.bf16.msra.mxu0 %v8631_v27  ;;  %8150 = vmatpush1.bf16.msra.mxu1 %v8633_v28  ;;  %v184_v27 = vld [vmem:[#allocation2 + $0x438] sm:$0xff]  ;;  %v8679_v28 = vcombine.low %v171_v8, %v175_v9  ;;  %v223_v8 = vld [vmem:[#allocation2 + $0x570] sm:$0xff] }
 0x28f   :  { %7782 = vmatprep.subr.bf16.mxu0 %v8640_v57  ;;  %8151 = vmatprep.subr.bf16.mxu1 %v8642_v29  ;;  %v8681_v57 = vcombine.low %v172_v10, %v176_v11  ;;  %v8688_v29 = vcombine.high %v179_v21, %v183_v23  ;;  %v8690_v30 = vcombine.high %v180_v26, %v184_v27  ;;  %v220_v9 = vld [vmem:[#allocation2 + $0x558] sm:$0xff] }
 0x290   :  { %v224_v10 = vld [vmem:[#allocation2 + $0x578] sm:$0xff]  ;;  %v8719_v11 = vcombine.low %v211_v63, %v215_v1 }
 0x292   :  { %7783 = vmatpush1.bf16.msra.mxu0 %v8639_v34  ;;  %8152 = vmatpush1.bf16.msra.mxu1 %v8641_v35  ;;  %v192_v34 = vld [vmem:[#allocation2 + $0x478] sm:$0xff]  ;;  %v8687_v35 = vcombine.low %v179_v21, %v183_v23  ;;  %v231_v21 = vld [vmem:[#allocation2 + $0x5b0] sm:$0xff] }
 0x293   :  { %7784 = vmatprep.subr.bf16.mxu0 %v8648_v37  ;;  %8153 = vmatprep.subr.bf16.mxu1 %v8650_v38  ;;  %v8689_v37 = vcombine.low %v180_v26, %v184_v27  ;;  %v8696_v38 = vcombine.high %v187_v31, %v191_v32  ;;  %v8698_v40 = vcombine.high %v188_v33, %v192_v34  ;;  %v228_v23 = vld [vmem:[#allocation2 + $0x598] sm:$0xff] }
 0x294   :  { %v232_v26 = vld [vmem:[#allocation2 + $0x5b8] sm:$0xff] }
 0x296   :  { %7785 = vmatpush1.bf16.msra.mxu0 %v8647_v44  ;;  %8154 = vmatpush1.bf16.msra.mxu1 %v8649_v45  ;;  %v200_v44 = vld [vmem:[#allocation2 + $0x4b8] sm:$0xff]  ;;  %v8695_v45 = vcombine.low %v187_v31, %v191_v32  ;;  %v239_v31 = vld [vmem:[#allocation2 + $0x5f0] sm:$0xff] }
 0x297   :  { %7786 = vmatprep.subr.bf16.mxu0 %v8656_v47  ;;  %8155 = vmatprep.subr.bf16.mxu1 %v8658_v48  ;;  %v8697_v47 = vcombine.low %v188_v33, %v192_v34  ;;  %v8704_v48 = vcombine.high %v195_v41, %v199_v42  ;;  %v8706_v51 = vcombine.high %v196_v43, %v200_v44  ;;  %v236_v32 = vld [vmem:[#allocation2 + $0x5d8] sm:$0xff] }
 0x298   :  { %v240_v33 = vld [vmem:[#allocation2 + $0x5f8] sm:$0xff] }
 0x29a   :  { %7787 = vmatpush1.bf16.msra.mxu0 %v8655_v58  ;;  %8156 = vmatpush1.bf16.msra.mxu1 %v8657_v60  ;;  %v208_v58 = vld [vmem:[#allocation2 + $0x4f8] sm:$0xff]  ;;  %v8703_v60 = vcombine.low %v195_v41, %v199_v42  ;;  %v247_v41 = vld [vmem:[#allocation2 + $0x630] sm:$0xff] }
 0x29b   :  { %7788 = vmatprep.subr.bf16.mxu0 %v8664_v61  ;;  %8157 = vmatprep.subr.bf16.mxu1 %v8666_v62  ;;  %v8712_v61 = vcombine.high %v203_v52, %v207_v54  ;;  %v8714_v62 = vcombine.high %v204_v56, %v208_v58  ;;  %v244_v42 = vld [vmem:[#allocation2 + $0x618] sm:$0xff] }
 0x29e   :  { %7789 = vmatpush1.bf16.msra.mxu0 %v8663_v4  ;;  %8158 = vmatpush1.bf16.msra.mxu1 %v8665_v5  ;;  %v8711_v4 = vcombine.low %v203_v52, %v207_v54  ;;  %v8713_v5 = vcombine.low %v204_v56, %v208_v58  ;;  %v255_v52 = vld [vmem:[#allocation2 + $0x670] sm:$0xff]  ;;  %v252_v54 = vld [vmem:[#allocation2 + $0x658] sm:$0xff] }
 0x29f   :  { %7790 = vmatprep.subr.bf16.mxu0 %v8672_v6  ;;  %8159 = vmatprep.subr.bf16.mxu1 %v8674_v7  ;;  %v8720_v6 = vcombine.high %v211_v63, %v215_v1  ;;  %v219_v7 = vld [vmem:[#allocation2 + $0x550] sm:$0xff]  ;;  %v256_v56 = vld [vmem:[#allocation2 + $0x678] sm:$0xff] }
 0x2a0   :  { %v8727_v27 = vcombine.low %v219_v7, %v223_v8  ;;  %v263_v63 = vld [vmem:[#allocation2 + $0x6b0] sm:$0xff]  ;;  %v260_v1 = vld [vmem:[#allocation2 + $0x698] sm:$0xff] }
 0x2a2   :  { %7791 = vmatpush1.bf16.msra.mxu0 %v8671_v13  ;;  %8160 = vmatpush1.bf16.msra.mxu1 %v8673_v14  ;;  %v8721_v13 = vcombine.low %v212_v3, %v216_v2  ;;  %v8728_v14 = vcombine.high %v219_v7, %v223_v8  ;;  %v271_v7 = vld [vmem:[#allocation2 + $0x6f0] sm:$0xff]  ;;  %v268_v8 = vld [vmem:[#allocation2 + $0x6d8] sm:$0xff] }
 0x2a3   :  { %7792 = vmatprep.subr.bf16.mxu0 %v8680_v17  ;;  %8161 = vmatprep.subr.bf16.mxu1 %v8682_v18  ;;  %v8730_v17 = vcombine.high %v220_v9, %v224_v10  ;;  %v227_v18 = vld [vmem:[#allocation2 + $0x590] sm:$0xff] }
 0x2a4   :  { %v8735_v34 = vcombine.low %v227_v18, %v231_v21 }
 0x2a6   :  { %7793 = vmatpush1.bf16.msra.mxu0 %v8679_v28  ;;  %8162 = vmatpush1.bf16.msra.mxu1 %v8681_v57  ;;  %v8729_v28 = vcombine.low %v220_v9, %v224_v10  ;;  %v8736_v57 = vcombine.high %v227_v18, %v231_v21  ;;  %v272_v9 = vld [vmem:[#allocation2 + $0x6f8] sm:$0xff]  ;;  %v279_v18 = vld [vmem:[#allocation2 + $0x730] sm:$0xff] }
 0x2a7   :  { %7803 = vmatprep.subr.bf16.mxu0 %v8688_v29  ;;  %8172 = vmatprep.subr.bf16.mxu1 %v8690_v30  ;;  %v8738_v29 = vcombine.high %v228_v23, %v232_v26  ;;  %v235_v30 = vld [vmem:[#allocation2 + $0x5d0] sm:$0xff]  ;;  %v276_v21 = vld [vmem:[#allocation2 + $0x718] sm:$0xff] }
 0x2a9   :  { %7795 = vmatmul.mubr.bf16.vlgmr.msra.gmra.mrb[4].mxu0 %v9968_v12  ;;  %8164 = vmatmul.mubr.bf16.vlgmr.msra.gmra.mrb[4].mxu1 %v9968_v12  ;;  %v8705_v12 = vcombine.low %v196_v43, %v200_v44  ;;  %v248_v43 = vld [vmem:[#allocation2 + $0x638] sm:$0xff]  ;;  %v8743_v44 = vcombine.low %v235_v30, %v239_v31 }
 0x2aa   :  { %7804 = vmatpush1.bf16.msra.mxu0 %v8687_v35  ;;  %8173 = vmatpush1.bf16.msra.mxu1 %v8689_v37  ;;  %v8737_v35 = vcombine.low %v228_v23, %v232_v26  ;;  %v8744_v37 = vcombine.high %v235_v30, %v239_v31  ;;  %v280_v23 = vld [vmem:[#allocation2 + $0x738] sm:$0xff]  ;;  %v287_v30 = vld [vmem:[#allocation2 + $0x770] sm:$0xff] }
 0x2ab   :  { %7805 = vmatprep.subr.bf16.mxu0 %v8696_v38  ;;  %8174 = vmatprep.subr.bf16.mxu1 %v8698_v40  ;;  %v8746_v38 = vcombine.high %v236_v32, %v240_v33  ;;  %v243_v40 = vld [vmem:[#allocation2 + $0x610] sm:$0xff]  ;;  %v284_v31 = vld [vmem:[#allocation2 + $0x758] sm:$0xff] }
 0x2ac   :  { %7835 = vmatprep.mubr.bf16.mxu0 %v9977_v53  ;;  %8204 = vmatprep.mubr.bf16.mxu1 %v9977_v53  ;;  %v8722_v53 = vcombine.high %v212_v3, %v216_v2  ;;  %v8751_v58 = vcombine.low %v243_v40, %v247_v41  ;;  %v264_v3 = vld [vmem:[#allocation2 + $0x6b8] sm:$0xff] }
 0x2ae   :  { %7806 = vmatpush1.bf16.msra.mxu0 %v8695_v45  ;;  %8175 = vmatpush1.bf16.msra.mxu1 %v8697_v47  ;;  %v8745_v45 = vcombine.low %v236_v32, %v240_v33  ;;  %v8752_v47 = vcombine.high %v243_v40, %v247_v41  ;;  %v288_v32 = vld [vmem:[#allocation2 + $0x778] sm:$0xff]  ;;  %v295_v40 = vld [vmem:[#allocation2 + $0x7b0] sm:$0xff] }
 0x2af   :  { %7807 = vmatprep.subr.bf16.mxu0 %v8704_v48  ;;  %8176 = vmatprep.subr.bf16.mxu1 %v8706_v51  ;;  %v8754_v48 = vcombine.high %v244_v42, %v248_v43  ;;  %v251_v51 = vld [vmem:[#allocation2 + $0x650] sm:$0xff]  ;;  %v292_v41 = vld [vmem:[#allocation2 + $0x798] sm:$0xff] }
 0x2b0   :  { %v8759_v2 = vcombine.low %v251_v51, %v255_v52 }
 0x2b2   :  { %7808 = vmatpush1.bf16.msra.mxu0 %v8703_v60  ;;  %8177 = vmatpush1.bf16.msra.mxu1 %v8705_v12  ;;  %v8753_v60 = vcombine.low %v244_v42, %v248_v43  ;;  %v8760_v12 = vcombine.high %v251_v51, %v255_v52  ;;  %v296_v42 = vld [vmem:[#allocation2 + $0x7b8] sm:$0xff]  ;;  %v303_v51 = vld [vmem:[#allocation2 + $0x7f0] sm:$0xff] }
 0x2b3   :  { %7809 = vmatprep.subr.bf16.mxu0 %v8712_v61  ;;  %8178 = vmatprep.subr.bf16.mxu1 %v8714_v62  ;;  %v8762_v61 = vcombine.high %v252_v54, %v256_v56  ;;  %v259_v62 = vld [vmem:[#allocation2 + $0x690] sm:$0xff]  ;;  %v300_v52 = vld [vmem:[#allocation2 + $0x7d8] sm:$0xff] }
 0x2b4   :  { %v8767_v10 = vcombine.low %v259_v62, %v263_v63 }
 0x2b6   :  { %7810 = vmatpush1.bf16.msra.mxu0 %v8711_v4  ;;  %8179 = vmatpush1.bf16.msra.mxu1 %v8713_v5  ;;  %v8761_v4 = vcombine.low %v252_v54, %v256_v56  ;;  %v8768_v5 = vcombine.high %v259_v62, %v263_v63  ;;  %v304_v54 = vld [vmem:[#allocation2 + $0x7f8] sm:$0xff]  ;;  %v311_v62 = vld [vmem:[#allocation2 + $0x830] sm:$0xff] }
 0x2b7   :  { %7811 = vmatprep.subr.bf16.mxu0 %v8720_v6  ;;  %8180 = vmatprep.subr.bf16.mxu1 %v8722_v53  ;;  %v8770_v6 = vcombine.high %v260_v1, %v264_v3  ;;  %v267_v53 = vld [vmem:[#allocation2 + $0x6d0] sm:$0xff]  ;;  %v308_v63 = vld [vmem:[#allocation2 + $0x818] sm:$0xff] }
 0x2b8   :  { %v8775_v26 = vcombine.low %v267_v53, %v271_v7 }
 0x2ba   :  { %7812 = vmatpush1.bf16.msra.mxu0 %v8719_v11  ;;  %8181 = vmatpush1.bf16.msra.mxu1 %v8721_v13  ;;  %v8769_v11 = vcombine.low %v260_v1, %v264_v3  ;;  %v8776_v13 = vcombine.high %v267_v53, %v271_v7  ;;  %v312_v1 = vld [vmem:[#allocation2 + $0x838] sm:$0xff]  ;;  %v319_v53 = vld [vmem:[#allocation2 + $0x870] sm:$0xff] }
 0x2bb   :  { %7813 = vmatprep.subr.bf16.mxu0 %v8728_v14  ;;  %8182 = vmatprep.subr.bf16.mxu1 %v8730_v17  ;;  %v8778_v14 = vcombine.high %v268_v8, %v272_v9  ;;  %v275_v17 = vld [vmem:[#allocation2 + $0x710] sm:$0xff]  ;;  %v316_v7 = vld [vmem:[#allocation2 + $0x858] sm:$0xff] }
 0x2bc   :  { %v8783_v33 = vcombine.low %v275_v17, %v279_v18 }
 0x2be   :  { %7814 = vmatpush1.bf16.msra.mxu0 %v8727_v27  ;;  %8183 = vmatpush1.bf16.msra.mxu1 %v8729_v28  ;;  %v8777_v27 = vcombine.low %v268_v8, %v272_v9  ;;  %v8784_v28 = vcombine.high %v275_v17, %v279_v18  ;;  %v320_v8 = vld [vmem:[#allocation2 + $0x878] sm:$0xff]  ;;  %v327_v17 = vld [vmem:[#allocation2 + $0x8b0] sm:$0xff] }
 0x2bf   :  { %7815 = vmatprep.subr.bf16.mxu0 %v8736_v57  ;;  %8184 = vmatprep.subr.bf16.mxu1 %v8738_v29  ;;  %v8786_v57 = vcombine.high %v276_v21, %v280_v23  ;;  %v283_v29 = vld [vmem:[#allocation2 + $0x750] sm:$0xff]  ;;  %v324_v18 = vld [vmem:[#allocation2 + $0x898] sm:$0xff] }
 0x2c0   :  { %v8791_v43 = vcombine.low %v283_v29, %v287_v30 }
 0x2c2   :  { %7816 = vmatpush1.bf16.msra.mxu0 %v8735_v34  ;;  %8185 = vmatpush1.bf16.msra.mxu1 %v8737_v35  ;;  %v8785_v34 = vcombine.low %v276_v21, %v280_v23  ;;  %v8792_v35 = vcombine.high %v283_v29, %v287_v30  ;;  %v328_v21 = vld [vmem:[#allocation2 + $0x8b8] sm:$0xff]  ;;  %v335_v29 = vld [vmem:[#allocation2 + $0x8f0] sm:$0xff] }
 0x2c3   :  { %7817 = vmatprep.subr.bf16.mxu0 %v8744_v37  ;;  %8186 = vmatprep.subr.bf16.mxu1 %v8746_v38  ;;  %v8794_v37 = vcombine.high %v284_v31, %v288_v32  ;;  %v291_v38 = vld [vmem:[#allocation2 + $0x790] sm:$0xff]  ;;  %v332_v30 = vld [vmem:[#allocation2 + $0x8d8] sm:$0xff] }
 0x2c4   :  { %v8799_v56 = vcombine.low %v291_v38, %v295_v40 }
 0x2c6   :  { %7818 = vmatpush1.bf16.msra.mxu0 %v8743_v44  ;;  %8187 = vmatpush1.bf16.msra.mxu1 %v8745_v45  ;;  %v8793_v44 = vcombine.low %v284_v31, %v288_v32  ;;  %v8800_v45 = vcombine.high %v291_v38, %v295_v40  ;;  %v336_v31 = vld [vmem:[#allocation2 + $0x8f8] sm:$0xff] }
 0x2c7   :  { %7819 = vmatprep.subr.bf16.mxu0 %v8752_v47  ;;  %8188 = vmatprep.subr.bf16.mxu1 %v8754_v48  ;;  %v8802_v47 = vcombine.high %v292_v41, %v296_v42  ;;  %v299_v48 = vld [vmem:[#allocation2 + $0x7d0] sm:$0xff]  ;;  %v340_v38 = vld [vmem:[#allocation2 + $0x918] sm:$0xff] }
 0x2c8   :  { %v8807_v3 = vcombine.low %v299_v48, %v303_v51  ;;  %v344_v40 = vld [vmem:[#allocation2 + $0x938] sm:$0xff] }
 0x2ca   :  { %7820 = vmatpush1.bf16.msra.mxu0 %v8751_v58  ;;  %8189 = vmatpush1.bf16.msra.mxu1 %v8753_v60  ;;  %v8801_v58 = vcombine.low %v292_v41, %v296_v42  ;;  %v8808_v60 = vcombine.high %v299_v48, %v303_v51  ;;  %v8841_v42 = vcombine.low %v332_v30, %v336_v31  ;;  %v352_v48 = vld [vmem:[#allocation2 + $0x978] sm:$0xff] }
 0x2cb   :  { %7821 = vmatprep.subr.bf16.mxu0 %v8760_v12  ;;  %8190 = vmatprep.subr.bf16.mxu1 %v8762_v61  ;;  %v8810_v12 = vcombine.high %v300_v52, %v304_v54  ;;  %v307_v61 = vld [vmem:[#allocation2 + $0x810] sm:$0xff] }
 0x2cc   :  { %v8815_v9 = vcombine.low %v307_v61, %v311_v62 }
 0x2ce   :  { %7822 = vmatpush1.bf16.msra.mxu0 %v8759_v2  ;;  %8191 = vmatpush1.bf16.msra.mxu1 %v8761_v4  ;;  %v8809_v2 = vcombine.low %v300_v52, %v304_v54  ;;  %v8816_v4 = vcombine.high %v307_v61, %v311_v62  ;;  %v8849_v52 = vcombine.low %v340_v38, %v344_v40  ;;  %v360_v61 = vld [vmem:[#allocation2 + $0x9b8] sm:$0xff] }
 0x2cf   :  { %7823 = vmatprep.subr.bf16.mxu0 %v8768_v5  ;;  %8192 = vmatprep.subr.bf16.mxu1 %v8770_v6  ;;  %v8818_v5 = vcombine.high %v308_v63, %v312_v1  ;;  %v315_v6 = vld [vmem:[#allocation2 + $0x850] sm:$0xff] }
 0x2d0   :  { %v8823_v23 = vcombine.low %v315_v6, %v319_v53 }
 0x2d2   :  { %7824 = vmatpush1.bf16.msra.mxu0 %v8767_v10  ;;  %8193 = vmatpush1.bf16.msra.mxu1 %v8769_v11  ;;  %v8817_v10 = vcombine.low %v308_v63, %v312_v1  ;;  %v8824_v11 = vcombine.high %v315_v6, %v319_v53  ;;  %v368_v6 = vld [vmem:[#allocation2 + $0x9f8] sm:$0xff] }
 0x2d3   :  { %7825 = vmatprep.subr.bf16.mxu0 %v8776_v13  ;;  %8194 = vmatprep.subr.bf16.mxu1 %v8778_v14  ;;  %v8826_v13 = vcombine.high %v316_v7, %v320_v8  ;;  %v323_v14 = vld [vmem:[#allocation2 + $0x890] sm:$0xff] }
 0x2d4   :  { %v8831_v32 = vcombine.low %v323_v14, %v327_v17 }
 0x2d6   :  { %7826 = vmatpush1.bf16.msra.mxu0 %v8775_v26  ;;  %8195 = vmatpush1.bf16.msra.mxu1 %v8777_v27  ;;  %v8825_v26 = vcombine.low %v316_v7, %v320_v8  ;;  %v8832_v27 = vcombine.high %v323_v14, %v327_v17  ;;  %v376_v14 = vld [vmem:[#allocation2 + $0xa38] sm:$0xff] }
 0x2d7   :  { %7827 = vmatprep.subr.bf16.mxu0 %v8784_v28  ;;  %8196 = vmatprep.subr.bf16.mxu1 %v8786_v57  ;;  %v8834_v28 = vcombine.high %v324_v18, %v328_v21  ;;  %v331_v57 = vld [vmem:[#allocation2 + $0x8d0] sm:$0xff] }
 0x2d8   :  { %v8839_v41 = vcombine.low %v331_v57, %v335_v29 }
 0x2da   :  { %7828 = vmatpush1.bf16.msra.mxu0 %v8783_v33  ;;  %8197 = vmatpush1.bf16.msra.mxu1 %v8785_v34  ;;  %v8840_v33 = vcombine.high %v331_v57, %v335_v29  ;;  %v8842_v34 = vcombine.high %v332_v30, %v336_v31  ;;  %v384_v57 = vld [vmem:[#allocation2 + $0xa78] sm:$0xff] }
 0x2db   :  { %7829 = vmatprep.subr.bf16.mxu0 %v8792_v35  ;;  %8198 = vmatprep.subr.bf16.mxu1 %v8794_v37  ;;  %v339_v35 = vld [vmem:[#allocation2 + $0x910] sm:$0xff] }
 0x2dc   :  { %v343_v37 = vld [vmem:[#allocation2 + $0x930] sm:$0xff] }
 0x2dd   :  { %v8847_v51 = vcombine.low %v339_v35, %v343_v37 }
 0x2de   :  { %7830 = vmatpush1.bf16.msra.mxu0 %v8791_v43  ;;  %8199 = vmatpush1.bf16.msra.mxu1 %v8793_v44  ;;  %v8848_v43 = vcombine.high %v339_v35, %v343_v37  ;;  %v347_v44 = vld [vmem:[#allocation2 + $0x950] sm:$0xff]  ;;  %v392_v35 = vld [vmem:[#allocation2 + $0xab8] sm:$0xff] }
 0x2df   :  { %7831 = vmatprep.subr.bf16.mxu0 %v8800_v45  ;;  %8200 = vmatprep.subr.bf16.mxu1 %v8802_v47  ;;  %v351_v45 = vld [vmem:[#allocation2 + $0x970] sm:$0xff]  ;;  %v348_v47 = vld [vmem:[#allocation2 + $0x958] sm:$0xff] }
 0x2e0   :  { %v8856_v54 = vcombine.high %v347_v44, %v351_v45  ;;  %v8855_v62 = vcombine.low %v347_v44, %v351_v45  ;;  %v8857_v63 = vcombine.low %v348_v47, %v352_v48  ;;  %v400_v44 = vld [vmem:[#allocation2 + $0xaf8] sm:$0xff] }
 0x2e2   :  { %7832 = vmatpush1.bf16.msra.mxu0 %v8799_v56  ;;  %8201 = vmatpush1.bf16.msra.mxu1 %v8801_v58  ;;  %v8858_v56 = vcombine.high %v348_v47, %v352_v48  ;;  %v355_v58 = vld [vmem:[#allocation2 + $0x990] sm:$0xff] }
 0x2e3   :  { %7833 = vmatprep.subr.bf16.mxu0 %v8808_v60  ;;  %8202 = vmatprep.subr.bf16.mxu1 %v8810_v12  ;;  %v359_v60 = vld [vmem:[#allocation2 + $0x9b0] sm:$0xff]  ;;  %v356_v12 = vld [vmem:[#allocation2 + $0x998] sm:$0xff] }
 0x2e4   :  { %v8864_v1 = vcombine.high %v355_v58, %v359_v60  ;;  %v8863_v53 = vcombine.low %v355_v58, %v359_v60  ;;  %v8865_v7 = vcombine.low %v356_v12, %v360_v61  ;;  %v408_v58 = vld [vmem:[#allocation2 + $0xb38] sm:$0xff] }
 0x2e6   :  { %7834 = vmatpush1.bf16.msra.mxu0 %v8807_v3  ;;  %8203 = vmatpush1.bf16.msra.mxu1 %v8809_v2  ;;  %v8866_v3 = vcombine.high %v356_v12, %v360_v61  ;;  %v363_v2 = vld [vmem:[#allocation2 + $0x9d0] sm:$0xff] }
 0x2e7   :  { %7844 = vmatprep.subr.bf16.mxu0 %v8816_v4  ;;  %8213 = vmatprep.subr.bf16.mxu1 %v8818_v5  ;;  %v367_v4 = vld [vmem:[#allocation2 + $0x9f0] sm:$0xff]  ;;  %v364_v5 = vld [vmem:[#allocation2 + $0x9d8] sm:$0xff] }
 0x2e8   :  { %v8872_v8 = vcombine.high %v363_v2, %v367_v4  ;;  %v8871_v17 = vcombine.low %v363_v2, %v367_v4  ;;  %v416_v2 = vld [vmem:[#allocation2 + $0xb78] sm:$0xff] }
 0x2e9   :  { %7836 = vmatmul.mubr.bf16.vlgmr.msra.gmra.mrb[4].mxu0 %v9985_v22  ;;  %8205 = vmatmul.mubr.bf16.vlgmr.msra.gmra.mrb[4].mxu1 %v9985_v22  ;;  %v8833_v22 = vcombine.low %v324_v18, %v328_v21  ;;  %v8873_v18 = vcombine.low %v364_v5, %v368_v6 }
 0x2ea   :  { %7845 = vmatpush1.bf16.msra.mxu0 %v8815_v9  ;;  %8214 = vmatpush1.bf16.msra.mxu1 %v8817_v10  ;;  %v8874_v9 = vcombine.high %v364_v5, %v368_v6  ;;  %v371_v10 = vld [vmem:[#allocation2 + $0xa10] sm:$0xff] }
 0x2eb   :  { %7846 = vmatprep.subr.bf16.mxu0 %v8824_v11  ;;  %8215 = vmatprep.subr.bf16.mxu1 %v8826_v13  ;;  %v375_v11 = vld [vmem:[#allocation2 + $0xa30] sm:$0xff]  ;;  %v372_v13 = vld [vmem:[#allocation2 + $0xa18] sm:$0xff] }
 0x2ec   :  { %7876 = vmatprep.mubr.bf16.mxu0 %v9994_v15  ;;  %8245 = vmatprep.mubr.bf16.mxu1 %v9994_v15  ;;  %v8850_v15 = vcombine.high %v340_v38, %v344_v40  ;;  %v8880_v21 = vcombine.high %v371_v10, %v375_v11  ;;  %v8879_v29 = vcombine.low %v371_v10, %v375_v11  ;;  %v424_v10 = vld [vmem:[#allocation2 + $0xbb8] sm:$0xff] }
 0x2ed   :  { %v8881_v30 = vcombine.low %v372_v13, %v376_v14 }
 0x2ee   :  { %7847 = vmatpush1.bf16.msra.mxu0 %v8823_v23  ;;  %8216 = vmatpush1.bf16.msra.mxu1 %v8825_v26  ;;  %v8882_v23 = vcombine.high %v372_v13, %v376_v14  ;;  %v379_v26 = vld [vmem:[#allocation2 + $0xa50] sm:$0xff] }
 0x2ef   :  { %7848 = vmatprep.subr.bf16.mxu0 %v8832_v27  ;;  %8217 = vmatprep.subr.bf16.mxu1 %v8834_v28  ;;  %v383_v27 = vld [vmem:[#allocation2 + $0xa70] sm:$0xff]  ;;  %v380_v28 = vld [vmem:[#allocation2 + $0xa58] sm:$0xff] }
 0x2f0   :  { %v8888_v31 = vcombine.high %v379_v26, %v383_v27  ;;  %v8887_v37 = vcombine.low %v379_v26, %v383_v27  ;;  %v8889_v38 = vcombine.low %v380_v28, %v384_v57  ;;  %v432_v26 = vld [vmem:[#allocation2 + $0xbf8] sm:$0xff] }
 0x2f2   :  { %7849 = vmatpush1.bf16.msra.mxu0 %v8831_v32  ;;  %8218 = vmatpush1.bf16.msra.mxu1 %v8833_v22  ;;  %v8890_v32 = vcombine.high %v380_v28, %v384_v57  ;;  %v387_v22 = vld [vmem:[#allocation2 + $0xa90] sm:$0xff] }
 0x2f3   :  { %7850 = vmatprep.subr.bf16.mxu0 %v8840_v33  ;;  %8219 = vmatprep.subr.bf16.mxu1 %v8842_v34  ;;  %v391_v33 = vld [vmem:[#allocation2 + $0xab0] sm:$0xff]  ;;  %v388_v34 = vld [vmem:[#allocation2 + $0xa98] sm:$0xff] }
 0x2f4   :  { %v8896_v40 = vcombine.high %v387_v22, %v391_v33  ;;  %v8895_v45 = vcombine.low %v387_v22, %v391_v33  ;;  %v8897_v47 = vcombine.low %v388_v34, %v392_v35  ;;  %v440_v22 = vld [vmem:[#allocation2 + $0xc38] sm:$0xff] }
 0x2f6   :  { %7851 = vmatpush1.bf16.msra.mxu0 %v8839_v41  ;;  %8220 = vmatpush1.bf16.msra.mxu1 %v8841_v42  ;;  %v8898_v41 = vcombine.high %v388_v34, %v392_v35  ;;  %v395_v42 = vld [vmem:[#allocation2 + $0xad0] sm:$0xff] }
 0x2f7   :  { %7852 = vmatprep.subr.bf16.mxu0 %v8848_v43  ;;  %8221 = vmatprep.subr.bf16.mxu1 %v8850_v15  ;;  %v399_v43 = vld [vmem:[#allocation2 + $0xaf0] sm:$0xff]  ;;  %v396_v15 = vld [vmem:[#allocation2 + $0xad8] sm:$0xff] }
 0x2f8   :  { %v8904_v48 = vcombine.high %v395_v42, %v399_v43  ;;  %v8903_v60 = vcombine.low %v395_v42, %v399_v43  ;;  %v8905_v12 = vcombine.low %v396_v15, %v400_v44  ;;  %v448_v42 = vld [vmem:[#allocation2 + $0xc78] sm:$0xff] }
 0x2fa   :  { %7853 = vmatpush1.bf16.msra.mxu0 %v8847_v51  ;;  %8222 = vmatpush1.bf16.msra.mxu1 %v8849_v52  ;;  %v8906_v51 = vcombine.high %v396_v15, %v400_v44  ;;  %v403_v52 = vld [vmem:[#allocation2 + $0xb10] sm:$0xff] }
 0x2fb   :  { %7854 = vmatprep.subr.bf16.mxu0 %v8856_v54  ;;  %8223 = vmatprep.subr.bf16.mxu1 %v8858_v56  ;;  %v407_v54 = vld [vmem:[#allocation2 + $0xb30] sm:$0xff]  ;;  %v404_v56 = vld [vmem:[#allocation2 + $0xb18] sm:$0xff] }
 0x2fc   :  { %v8912_v61 = vcombine.high %v403_v52, %v407_v54  ;;  %v8911_v4 = vcombine.low %v403_v52, %v407_v54  ;;  %v8913_v5 = vcombine.low %v404_v56, %v408_v58  ;;  %v456_v52 = vld [vmem:[#allocation2 + $0xcb8] sm:$0xff] }
 0x2fe   :  { %7855 = vmatpush1.bf16.msra.mxu0 %v8855_v62  ;;  %8224 = vmatpush1.bf16.msra.mxu1 %v8857_v63  ;;  %v8914_v62 = vcombine.high %v404_v56, %v408_v58  ;;  %v411_v63 = vld [vmem:[#allocation2 + $0xb50] sm:$0xff] }
 0x2ff   :  { %7856 = vmatprep.subr.bf16.mxu0 %v8864_v1  ;;  %8225 = vmatprep.subr.bf16.mxu1 %v8866_v3  ;;  %v415_v1 = vld [vmem:[#allocation2 + $0xb70] sm:$0xff]  ;;  %v412_v3 = vld [vmem:[#allocation2 + $0xb58] sm:$0xff] }
 0x300   :  { %v8920_v6 = vcombine.high %v411_v63, %v415_v1  ;;  %v8919_v11 = vcombine.low %v411_v63, %v415_v1  ;;  %v8921_v13 = vcombine.low %v412_v3, %v416_v2  ;;  %v464_v63 = vld [vmem:[#allocation2 + $0xcf8] sm:$0xff] }
 0x302   :  { %7857 = vmatpush1.bf16.msra.mxu0 %v8863_v53  ;;  %8226 = vmatpush1.bf16.msra.mxu1 %v8865_v7  ;;  %v8922_v53 = vcombine.high %v412_v3, %v416_v2  ;;  %v419_v7 = vld [vmem:[#allocation2 + $0xb90] sm:$0xff] }
 0x303   :  { %7858 = vmatprep.subr.bf16.mxu0 %v8872_v8  ;;  %8227 = vmatprep.subr.bf16.mxu1 %v8874_v9  ;;  %v423_v8 = vld [vmem:[#allocation2 + $0xbb0] sm:$0xff]  ;;  %v420_v9 = vld [vmem:[#allocation2 + $0xb98] sm:$0xff] }
 0x304   :  { %v8928_v14 = vcombine.high %v419_v7, %v423_v8  ;;  %v8927_v27 = vcombine.low %v419_v7, %v423_v8  ;;  %v8929_v28 = vcombine.low %v420_v9, %v424_v10 }
 0x306   :  { %7859 = vmatpush1.bf16.msra.mxu0 %v8871_v17  ;;  %8228 = vmatpush1.bf16.msra.mxu1 %v8873_v18  ;;  %v8930_v17 = vcombine.high %v420_v9, %v424_v10  ;;  %v427_v18 = vld [vmem:[#allocation2 + $0xbd0] sm:$0xff] }
 0x307   :  { %7860 = vmatprep.subr.bf16.mxu0 %v8880_v21  ;;  %8229 = vmatprep.subr.bf16.mxu1 %v8882_v23  ;;  %v431_v21 = vld [vmem:[#allocation2 + $0xbf0] sm:$0xff]  ;;  %v428_v23 = vld [vmem:[#allocation2 + $0xbd8] sm:$0xff] }
 0x308   :  { %v8936_v57 = vcombine.high %v427_v18, %v431_v21  ;;  %v8935_v33 = vcombine.low %v427_v18, %v431_v21  ;;  %v8937_v34 = vcombine.low %v428_v23, %v432_v26  ;;  %v475_v10 = vld [vmem:[#allocation2 + $0xd50] sm:$0xff] }
 0x30a   :  { %7861 = vmatpush1.bf16.msra.mxu0 %v8879_v29  ;;  %8230 = vmatpush1.bf16.msra.mxu1 %v8881_v30  ;;  %v8938_v29 = vcombine.high %v428_v23, %v432_v26  ;;  %v435_v30 = vld [vmem:[#allocation2 + $0xc10] sm:$0xff] }
 0x30b   :  { %7862 = vmatprep.subr.bf16.mxu0 %v8888_v31  ;;  %8231 = vmatprep.subr.bf16.mxu1 %v8890_v32  ;;  %v439_v31 = vld [vmem:[#allocation2 + $0xc30] sm:$0xff]  ;;  %v436_v32 = vld [vmem:[#allocation2 + $0xc18] sm:$0xff] }
 0x30c   :  { %v8944_v35 = vcombine.high %v435_v30, %v439_v31  ;;  %v8943_v43 = vcombine.low %v435_v30, %v439_v31  ;;  %v8945_v15 = vcombine.low %v436_v32, %v440_v22  ;;  %v483_v26 = vld [vmem:[#allocation2 + $0xd90] sm:$0xff] }
 0x30e   :  { %7863 = vmatpush1.bf16.msra.mxu0 %v8887_v37  ;;  %8232 = vmatpush1.bf16.msra.mxu1 %v8889_v38  ;;  %v8946_v37 = vcombine.high %v436_v32, %v440_v22  ;;  %v443_v38 = vld [vmem:[#allocation2 + $0xc50] sm:$0xff] }
 0x30f   :  { %7864 = vmatprep.subr.bf16.mxu0 %v8896_v40  ;;  %8233 = vmatprep.subr.bf16.mxu1 %v8898_v41  ;;  %v447_v40 = vld [vmem:[#allocation2 + $0xc70] sm:$0xff]  ;;  %v444_v41 = vld [vmem:[#allocation2 + $0xc58] sm:$0xff] }
 0x310   :  { %v8952_v44 = vcombine.high %v443_v38, %v447_v40  ;;  %v8951_v54 = vcombine.low %v443_v38, %v447_v40  ;;  %v8953_v56 = vcombine.low %v444_v41, %v448_v42  ;;  %v492_v38 = vld [vmem:[#allocation2 + $0xdd8] sm:$0xff] }
 0x311   :  { %v496_v40 = vld [vmem:[#allocation2 + $0xdf8] sm:$0xff] }
 0x312   :  { %7865 = vmatpush1.bf16.msra.mxu0 %v8895_v45  ;;  %8234 = vmatpush1.bf16.msra.mxu1 %v8897_v47  ;;  %v8954_v45 = vcombine.high %v444_v41, %v448_v42  ;;  %v451_v47 = vld [vmem:[#allocation2 + $0xc90] sm:$0xff] }
 0x313   :  { %7866 = vmatprep.subr.bf16.mxu0 %v8904_v48  ;;  %8235 = vmatprep.subr.bf16.mxu1 %v8906_v51  ;;  %v455_v48 = vld [vmem:[#allocation2 + $0xcb0] sm:$0xff]  ;;  %v452_v51 = vld [vmem:[#allocation2 + $0xc98] sm:$0xff] }
 0x314   :  { %v8960_v58 = vcombine.high %v451_v47, %v455_v48  ;;  %v8959_v1 = vcombine.low %v451_v47, %v455_v48 }
 0x316   :  { %7867 = vmatpush1.bf16.msra.mxu0 %v8903_v60  ;;  %8236 = vmatpush1.bf16.msra.mxu1 %v8905_v12  ;;  %v8962_v60 = vcombine.high %v452_v51, %v456_v52  ;;  %v459_v12 = vld [vmem:[#allocation2 + $0xcd0] sm:$0xff] }
 0x317   :  { %7868 = vmatprep.subr.bf16.mxu0 %v8912_v61  ;;  %8237 = vmatprep.subr.bf16.mxu1 %v8914_v62  ;;  %v463_v61 = vld [vmem:[#allocation2 + $0xcf0] sm:$0xff]  ;;  %v460_v62 = vld [vmem:[#allocation2 + $0xcd8] sm:$0xff] }
 0x318   :  { %v8968_v3 = vcombine.high %v459_v12, %v463_v61  ;;  %v8970_v2 = vcombine.high %v460_v62, %v464_v63  ;;  %v8967_v7 = vcombine.low %v459_v12, %v463_v61  ;;  %v8969_v8 = vcombine.low %v460_v62, %v464_v63  ;;  %v504_v12 = vld [vmem:[#allocation2 + $0xe38] sm:$0xff] }
 0x319   :  { %v9001_v62 = vcombine.low %v492_v38, %v496_v40 }
 0x31a   :  { %7869 = vmatpush1.bf16.msra.mxu0 %v8911_v4  ;;  %8238 = vmatpush1.bf16.msra.mxu1 %v8913_v5  ;;  %v467_v4 = vld [vmem:[#allocation2 + $0xd10] sm:$0xff] }
 0x31b   :  { %7870 = vmatprep.subr.bf16.mxu0 %v8920_v6  ;;  %8239 = vmatprep.subr.bf16.mxu1 %v8922_v53  ;;  %v471_v5 = vld [vmem:[#allocation2 + $0xd30] sm:$0xff]  ;;  %v468_v6 = vld [vmem:[#allocation2 + $0xd18] sm:$0xff] }
 0x31c   :  { %v472_v53 = vld [vmem:[#allocation2 + $0xd38] sm:$0xff]  ;;  %v8976_v9 = vcombine.high %v467_v4, %v471_v5 }
 0x31d   :  { %v8977_v18 = vcombine.low %v468_v6, %v472_v53 }
 0x31e   :  { %7871 = vmatpush1.bf16.msra.mxu0 %v8919_v11  ;;  %8240 = vmatpush1.bf16.msra.mxu1 %v8921_v13  ;;  %v479_v11 = vld [vmem:[#allocation2 + $0xd70] sm:$0xff]  ;;  %v476_v13 = vld [vmem:[#allocation2 + $0xd58] sm:$0xff] }
 0x31f   :  { %7872 = vmatprep.subr.bf16.mxu0 %v8928_v14  ;;  %8241 = vmatprep.subr.bf16.mxu1 %v8930_v17  ;;  %v480_v14 = vld [vmem:[#allocation2 + $0xd78] sm:$0xff]  ;;  %v8975_v17 = vcombine.low %v467_v4, %v471_v5  ;;  %v8984_v21 = vcombine.high %v475_v10, %v479_v11 }
 0x320   :  { %v8986_v23 = vcombine.high %v476_v13, %v480_v14  ;;  %v8985_v30 = vcombine.low %v476_v13, %v480_v14  ;;  %v512_v4 = vld [vmem:[#allocation2 + $0xe78] sm:$0xff] }
 0x322   :  { %7873 = vmatpush1.bf16.msra.mxu0 %v8927_v27  ;;  %8242 = vmatpush1.bf16.msra.mxu1 %v8929_v28  ;;  %v487_v27 = vld [vmem:[#allocation2 + $0xdb0] sm:$0xff]  ;;  %v484_v28 = vld [vmem:[#allocation2 + $0xd98] sm:$0xff] }
 0x323   :  { %7874 = vmatprep.subr.bf16.mxu0 %v8936_v57  ;;  %8243 = vmatprep.subr.bf16.mxu1 %v8938_v29  ;;  %v488_v57 = vld [vmem:[#allocation2 + $0xdb8] sm:$0xff]  ;;  %v8983_v29 = vcombine.low %v475_v10, %v479_v11  ;;  %v8992_v31 = vcombine.high %v483_v26, %v487_v27 }
 0x324   :  { %v8994_v22 = vcombine.high %v484_v28, %v488_v57  ;;  %v8993_v48 = vcombine.low %v484_v28, %v488_v57  ;;  %v520_v10 = vld [vmem:[#allocation2 + $0xeb8] sm:$0xff] }
 0x326   :  { %7875 = vmatpush1.bf16.msra.mxu0 %v8935_v33  ;;  %8244 = vmatpush1.bf16.msra.mxu1 %v8937_v34  ;;  %v491_v33 = vld [vmem:[#allocation2 + $0xdd0] sm:$0xff] }
 0x327   :  { %7885 = vmatprep.subr.bf16.mxu0 %v8944_v35  ;;  %8254 = vmatprep.subr.bf16.mxu1 %v8946_v37  ;;  %v495_v34 = vld [vmem:[#allocation2 + $0xdf0] sm:$0xff] }
 0x328   :  { %v8999_v61 = vcombine.low %v491_v33, %v495_v34 }
 0x329   :  { %7877 = vmatmul.mubr.bf16.vlgmr.msra.gmra.mrb[4].mxu0 %v10002_v36  ;;  %8246 = vmatmul.mubr.bf16.vlgmr.msra.gmra.mrb[4].mxu1 %v10002_v36  ;;  %v8961_v36 = vcombine.low %v452_v51, %v456_v52  ;;  %v9000_v51 = vcombine.high %v491_v33, %v495_v34  ;;  %v536_v33 = vld [vmem:[#allocation2 + $0xf38] sm:$0xff] }
 0x32a   :  { %7886 = vmatpush1.bf16.msra.mxu0 %v8943_v43  ;;  %8255 = vmatpush1.bf16.msra.mxu1 %v8945_v15  ;;  %v8991_v15 = vcombine.low %v483_v26, %v487_v27  ;;  %v528_v26 = vld [vmem:[#allocation2 + $0xef8] sm:$0xff] }
 0x32b   :  { %7887 = vmatprep.subr.bf16.mxu0 %v8952_v44  ;;  %8256 = vmatprep.subr.bf16.mxu1 %v8954_v45 }
 0x32c   :  { %7917 = vmatprep.mubr.bf16.mxu0 %v10011_v25  ;;  %8286 = vmatprep.mubr.bf16.mxu1 %v10011_v25  ;;  %v8978_v25 = vcombine.high %v468_v6, %v472_v53 }
 0x32e   :  { %7888 = vmatpush1.bf16.msra.mxu0 %v8951_v54  ;;  %8257 = vmatpush1.bf16.msra.mxu1 %v8953_v56  ;;  %v9002_v54 = vcombine.high %v492_v38, %v496_v40  ;;  %v499_v56 = vld [vmem:[#allocation2 + $0xe10] sm:$0xff] }
 0x32f   :  { %7889 = vmatprep.subr.bf16.mxu0 %v8960_v58  ;;  %8258 = vmatprep.subr.bf16.mxu1 %v8962_v60  ;;  %v503_v58 = vld [vmem:[#allocation2 + $0xe30] sm:$0xff]  ;;  %v500_v60 = vld [vmem:[#allocation2 + $0xe18] sm:$0xff] }
 0x330   :  { %v9008_v63 = vcombine.high %v499_v56, %v503_v58  ;;  %v9007_v5 = vcombine.low %v499_v56, %v503_v58  ;;  %v9009_v6 = vcombine.low %v500_v60, %v504_v12  ;;  %v547_v58 = vld [vmem:[#allocation2 + $0xf90] sm:$0xff] }
 0x332   :  { %7890 = vmatpush1.bf16.msra.mxu0 %v8959_v1  ;;  %8259 = vmatpush1.bf16.msra.mxu1 %v8961_v36  ;;  %v9010_v1 = vcombine.high %v500_v60, %v504_v12  ;;  %v507_v36 = vld [vmem:[#allocation2 + $0xe50] sm:$0xff]  ;;  %v548_v12 = vld [vmem:[#allocation2 + $0xf98] sm:$0xff] }
 0x333   :  { %7891 = vmatprep.subr.bf16.mxu0 %v8968_v3  ;;  %8260 = vmatprep.subr.bf16.mxu1 %v8970_v2  ;;  %v511_v3 = vld [vmem:[#allocation2 + $0xe70] sm:$0xff]  ;;  %v508_v2 = vld [vmem:[#allocation2 + $0xe58] sm:$0xff] }
 0x334   :  { %v9016_v53 = vcombine.high %v507_v36, %v511_v3  ;;  %v9015_v11 = vcombine.low %v507_v36, %v511_v3  ;;  %v9017_v13 = vcombine.low %v508_v2, %v512_v4  ;;  %v551_v60 = vld [vmem:[#allocation2 + $0xfb0] sm:$0xff] }
 0x335   :  { %v555_v3 = vld [vmem:[#allocation2 + $0xfd0] sm:$0xff] }
 0x336   :  { %7892 = vmatpush1.bf16.msra.mxu0 %v8967_v7  ;;  %8261 = vmatpush1.bf16.msra.mxu1 %v8969_v8  ;;  %v9018_v7 = vcombine.high %v508_v2, %v512_v4  ;;  %v515_v8 = vld [vmem:[#allocation2 + $0xe90] sm:$0xff]  ;;  %v556_v4 = vld [vmem:[#allocation2 + $0xfd8] sm:$0xff] }
 0x337   :  { %7893 = vmatprep.subr.bf16.mxu0 %v8976_v9  ;;  %8262 = vmatprep.subr.bf16.mxu1 %v8978_v25  ;;  %v519_v9 = vld [vmem:[#allocation2 + $0xeb0] sm:$0xff]  ;;  %v516_v25 = vld [vmem:[#allocation2 + $0xe98] sm:$0xff] }
 0x338   :  { %v9024_v14 = vcombine.high %v515_v8, %v519_v9  ;;  %v9023_v27 = vcombine.low %v515_v8, %v519_v9  ;;  %v9025_v28 = vcombine.low %v516_v25, %v520_v10  ;;  %v559_v2 = vld [vmem:[#allocation2 + $0xff0] sm:$0xff] }
 0x339   :  { %v563_v9 = vld [vmem:[#allocation2 + $0x1010] sm:$0xff] }
 0x33a   :  { %7894 = vmatpush1.bf16.msra.mxu0 %v8975_v17  ;;  %8263 = vmatpush1.bf16.msra.mxu1 %v8977_v18  ;;  %v9026_v17 = vcombine.high %v516_v25, %v520_v10  ;;  %v523_v18 = vld [vmem:[#allocation2 + $0xed0] sm:$0xff]  ;;  %v564_v10 = vld [vmem:[#allocation2 + $0x1018] sm:$0xff] }
 0x33b   :  { %7895 = vmatprep.subr.bf16.mxu0 %v8984_v21  ;;  %8264 = vmatprep.subr.bf16.mxu1 %v8986_v23  ;;  %v527_v21 = vld [vmem:[#allocation2 + $0xef0] sm:$0xff]  ;;  %v524_v23 = vld [vmem:[#allocation2 + $0xed8] sm:$0xff] }
 0x33c   :  { %v10122_v32 = vpop.f32.mrb[0].mxu0  ;;  %v10124_v35 = vpop.f32.mrb[0].mxu1  ;;  %v9032_v57 = vcombine.high %v523_v18, %v527_v21  ;;  %v9031_v34 = vcombine.low %v523_v18, %v527_v21  ;;  %v9033_v38 = vcombine.low %v524_v23, %v528_v26  ;;  %v567_v25 = vld [vmem:[#allocation2 + $0x1030] sm:$0xff] }
 0x33d   :  { %v10126_v37 = vpop.f32.mrb[1].mxu0  ;;  %v8500_v41 = vmax.f32 %v10122_v32, %v10124_v35  ;;  %v10130_v42 = vpop.f32.mrb[1].mxu1  ;;  %v571_v21 = vld [vmem:[#allocation2 + $0x1050] sm:$0xff] }
 0x33e   :  { %v7390_v43 = vpop.f32.mrb[2].mxu0  ;;  %7896 = vmatpush1.bf16.msra.mxu0 %v8983_v29  ;;  %v8501_v44 = vmax.f32 %v10126_v37, %v10130_v42  ;;  %v7759_v45 = vpop.f32.mrb[2].mxu1  ;;  %8265 = vmatpush1.bf16.msra.mxu1 %v8985_v30  ;;  %v9034_v29 = vcombine.high %v524_v23, %v528_v26  ;;  %v531_v30 = vld [vmem:[#allocation2 + $0xf10] sm:$0xff]  ;;  %v572_v26 = vld [vmem:[#allocation2 + $0x1058] sm:$0xff] }
 0x33f   :  { %v7391_v47 = vpop.f32.mrb[3].mxu0  ;;  %7897 = vmatprep.subr.bf16.mxu0 %v8992_v31  ;;  %v7760_v52 = vpop.f32.mrb[3].mxu1  ;;  %8266 = vmatprep.subr.bf16.mxu1 %v8994_v22  ;;  %v535_v31 = vld [vmem:[#allocation2 + $0xf30] sm:$0xff]  ;;  %v532_v22 = vld [vmem:[#allocation2 + $0xf18] sm:$0xff] }
 0x340   :  { %v9040_v40 = vcombine.high %v531_v30, %v535_v31  ;;  %v9042_v43 = vcombine.high %v532_v22, %v536_v33  ;;  %v543_v45 = vld [vmem:[#allocation2 + $0xf70] sm:$0xff]  ;;  %v540_v47 = vld [vmem:[#allocation2 + $0xf58] sm:$0xff]  ;;  %v9041_v52 = vcombine.low %v532_v22, %v536_v33 }
 0x341   :  { %v575_v23 = vld [vmem:[#allocation2 + $0x1070] sm:$0xff]  ;;  %v580_v33 = vld [vmem:[#allocation2 + $0x1098] sm:$0xff] }
 0x342   :  { %7898 = vmatpush1.bf16.msra.mxu0 %v8991_v15  ;;  %8267 = vmatpush1.bf16.msra.mxu1 %v8993_v48  ;;  %v539_v15 = vld [vmem:[#allocation2 + $0xf50] sm:$0xff]  ;;  %v544_v48 = vld [vmem:[#allocation2 + $0xf78] sm:$0xff] }
 0x343   :  { %7899 = vmatprep.subr.bf16.mxu0 %v9000_v51  ;;  %8268 = vmatprep.subr.bf16.mxu1 %v9002_v54  ;;  %v9039_v51 = vcombine.low %v531_v30, %v535_v31  ;;  %v9048_v54 = vcombine.high %v539_v15, %v543_v45  ;;  %v9050_v56 = vcombine.high %v540_v47, %v544_v48  ;;  %v579_v31 = vld [vmem:[#allocation2 + $0x1090] sm:$0xff] }
 0x344   :  { %v583_v22 = vld [vmem:[#allocation2 + $0x10b0] sm:$0xff] }
 0x346   :  { %7900 = vmatpush1.bf16.msra.mxu0 %v8999_v61  ;;  %8269 = vmatpush1.bf16.msra.mxu1 %v9001_v62  ;;  %v552_v61 = vld [vmem:[#allocation2 + $0xfb8] sm:$0xff]  ;;  %v9047_v62 = vcombine.low %v539_v15, %v543_v45  ;;  %v587_v45 = vld [vmem:[#allocation2 + $0x10d0] sm:$0xff] }
 0x347   :  { %7901 = vmatprep.subr.bf16.mxu0 %v9008_v63  ;;  %8270 = vmatprep.subr.bf16.mxu1 %v9010_v1  ;;  %v9049_v63 = vcombine.low %v540_v47, %v544_v48  ;;  %v9056_v1 = vcombine.high %v547_v58, %v551_v60  ;;  %v9058_v36 = vcombine.high %v548_v12, %v552_v61  ;;  %v591_v47 = vld [vmem:[#allocation2 + $0x10f0] sm:$0xff]  ;;  %v588_v48 = vld [vmem:[#allocation2 + $0x10d8] sm:$0xff] }
 0x34a   :  { %7902 = vmatpush1.bf16.msra.mxu0 %v9007_v5  ;;  %8271 = vmatpush1.bf16.msra.mxu1 %v9009_v6  ;;  %v560_v5 = vld [vmem:[#allocation2 + $0xff8] sm:$0xff]  ;;  %v9055_v6 = vcombine.low %v547_v58, %v551_v60  ;;  %v595_v58 = vld [vmem:[#allocation2 + $0x1110] sm:$0xff] }
 0x34b   :  { %7903 = vmatprep.subr.bf16.mxu0 %v9016_v53  ;;  %8272 = vmatprep.subr.bf16.mxu1 %v9018_v7  ;;  %v9057_v53 = vcombine.low %v548_v12, %v552_v61  ;;  %v9064_v7 = vcombine.high %v555_v3, %v559_v2  ;;  %v9066_v8 = vcombine.high %v556_v4, %v560_v5  ;;  %v599_v60 = vld [vmem:[#allocation2 + $0x1130] sm:$0xff]  ;;  %v596_v12 = vld [vmem:[#allocation2 + $0x1118] sm:$0xff] }
 0x34c   :  { %v600_v61 = vld [vmem:[#allocation2 + $0x1138] sm:$0xff] }
 0x34e   :  { %7904 = vmatpush1.bf16.msra.mxu0 %v9015_v11  ;;  %8273 = vmatpush1.bf16.msra.mxu1 %v9017_v13  ;;  %v568_v11 = vld [vmem:[#allocation2 + $0x1038] sm:$0xff]  ;;  %v9063_v13 = vcombine.low %v555_v3, %v559_v2  ;;  %v607_v3 = vld [vmem:[#allocation2 + $0x1170] sm:$0xff] }
 0x34f   :  { %7905 = vmatprep.subr.bf16.mxu0 %v9024_v14  ;;  %8274 = vmatprep.subr.bf16.mxu1 %v9026_v17  ;;  %v9065_v14 = vcombine.low %v556_v4, %v560_v5  ;;  %v9072_v17 = vcombine.high %v563_v9, %v567_v25  ;;  %v9074_v18 = vcombine.high %v564_v10, %v568_v11  ;;  %v604_v2 = vld [vmem:[#allocation2 + $0x1158] sm:$0xff] }
 0x350   :  { %v608_v4 = vld [vmem:[#allocation2 + $0x1178] sm:$0xff]  ;;  %v9103_v5 = vcombine.low %v595_v58, %v599_v60 }
 0x352   :  { %7906 = vmatpush1.bf16.msra.mxu0 %v9023_v27  ;;  %8275 = vmatpush1.bf16.msra.mxu1 %v9025_v28  ;;  %v576_v27 = vld [vmem:[#allocation2 + $0x1078] sm:$0xff]  ;;  %v9071_v28 = vcombine.low %v563_v9, %v567_v25  ;;  %v615_v9 = vld [vmem:[#allocation2 + $0x11b0] sm:$0xff] }
 0x353   :  { %7907 = vmatprep.subr.bf16.mxu0 %v9032_v57  ;;  %8276 = vmatprep.subr.bf16.mxu1 %v9034_v29  ;;  %v9073_v57 = vcombine.low %v564_v10, %v568_v11  ;;  %v9080_v29 = vcombine.high %v571_v21, %v575_v23  ;;  %v9082_v30 = vcombine.high %v572_v26, %v576_v27  ;;  %v612_v25 = vld [vmem:[#allocation2 + $0x1198] sm:$0xff] }
 0x354   :  { %v616_v10 = vld [vmem:[#allocation2 + $0x11b8] sm:$0xff] }
 0x356   :  { %7908 = vmatpush1.bf16.msra.mxu0 %v9031_v34  ;;  %8277 = vmatpush1.bf16.msra.mxu1 %v9033_v38  ;;  %v584_v34 = vld [vmem:[#allocation2 + $0x10b8] sm:$0xff]  ;;  %v9079_v38 = vcombine.low %v571_v21, %v575_v23  ;;  %v623_v21 = vld [vmem:[#allocation2 + $0x11f0] sm:$0xff] }
 0x357   :  { %7909 = vmatprep.subr.bf16.mxu0 %v9040_v40  ;;  %8278 = vmatprep.subr.bf16.mxu1 %v9042_v43  ;;  %v9081_v40 = vcombine.low %v572_v26, %v576_v27  ;;  %v9088_v43 = vcombine.high %v579_v31, %v583_v22  ;;  %v9090_v15 = vcombine.high %v580_v33, %v584_v34  ;;  %v620_v23 = vld [vmem:[#allocation2 + $0x11d8] sm:$0xff] }
 0x358   :  { %v624_v26 = vld [vmem:[#allocation2 + $0x11f8] sm:$0xff] }
 0x35a   :  { %7910 = vmatpush1.bf16.msra.mxu0 %v9039_v51  ;;  %8279 = vmatpush1.bf16.msra.mxu1 %v9041_v52  ;;  %v592_v51 = vld [vmem:[#allocation2 + $0x10f8] sm:$0xff]  ;;  %v9087_v52 = vcombine.low %v579_v31, %v583_v22  ;;  %v631_v31 = vld [vmem:[#allocation2 + $0x1230] sm:$0xff] }
 0x35b   :  { %7911 = vmatprep.subr.bf16.mxu0 %v9048_v54  ;;  %8280 = vmatprep.subr.bf16.mxu1 %v9050_v56  ;;  %v9096_v54 = vcombine.high %v587_v45, %v591_v47  ;;  %v9098_v56 = vcombine.high %v588_v48, %v592_v51  ;;  %v628_v22 = vld [vmem:[#allocation2 + $0x1218] sm:$0xff] }
 0x35e   :  { %7912 = vmatpush1.bf16.msra.mxu0 %v9047_v62  ;;  %8281 = vmatpush1.bf16.msra.mxu1 %v9049_v63  ;;  %v9095_v62 = vcombine.low %v587_v45, %v591_v47  ;;  %v9097_v63 = vcombine.low %v588_v48, %v592_v51  ;;  %v639_v45 = vld [vmem:[#allocation2 + $0x1270] sm:$0xff]  ;;  %v636_v47 = vld [vmem:[#allocation2 + $0x1258] sm:$0xff] }
 0x35f   :  { %7913 = vmatprep.subr.bf16.mxu0 %v9056_v1  ;;  %8282 = vmatprep.subr.bf16.mxu1 %v9058_v36  ;;  %v9104_v1 = vcombine.high %v595_v58, %v599_v60  ;;  %v603_v36 = vld [vmem:[#allocation2 + $0x1150] sm:$0xff]  ;;  %v640_v48 = vld [vmem:[#allocation2 + $0x1278] sm:$0xff] }
 0x360   :  { %v9111_v11 = vcombine.low %v603_v36, %v607_v3  ;;  %v647_v58 = vld [vmem:[#allocation2 + $0x12b0] sm:$0xff]  ;;  %v644_v60 = vld [vmem:[#allocation2 + $0x1298] sm:$0xff] }
 0x362   :  { %7914 = vmatpush1.bf16.msra.mxu0 %v9055_v6  ;;  %8283 = vmatpush1.bf16.msra.mxu1 %v9057_v53  ;;  %v9105_v6 = vcombine.low %v596_v12, %v600_v61  ;;  %v9112_v53 = vcombine.high %v603_v36, %v607_v3  ;;  %v655_v36 = vld [vmem:[#allocation2 + $0x12f0] sm:$0xff]  ;;  %v652_v3 = vld [vmem:[#allocation2 + $0x12d8] sm:$0xff] }
 0x363   :  { %7915 = vmatprep.subr.bf16.mxu0 %v9064_v7  ;;  %8284 = vmatprep.subr.bf16.mxu1 %v9066_v8  ;;  %v9114_v7 = vcombine.high %v604_v2, %v608_v4  ;;  %v611_v8 = vld [vmem:[#allocation2 + $0x1190] sm:$0xff] }
 0x364   :  { %v9119_v27 = vcombine.low %v611_v8, %v615_v9 }
 0x366   :  { %7916 = vmatpush1.bf16.msra.mxu0 %v9063_v13  ;;  %8285 = vmatpush1.bf16.msra.mxu1 %v9065_v14  ;;  %v9113_v13 = vcombine.low %v604_v2, %v608_v4  ;;  %v9120_v14 = vcombine.high %v611_v8, %v615_v9  ;;  %v656_v2 = vld [vmem:[#allocation2 + $0x12f8] sm:$0xff]  ;;  %v663_v8 = vld [vmem:[#allocation2 + $0x1330] sm:$0xff] }
 0x367   :  { %7926 = vmatprep.subr.bf16.mxu0 %v9072_v17  ;;  %8295 = vmatprep.subr.bf16.mxu1 %v9074_v18  ;;  %v9122_v17 = vcombine.high %v612_v25, %v616_v10  ;;  %v619_v18 = vld [vmem:[#allocation2 + $0x11d0] sm:$0xff]  ;;  %v660_v9 = vld [vmem:[#allocation2 + $0x1318] sm:$0xff] }
 0x369   :  { %7918 = vmatmul.mubr.bf16.vlgmr.msra.gmra.mrb[4].mxu0 %v10019_v55  ;;  %8287 = vmatmul.mubr.bf16.vlgmr.msra.gmra.mrb[4].mxu1 %v10019_v55  ;;  %v9089_v55 = vcombine.low %v580_v33, %v584_v34  ;;  %v632_v33 = vld [vmem:[#allocation2 + $0x1238] sm:$0xff]  ;;  %v9127_v34 = vcombine.low %v619_v18, %v623_v21 }
 0x36a   :  { %7927 = vmatpush1.bf16.msra.mxu0 %v9071_v28  ;;  %8296 = vmatpush1.bf16.msra.mxu1 %v9073_v57  ;;  %v9121_v28 = vcombine.low %v612_v25, %v616_v10  ;;  %v9128_v57 = vcombine.high %v619_v18, %v623_v21  ;;  %v664_v25 = vld [vmem:[#allocation2 + $0x1338] sm:$0xff]  ;;  %v671_v18 = vld [vmem:[#allocation2 + $0x1370] sm:$0xff] }
 0x36b   :  { %7928 = vmatprep.subr.bf16.mxu0 %v9080_v29  ;;  %8297 = vmatprep.subr.bf16.mxu1 %v9082_v30  ;;  %v9130_v29 = vcombine.high %v620_v23, %v624_v26  ;;  %v627_v30 = vld [vmem:[#allocation2 + $0x1210] sm:$0xff]  ;;  %v668_v21 = vld [vmem:[#allocation2 + $0x1358] sm:$0xff] }
 0x36c   :  { %7958 = vmatprep.mubr.bf16.mxu0 %v10028_v39  ;;  %8327 = vmatprep.mubr.bf16.mxu1 %v10028_v39  ;;  %v9106_v39 = vcombine.high %v596_v12, %v600_v61  ;;  %v9135_v51 = vcombine.low %v627_v30, %v631_v31  ;;  %v648_v12 = vld [vmem:[#allocation2 + $0x12b8] sm:$0xff] }
 0x36e   :  { %7929 = vmatpush1.bf16.msra.mxu0 %v9079_v38  ;;  %8298 = vmatpush1.bf16.msra.mxu1 %v9081_v40  ;;  %v9129_v38 = vcombine.low %v620_v23, %v624_v26  ;;  %v9136_v40 = vcombine.high %v627_v30, %v631_v31  ;;  %v672_v23 = vld [vmem:[#allocation2 + $0x1378] sm:$0xff]  ;;  %v679_v30 = vld [vmem:[#allocation2 + $0x13b0] sm:$0xff] }
 0x36f   :  { %7930 = vmatprep.subr.bf16.mxu0 %v9088_v43  ;;  %8299 = vmatprep.subr.bf16.mxu1 %v9090_v15  ;;  %v9138_v43 = vcombine.high %v628_v22, %v632_v33  ;;  %v635_v15 = vld [vmem:[#allocation2 + $0x1250] sm:$0xff]  ;;  %v676_v31 = vld [vmem:[#allocation2 + $0x1398] sm:$0xff] }
 0x370   :  { %v9143_v61 = vcombine.low %v635_v15, %v639_v45 }
 0x372   :  { %7931 = vmatpush1.bf16.msra.mxu0 %v9087_v52  ;;  %8300 = vmatpush1.bf16.msra.mxu1 %v9089_v55  ;;  %v9137_v52 = vcombine.low %v628_v22, %v632_v33  ;;  %v9144_v55 = vcombine.high %v635_v15, %v639_v45  ;;  %v680_v22 = vld [vmem:[#allocation2 + $0x13b8] sm:$0xff]  ;;  %v687_v15 = vld [vmem:[#allocation2 + $0x13f0] sm:$0xff] }
 0x373   :  { %7932 = vmatprep.subr.bf16.mxu0 %v9096_v54  ;;  %8301 = vmatprep.subr.bf16.mxu1 %v9098_v56  ;;  %v9146_v54 = vcombine.high %v636_v47, %v640_v48  ;;  %v643_v56 = vld [vmem:[#allocation2 + $0x1290] sm:$0xff]  ;;  %v684_v45 = vld [vmem:[#allocation2 + $0x13d8] sm:$0xff] }
 0x374   :  { %v9151_v4 = vcombine.low %v643_v56, %v647_v58 }
 0x376   :  { %7933 = vmatpush1.bf16.msra.mxu0 %v9095_v62  ;;  %8302 = vmatpush1.bf16.msra.mxu1 %v9097_v63  ;;  %v9145_v62 = vcombine.low %v636_v47, %v640_v48  ;;  %v9152_v63 = vcombine.high %v643_v56, %v647_v58  ;;  %v688_v47 = vld [vmem:[#allocation2 + $0x13f8] sm:$0xff]  ;;  %v695_v56 = vld [vmem:[#allocation2 + $0x1430] sm:$0xff] }
 0x377   :  { %7934 = vmatprep.subr.bf16.mxu0 %v9104_v1  ;;  %8303 = vmatprep.subr.bf16.mxu1 %v9106_v39  ;;  %v9154_v1 = vcombine.high %v644_v60, %v648_v12  ;;  %v651_v39 = vld [vmem:[#allocation2 + $0x12d0] sm:$0xff]  ;;  %v692_v58 = vld [vmem:[#allocation2 + $0x1418] sm:$0xff] }
 0x378   :  { %v9159_v10 = vcombine.low %v651_v39, %v655_v36 }
 0x37a   :  { %7935 = vmatpush1.bf16.msra.mxu0 %v9103_v5  ;;  %8304 = vmatpush1.bf16.msra.mxu1 %v9105_v6  ;;  %v9153_v5 = vcombine.low %v644_v60, %v648_v12  ;;  %v9160_v6 = vcombine.high %v651_v39, %v655_v36  ;;  %v696_v60 = vld [vmem:[#allocation2 + $0x1438] sm:$0xff]  ;;  %v703_v39 = vld [vmem:[#allocation2 + $0x1470] sm:$0xff] }
 0x37b   :  { %7936 = vmatprep.subr.bf16.mxu0 %v9112_v53  ;;  %8305 = vmatprep.subr.bf16.mxu1 %v9114_v7  ;;  %v9162_v53 = vcombine.high %v652_v3, %v656_v2  ;;  %v659_v7 = vld [vmem:[#allocation2 + $0x1310] sm:$0xff]  ;;  %v700_v36 = vld [vmem:[#allocation2 + $0x1458] sm:$0xff] }
 0x37c   :  { %v9167_v26 = vcombine.low %v659_v7, %v663_v8 }
 0x37e   :  { %7937 = vmatpush1.bf16.msra.mxu0 %v9111_v11  ;;  %8306 = vmatpush1.bf16.msra.mxu1 %v9113_v13  ;;  %v9161_v11 = vcombine.low %v652_v3, %v656_v2  ;;  %v9168_v13 = vcombine.high %v659_v7, %v663_v8  ;;  %v704_v3 = vld [vmem:[#allocation2 + $0x1478] sm:$0xff]  ;;  %v711_v7 = vld [vmem:[#allocation2 + $0x14b0] sm:$0xff] }
 0x37f   :  { %7938 = vmatprep.subr.bf16.mxu0 %v9120_v14  ;;  %8307 = vmatprep.subr.bf16.mxu1 %v9122_v17  ;;  %v9170_v14 = vcombine.high %v660_v9, %v664_v25  ;;  %v667_v17 = vld [vmem:[#allocation2 + $0x1350] sm:$0xff]  ;;  %v708_v8 = vld [vmem:[#allocation2 + $0x1498] sm:$0xff] }
 0x380   :  { %v9175_v33 = vcombine.low %v667_v17, %v671_v18 }
 0x382   :  { %7939 = vmatpush1.bf16.msra.mxu0 %v9119_v27  ;;  %8308 = vmatpush1.bf16.msra.mxu1 %v9121_v28  ;;  %v9169_v27 = vcombine.low %v660_v9, %v664_v25  ;;  %v9176_v28 = vcombine.high %v667_v17, %v671_v18  ;;  %v712_v9 = vld [vmem:[#allocation2 + $0x14b8] sm:$0xff]  ;;  %v719_v17 = vld [vmem:[#allocation2 + $0x14f0] sm:$0xff] }
 0x383   :  { %7940 = vmatprep.subr.bf16.mxu0 %v9128_v57  ;;  %8309 = vmatprep.subr.bf16.mxu1 %v9130_v29  ;;  %v9178_v57 = vcombine.high %v668_v21, %v672_v23  ;;  %v675_v29 = vld [vmem:[#allocation2 + $0x1390] sm:$0xff]  ;;  %v716_v18 = vld [vmem:[#allocation2 + $0x14d8] sm:$0xff] }
 0x384   :  { %v9183_v48 = vcombine.low %v675_v29, %v679_v30 }
 0x386   :  { %7941 = vmatpush1.bf16.msra.mxu0 %v9127_v34  ;;  %8310 = vmatpush1.bf16.msra.mxu1 %v9129_v38  ;;  %v9177_v34 = vcombine.low %v668_v21, %v672_v23  ;;  %v9184_v38 = vcombine.high %v675_v29, %v679_v30  ;;  %v720_v21 = vld [vmem:[#allocation2 + $0x14f8] sm:$0xff] }
 0x387   :  { %7942 = vmatprep.subr.bf16.mxu0 %v9136_v40  ;;  %8311 = vmatprep.subr.bf16.mxu1 %v9138_v43  ;;  %v9186_v40 = vcombine.high %v676_v31, %v680_v22  ;;  %v683_v43 = vld [vmem:[#allocation2 + $0x13d0] sm:$0xff]  ;;  %v724_v29 = vld [vmem:[#allocation2 + $0x1518] sm:$0xff] }
 0x388   :  { %v9191_v12 = vcombine.low %v683_v43, %v687_v15  ;;  %v728_v30 = vld [vmem:[#allocation2 + $0x1538] sm:$0xff] }
 0x38a   :  { %7943 = vmatpush1.bf16.msra.mxu0 %v9135_v51  ;;  %8312 = vmatpush1.bf16.msra.mxu1 %v9137_v52  ;;  %v9185_v51 = vcombine.low %v676_v31, %v680_v22  ;;  %v9192_v52 = vcombine.high %v683_v43, %v687_v15  ;;  %v9225_v22 = vcombine.low %v716_v18, %v720_v21  ;;  %v736_v43 = vld [vmem:[#allocation2 + $0x1578] sm:$0xff] }
 0x38b   :  { %7944 = vmatprep.subr.bf16.mxu0 %v9144_v55  ;;  %8313 = vmatprep.subr.bf16.mxu1 %v9146_v54  ;;  %v9194_v55 = vcombine.high %v684_v45, %v688_v47  ;;  %v691_v54 = vld [vmem:[#allocation2 + $0x1410] sm:$0xff] }
 0x38c   :  { %v9199_v2 = vcombine.low %v691_v54, %v695_v56 }
 0x38e   :  { %7945 = vmatpush1.bf16.msra.mxu0 %v9143_v61  ;;  %8314 = vmatpush1.bf16.msra.mxu1 %v9145_v62  ;;  %v9193_v61 = vcombine.low %v684_v45, %v688_v47  ;;  %v9200_v62 = vcombine.high %v691_v54, %v695_v56  ;;  %v9233_v45 = vcombine.low %v724_v29, %v728_v30  ;;  %v744_v54 = vld [vmem:[#allocation2 + $0x15b8] sm:$0xff] }
 0x38f   :  { %7946 = vmatprep.subr.bf16.mxu0 %v9152_v63  ;;  %8315 = vmatprep.subr.bf16.mxu1 %v9154_v1  ;;  %v9202_v63 = vcombine.high %v692_v58, %v696_v60  ;;  %v699_v1 = vld [vmem:[#allocation2 + $0x1450] sm:$0xff] }
 0x390   :  { %v9207_v25 = vcombine.low %v699_v1, %v703_v39 }
 0x392   :  { %7947 = vmatpush1.bf16.msra.mxu0 %v9151_v4  ;;  %8316 = vmatpush1.bf16.msra.mxu1 %v9153_v5  ;;  %v9201_v4 = vcombine.low %v692_v58, %v696_v60  ;;  %v9208_v5 = vcombine.high %v699_v1, %v703_v39  ;;  %v752_v1 = vld [vmem:[#allocation2 + $0x15f8] sm:$0xff] }
 0x393   :  { %7948 = vmatprep.subr.bf16.mxu0 %v9160_v6  ;;  %8317 = vmatprep.subr.bf16.mxu1 %v9162_v53  ;;  %v9210_v6 = vcombine.high %v700_v36, %v704_v3  ;;  %v707_v53 = vld [vmem:[#allocation2 + $0x1490] sm:$0xff] }
 0x394   :  { %v9215_v23 = vcombine.low %v707_v53, %v711_v7 }
 0x396   :  { %7949 = vmatpush1.bf16.msra.mxu0 %v9159_v10  ;;  %8318 = vmatpush1.bf16.msra.mxu1 %v9161_v11  ;;  %v9209_v10 = vcombine.low %v700_v36, %v704_v3  ;;  %v9216_v11 = vcombine.high %v707_v53, %v711_v7  ;;  %v760_v53 = vld [vmem:[#allocation2 + $0x1638] sm:$0xff] }
 0x397   :  { %7950 = vmatprep.subr.bf16.mxu0 %v9168_v13  ;;  %8319 = vmatprep.subr.bf16.mxu1 %v9170_v14  ;;  %v9218_v13 = vcombine.high %v708_v8, %v712_v9  ;;  %v715_v14 = vld [vmem:[#allocation2 + $0x14d0] sm:$0xff] }
 0x398   :  { %v9223_v31 = vcombine.low %v715_v14, %v719_v17 }
 0x39a   :  { %7951 = vmatpush1.bf16.msra.mxu0 %v9167_v26  ;;  %8320 = vmatpush1.bf16.msra.mxu1 %v9169_v27  ;;  %v9224_v26 = vcombine.high %v715_v14, %v719_v17  ;;  %v9226_v27 = vcombine.high %v716_v18, %v720_v21  ;;  %v768_v14 = vld [vmem:[#allocation2 + $0x1678] sm:$0xff] }
 0x39b   :  { %7952 = vmatprep.subr.bf16.mxu0 %v9176_v28  ;;  %8321 = vmatprep.subr.bf16.mxu1 %v9178_v57  ;;  %v723_v28 = vld [vmem:[#allocation2 + $0x1510] sm:$0xff] }
 0x39c   :  { %v727_v57 = vld [vmem:[#allocation2 + $0x1530] sm:$0xff] }
 0x39d   :  { %v9231_v15 = vcombine.low %v723_v28, %v727_v57 }
 0x39e   :  { %7953 = vmatpush1.bf16.msra.mxu0 %v9175_v33  ;;  %8322 = vmatpush1.bf16.msra.mxu1 %v9177_v34  ;;  %v9232_v33 = vcombine.high %v723_v28, %v727_v57  ;;  %v731_v34 = vld [vmem:[#allocation2 + $0x1550] sm:$0xff]  ;;  %v776_v28 = vld [vmem:[#allocation2 + $0x16b8] sm:$0xff] }
 0x39f   :  { %7954 = vmatprep.subr.bf16.mxu0 %v9184_v38  ;;  %8323 = vmatprep.subr.bf16.mxu1 %v9186_v40  ;;  %v735_v38 = vld [vmem:[#allocation2 + $0x1570] sm:$0xff]  ;;  %v732_v40 = vld [vmem:[#allocation2 + $0x1558] sm:$0xff] }
 0x3a0   :  { %v9240_v47 = vcombine.high %v731_v34, %v735_v38  ;;  %v9239_v56 = vcombine.low %v731_v34, %v735_v38  ;;  %v9241_v58 = vcombine.low %v732_v40, %v736_v43  ;;  %v784_v34 = vld [vmem:[#allocation2 + $0x16f8] sm:$0xff] }
 0x3a2   :  { %7955 = vmatpush1.bf16.msra.mxu0 %v9183_v48  ;;  %8324 = vmatpush1.bf16.msra.mxu1 %v9185_v51  ;;  %v9242_v48 = vcombine.high %v732_v40, %v736_v43  ;;  %v739_v51 = vld [vmem:[#allocation2 + $0x1590] sm:$0xff] }
 0x3a3   :  { %7956 = vmatprep.subr.bf16.mxu0 %v9192_v52  ;;  %8325 = vmatprep.subr.bf16.mxu1 %v9194_v55  ;;  %v743_v52 = vld [vmem:[#allocation2 + $0x15b0] sm:$0xff]  ;;  %v740_v55 = vld [vmem:[#allocation2 + $0x1598] sm:$0xff] }
 0x3a4   :  { %v9248_v60 = vcombine.high %v739_v51, %v743_v52  ;;  %v9247_v39 = vcombine.low %v739_v51, %v743_v52  ;;  %v9249_v36 = vcombine.low %v740_v55, %v744_v54  ;;  %v792_v51 = vld [vmem:[#allocation2 + $0x1738] sm:$0xff] }
 0x3a6   :  { %7957 = vmatpush1.bf16.msra.mxu0 %v9191_v12  ;;  %8326 = vmatpush1.bf16.msra.mxu1 %v9193_v61  ;;  %v9250_v12 = vcombine.high %v740_v55, %v744_v54  ;;  %v747_v61 = vld [vmem:[#allocation2 + $0x15d0] sm:$0xff] }
 0x3a7   :  { %7967 = vmatprep.subr.bf16.mxu0 %v9200_v62  ;;  %8336 = vmatprep.subr.bf16.mxu1 %v9202_v63  ;;  %v751_v62 = vld [vmem:[#allocation2 + $0x15f0] sm:$0xff]  ;;  %v748_v63 = vld [vmem:[#allocation2 + $0x15d8] sm:$0xff] }
 0x3a8   :  { %v9256_v3 = vcombine.high %v747_v61, %v751_v62  ;;  %v9255_v7 = vcombine.low %v747_v61, %v751_v62  ;;  %v800_v61 = vld [vmem:[#allocation2 + $0x1778] sm:$0xff] }
 0x3a9   :  { %7959 = vmatmul.mubr.bf16.vlgmr.msra.gmra.mrb[4].mxu0 %v10036_v16  ;;  %8328 = vmatmul.mubr.bf16.vlgmr.msra.gmra.mrb[4].mxu1 %v10036_v16  ;;  %v9217_v16 = vcombine.low %v708_v8, %v712_v9  ;;  %v9257_v8 = vcombine.low %v748_v63, %v752_v1 }
 0x3aa   :  { %7968 = vmatpush1.bf16.msra.mxu0 %v9199_v2  ;;  %8337 = vmatpush1.bf16.msra.mxu1 %v9201_v4  ;;  %v9258_v2 = vcombine.high %v748_v63, %v752_v1  ;;  %v755_v4 = vld [vmem:[#allocation2 + $0x1610] sm:$0xff] }
 0x3ab   :  { %7969 = vmatprep.subr.bf16.mxu0 %v9208_v5  ;;  %8338 = vmatprep.subr.bf16.mxu1 %v9210_v6  ;;  %v759_v5 = vld [vmem:[#allocation2 + $0x1630] sm:$0xff]  ;;  %v756_v6 = vld [vmem:[#allocation2 + $0x1618] sm:$0xff] }
 0x3ac   :  { %7999 = vmatprep.mubr.bf16.mxu0 %v10045_v59  ;;  %8368 = vmatprep.mubr.bf16.mxu1 %v10045_v59  ;;  %v9234_v59 = vcombine.high %v724_v29, %v728_v30  ;;  %v9264_v9 = vcombine.high %v755_v4, %v759_v5  ;;  %v9263_v17 = vcombine.low %v755_v4, %v759_v5  ;;  %v808_v4 = vld [vmem:[#allocation2 + $0x17b8] sm:$0xff] }
 0x3ad   :  { %v9265_v18 = vcombine.low %v756_v6, %v760_v53 }
 0x3ae   :  { %7970 = vmatpush1.bf16.msra.mxu0 %v9207_v25  ;;  %8339 = vmatpush1.bf16.msra.mxu1 %v9209_v10  ;;  %v9266_v25 = vcombine.high %v756_v6, %v760_v53  ;;  %v763_v10 = vld [vmem:[#allocation2 + $0x1650] sm:$0xff] }
 0x3af   :  { %7971 = vmatprep.subr.bf16.mxu0 %v9216_v11  ;;  %8340 = vmatprep.subr.bf16.mxu1 %v9218_v13  ;;  %v767_v11 = vld [vmem:[#allocation2 + $0x1670] sm:$0xff]  ;;  %v764_v13 = vld [vmem:[#allocation2 + $0x1658] sm:$0xff] }
 0x3b0   :  { %v9272_v21 = vcombine.high %v763_v10, %v767_v11  ;;  %v9271_v57 = vcombine.low %v763_v10, %v767_v11  ;;  %v9273_v29 = vcombine.low %v764_v13, %v768_v14  ;;  %v816_v10 = vld [vmem:[#allocation2 + $0x17f8] sm:$0xff] }
 0x3b2   :  { %7972 = vmatpush1.bf16.msra.mxu0 %v9215_v23  ;;  %8341 = vmatpush1.bf16.msra.mxu1 %v9217_v16  ;;  %v9274_v23 = vcombine.high %v764_v13, %v768_v14  ;;  %v771_v16 = vld [vmem:[#allocation2 + $0x1690] sm:$0xff] }
 0x3b3   :  { %7973 = vmatprep.subr.bf16.mxu0 %v9224_v26  ;;  %8342 = vmatprep.subr.bf16.mxu1 %v9226_v27  ;;  %v775_v26 = vld [vmem:[#allocation2 + $0x16b0] sm:$0xff]  ;;  %v772_v27 = vld [vmem:[#allocation2 + $0x1698] sm:$0xff] }
 0x3b4   :  { %v9280_v30 = vcombine.high %v771_v16, %v775_v26  ;;  %v9279_v38 = vcombine.low %v771_v16, %v775_v26  ;;  %v9281_v40 = vcombine.low %v772_v27, %v776_v28  ;;  %v824_v16 = vld [vmem:[#allocation2 + $0x1838] sm:$0xff] }
 0x3b6   :  { %7974 = vmatpush1.bf16.msra.mxu0 %v9223_v31  ;;  %8343 = vmatpush1.bf16.msra.mxu1 %v9225_v22  ;;  %v9282_v31 = vcombine.high %v772_v27, %v776_v28  ;;  %v779_v22 = vld [vmem:[#allocation2 + $0x16d0] sm:$0xff] }
 0x3b7   :  { %7975 = vmatprep.subr.bf16.mxu0 %v9232_v33  ;;  %8344 = vmatprep.subr.bf16.mxu1 %v9234_v59  ;;  %v783_v33 = vld [vmem:[#allocation2 + $0x16f0] sm:$0xff]  ;;  %v780_v59 = vld [vmem:[#allocation2 + $0x16d8] sm:$0xff] }
 0x3b8   :  { %v9288_v43 = vcombine.high %v779_v22, %v783_v33  ;;  %v9287_v52 = vcombine.low %v779_v22, %v783_v33  ;;  %v9289_v55 = vcombine.low %v780_v59, %v784_v34  ;;  %v832_v22 = vld [vmem:[#allocation2 + $0x1878] sm:$0xff] }
 0x3ba   :  { %7976 = vmatpush1.bf16.msra.mxu0 %v9231_v15  ;;  %8345 = vmatpush1.bf16.msra.mxu1 %v9233_v45  ;;  %v9290_v15 = vcombine.high %v780_v59, %v784_v34  ;;  %v787_v45 = vld [vmem:[#allocation2 + $0x1710] sm:$0xff] }
 0x3bb   :  { %7977 = vmatprep.subr.bf16.mxu0 %v9240_v47  ;;  %8346 = vmatprep.subr.bf16.mxu1 %v9242_v48  ;;  %v791_v47 = vld [vmem:[#allocation2 + $0x1730] sm:$0xff]  ;;  %v788_v48 = vld [vmem:[#allocation2 + $0x1718] sm:$0xff] }
 0x3bc   :  { %v9296_v54 = vcombine.high %v787_v45, %v791_v47  ;;  %v9295_v62 = vcombine.low %v787_v45, %v791_v47  ;;  %v9297_v63 = vcombine.low %v788_v48, %v792_v51  ;;  %v840_v45 = vld [vmem:[#allocation2 + $0x18b8] sm:$0xff] }
 0x3be   :  { %7978 = vmatpush1.bf16.msra.mxu0 %v9239_v56  ;;  %8347 = vmatpush1.bf16.msra.mxu1 %v9241_v58  ;;  %v9298_v56 = vcombine.high %v788_v48, %v792_v51  ;;  %v795_v58 = vld [vmem:[#allocation2 + $0x1750] sm:$0xff] }
 0x3bf   :  { %7979 = vmatprep.subr.bf16.mxu0 %v9248_v60  ;;  %8348 = vmatprep.subr.bf16.mxu1 %v9250_v12  ;;  %v799_v60 = vld [vmem:[#allocation2 + $0x1770] sm:$0xff]  ;;  %v796_v12 = vld [vmem:[#allocation2 + $0x1758] sm:$0xff] }
 0x3c0   :  { %v9304_v1 = vcombine.high %v795_v58, %v799_v60  ;;  %v9303_v5 = vcombine.low %v795_v58, %v799_v60  ;;  %v9305_v6 = vcombine.low %v796_v12, %v800_v61  ;;  %v848_v58 = vld [vmem:[#allocation2 + $0x18f8] sm:$0xff] }
 0x3c2   :  { %7980 = vmatpush1.bf16.msra.mxu0 %v9247_v39  ;;  %8349 = vmatpush1.bf16.msra.mxu1 %v9249_v36  ;;  %v9306_v39 = vcombine.high %v796_v12, %v800_v61  ;;  %v803_v36 = vld [vmem:[#allocation2 + $0x1790] sm:$0xff] }
 0x3c3   :  { %7981 = vmatprep.subr.bf16.mxu0 %v9256_v3  ;;  %8350 = vmatprep.subr.bf16.mxu1 %v9258_v2  ;;  %v807_v3 = vld [vmem:[#allocation2 + $0x17b0] sm:$0xff]  ;;  %v804_v2 = vld [vmem:[#allocation2 + $0x1798] sm:$0xff] }
 0x3c4   :  { %v9312_v53 = vcombine.high %v803_v36, %v807_v3  ;;  %v9311_v11 = vcombine.low %v803_v36, %v807_v3  ;;  %v9313_v13 = vcombine.low %v804_v2, %v808_v4 }
 0x3c6   :  { %7982 = vmatpush1.bf16.msra.mxu0 %v9255_v7  ;;  %8351 = vmatpush1.bf16.msra.mxu1 %v9257_v8  ;;  %v9314_v7 = vcombine.high %v804_v2, %v808_v4  ;;  %v811_v8 = vld [vmem:[#allocation2 + $0x17d0] sm:$0xff] }
 0x3c7   :  { %7983 = vmatprep.subr.bf16.mxu0 %v9264_v9  ;;  %8352 = vmatprep.subr.bf16.mxu1 %v9266_v25  ;;  %v815_v9 = vld [vmem:[#allocation2 + $0x17f0] sm:$0xff]  ;;  %v812_v25 = vld [vmem:[#allocation2 + $0x17d8] sm:$0xff] }
 0x3c8   :  { %v9320_v14 = vcombine.high %v811_v8, %v815_v9  ;;  %v9319_v26 = vcombine.low %v811_v8, %v815_v9  ;;  %v9321_v27 = vcombine.low %v812_v25, %v816_v10  ;;  %v859_v4 = vld [vmem:[#allocation2 + $0x1950] sm:$0xff] }
 0x3ca   :  { %7984 = vmatpush1.bf16.msra.mxu0 %v9263_v17  ;;  %8353 = vmatpush1.bf16.msra.mxu1 %v9265_v18  ;;  %v9322_v17 = vcombine.high %v812_v25, %v816_v10  ;;  %v819_v18 = vld [vmem:[#allocation2 + $0x1810] sm:$0xff] }
 0x3cb   :  { %7985 = vmatprep.subr.bf16.mxu0 %v9272_v21  ;;  %8354 = vmatprep.subr.bf16.mxu1 %v9274_v23  ;;  %v823_v21 = vld [vmem:[#allocation2 + $0x1830] sm:$0xff]  ;;  %v820_v23 = vld [vmem:[#allocation2 + $0x1818] sm:$0xff] }
 0x3cc   :  { %v9328_v28 = vcombine.high %v819_v18, %v823_v21  ;;  %v9327_v33 = vcombine.low %v819_v18, %v823_v21  ;;  %v9329_v59 = vcombine.low %v820_v23, %v824_v16  ;;  %v867_v10 = vld [vmem:[#allocation2 + $0x1990] sm:$0xff] }
 0x3ce   :  { %7986 = vmatpush1.bf16.msra.mxu0 %v9271_v57  ;;  %8355 = vmatpush1.bf16.msra.mxu1 %v9273_v29  ;;  %v9330_v57 = vcombine.high %v820_v23, %v824_v16  ;;  %v827_v29 = vld [vmem:[#allocation2 + $0x1850] sm:$0xff] }
 0x3cf   :  { %7987 = vmatprep.subr.bf16.mxu0 %v9280_v30  ;;  %8356 = vmatprep.subr.bf16.mxu1 %v9282_v31  ;;  %v831_v30 = vld [vmem:[#allocation2 + $0x1870] sm:$0xff]  ;;  %v828_v31 = vld [vmem:[#allocation2 + $0x1858] sm:$0xff] }
 0x3d0   :  { %v9336_v34 = vcombine.high %v827_v29, %v831_v30  ;;  %v9335_v47 = vcombine.low %v827_v29, %v831_v30  ;;  %v9337_v48 = vcombine.low %v828_v31, %v832_v22  ;;  %v875_v16 = vld [vmem:[#allocation2 + $0x19d0] sm:$0xff] }
 0x3d2   :  { %7988 = vmatpush1.bf16.msra.mxu0 %v9279_v38  ;;  %8357 = vmatpush1.bf16.msra.mxu1 %v9281_v40  ;;  %v9338_v38 = vcombine.high %v828_v31, %v832_v22  ;;  %v835_v40 = vld [vmem:[#allocation2 + $0x1890] sm:$0xff] }
 0x3d3   :  { %7989 = vmatprep.subr.bf16.mxu0 %v9288_v43  ;;  %8358 = vmatprep.subr.bf16.mxu1 %v9290_v15  ;;  %v839_v43 = vld [vmem:[#allocation2 + $0x18b0] sm:$0xff]  ;;  %v836_v15 = vld [vmem:[#allocation2 + $0x1898] sm:$0xff] }
 0x3d4   :  { %v9344_v51 = vcombine.high %v835_v40, %v839_v43  ;;  %v9343_v60 = vcombine.low %v835_v40, %v839_v43  ;;  %v883_v22 = vld [vmem:[#allocation2 + $0x1a10] sm:$0xff] }
 0x3d6   :  { %7990 = vmatpush1.bf16.msra.mxu0 %v9287_v52  ;;  %8359 = vmatpush1.bf16.msra.mxu1 %v9289_v55  ;;  %v9346_v52 = vcombine.high %v836_v15, %v840_v45  ;;  %v843_v55 = vld [vmem:[#allocation2 + $0x18d0] sm:$0xff] }
 0x3d7   :  { %7991 = vmatprep.subr.bf16.mxu0 %v9296_v54  ;;  %8360 = vmatprep.subr.bf16.mxu1 %v9298_v56  ;;  %v847_v54 = vld [vmem:[#allocation2 + $0x18f0] sm:$0xff]  ;;  %v844_v56 = vld [vmem:[#allocation2 + $0x18d8] sm:$0xff] }
 0x3d8   :  { %v9352_v12 = vcombine.high %v843_v55, %v847_v54  ;;  %v9354_v61 = vcombine.high %v844_v56, %v848_v58  ;;  %v9351_v36 = vcombine.low %v843_v55, %v847_v54  ;;  %v9353_v3 = vcombine.low %v844_v56, %v848_v58  ;;  %v899_v58 = vld [vmem:[#allocation2 + $0x1a90] sm:$0xff] }
 0x3da   :  { %7992 = vmatpush1.bf16.msra.mxu0 %v9295_v62  ;;  %8361 = vmatpush1.bf16.msra.mxu1 %v9297_v63  ;;  %v851_v62 = vld [vmem:[#allocation2 + $0x1910] sm:$0xff] }
 0x3db   :  { %7993 = vmatprep.subr.bf16.mxu0 %v9304_v1  ;;  %8362 = vmatprep.subr.bf16.mxu1 %v9306_v39  ;;  %v855_v63 = vld [vmem:[#allocation2 + $0x1930] sm:$0xff]  ;;  %v852_v1 = vld [vmem:[#allocation2 + $0x1918] sm:$0xff] }
 0x3dc   :  { %v856_v39 = vld [vmem:[#allocation2 + $0x1938] sm:$0xff]  ;;  %v9360_v2 = vcombine.high %v851_v62, %v855_v63 }
 0x3dd   :  { %v9361_v8 = vcombine.low %v852_v1, %v856_v39 }
 0x3de   :  { %7994 = vmatpush1.bf16.msra.mxu0 %v9303_v5  ;;  %8363 = vmatpush1.bf16.msra.mxu1 %v9305_v6  ;;  %v863_v5 = vld [vmem:[#allocation2 + $0x1970] sm:$0xff]  ;;  %v860_v6 = vld [vmem:[#allocation2 + $0x1958] sm:$0xff] }
 0x3df   :  { %7995 = vmatprep.subr.bf16.mxu0 %v9312_v53  ;;  %8364 = vmatprep.subr.bf16.mxu1 %v9314_v7  ;;  %v864_v53 = vld [vmem:[#allocation2 + $0x1978] sm:$0xff]  ;;  %v9359_v7 = vcombine.low %v851_v62, %v855_v63  ;;  %v9368_v9 = vcombine.high %v859_v4, %v863_v5 }
 0x3e0   :  { %v9370_v25 = vcombine.high %v860_v6, %v864_v53  ;;  %v9369_v18 = vcombine.low %v860_v6, %v864_v53  ;;  %v915_v53 = vld [vmem:[#allocation2 + $0x1b10] sm:$0xff] }
 0x3e2   :  { %7996 = vmatpush1.bf16.msra.mxu0 %v9311_v11  ;;  %8365 = vmatpush1.bf16.msra.mxu1 %v9313_v13  ;;  %v871_v11 = vld [vmem:[#allocation2 + $0x19b0] sm:$0xff]  ;;  %v868_v13 = vld [vmem:[#allocation2 + $0x1998] sm:$0xff] }
 0x3e3   :  { %7997 = vmatprep.subr.bf16.mxu0 %v9320_v14  ;;  %8366 = vmatprep.subr.bf16.mxu1 %v9322_v17  ;;  %v872_v14 = vld [vmem:[#allocation2 + $0x19b8] sm:$0xff]  ;;  %v9367_v17 = vcombine.low %v859_v4, %v863_v5  ;;  %v9376_v21 = vcombine.high %v867_v10, %v871_v11 }
 0x3e4   :  { %v9378_v23 = vcombine.high %v868_v13, %v872_v14  ;;  %v9377_v29 = vcombine.low %v868_v13, %v872_v14  ;;  %v923_v14 = vld [vmem:[#allocation2 + $0x1b50] sm:$0xff] }
 0x3e6   :  { %7998 = vmatpush1.bf16.msra.mxu0 %v9319_v26  ;;  %8367 = vmatpush1.bf16.msra.mxu1 %v9321_v27  ;;  %v879_v26 = vld [vmem:[#allocation2 + $0x19f0] sm:$0xff]  ;;  %v876_v27 = vld [vmem:[#allocation2 + $0x19d8] sm:$0xff] }
 0x3e7   :  { %8008 = vmatprep.subr.bf16.mxu0 %v9328_v28  ;;  %8377 = vmatprep.subr.bf16.mxu1 %v9330_v57  ;;  %v880_v28 = vld [vmem:[#allocation2 + $0x19f8] sm:$0xff]  ;;  %v9375_v57 = vcombine.low %v867_v10, %v871_v11  ;;  %v9384_v30 = vcombine.high %v875_v16, %v879_v26 }
 0x3e8   :  { %v9386_v31 = vcombine.high %v876_v27, %v880_v28  ;;  %v9385_v40 = vcombine.low %v876_v27, %v880_v28  ;;  %v931_v28 = vld [vmem:[#allocation2 + $0x1b90] sm:$0xff] }
 0x3e9   :  { %8000 = vmatmul.mubr.bf16.vlgmr.msra.gmra.mrb[4].mxu0 %v10053_v46  ;;  %8369 = vmatmul.mubr.bf16.vlgmr.msra.gmra.mrb[4].mxu1 %v10053_v46  ;;  %v9345_v46 = vcombine.low %v836_v15, %v840_v45  ;;  %v891_v45 = vld [vmem:[#allocation2 + $0x1a50] sm:$0xff] }
 0x3ea   :  { %8009 = vmatpush1.bf16.msra.mxu0 %v9327_v33  ;;  %8378 = vmatpush1.bf16.msra.mxu1 %v9329_v59  ;;  %v887_v33 = vld [vmem:[#allocation2 + $0x1a30] sm:$0xff]  ;;  %v884_v59 = vld [vmem:[#allocation2 + $0x1a18] sm:$0xff] }
 0x3eb   :  { %8010 = vmatprep.subr.bf16.mxu0 %v9336_v34  ;;  %8379 = vmatprep.subr.bf16.mxu1 %v9338_v38  ;;  %v888_v34 = vld [vmem:[#allocation2 + $0x1a38] sm:$0xff]  ;;  %v9383_v38 = vcombine.low %v875_v16, %v879_v26  ;;  %v9392_v43 = vcombine.high %v883_v22, %v887_v33 }
 0x3ec   :  { %8040 = vmatprep.mubr.bf16.mxu0 %v10062_v19  ;;  %8409 = vmatprep.mubr.bf16.mxu1 %v10062_v19  ;;  %v9362_v19 = vcombine.high %v852_v1, %v856_v39  ;;  %v9394_v15 = vcombine.high %v884_v59, %v888_v34  ;;  %v9393_v55 = vcombine.low %v884_v59, %v888_v34  ;;  %v907_v39 = vld [vmem:[#allocation2 + $0x1ad0] sm:$0xff] }
 0x3ed   :  { %v939_v34 = vld [vmem:[#allocation2 + $0x1bd0] sm:$0xff] }
 0x3ee   :  { %8011 = vmatpush1.bf16.msra.mxu0 %v9335_v47  ;;  %8380 = vmatpush1.bf16.msra.mxu1 %v9337_v48  ;;  %v895_v47 = vld [vmem:[#allocation2 + $0x1a70] sm:$0xff]  ;;  %v892_v48 = vld [vmem:[#allocation2 + $0x1a58] sm:$0xff] }
 0x3ef   :  { %8012 = vmatprep.subr.bf16.mxu0 %v9344_v51  ;;  %8381 = vmatprep.subr.bf16.mxu1 %v9346_v52  ;;  %v896_v51 = vld [vmem:[#allocation2 + $0x1a78] sm:$0xff]  ;;  %v9391_v52 = vcombine.low %v883_v22, %v887_v33  ;;  %v9400_v54 = vcombine.high %v891_v45, %v895_v47 }
 0x3f0   :  { %v9402_v56 = vcombine.high %v892_v48, %v896_v51  ;;  %v9401_v62 = vcombine.low %v892_v48, %v896_v51  ;;  %v947_v51 = vld [vmem:[#allocation2 + $0x1c10] sm:$0xff] }
 0x3f2   :  { %8013 = vmatpush1.bf16.msra.mxu0 %v9343_v60  ;;  %8382 = vmatpush1.bf16.msra.mxu1 %v9345_v46  ;;  %v903_v60 = vld [vmem:[#allocation2 + $0x1ab0] sm:$0xff]  ;;  %v900_v46 = vld [vmem:[#allocation2 + $0x1a98] sm:$0xff] }
 0x3f3   :  { %8014 = vmatprep.subr.bf16.mxu0 %v9352_v12  ;;  %8383 = vmatprep.subr.bf16.mxu1 %v9354_v61  ;;  %v904_v12 = vld [vmem:[#allocation2 + $0x1ab8] sm:$0xff]  ;;  %v9399_v61 = vcombine.low %v891_v45, %v895_v47  ;;  %v9408_v63 = vcombine.high %v899_v58, %v903_v60 }
 0x3f4   :  { %v9410_v1 = vcombine.high %v900_v46, %v904_v12  ;;  %v9409_v4 = vcombine.low %v900_v46, %v904_v12  ;;  %v955_v12 = vld [vmem:[#allocation2 + $0x1c50] sm:$0xff] }
 0x3f6   :  { %8015 = vmatpush1.bf16.msra.mxu0 %v9351_v36  ;;  %8384 = vmatpush1.bf16.msra.mxu1 %v9353_v3  ;;  %v911_v36 = vld [vmem:[#allocation2 + $0x1af0] sm:$0xff]  ;;  %v908_v3 = vld [vmem:[#allocation2 + $0x1ad8] sm:$0xff] }
 0x3f7   :  { %8016 = vmatprep.subr.bf16.mxu0 %v9360_v2  ;;  %8385 = vmatprep.subr.bf16.mxu1 %v9362_v19  ;;  %v912_v2 = vld [vmem:[#allocation2 + $0x1af8] sm:$0xff]  ;;  %v9407_v19 = vcombine.low %v899_v58, %v903_v60  ;;  %v9416_v5 = vcombine.high %v907_v39, %v911_v36 }
 0x3f8   :  { %v9418_v6 = vcombine.high %v908_v3, %v912_v2  ;;  %v9417_v10 = vcombine.low %v908_v3, %v912_v2  ;;  %v963_v2 = vld [vmem:[#allocation2 + $0x1c90] sm:$0xff] }
 0x3fa   :  { %8017 = vmatpush1.bf16.msra.mxu0 %v9359_v7  ;;  %8386 = vmatpush1.bf16.msra.mxu1 %v9361_v8  ;;  %v919_v7 = vld [vmem:[#allocation2 + $0x1b30] sm:$0xff]  ;;  %v916_v8 = vld [vmem:[#allocation2 + $0x1b18] sm:$0xff] }
 0x3fb   :  { %8018 = vmatprep.subr.bf16.mxu0 %v9368_v9  ;;  %8387 = vmatprep.subr.bf16.mxu1 %v9370_v25  ;;  %v920_v9 = vld [vmem:[#allocation2 + $0x1b38] sm:$0xff]  ;;  %v9415_v25 = vcombine.low %v907_v39, %v911_v36  ;;  %v9424_v11 = vcombine.high %v915_v53, %v919_v7 }
 0x3fc   :  { %v9426_v13 = vcombine.high %v916_v8, %v920_v9  ;;  %v9425_v16 = vcombine.low %v916_v8, %v920_v9  ;;  %v971_v9 = vld [vmem:[#allocation2 + $0x1cd0] sm:$0xff] }
 0x3fe   :  { %8019 = vmatpush1.bf16.msra.mxu0 %v9367_v17  ;;  %8388 = vmatpush1.bf16.msra.mxu1 %v9369_v18  ;;  %v927_v17 = vld [vmem:[#allocation2 + $0x1b70] sm:$0xff]  ;;  %v924_v18 = vld [vmem:[#allocation2 + $0x1b58] sm:$0xff] }
 0x3ff   :  { %8020 = vmatprep.subr.bf16.mxu0 %v9376_v21  ;;  %8389 = vmatprep.subr.bf16.mxu1 %v9378_v23  ;;  %v928_v21 = vld [vmem:[#allocation2 + $0x1b78] sm:$0xff]  ;;  %v9423_v23 = vcombine.low %v915_v53, %v919_v7  ;;  %v9432_v26 = vcombine.high %v923_v14, %v927_v17 }
 0x400   :  { %v9434_v27 = vcombine.high %v924_v18, %v928_v21  ;;  %v9433_v22 = vcombine.low %v924_v18, %v928_v21  ;;  %v979_v18 = vld [vmem:[#allocation2 + $0x1d10] sm:$0xff] }
 0x401   :  { %v983_v21 = vld [vmem:[#allocation2 + $0x1d30] sm:$0xff] }
 0x402   :  { %8021 = vmatpush1.bf16.msra.mxu0 %v9375_v57  ;;  %8390 = vmatpush1.bf16.msra.mxu1 %v9377_v29  ;;  %v935_v57 = vld [vmem:[#allocation2 + $0x1bb0] sm:$0xff]  ;;  %v932_v29 = vld [vmem:[#allocation2 + $0x1b98] sm:$0xff] }
 0x403   :  { %8022 = vmatprep.subr.bf16.mxu0 %v9384_v30  ;;  %8391 = vmatprep.subr.bf16.mxu1 %v9386_v31  ;;  %v936_v30 = vld [vmem:[#allocation2 + $0x1bb8] sm:$0xff]  ;;  %v9431_v31 = vcombine.low %v923_v14, %v927_v17  ;;  %v9440_v33 = vcombine.high %v931_v28, %v935_v57 }
 0x404   :  { %v9442_v59 = vcombine.high %v932_v29, %v936_v30  ;;  %v9441_v45 = vcombine.low %v932_v29, %v936_v30  ;;  %v991_v29 = vld [vmem:[#allocation2 + $0x1d70] sm:$0xff]  ;;  %v988_v30 = vld [vmem:[#allocation2 + $0x1d58] sm:$0xff] }
 0x406   :  { %8023 = vmatpush1.bf16.msra.mxu0 %v9383_v38  ;;  %8392 = vmatpush1.bf16.msra.mxu1 %v9385_v40  ;;  %v943_v38 = vld [vmem:[#allocation2 + $0x1bf0] sm:$0xff]  ;;  %v940_v40 = vld [vmem:[#allocation2 + $0x1bd8] sm:$0xff] }
 0x407   :  { %8024 = vmatprep.subr.bf16.mxu0 %v9392_v43  ;;  %8393 = vmatprep.subr.bf16.mxu1 %v9394_v15  ;;  %v944_v43 = vld [vmem:[#allocation2 + $0x1bf8] sm:$0xff]  ;;  %v9439_v15 = vcombine.low %v931_v28, %v935_v57  ;;  %v9448_v47 = vcombine.high %v939_v34, %v943_v38  ;;  %v9488_v28 = vcombine.high %v979_v18, %v983_v21  ;;  %v987_v57 = vld [vmem:[#allocation2 + $0x1d50] sm:$0xff] }
 0x408   :  { %v9450_v48 = vcombine.high %v940_v40, %v944_v43  ;;  %v9449_v58 = vcombine.low %v940_v40, %v944_v43  ;;  %v999_v40 = vld [vmem:[#allocation2 + $0x1db0] sm:$0xff]  ;;  %v996_v43 = vld [vmem:[#allocation2 + $0x1d98] sm:$0xff] }
 0x40a   :  { %8025 = vmatpush1.bf16.msra.mxu0 %v9391_v52  ;;  %8394 = vmatpush1.bf16.msra.mxu1 %v9393_v55  ;;  %v951_v52 = vld [vmem:[#allocation2 + $0x1c30] sm:$0xff]  ;;  %v948_v55 = vld [vmem:[#allocation2 + $0x1c18] sm:$0xff] }
 0x40b   :  { %8026 = vmatprep.subr.bf16.mxu0 %v9400_v54  ;;  %8395 = vmatprep.subr.bf16.mxu1 %v9402_v56  ;;  %v952_v54 = vld [vmem:[#allocation2 + $0x1c38] sm:$0xff]  ;;  %v9447_v56 = vcombine.low %v939_v34, %v943_v38  ;;  %v9456_v60 = vcombine.high %v947_v51, %v951_v52  ;;  %v995_v38 = vld [vmem:[#allocation2 + $0x1d90] sm:$0xff] }
 0x40c   :  { %v9458_v46 = vcombine.high %v948_v55, %v952_v54  ;;  %v9457_v39 = vcombine.low %v948_v55, %v952_v54  ;;  %v1007_v55 = vld [vmem:[#allocation2 + $0x1df0] sm:$0xff]  ;;  %v1004_v54 = vld [vmem:[#allocation2 + $0x1dd8] sm:$0xff] }
 0x40e   :  { %8027 = vmatpush1.bf16.msra.mxu0 %v9399_v61  ;;  %8396 = vmatpush1.bf16.msra.mxu1 %v9401_v62  ;;  %v959_v61 = vld [vmem:[#allocation2 + $0x1c70] sm:$0xff]  ;;  %v956_v62 = vld [vmem:[#allocation2 + $0x1c58] sm:$0xff] }
 0x40f   :  { %8028 = vmatprep.subr.bf16.mxu0 %v9408_v63  ;;  %8397 = vmatprep.subr.bf16.mxu1 %v9410_v1  ;;  %v960_v63 = vld [vmem:[#allocation2 + $0x1c78] sm:$0xff]  ;;  %v9455_v1 = vcombine.low %v947_v51, %v951_v52  ;;  %v9464_v36 = vcombine.high %v955_v12, %v959_v61  ;;  %v1003_v52 = vld [vmem:[#allocation2 + $0x1dd0] sm:$0xff] }
 0x410   :  { %v9466_v3 = vcombine.high %v956_v62, %v960_v63  ;;  %v9465_v53 = vcombine.low %v956_v62, %v960_v63  ;;  %v1015_v62 = vld [vmem:[#allocation2 + $0x1e30] sm:$0xff]  ;;  %v1012_v63 = vld [vmem:[#allocation2 + $0x1e18] sm:$0xff] }
 0x412   :  { %8029 = vmatpush1.bf16.msra.mxu0 %v9407_v19  ;;  %8398 = vmatpush1.bf16.msra.mxu1 %v9409_v4  ;;  %v967_v19 = vld [vmem:[#allocation2 + $0x1cb0] sm:$0xff]  ;;  %v964_v4 = vld [vmem:[#allocation2 + $0x1c98] sm:$0xff] }
 0x413   :  { %8030 = vmatprep.subr.bf16.mxu0 %v9416_v5  ;;  %8399 = vmatprep.subr.bf16.mxu1 %v9418_v6  ;;  %v968_v5 = vld [vmem:[#allocation2 + $0x1cb8] sm:$0xff]  ;;  %v9463_v6 = vcombine.low %v955_v12, %v959_v61  ;;  %v9472_v7 = vcombine.high %v963_v2, %v967_v19  ;;  %v1011_v61 = vld [vmem:[#allocation2 + $0x1e10] sm:$0xff] }
 0x414   :  { %v9474_v8 = vcombine.high %v964_v4, %v968_v5 }
 0x416   :  { %8031 = vmatpush1.bf16.msra.mxu0 %v9415_v25  ;;  %8400 = vmatpush1.bf16.msra.mxu1 %v9417_v10  ;;  %v975_v25 = vld [vmem:[#allocation2 + $0x1cf0] sm:$0xff]  ;;  %v972_v10 = vld [vmem:[#allocation2 + $0x1cd8] sm:$0xff] }
 0x417   :  { %8032 = vmatprep.subr.bf16.mxu0 %v9424_v11  ;;  %8401 = vmatprep.subr.bf16.mxu1 %v9426_v13  ;;  %v976_v11 = vld [vmem:[#allocation2 + $0x1cf8] sm:$0xff]  ;;  %v9471_v13 = vcombine.low %v963_v2, %v967_v19  ;;  %v9480_v14 = vcombine.high %v971_v9, %v975_v25  ;;  %v1019_v19 = vld [vmem:[#allocation2 + $0x1e50] sm:$0xff] }
 0x418   :  { %v9482_v17 = vcombine.high %v972_v10, %v976_v11 }
 0x41a   :  { %8033 = vmatpush1.bf16.msra.mxu0 %v9423_v23  ;;  %8402 = vmatpush1.bf16.msra.mxu1 %v9425_v16  ;;  %v980_v23 = vld [vmem:[#allocation2 + $0x1d18] sm:$0xff] }
 0x41b   :  { %8034 = vmatprep.subr.bf16.mxu0 %v9432_v26  ;;  %8403 = vmatprep.subr.bf16.mxu1 %v9434_v27  ;;  %v984_v16 = vld [vmem:[#allocation2 + $0x1d38] sm:$0xff]  ;;  %v9479_v26 = vcombine.low %v971_v9, %v975_v25  ;;  %v9481_v27 = vcombine.low %v972_v10, %v976_v11  ;;  %v1027_v25 = vld [vmem:[#allocation2 + $0x1e90] sm:$0xff] }
 0x41c   :  { %v1031_v10 = vld [vmem:[#allocation2 + $0x1eb0] sm:$0xff]  ;;  %v1028_v11 = vld [vmem:[#allocation2 + $0x1e98] sm:$0xff] }
 0x41e   :  { %8035 = vmatpush1.bf16.msra.mxu0 %v9431_v31  ;;  %8404 = vmatpush1.bf16.msra.mxu1 %v9433_v22  ;;  %v992_v31 = vld [vmem:[#allocation2 + $0x1d78] sm:$0xff]  ;;  %v9487_v22 = vcombine.low %v979_v18, %v983_v21  ;;  %v1035_v21 = vld [vmem:[#allocation2 + $0x1ed0] sm:$0xff] }
 0x41f   :  { %8036 = vmatprep.subr.bf16.mxu0 %v9440_v33  ;;  %8405 = vmatprep.subr.bf16.mxu1 %v9442_v59  ;;  %v9489_v33 = vcombine.low %v980_v23, %v984_v16  ;;  %v9496_v59 = vcombine.high %v987_v57, %v991_v29  ;;  %v9498_v34 = vcombine.high %v988_v30, %v992_v31 }
 0x422   :  { %8037 = vmatpush1.bf16.msra.mxu0 %v9439_v15  ;;  %8406 = vmatpush1.bf16.msra.mxu1 %v9441_v45  ;;  %v1000_v15 = vld [vmem:[#allocation2 + $0x1db8] sm:$0xff]  ;;  %v9495_v45 = vcombine.low %v987_v57, %v991_v29  ;;  %v1043_v29 = vld [vmem:[#allocation2 + $0x1f10] sm:$0xff] }
 0x423   :  { %8038 = vmatprep.subr.bf16.mxu0 %v9448_v47  ;;  %8407 = vmatprep.subr.bf16.mxu1 %v9450_v48  ;;  %v9497_v47 = vcombine.low %v988_v30, %v992_v31  ;;  %v9504_v48 = vcombine.high %v995_v38, %v999_v40  ;;  %v9506_v51 = vcombine.high %v996_v43, %v1000_v15  ;;  %v1047_v30 = vld [vmem:[#allocation2 + $0x1f30] sm:$0xff]  ;;  %v1044_v31 = vld [vmem:[#allocation2 + $0x1f18] sm:$0xff] }
 0x426   :  { %8039 = vmatpush1.bf16.msra.mxu0 %v9447_v56  ;;  %8408 = vmatpush1.bf16.msra.mxu1 %v9449_v58  ;;  %v1008_v56 = vld [vmem:[#allocation2 + $0x1df8] sm:$0xff]  ;;  %v9503_v58 = vcombine.low %v995_v38, %v999_v40  ;;  %v1051_v40 = vld [vmem:[#allocation2 + $0x1f50] sm:$0xff] }
 0x427   :  { %8049 = vmatprep.subr.bf16.mxu0 %v9456_v60  ;;  %8418 = vmatprep.subr.bf16.mxu1 %v9458_v46  ;;  %v9505_v60 = vcombine.low %v996_v43, %v1000_v15  ;;  %v9512_v46 = vcombine.high %v1003_v52, %v1007_v55  ;;  %v9514_v12 = vcombine.high %v1004_v54, %v1008_v56  ;;  %v1055_v43 = vld [vmem:[#allocation2 + $0x1f70] sm:$0xff]  ;;  %v1052_v15 = vld [vmem:[#allocation2 + $0x1f58] sm:$0xff] }
 0x429   :  { %8041 = vmatmul.mubr.bf16.vlgmr.msra.gmra.mrb[4].mxu0 %v10070_v20  ;;  %8410 = vmatmul.mubr.bf16.vlgmr.msra.gmra.mrb[4].mxu1 %v10070_v20  ;;  %v9473_v20 = vcombine.low %v964_v4, %v968_v5  ;;  %v1023_v4 = vld [vmem:[#allocation2 + $0x1e70] sm:$0xff]  ;;  %v1020_v5 = vld [vmem:[#allocation2 + $0x1e58] sm:$0xff] }
 0x42a   :  { %8050 = vmatpush1.bf16.msra.mxu0 %v9455_v1  ;;  %8419 = vmatpush1.bf16.msra.mxu1 %v9457_v39  ;;  %v1016_v1 = vld [vmem:[#allocation2 + $0x1e38] sm:$0xff]  ;;  %v9511_v39 = vcombine.low %v1003_v52, %v1007_v55  ;;  %v1059_v55 = vld [vmem:[#allocation2 + $0x1f90] sm:$0xff] }
 0x42b   :  { %8051 = vmatprep.subr.bf16.mxu0 %v9464_v36  ;;  %8420 = vmatprep.subr.bf16.mxu1 %v9466_v3  ;;  %v9513_v36 = vcombine.low %v1004_v54, %v1008_v56  ;;  %v9520_v3 = vcombine.high %v1011_v61, %v1015_v62  ;;  %v9522_v2 = vcombine.high %v1012_v63, %v1016_v1  ;;  %v1063_v54 = vld [vmem:[#allocation2 + $0x1fb0] sm:$0xff]  ;;  %v1060_v56 = vld [vmem:[#allocation2 + $0x1f98] sm:$0xff] }
 0x42c   :  { %8081 = vmatprep.mubr.bf16.mxu0 %v10079_v49  ;;  %8450 = vmatprep.mubr.bf16.mxu1 %v10079_v49  ;;  %v9490_v49 = vcombine.high %v980_v23, %v984_v16  ;;  %v1039_v23 = vld [vmem:[#allocation2 + $0x1ef0] sm:$0xff]  ;;  %v1036_v16 = vld [vmem:[#allocation2 + $0x1ed8] sm:$0xff] }
 0x42e   :  { %8052 = vmatpush1.bf16.msra.mxu0 %v9463_v6  ;;  %8421 = vmatpush1.bf16.msra.mxu1 %v9465_v53  ;;  %v1024_v6 = vld [vmem:[#allocation2 + $0x1e78] sm:$0xff]  ;;  %v9519_v53 = vcombine.low %v1011_v61, %v1015_v62  ;;  %v1067_v62 = vld [vmem:[#allocation2 + $0x1fd0] sm:$0xff] }
 0x42f   :  { %8053 = vmatprep.subr.bf16.mxu0 %v9472_v7  ;;  %8422 = vmatprep.subr.bf16.mxu1 %v9474_v8  ;;  %v9521_v7 = vcombine.low %v1012_v63, %v1016_v1  ;;  %v9528_v8 = vcombine.high %v1019_v19, %v1023_v4  ;;  %v9530_v9 = vcombine.high %v1020_v5, %v1024_v6  ;;  %v1071_v63 = vld [vmem:[#allocation2 + $0x1ff0] sm:$0xff]  ;;  %v1068_v1 = vld [vmem:[#allocation2 + $0x1fd8] sm:$0xff] }
 0x432   :  { %8054 = vmatpush1.bf16.msra.mxu0 %v9471_v13  ;;  %8423 = vmatpush1.bf16.msra.mxu1 %v9473_v20  ;;  %v1032_v13 = vld [vmem:[#allocation2 + $0x1eb8] sm:$0xff]  ;;  %v9527_v20 = vcombine.low %v1019_v19, %v1023_v4  ;;  %v1075_v4 = vld [vmem:[#allocation2 + $0x2010] sm:$0xff] }
 0x433   :  { %8055 = vmatprep.subr.bf16.mxu0 %v9480_v14  ;;  %8424 = vmatprep.subr.bf16.mxu1 %v9482_v17  ;;  %v9529_v14 = vcombine.low %v1020_v5, %v1024_v6  ;;  %v9536_v17 = vcombine.high %v1027_v25, %v1031_v10  ;;  %v9538_v18 = vcombine.high %v1028_v11, %v1032_v13  ;;  %v1079_v5 = vld [vmem:[#allocation2 + $0x2030] sm:$0xff]  ;;  %v1076_v6 = vld [vmem:[#allocation2 + $0x2018] sm:$0xff] }
 0x436   :  { %8056 = vmatpush1.bf16.msra.mxu0 %v9479_v26  ;;  %8425 = vmatpush1.bf16.msra.mxu1 %v9481_v27  ;;  %v1040_v26 = vld [vmem:[#allocation2 + $0x1ef8] sm:$0xff]  ;;  %v9535_v27 = vcombine.low %v1027_v25, %v1031_v10  ;;  %v1083_v10 = vld [vmem:[#allocation2 + $0x2050] sm:$0xff] }
 0x437   :  { %8057 = vmatprep.subr.bf16.mxu0 %v9488_v28  ;;  %8426 = vmatprep.subr.bf16.mxu1 %v9490_v49  ;;  %v9537_v28 = vcombine.low %v1028_v11, %v1032_v13  ;;  %v9544_v49 = vcombine.high %v1035_v21, %v1039_v23  ;;  %v9546_v57 = vcombine.high %v1036_v16, %v1040_v26  ;;  %v1087_v11 = vld [vmem:[#allocation2 + $0x2070] sm:$0xff]  ;;  %v1084_v13 = vld [vmem:[#allocation2 + $0x2058] sm:$0xff] }
 0x43a   :  { %8058 = vmatpush1.bf16.msra.mxu0 %v9487_v22  ;;  %8427 = vmatpush1.bf16.msra.mxu1 %v9489_v33  ;;  %v1048_v22 = vld [vmem:[#allocation2 + $0x1f38] sm:$0xff]  ;;  %v9543_v33 = vcombine.low %v1035_v21, %v1039_v23  ;;  %v1091_v23 = vld [vmem:[#allocation2 + $0x2090] sm:$0xff] }
 0x43b   :  { %8059 = vmatprep.subr.bf16.mxu0 %v9496_v59  ;;  %8428 = vmatprep.subr.bf16.mxu1 %v9498_v34  ;;  %v9545_v59 = vcombine.low %v1036_v16, %v1040_v26  ;;  %v9552_v34 = vcombine.high %v1043_v29, %v1047_v30  ;;  %v9554_v38 = vcombine.high %v1044_v31, %v1048_v22  ;;  %v1095_v16 = vld [vmem:[#allocation2 + $0x20b0] sm:$0xff]  ;;  %v1092_v26 = vld [vmem:[#allocation2 + $0x2098] sm:$0xff] }
 0x43e   :  { %8060 = vmatpush1.bf16.msra.mxu0 %v9495_v45  ;;  %8429 = vmatpush1.bf16.msra.mxu1 %v9497_v47  ;;  %v1056_v45 = vld [vmem:[#allocation2 + $0x1f78] sm:$0xff]  ;;  %v9551_v47 = vcombine.low %v1043_v29, %v1047_v30  ;;  %v1099_v30 = vld [vmem:[#allocation2 + $0x20d0] sm:$0xff] }
 0x43f   :  { %8061 = vmatprep.subr.bf16.mxu0 %v9504_v48  ;;  %8430 = vmatprep.subr.bf16.mxu1 %v9506_v51  ;;  %v9553_v48 = vcombine.low %v1044_v31, %v1048_v22  ;;  %v9560_v51 = vcombine.high %v1051_v40, %v1055_v43  ;;  %v9562_v52 = vcombine.high %v1052_v15, %v1056_v45  ;;  %v1103_v31 = vld [vmem:[#allocation2 + $0x20f0] sm:$0xff]  ;;  %v1100_v22 = vld [vmem:[#allocation2 + $0x20d8] sm:$0xff] }
 0x442   :  { %8062 = vmatpush1.bf16.msra.mxu0 %v9503_v58  ;;  %8431 = vmatpush1.bf16.msra.mxu1 %v9505_v60  ;;  %v1064_v58 = vld [vmem:[#allocation2 + $0x1fb8] sm:$0xff]  ;;  %v9559_v60 = vcombine.low %v1051_v40, %v1055_v43  ;;  %v1107_v40 = vld [vmem:[#allocation2 + $0x2110] sm:$0xff] }
 0x443   :  { %8063 = vmatprep.subr.bf16.mxu0 %v9512_v46  ;;  %8432 = vmatprep.subr.bf16.mxu1 %v9514_v12  ;;  %v9561_v46 = vcombine.low %v1052_v15, %v1056_v45  ;;  %v9568_v12 = vcombine.high %v1059_v55, %v1063_v54  ;;  %v9570_v61 = vcombine.high %v1060_v56, %v1064_v58  ;;  %v1111_v43 = vld [vmem:[#allocation2 + $0x2130] sm:$0xff]  ;;  %v1108_v15 = vld [vmem:[#allocation2 + $0x2118] sm:$0xff] }
 0x444   :  { %v1112_v45 = vld [vmem:[#allocation2 + $0x2138] sm:$0xff] }
 0x446   :  { %8064 = vmatpush1.bf16.msra.mxu0 %v9511_v39  ;;  %8433 = vmatpush1.bf16.msra.mxu1 %v9513_v36  ;;  %v1072_v39 = vld [vmem:[#allocation2 + $0x1ff8] sm:$0xff]  ;;  %v9567_v36 = vcombine.low %v1059_v55, %v1063_v54  ;;  %v1119_v55 = vld [vmem:[#allocation2 + $0x2170] sm:$0xff] }
 0x447   :  { %8065 = vmatprep.subr.bf16.mxu0 %v9520_v3  ;;  %8434 = vmatprep.subr.bf16.mxu1 %v9522_v2  ;;  %v9569_v3 = vcombine.low %v1060_v56, %v1064_v58  ;;  %v9576_v2 = vcombine.high %v1067_v62, %v1071_v63  ;;  %v9578_v19 = vcombine.high %v1068_v1, %v1072_v39  ;;  %v1116_v54 = vld [vmem:[#allocation2 + $0x2158] sm:$0xff] }
 0x448   :  { %v1120_v56 = vld [vmem:[#allocation2 + $0x2178] sm:$0xff]  ;;  %v9615_v58 = vcombine.low %v1107_v40, %v1111_v43 }
 0x44a   :  { %8066 = vmatpush1.bf16.msra.mxu0 %v9519_v53  ;;  %8435 = vmatpush1.bf16.msra.mxu1 %v9521_v7  ;;  %v1080_v53 = vld [vmem:[#allocation2 + $0x2038] sm:$0xff]  ;;  %v9575_v7 = vcombine.low %v1067_v62, %v1071_v63  ;;  %v1127_v62 = vld [vmem:[#allocation2 + $0x21b0] sm:$0xff] }
 0x44b   :  { %8067 = vmatprep.subr.bf16.mxu0 %v9528_v8  ;;  %8436 = vmatprep.subr.bf16.mxu1 %v9530_v9  ;;  %v9577_v8 = vcombine.low %v1068_v1, %v1072_v39  ;;  %v9584_v9 = vcombine.high %v1075_v4, %v1079_v5  ;;  %v9586_v25 = vcombine.high %v1076_v6, %v1080_v53  ;;  %v1124_v63 = vld [vmem:[#allocation2 + $0x2198] sm:$0xff] }
 0x44c   :  { %v1128_v1 = vld [vmem:[#allocation2 + $0x21b8] sm:$0xff] }
 0x44e   :  { %8068 = vmatpush1.bf16.msra.mxu0 %v9527_v20  ;;  %8437 = vmatpush1.bf16.msra.mxu1 %v9529_v14  ;;  %v1088_v20 = vld [vmem:[#allocation2 + $0x2078] sm:$0xff]  ;;  %v9583_v14 = vcombine.low %v1075_v4, %v1079_v5  ;;  %v1135_v4 = vld [vmem:[#allocation2 + $0x21f0] sm:$0xff] }
 0x44f   :  { %8069 = vmatprep.subr.bf16.mxu0 %v9536_v17  ;;  %8438 = vmatprep.subr.bf16.mxu1 %v9538_v18  ;;  %v9585_v17 = vcombine.low %v1076_v6, %v1080_v53  ;;  %v9592_v18 = vcombine.high %v1083_v10, %v1087_v11  ;;  %v9594_v21 = vcombine.high %v1084_v13, %v1088_v20  ;;  %v1132_v5 = vld [vmem:[#allocation2 + $0x21d8] sm:$0xff] }
 0x450   :  { %v1136_v6 = vld [vmem:[#allocation2 + $0x21f8] sm:$0xff] }
 0x452   :  { %8070 = vmatpush1.bf16.msra.mxu0 %v9535_v27  ;;  %8439 = vmatpush1.bf16.msra.mxu1 %v9537_v28  ;;  %v1096_v27 = vld [vmem:[#allocation2 + $0x20b8] sm:$0xff]  ;;  %v9591_v28 = vcombine.low %v1083_v10, %v1087_v11  ;;  %v1143_v10 = vld [vmem:[#allocation2 + $0x2230] sm:$0xff] }
 0x453   :  { %8071 = vmatprep.subr.bf16.mxu0 %v9544_v49  ;;  %8440 = vmatprep.subr.bf16.mxu1 %v9546_v57  ;;  %v9593_v49 = vcombine.low %v1084_v13, %v1088_v20  ;;  %v9600_v57 = vcombine.high %v1091_v23, %v1095_v16  ;;  %v9602_v29 = vcombine.high %v1092_v26, %v1096_v27  ;;  %v1140_v11 = vld [vmem:[#allocation2 + $0x2218] sm:$0xff] }
 0x454   :  { %v1144_v13 = vld [vmem:[#allocation2 + $0x2238] sm:$0xff] }
 0x456   :  { %8072 = vmatpush1.bf16.msra.mxu0 %v9543_v33  ;;  %8441 = vmatpush1.bf16.msra.mxu1 %v9545_v59  ;;  %v1104_v33 = vld [vmem:[#allocation2 + $0x20f8] sm:$0xff]  ;;  %v9599_v59 = vcombine.low %v1091_v23, %v1095_v16  ;;  %v1151_v23 = vld [vmem:[#allocation2 + $0x2270] sm:$0xff] }
 0x457   :  { %8073 = vmatprep.subr.bf16.mxu0 %v9552_v34  ;;  %8442 = vmatprep.subr.bf16.mxu1 %v9554_v38  ;;  %v9608_v34 = vcombine.high %v1099_v30, %v1103_v31  ;;  %v9610_v38 = vcombine.high %v1100_v22, %v1104_v33  ;;  %v1148_v16 = vld [vmem:[#allocation2 + $0x2258] sm:$0xff] }
 0x45a   :  { %8074 = vmatpush1.bf16.msra.mxu0 %v9551_v47  ;;  %8443 = vmatpush1.bf16.msra.mxu1 %v9553_v48  ;;  %v9607_v47 = vcombine.low %v1099_v30, %v1103_v31  ;;  %v9609_v48 = vcombine.low %v1100_v22, %v1104_v33  ;;  %v1159_v30 = vld [vmem:[#allocation2 + $0x22b0] sm:$0xff]  ;;  %v1156_v31 = vld [vmem:[#allocation2 + $0x2298] sm:$0xff] }
 0x45b   :  { %8075 = vmatprep.subr.bf16.mxu0 %v9560_v51  ;;  %8444 = vmatprep.subr.bf16.mxu1 %v9562_v52  ;;  %v9616_v51 = vcombine.high %v1107_v40, %v1111_v43  ;;  %v1115_v52 = vld [vmem:[#allocation2 + $0x2150] sm:$0xff]  ;;  %v1160_v22 = vld [vmem:[#allocation2 + $0x22b8] sm:$0xff] }
 0x45c   :  { %v9623_v39 = vcombine.low %v1115_v52, %v1119_v55  ;;  %v1167_v40 = vld [vmem:[#allocation2 + $0x22f0] sm:$0xff]  ;;  %v1164_v43 = vld [vmem:[#allocation2 + $0x22d8] sm:$0xff] }
 0x45e   :  { %8076 = vmatpush1.bf16.msra.mxu0 %v9559_v60  ;;  %8445 = vmatpush1.bf16.msra.mxu1 %v9561_v46  ;;  %v9617_v60 = vcombine.low %v1108_v15, %v1112_v45  ;;  %v9624_v46 = vcombine.high %v1115_v52, %v1119_v55  ;;  %v1175_v52 = vld [vmem:[#allocation2 + $0x2330] sm:$0xff]  ;;  %v1172_v55 = vld [vmem:[#allocation2 + $0x2318] sm:$0xff] }
 0x45f   :  { %8077 = vmatprep.subr.bf16.mxu0 %v9568_v12  ;;  %8446 = vmatprep.subr.bf16.mxu1 %v9570_v61  ;;  %v9626_v12 = vcombine.high %v1116_v54, %v1120_v56  ;;  %v1123_v61 = vld [vmem:[#allocation2 + $0x2190] sm:$0xff] }
 0x460   :  { %v9631_v53 = vcombine.low %v1123_v61, %v1127_v62 }
 0x462   :  { %8078 = vmatpush1.bf16.msra.mxu0 %v9567_v36  ;;  %8447 = vmatpush1.bf16.msra.mxu1 %v9569_v3  ;;  %v9625_v36 = vcombine.low %v1116_v54, %v1120_v56  ;;  %v9632_v3 = vcombine.high %v1123_v61, %v1127_v62  ;;  %v1176_v54 = vld [vmem:[#allocation2 + $0x2338] sm:$0xff]  ;;  %v1183_v61 = vld [vmem:[#allocation2 + $0x2370] sm:$0xff] }
 0x463   :  { %8079 = vmatprep.subr.bf16.mxu0 %v9576_v2  ;;  %8448 = vmatprep.subr.bf16.mxu1 %v9578_v19  ;;  %v9634_v2 = vcombine.high %v1124_v63, %v1128_v1  ;;  %v1131_v19 = vld [vmem:[#allocation2 + $0x21d0] sm:$0xff]  ;;  %v1180_v62 = vld [vmem:[#allocation2 + $0x2358] sm:$0xff] }
 0x464   :  { %v9639_v20 = vcombine.low %v1131_v19, %v1135_v4 }
 0x466   :  { %8080 = vmatpush1.bf16.msra.mxu0 %v9575_v7  ;;  %8449 = vmatpush1.bf16.msra.mxu1 %v9577_v8  ;;  %v9633_v7 = vcombine.low %v1124_v63, %v1128_v1  ;;  %v9640_v8 = vcombine.high %v1131_v19, %v1135_v4  ;;  %v1184_v63 = vld [vmem:[#allocation2 + $0x2378] sm:$0xff]  ;;  %v1191_v19 = vld [vmem:[#allocation2 + $0x23b0] sm:$0xff] }
 0x467   :  { %8090 = vmatprep.subr.bf16.mxu0 %v9584_v9  ;;  %8459 = vmatprep.subr.bf16.mxu1 %v9586_v25  ;;  %v9642_v9 = vcombine.high %v1132_v5, %v1136_v6  ;;  %v1139_v25 = vld [vmem:[#allocation2 + $0x2210] sm:$0xff]  ;;  %v1188_v4 = vld [vmem:[#allocation2 + $0x2398] sm:$0xff] }
 0x469   :  { %8082 = vmatmul.mubr.bf16.vlgmr.msra.gmra.mrb[4].mxu0 %v10087_v0  ;;  %8451 = vmatmul.mubr.bf16.vlgmr.msra.gmra.mrb[4].mxu1 %v10087_v0  ;;  %v9601_v0 = vcombine.low %v1092_v26, %v1096_v27  ;;  %v1152_v26 = vld [vmem:[#allocation2 + $0x2278] sm:$0xff]  ;;  %v9647_v27 = vcombine.low %v1139_v25, %v1143_v10 }
 0x46a   :  { %8091 = vmatpush1.bf16.msra.mxu0 %v9583_v14  ;;  %8460 = vmatpush1.bf16.msra.mxu1 %v9585_v17  ;;  %v9641_v14 = vcombine.low %v1132_v5, %v1136_v6  ;;  %v9648_v17 = vcombine.high %v1139_v25, %v1143_v10  ;;  %v1192_v5 = vld [vmem:[#allocation2 + $0x23b8] sm:$0xff]  ;;  %v1199_v25 = vld [vmem:[#allocation2 + $0x23f0] sm:$0xff] }
 0x46b   :  { %8092 = vmatprep.subr.bf16.mxu0 %v9592_v18  ;;  %8461 = vmatprep.subr.bf16.mxu1 %v9594_v21  ;;  %v9650_v18 = vcombine.high %v1140_v11, %v1144_v13  ;;  %v1147_v21 = vld [vmem:[#allocation2 + $0x2250] sm:$0xff]  ;;  %v1196_v10 = vld [vmem:[#allocation2 + $0x23d8] sm:$0xff] }
 0x46c   :  { %8122 = vmatprep.mubr.bf16.mxu0 %v10096_v24  ;;  %8491 = vmatprep.mubr.bf16.mxu1 %v10096_v24  ;;  %v9618_v24 = vcombine.high %v1108_v15, %v1112_v45  ;;  %v9655_v33 = vcombine.low %v1147_v21, %v1151_v23  ;;  %v1168_v15 = vld [vmem:[#allocation2 + $0x22f8] sm:$0xff] }
 0x46e   :  { %8093 = vmatpush1.bf16.msra.mxu0 %v9591_v28  ;;  %8462 = vmatpush1.bf16.msra.mxu1 %v9593_v49  ;;  %v9649_v28 = vcombine.low %v1140_v11, %v1144_v13  ;;  %v9656_v49 = vcombine.high %v1147_v21, %v1151_v23  ;;  %v1200_v11 = vld [vmem:[#allocation2 + $0x23f8] sm:$0xff]  ;;  %v8508_v23 = vlaneseq }
 0x46f   :  { %8094 = vmatprep.subr.bf16.mxu0 %v9600_v57  ;;  %8463 = vmatprep.subr.bf16.mxu1 %v9602_v29  ;;  %v9658_v57 = vcombine.high %v1148_v16, %v1152_v26  ;;  %v1155_v29 = vld [vmem:[#allocation2 + $0x2290] sm:$0xff]  ;;  %v9705_v21 = vcombine.low %v1196_v10, %v1200_v11 }
 0x470   :  { %v9663_v45 = vcombine.low %v1155_v29, %v1159_v30 }
 0x472   :  { %8095 = vmatpush1.bf16.msra.mxu0 %v9599_v59  ;;  %8464 = vmatpush1.bf16.msra.mxu1 %v9601_v0  ;;  %v9657_v59 = vcombine.low %v1148_v16, %v1152_v26  ;;  %v9664_v0 = vcombine.high %v1155_v29, %v1159_v30  ;;  %v8509_v16 = vshrl.u32 %v8508_v23, 7 }
 0x473   :  { %8096 = vmatprep.subr.bf16.mxu0 %v9608_v34  ;;  %8465 = vmatprep.subr.bf16.mxu1 %v9610_v38  ;;  %v9666_v34 = vcombine.high %v1156_v31, %v1160_v22  ;;  %v1163_v38 = vld [vmem:[#allocation2 + $0x22d0] sm:$0xff] }
 0x474   :  { %v9671_v56 = vcombine.low %v1163_v38, %v1167_v40  ;;  %v8510_v26 = vsub.s32 0, %v8509_v16 }
 0x476   :  { %8097 = vmatpush1.bf16.msra.mxu0 %v9607_v47  ;;  %8466 = vmatpush1.bf16.msra.mxu1 %v9609_v48  ;;  %v9665_v47 = vcombine.low %v1156_v31, %v1160_v22  ;;  %v9672_v48 = vcombine.high %v1163_v38, %v1167_v40 }
 0x477   :  { %8098 = vmatprep.subr.bf16.mxu0 %v9616_v51  ;;  %8467 = vmatprep.subr.bf16.mxu1 %v9618_v24  ;;  %v9674_v51 = vcombine.high %v1164_v43, %v1168_v15  ;;  %v1171_v24 = vld [vmem:[#allocation2 + $0x2310] sm:$0xff] }
 0x478   :  { %v9679_v1 = vcombine.low %v1171_v24, %v1175_v52 }
 0x47a   :  { %8099 = vmatpush1.bf16.msra.mxu0 %v9615_v58  ;;  %8468 = vmatpush1.bf16.msra.mxu1 %v9617_v60  ;;  %v9673_v58 = vcombine.low %v1164_v43, %v1168_v15  ;;  %v9680_v60 = vcombine.high %v1171_v24, %v1175_v52 }
 0x47b   :  { %8100 = vmatprep.subr.bf16.mxu0 %v9624_v46  ;;  %8469 = vmatprep.subr.bf16.mxu1 %v9626_v12  ;;  %v9682_v46 = vcombine.high %v1172_v55, %v1176_v54  ;;  %v1179_v12 = vld [vmem:[#allocation2 + $0x2350] sm:$0xff] }
 0x47c   :  { %v9687_v6 = vcombine.low %v1179_v12, %v1183_v61 }
 0x47e   :  { %8101 = vmatpush1.bf16.msra.mxu0 %v9623_v39  ;;  %8470 = vmatpush1.bf16.msra.mxu1 %v9625_v36  ;;  %v9681_v39 = vcombine.low %v1172_v55, %v1176_v54  ;;  %v9688_v36 = vcombine.high %v1179_v12, %v1183_v61 }
 0x47f   :  { %8102 = vmatprep.subr.bf16.mxu0 %v9632_v3  ;;  %8471 = vmatprep.subr.bf16.mxu1 %v9634_v2  ;;  %v9690_v3 = vcombine.high %v1180_v62, %v1184_v63  ;;  %v1187_v2 = vld [vmem:[#allocation2 + $0x2390] sm:$0xff] }
 0x480   :  { %v9695_v13 = vcombine.low %v1187_v2, %v1191_v19 }
 0x482   :  { %8103 = vmatpush1.bf16.msra.mxu0 %v9631_v53  ;;  %8472 = vmatpush1.bf16.msra.mxu1 %v9633_v7  ;;  %v9689_v53 = vcombine.low %v1180_v62, %v1184_v63  ;;  %v9696_v7 = vcombine.high %v1187_v2, %v1191_v19 }
 0x483   :  { %8104 = vmatprep.subr.bf16.mxu0 %v9640_v8  ;;  %8473 = vmatprep.subr.bf16.mxu1 %v9642_v9  ;;  %v9698_v8 = vcombine.high %v1188_v4, %v1192_v5  ;;  %v1195_v9 = vld [vmem:[#allocation2 + $0x23d0] sm:$0xff] }
 0x486   :  { %8105 = vmatpush1.bf16.msra.mxu0 %v9639_v20  ;;  %8474 = vmatpush1.bf16.msra.mxu1 %v9641_v14  ;;  %v9697_v20 = vcombine.low %v1188_v4, %v1192_v5  ;;  %v9704_v14 = vcombine.high %v1195_v9, %v1199_v25 }
 0x487   :  { %8106 = vmatprep.subr.bf16.mxu0 %v9648_v17  ;;  %8475 = vmatprep.subr.bf16.mxu1 %v9650_v18  ;;  %v9706_v17 = vcombine.high %v1196_v10, %v1200_v11  ;;  %v9703_v18 = vcombine.low %v1195_v9, %v1199_v25 }
 0x48a   :  { %8107 = vmatpush1.bf16.msra.mxu0 %v9647_v27  ;;  %8476 = vmatpush1.bf16.msra.mxu1 %v9649_v28  ;;  %v8506_v27 = vld [vmem:[#allocation4] sm:$0x3]  ;;  %v8514_v28 = vsub.s32 1, %v8509_v16 }
 0x48b   :  { %8108 = vmatprep.subr.bf16.mxu0 %v9656_v49  ;;  %8477 = vmatprep.subr.bf16.mxu1 %v9658_v57  ;;  %v8511_v30 = vrot.slane %v8506_v27, %v8510_v26 }
 0x48e   :  { %8109 = vmatpush1.bf16.msra.mxu0 %v9655_v33  ;;  %8478 = vmatpush1.bf16.msra.mxu1 %v9657_v59  ;;  %v8515_v59 = vrot.slane %v8506_v27, %v8514_v28 }
 0x48f   :  { %8110 = vmatprep.subr.bf16.mxu0 %v9664_v0  ;;  %8479 = vmatprep.subr.bf16.mxu1 %v9666_v34 }
 0x492   :  { %8111 = vmatpush1.bf16.msra.mxu0 %v9663_v45  ;;  %8480 = vmatpush1.bf16.msra.mxu1 %v9665_v47 }
 0x493   :  { %8112 = vmatprep.subr.bf16.mxu0 %v9672_v48  ;;  %8481 = vmatprep.subr.bf16.mxu1 %v9674_v51 }
 0x496   :  { %8113 = vmatpush1.bf16.msra.mxu0 %v9671_v56  ;;  %8482 = vmatpush1.bf16.msra.mxu1 %v9673_v58 }
 0x497   :  { %8114 = vmatprep.subr.bf16.mxu0 %v9680_v60  ;;  %8483 = vmatprep.subr.bf16.mxu1 %v9682_v46 }
 0x49a   :  { %8115 = vmatpush1.bf16.msra.mxu0 %v9679_v1  ;;  %8484 = vmatpush1.bf16.msra.mxu1 %v9681_v39 }
 0x49b   :  { %8116 = vmatprep.subr.bf16.mxu0 %v9688_v36  ;;  %8485 = vmatprep.subr.bf16.mxu1 %v9690_v3 }
 0x49e   :  { %8117 = vmatpush1.bf16.msra.mxu0 %v9687_v6  ;;  %8486 = vmatpush1.bf16.msra.mxu1 %v9689_v53 }
 0x49f   :  { %8118 = vmatprep.subr.bf16.mxu0 %v9696_v7  ;;  %8487 = vmatprep.subr.bf16.mxu1 %v9698_v8 }
 0x4a2   :  { %8119 = vmatpush1.bf16.msra.mxu0 %v9695_v13  ;;  %8488 = vmatpush1.bf16.msra.mxu1 %v9697_v20 }
 0x4a3   :  { %8120 = vmatprep.subr.bf16.mxu0 %v9704_v14  ;;  %8489 = vmatprep.subr.bf16.mxu1 %v9706_v17 }
 0x4a6   :  { %8121 = vmatpush1.bf16.msra.mxu0 %v9703_v18  ;;  %8490 = vmatpush1.bf16.msra.mxu1 %v9705_v21 }
 0x4a9   :  { %8123 = vmatmul.mubr.bf16.vlgmr.msra.gmra.mrb[4].mxu0 %v10104_v50  ;;  %8492 = vmatmul.mubr.bf16.vlgmr.msra.gmra.mrb[4].mxu1 %v10104_v50 }
 0x57c   :  { %v8124_v49 = vpop.f32.mrb[4].mxu0  ;;  %v8493_v29 = vpop.f32.mrb[4].mxu1 }
 0x57d   :  { %v8502_v57 = vmax.f32 %v8500_v41, %v8124_v49  ;;  %v8126_v31 = vpop.f32.mrb[5].mxu0  ;;  %v8495_v33 = vpop.f32.mrb[5].mxu1 }
 0x57e   :  { %v8503_v22 = vmax.f32 %v8501_v44, %v8126_v31  ;;  %v8128_v50 = vpop.f32.mrb[6].mxu0  ;;  %v8497_v34 = vpop.f32.mrb[6].mxu1 }
 0x57f   :  { %v8504_v0 = vmax.f32 %v8502_v57, %v8493_v29  ;;  %v8129_v38 = vpop.f32.mrb[7].mxu0  ;;  %v8498_v43 = vpop.f32.mrb[7].mxu1 }
 0x580   :  { %v8505_v40 = vmax.f32 %v8503_v22, %v8495_v33 }
 0x581   :  { %v8518_v15 = vadd.f32 %v8511_v30, %v8504_v0 }
 0x582   :  { %v8519_v45 = vadd.f32 %v8515_v59, %v8505_v40 }
 0x583   :  { %v8520_v47 = vmax.f32 %v8518_v15, 0.0 }
 0x584   :  { %v8521_v32 = vmax.f32 %v8519_v45, 0.0 }
 0x586   :  { %v9708_v35 = vpack.c.bf16 %v8521_v32, %v8520_v47 }
 0x588   :  { %8530 = vst [vmem:[%s10168_s3] sm:$0xff] %v9708_v35 }
 0x589   :  { %8535 = vsyncpa [#allocation3], 1 }
 0x58a   :  { %8536 = vsyncpa [#allocation5], 1 }

</bundles_post_ra>
